<compile_context>
chip_gen: v6e
topology: v6e:2x2x1
jax: 0.10.0
libtpu: 0.0.40
codegen_flags: <defaults>
</compile_context>

<pallas_src>
import jax
import jax.numpy as jnp
import numpy as np
from jax import lax
from jax.experimental import pallas as pl
from jax.experimental.pallas import tpu as pltpu

# Static model geometry from the PyTorch module.
KH1, KW1 = 20, 8        # conv1 kernel
KH2, KW2 = 10, 4        # conv2 kernel
C = 64                  # conv channels

# Older jax spells it TPUCompilerParams; newer spells it CompilerParams.
_CompilerParams = getattr(pltpu, "CompilerParams", None) or getattr(
    pltpu, "TPUCompilerParams")


def _round_up(x, m):
    return -(-x // m) * m


def _conv_geometry(H, W):
    H1, W1 = H - KH1 + 1, W - KW1 + 1      # conv1 output
    Hp, Wp = H1 // 2, W1 // 2              # after MaxPool(2,2), floor semantics
    H2, W2 = Hp - KH2 + 1, Wp - KW2 + 1    # conv2 output (pool2 = MaxPool(1,1) = id)
    return H1, W1, Hp, Wp, H2, W2


def conv_net_size(H, W):
    """Replicates the size probe in SpeechResModel.__init__."""
    _, _, _, _, H2, W2 = _conv_geometry(H, W)
    return C * H2 * W2


def _pick_batch_block(n, hp_wp):
    """Largest divisor of n such that the cols block stays modest and the grid
    keeps >= 2 steps (v7x has two TensorCores; a 1-long grid idles one)."""
    max_nb = max(1, min(16, 2048 // max(hp_wp, 1)))
    best = 1
    for d in range(1, n + 1):
        if d > max_nb:
            break
        if n % d:
            continue
        if n // d >= 2 or n == 1:
            best = d
    return best


# ----------------------------------------------------------------------------
# Fused Pallas kernel: conv1 + bias + ReLU + MaxPool(2,2) + conv2 + bias + ReLU
# Batched over NB elements per grid step.
# ----------------------------------------------------------------------------
def _make_fused_kernel(NB, Hp, Wp):
    hp_wp = Hp * Wp
    M = NB * hp_wp                              # matmul M rows per grid step
    R4 = _round_up(M + (KH2 - 1) * Wp, 8)       # rows of the kw-concat map
    P_rows = _round_up(R4 + KW2 - 1, 8)         # pooled-map rows incl. zero tail

    def kernel(cols_ref, w1_ref, b1_ref, w2_ref, b2_ref, o_ref, p_ref, p4_ref):
        # ---- conv1 (+bias,+ReLU) fused with MaxPool(2,2), batched ----------
        # cols_ref: (4, NB*Hp*Wp, KH1*KW1) bf16, im2col grouped by pool phase;
        # rows are batch-major (row = b_local*Hp*Wp + h*Wp + w).
        w1 = w1_ref[...]
        m = jnp.dot(cols_ref[0], w1, preferred_element_type=jnp.float32)
        for q in range(1, 4):
            m = jnp.maximum(
                m, jnp.dot(cols_ref[q], w1, preferred_element_type=jnp.float32))
        # Exact identity: max_q relu(a_q + b) == relu(max_q a_q + b); one
        # broadcast-add + one ReLU instead of four of each.
        pooled = jnp.maximum(m + b1_ref[...], 0.0)          # (M, C) f32

        # Pooled map stays VMEM-resident; tail rows are zeroed so wrap-around
        # contributions stay finite (they are annihilated by zero fc rows).
        p_ref[:M, :] = pooled.astype(p_ref.dtype)
        p_ref[M:, :] = jnp.zeros((P_rows - M, C), p_ref.dtype)

        # ---- K-concatenate the KW2=4 taps ONCE ------------------------------
        # p4[r, kw*C:(kw+1)*C] = pooled[r + kw]  -> conv2 tap (kh,kw) becomes a
        # lane-block of a single fat operand read at sublane offset kh*Wp.
        p4_ref[...] = jnp.concatenate(
            [p_ref[kw:kw + R4, :] for kw in range(KW2)], axis=1)

        # ---- conv2 (+bias,+ReLU): KH2 fat matmuls (M,256)@(256,64) ----------
        # Accumulated in f32 directly into the output block (no 40 tiny
        # matmuls, no per-row epilogue).  Rows whose (h,w) fall outside the
        # valid conv2 output are computed but zeroed later by the folded fc_w.
        o_ref[...] = jnp.dot(p4_ref[0:M, :], w2_ref[0],
                             preferred_element_type=jnp.float32)
        for kh in range(1, KH2):
            d = kh * Wp
            o_ref[...] += jnp.dot(p4_ref[d:d + M, :], w2_ref[kh],
                                  preferred_element_type=jnp.float32)
        o_ref[...] = jnp.maximum(o_ref[...] + b2_ref[...], 0.0)

    return kernel, R4, P_rows


# ----------------------------------------------------------------------------
# Forward pass (jit-able)
# ----------------------------------------------------------------------------
def speech_res_forward(x_nchw, params):
    N, cin, H, W = x_nchw.shape
    assert cin == 1
    H1, W1, Hp, Wp, H2, W2 = _conv_geometry(H, W)
    assert H2 >= 1 and W2 >= 1, "input too small for cnn-trad-pool2"
    K1 = KH1 * KW1
    hp_wp = Hp * Wp

    NB = _pick_batch_block(N, hp_wp)
    G = N // NB
    M = NB * hp_wp

    # im2col for conv1, grouped by the 2x2 pool phase (cheap XLA glue on the
    # 1-channel input).  Laid out (G, 4, NB*Hp*Wp, K1) so kernel matmul rows
    # are batch-major inside a group and no in-kernel reshape is needed.
    # TODO(synk): this 57x expansion could be built in-kernel from the raw
    # (H, W) tile to cut HBM traffic further; kept in XLA for robustness.
    x2 = x_nchw.reshape(N, H, W).astype(jnp.bfloat16)
    groups = []
    for dh in (0, 1):
        for dw in (0, 1):
            patches = [
                x2[:, dh + i: dh + i + 2 * Hp: 2, dw + j: dw + j + 2 * Wp: 2]
                for i in range(KH1) for j in range(KW1)
            ]
            g = jnp.stack(patches, axis=-1)                  # (N, Hp, Wp, K1)
            groups.append(g.reshape(N, hp_wp, K1))
    cols = jnp.stack(groups, axis=1)                         # (N, 4, Hp*Wp, K1)
    cols = (cols.reshape(G, NB, 4, hp_wp, K1)
                .transpose(0, 2, 1, 3, 4)
                .reshape(G, 4, M, K1))

    # TODO(synk): nn.Dropout(0.5) is a stochastic training-time op; implemented
    # as identity (inference semantics).  MaxPool2d(1,1) is an identity: skipped.

    kernel, R4, P_rows = _make_fused_kernel(NB, Hp, Wp)
    z = pl.pallas_call(
        kernel,
        out_shape=jax.ShapeDtypeStruct((G, M, C), jnp.float32),
        grid=(G,),
        in_specs=[
            pl.BlockSpec((None, 4, M, K1), lambda g: (g, 0, 0, 0)),
            pl.BlockSpec((K1, C), lambda g: (0, 0)),               # resident w1
            pl.BlockSpec((1, C), lambda g: (0, 0)),
            pl.BlockSpec((KH2, KW2 * C, C), lambda g: (0, 0, 0)),  # resident w2
            pl.BlockSpec((1, C), lambda g: (0, 0)),
        ],
        out_specs=pl.BlockSpec((None, M, C), lambda g: (g, 0, 0)),
        scratch_shapes=[
            pltpu.VMEM((P_rows, C), jnp.bfloat16),        # pooled map (+ zero tail)
            pltpu.VMEM((R4, KW2 * C), jnp.bfloat16),      # kw-concatenated map
        ],
        compiler_params=_CompilerParams(
            dimension_semantics=("parallel",),            # megacore on v7x
            vmem_limit_bytes=32 * 1024 * 1024,            # plenty: ~a few MiB used
        ),
    )(cols, params["w1"], params["b1"], params["w2"], params["b2"])

    # FC: wrap-around rows (h >= H2 or w >= W2) hit zero rows of the pre-folded
    # fc weight, so the flat slab feeds the FC directly (no gather/slice).
    z_flat = z.reshape(N, hp_wp * C)
    return z_flat @ params["fc_w"] + params["fc_b"]


# ----------------------------------------------------------------------------
# One-time weight preparation (outside the jitted forward)
# ----------------------------------------------------------------------------
def prepare_params(torch_params, image_height, image_width):
    _, _, Hp, Wp, H2, W2 = _conv_geometry(image_height, image_width)
    w1 = torch_params["conv1_w"]                  # (64, 1, 20, 8)   OIHW
    w2 = torch_params["conv2_w"]                  # (64, 64, 10, 4)  OIHW
    fc_w = torch_params["fc_w"]                   # (num_classes, C*H2*W2)
    ncls = fc_w.shape[0]

    # FC: re-ordered from PyTorch's (c, h, w) flatten to the kernel's (h, w, c),
    # transposed to (K, ncls), and zero-padded to the full pooled (Hp, Wp) grid
    # so the kernel's wrap-around rows are annihilated by zero weights.
    fc_hwc = jnp.transpose(fc_w.reshape(ncls, C, H2, W2), (2, 3, 1, 0))
    fc_full = jnp.zeros((Hp, Wp, C, ncls), jnp.float32)
    fc_full = fc_full.at[:H2, :W2].set(fc_hwc.astype(jnp.float32))

    return {
        # conv1: (KH1*KW1, C); row k = i*KW1 + j matches the im2col ordering.
        "w1": jnp.transpose(w1, (2, 3, 1, 0)).reshape(KH1 * KW1, C)
                 .astype(jnp.bfloat16),
        "b1": torch_params["conv1_b"].reshape(1, C).astype(jnp.float32),
        # conv2: (KH2, KW2*Cin, Cout); row kw*C + cin matches p4's column order.
        "w2": jnp.transpose(w2, (2, 3, 1, 0)).reshape(KH2, KW2 * C, C)
                 .astype(jnp.bfloat16),
        "b2": torch_params["conv2_b"].reshape(1, C).astype(jnp.float32),
        "fc_w": fc_full.reshape(Hp * Wp * C, ncls),
        "fc_b": torch_params["fc_b"].astype(jnp.float32),
    }


# ----------------------------------------------------------------------------
# Pure-XLA reference (f32) for validation
# ----------------------------------------------------------------------------
def reference_forward(x_nchw, torch_params):
    x = x_nchw.astype(jnp.float32)
    y = lax.conv_general_dilated(x, torch_params["conv1_w"].astype(jnp.float32),
                                 (1, 1), "VALID",
                                 dimension_numbers=("NCHW", "OIHW", "NCHW"))
    y = jax.nn.relu(y + torch_params["conv1_b"].reshape(1, C, 1, 1))
    y = lax.reduce_window(y, -jnp.inf, lax.max, (1, 1, 2, 2), (1, 1, 2, 2),
                          "VALID")
    y = lax.conv_general_dilated(y, torch_params["conv2_w"].astype(jnp.float32),
                                 (1, 1), "VALID",
                                 dimension_numbers=("NCHW", "OIHW", "NCHW"))
    y = jax.nn.relu(y + torch_params["conv2_b"].reshape(1, C, 1, 1))
    flat = y.reshape(y.shape[0], -1)              # MaxPool(1,1) == identity
    return flat @ torch_params["fc_w"].T + torch_params["fc_b"]


# ----------------------------------------------------------------------------
if __name__ == "__main__":
    num_classes = 12
    batch = 8
    image_height, image_width = 50, 20            # small KWS-like spectrogram
    last_size = conv_net_size(image_height, image_width)

    key = jax.random.PRNGKey(0)
    ks = jax.random.split(key, 7)
    torch_params = {   # PyTorch-native layouts (OIHW conv weights, (out,in) FC)
        "conv1_w": jax.random.normal(ks[0], (C, 1, KH1, KW1), jnp.float32) * 0.05,
        "conv1_b": jax.random.normal(ks[1], (C,), jnp.float32) * 0.05,
        "conv2_w": jax.random.normal(ks[2], (C, C, KH2, KW2), jnp.float32) * 0.05,
        "conv2_b": jax.random.normal(ks[3], (C,), jnp.float32) * 0.05,
        "fc_w": jax.random.normal(ks[4], (num_classes, last_size), jnp.float32) * 0.05,
        "fc_b": jax.random.normal(ks[5], (num_classes,), jnp.float32) * 0.05,
    }
    x = jax.random.normal(ks[6], (batch, 1, image_height, image_width),
                          jnp.float32)

    params = prepare_params(torch_params, image_height, image_width)

    out = jax.block_until_ready(jax.jit(speech_res_forward)(x, params))
    assert out.shape == (batch, num_classes)
    assert out.dtype == jnp.float32

    # Validate against the f32 XLA reference (relaxed tolerance: bf16 MXU path).
    ref = jax.block_until_ready(jax.jit(reference_forward)(x, torch_params))
    np.testing.assert_allclose(np.asarray(out), np.asarray(ref),
                               rtol=5e-2, atol=1e-1)

    print("KERNEL_OK")
</pallas_src>

<mosaic_0001>
module attributes {stable_mosaic.version = 11 : i64} {
  func.func @kernel(%arg0: i32, %arg1: memref<1x4x360x160xbf16, #tpu.memory_space<vmem>>, %arg2: memref<160x64xbf16, #tpu.memory_space<vmem>>, %arg3: memref<1x64xf32, #tpu.memory_space<vmem>>, %arg4: memref<10x256x64xbf16, #tpu.memory_space<vmem>>, %arg5: memref<1x64xf32, #tpu.memory_space<vmem>>, %arg6: memref<1x360x64xf32, #tpu.memory_space<vmem>>, %arg7: memref<424x64xbf16, #tpu.memory_space<vmem>>, %arg8: memref<416x256xbf16, #tpu.memory_space<vmem>>) attributes {dimension_semantics = [#tpu.dimension_semantics<parallel>], iteration_bounds = array<i64: 2>, scalar_prefetch = 0 : i64, scratch_operands = 2 : i64, tpu.core_type = #tpu.core_type<tc>, window_params = [{transform_indices = @transform_0, window_bounds = array<i64: 1, 4, 360, 160>}, {pipeline_mode = #tpu.pipeline_mode<synchronous>, transform_indices = @transform_1, window_bounds = array<i64: 160, 64>}, {pipeline_mode = #tpu.pipeline_mode<synchronous>, transform_indices = @transform_2, window_bounds = array<i64: 1, 64>}, {pipeline_mode = #tpu.pipeline_mode<synchronous>, transform_indices = @transform_3, window_bounds = array<i64: 10, 256, 64>}, {pipeline_mode = #tpu.pipeline_mode<synchronous>, transform_indices = @transform_4, window_bounds = array<i64: 1, 64>}, {transform_indices = @transform_5, window_bounds = array<i64: 1, 360, 64>}]} {
    %c0 = arith.constant 0 : index
    %c0_0 = arith.constant 0 : index
    %0 = vector.load %arg2[%c0, %c0_0] : memref<160x64xbf16, #tpu.memory_space<vmem>>, vector<160x64xbf16>
    %c0_1 = arith.constant 0 : index
    %c0_2 = arith.constant 0 : index
    %c0_3 = arith.constant 0 : index
    %c0_4 = arith.constant 0 : index
    %1 = vector.load %arg1[%c0_1, %c0_2, %c0_3, %c0_4] : memref<1x4x360x160xbf16, #tpu.memory_space<vmem>>, vector<1x1x360x160xbf16>
    %2 = vector.shape_cast %1 : vector<1x1x360x160xbf16> to vector<360x160xbf16>
    %cst = arith.constant dense<0.000000e+00> : vector<360x64xf32>
    %3 = tpu.matmul %2, %0, %cst {dimension_numbers = #tpu.dot_dimension_numbers<[1], [0], [0], [1], [0, 0, 1, 1], [], []>} : vector<360x160xbf16>, vector<160x64xbf16>, vector<360x64xf32> -> vector<360x64xf32>
    %c0_5 = arith.constant 0 : index
    %c1 = arith.constant 1 : index
    %c0_6 = arith.constant 0 : index
    %c0_7 = arith.constant 0 : index
    %4 = vector.load %arg1[%c0_5, %c1, %c0_6, %c0_7] : memref<1x4x360x160xbf16, #tpu.memory_space<vmem>>, vector<1x1x360x160xbf16>
    %5 = vector.shape_cast %4 : vector<1x1x360x160xbf16> to vector<360x160xbf16>
    %cst_8 = arith.constant dense<0.000000e+00> : vector<360x64xf32>
    %6 = tpu.matmul %5, %0, %cst_8 {dimension_numbers = #tpu.dot_dimension_numbers<[1], [0], [0], [1], [0, 0, 1, 1], [], []>} : vector<360x160xbf16>, vector<160x64xbf16>, vector<360x64xf32> -> vector<360x64xf32>
    %7 = arith.maximumf %3, %6 : vector<360x64xf32>
    %c0_9 = arith.constant 0 : index
    %c2 = arith.constant 2 : index
    %c0_10 = arith.constant 0 : index
    %c0_11 = arith.constant 0 : index
    %8 = vector.load %arg1[%c0_9, %c2, %c0_10, %c0_11] : memref<1x4x360x160xbf16, #tpu.memory_space<vmem>>, vector<1x1x360x160xbf16>
    %9 = vector.shape_cast %8 : vector<1x1x360x160xbf16> to vector<360x160xbf16>
    %cst_12 = arith.constant dense<0.000000e+00> : vector<360x64xf32>
    %10 = tpu.matmul %9, %0, %cst_12 {dimension_numbers = #tpu.dot_dimension_numbers<[1], [0], [0], [1], [0, 0, 1, 1], [], []>} : vector<360x160xbf16>, vector<160x64xbf16>, vector<360x64xf32> -> vector<360x64xf32>
    %11 = arith.maximumf %7, %10 : vector<360x64xf32>
    %c0_13 = arith.constant 0 : index
    %c3 = arith.constant 3 : index
    %c0_14 = arith.constant 0 : index
    %c0_15 = arith.constant 0 : index
    %12 = vector.load %arg1[%c0_13, %c3, %c0_14, %c0_15] : memref<1x4x360x160xbf16, #tpu.memory_space<vmem>>, vector<1x1x360x160xbf16>
    %13 = vector.shape_cast %12 : vector<1x1x360x160xbf16> to vector<360x160xbf16>
    %cst_16 = arith.constant dense<0.000000e+00> : vector<360x64xf32>
    %14 = tpu.matmul %13, %0, %cst_16 {dimension_numbers = #tpu.dot_dimension_numbers<[1], [0], [0], [1], [0, 0, 1, 1], [], []>} : vector<360x160xbf16>, vector<160x64xbf16>, vector<360x64xf32> -> vector<360x64xf32>
    %15 = arith.maximumf %11, %14 : vector<360x64xf32>
    %c0_17 = arith.constant 0 : index
    %c0_18 = arith.constant 0 : index
    %16 = vector.load %arg3[%c0_17, %c0_18] : memref<1x64xf32, #tpu.memory_space<vmem>>, vector<1x64xf32>
    %17 = vector.broadcast %16 : vector<1x64xf32> to vector<360x64xf32>
    %18 = arith.addf %15, %17 : vector<360x64xf32>
    %cst_19 = arith.constant 0.000000e+00 : f32
    %19 = vector.broadcast %cst_19 : f32 to vector<360x64xf32>
    %20 = arith.maximumf %18, %19 : vector<360x64xf32>
    %21 = arith.truncf %20 : vector<360x64xf32> to vector<360x64xbf16>
    %c0_20 = arith.constant 0 : index
    %c0_21 = arith.constant 0 : index
    %22 = vector.load %arg7[%c0_20, %c0_21] : memref<424x64xbf16, #tpu.memory_space<vmem>>, vector<360x64xbf16>
    tpu.vector_store %arg7[%c0_20, %c0_21], %21 {strides = array<i32>} : memref<424x64xbf16, #tpu.memory_space<vmem>>, vector<360x64xbf16>,
    %cst_22 = arith.constant 0.000000e+00 : bf16
    %23 = vector.broadcast %cst_22 : bf16 to vector<64x64xbf16>
    %c360 = arith.constant 360 : index
    %c0_23 = arith.constant 0 : index
    %24 = vector.load %arg7[%c360, %c0_23] : memref<424x64xbf16, #tpu.memory_space<vmem>>, vector<64x64xbf16>
    tpu.vector_store %arg7[%c360, %c0_23], %23 {strides = array<i32>} : memref<424x64xbf16, #tpu.memory_space<vmem>>, vector<64x64xbf16>,
    %c0_24 = arith.constant 0 : index
    %c0_25 = arith.constant 0 : index
    %25 = vector.load %arg7[%c0_24, %c0_25] : memref<424x64xbf16, #tpu.memory_space<vmem>>, vector<416x64xbf16>
    %c1_26 = arith.constant 1 : index
    %c0_27 = arith.constant 0 : index
    %26 = vector.load %arg7[%c1_26, %c0_27] : memref<424x64xbf16, #tpu.memory_space<vmem>>, vector<416x64xbf16>
    %c2_28 = arith.constant 2 : index
    %c0_29 = arith.constant 0 : index
    %27 = vector.load %arg7[%c2_28, %c0_29] : memref<424x64xbf16, #tpu.memory_space<vmem>>, vector<416x64xbf16>
    %c3_30 = arith.constant 3 : index
    %c0_31 = arith.constant 0 : index
    %28 = vector.load %arg7[%c3_30, %c0_31] : memref<424x64xbf16, #tpu.memory_space<vmem>>, vector<416x64xbf16>
    %29 = tpu.concatenate %25, %26, %27, %28 in 1 : vector<416x64xbf16>, vector<416x64xbf16>, vector<416x64xbf16>, vector<416x64xbf16> -> vector<416x256xbf16>
    %c0_32 = arith.constant 0 : index
    %c0_33 = arith.constant 0 : index
    %30 = vector.load %arg8[%c0_32, %c0_33] : memref<416x256xbf16, #tpu.memory_space<vmem>>, vector<416x256xbf16>
    tpu.vector_store %arg8[%c0_32, %c0_33], %29 {strides = array<i32>} : memref<416x256xbf16, #tpu.memory_space<vmem>>, vector<416x256xbf16>,
    %c0_34 = arith.constant 0 : index
    %c0_35 = arith.constant 0 : index
    %31 = vector.load %arg8[%c0_34, %c0_35] : memref<416x256xbf16, #tpu.memory_space<vmem>>, vector<360x256xbf16>
    %c0_36 = arith.constant 0 : index
    %c0_37 = arith.constant 0 : index
    %c0_38 = arith.constant 0 : index
    %32 = vector.load %arg4[%c0_36, %c0_37, %c0_38] : memref<10x256x64xbf16, #tpu.memory_space<vmem>>, vector<1x256x64xbf16>
    %33 = vector.shape_cast %32 : vector<1x256x64xbf16> to vector<256x64xbf16>
    %cst_39 = arith.constant dense<0.000000e+00> : vector<360x64xf32>
    %34 = tpu.matmul %31, %33, %cst_39 {dimension_numbers = #tpu.dot_dimension_numbers<[1], [0], [0], [1], [0, 0, 1, 1], [], []>} : vector<360x256xbf16>, vector<256x64xbf16>, vector<360x64xf32> -> vector<360x64xf32>
    %c0_40 = arith.constant 0 : index
    %c0_41 = arith.constant 0 : index
    %c0_42 = arith.constant 0 : index
    %35 = vector.load %arg6[%c0_40, %c0_41, %c0_42] : memref<1x360x64xf32, #tpu.memory_space<vmem>>, vector<1x360x64xf32>
    %36 = vector.shape_cast %35 : vector<1x360x64xf32> to vector<360x64xf32>
    %37 = vector.shape_cast %34 : vector<360x64xf32> to vector<1x360x64xf32>
    tpu.vector_store %arg6[%c0_40, %c0_41, %c0_42], %37 {strides = array<i32>} : memref<1x360x64xf32, #tpu.memory_space<vmem>>, vector<1x360x64xf32>,
    %c0_43 = arith.constant 0 : index
    %c0_44 = arith.constant 0 : index
    %c0_45 = arith.constant 0 : index
    %38 = vector.load %arg6[%c0_43, %c0_44, %c0_45] : memref<1x360x64xf32, #tpu.memory_space<vmem>>, vector<1x360x64xf32>
    %39 = vector.shape_cast %38 : vector<1x360x64xf32> to vector<360x64xf32>
    %c6 = arith.constant 6 : index
    %c0_46 = arith.constant 0 : index
    %40 = vector.load %arg8[%c6, %c0_46] : memref<416x256xbf16, #tpu.memory_space<vmem>>, vector<360x256xbf16>
    %c1_47 = arith.constant 1 : index
    %c0_48 = arith.constant 0 : index
    %c0_49 = arith.constant 0 : index
    %41 = vector.load %arg4[%c1_47, %c0_48, %c0_49] : memref<10x256x64xbf16, #tpu.memory_space<vmem>>, vector<1x256x64xbf16>
    %42 = vector.shape_cast %41 : vector<1x256x64xbf16> to vector<256x64xbf16>
    %cst_50 = arith.constant dense<0.000000e+00> : vector<360x64xf32>
    %43 = tpu.matmul %40, %42, %cst_50 {dimension_numbers = #tpu.dot_dimension_numbers<[1], [0], [0], [1], [0, 0, 1, 1], [], []>} : vector<360x256xbf16>, vector<256x64xbf16>, vector<360x64xf32> -> vector<360x64xf32>
    %44 = arith.addf %39, %43 : vector<360x64xf32>
    %c0_51 = arith.constant 0 : index
    %c0_52 = arith.constant 0 : index
    %c0_53 = arith.constant 0 : index
    %45 = vector.load %arg6[%c0_51, %c0_52, %c0_53] : memref<1x360x64xf32, #tpu.memory_space<vmem>>, vector<1x360x64xf32>
    %46 = vector.shape_cast %45 : vector<1x360x64xf32> to vector<360x64xf32>
    %47 = vector.shape_cast %44 : vector<360x64xf32> to vector<1x360x64xf32>
    tpu.vector_store %arg6[%c0_51, %c0_52, %c0_53], %47 {strides = array<i32>} : memref<1x360x64xf32, #tpu.memory_space<vmem>>, vector<1x360x64xf32>,
    %c0_54 = arith.constant 0 : index
    %c0_55 = arith.constant 0 : index
    %c0_56 = arith.constant 0 : index
    %48 = vector.load %arg6[%c0_54, %c0_55, %c0_56] : memref<1x360x64xf32, #tpu.memory_space<vmem>>, vector<1x360x64xf32>
    %49 = vector.shape_cast %48 : vector<1x360x64xf32> to vector<360x64xf32>
    %c12 = arith.constant 12 : index
    %c0_57 = arith.constant 0 : index
    %50 = vector.load %arg8[%c12, %c0_57] : memref<416x256xbf16, #tpu.memory_space<vmem>>, vector<360x256xbf16>
    %c2_58 = arith.constant 2 : index
    %c0_59 = arith.constant 0 : index
    %c0_60 = arith.constant 0 : index
    %51 = vector.load %arg4[%c2_58, %c0_59, %c0_60] : memref<10x256x64xbf16, #tpu.memory_space<vmem>>, vector<1x256x64xbf16>
    %52 = vector.shape_cast %51 : vector<1x256x64xbf16> to vector<256x64xbf16>
    %cst_61 = arith.constant dense<0.000000e+00> : vector<360x64xf32>
    %53 = tpu.matmul %50, %52, %cst_61 {dimension_numbers = #tpu.dot_dimension_numbers<[1], [0], [0], [1], [0, 0, 1, 1], [], []>} : vector<360x256xbf16>, vector<256x64xbf16>, vector<360x64xf32> -> vector<360x64xf32>
    %54 = arith.addf %49, %53 : vector<360x64xf32>
    %c0_62 = arith.constant 0 : index
    %c0_63 = arith.constant 0 : index
    %c0_64 = arith.constant 0 : index
    %55 = vector.load %arg6[%c0_62, %c0_63, %c0_64] : memref<1x360x64xf32, #tpu.memory_space<vmem>>, vector<1x360x64xf32>
    %56 = vector.shape_cast %55 : vector<1x360x64xf32> to vector<360x64xf32>
    %57 = vector.shape_cast %54 : vector<360x64xf32> to vector<1x360x64xf32>
    tpu.vector_store %arg6[%c0_62, %c0_63, %c0_64], %57 {strides = array<i32>} : memref<1x360x64xf32, #tpu.memory_space<vmem>>, vector<1x360x64xf32>,
    %c0_65 = arith.constant 0 : index
    %c0_66 = arith.constant 0 : index
    %c0_67 = arith.constant 0 : index
    %58 = vector.load %arg6[%c0_65, %c0_66, %c0_67] : memref<1x360x64xf32, #tpu.memory_space<vmem>>, vector<1x360x64xf32>
    %59 = vector.shape_cast %58 : vector<1x360x64xf32> to vector<360x64xf32>
    %c18 = arith.constant 18 : index
    %c0_68 = arith.constant 0 : index
    %60 = vector.load %arg8[%c18, %c0_68] : memref<416x256xbf16, #tpu.memory_space<vmem>>, vector<360x256xbf16>
    %c3_69 = arith.constant 3 : index
    %c0_70 = arith.constant 0 : index
    %c0_71 = arith.constant 0 : index
    %61 = vector.load %arg4[%c3_69, %c0_70, %c0_71] : memref<10x256x64xbf16, #tpu.memory_space<vmem>>, vector<1x256x64xbf16>
    %62 = vector.shape_cast %61 : vector<1x256x64xbf16> to vector<256x64xbf16>
    %cst_72 = arith.constant dense<0.000000e+00> : vector<360x64xf32>
    %63 = tpu.matmul %60, %62, %cst_72 {dimension_numbers = #tpu.dot_dimension_numbers<[1], [0], [0], [1], [0, 0, 1, 1], [], []>} : vector<360x256xbf16>, vector<256x64xbf16>, vector<360x64xf32> -> vector<360x64xf32>
    %64 = arith.addf %59, %63 : vector<360x64xf32>
    %c0_73 = arith.constant 0 : index
    %c0_74 = arith.constant 0 : index
    %c0_75 = arith.constant 0 : index
    %65 = vector.load %arg6[%c0_73, %c0_74, %c0_75] : memref<1x360x64xf32, #tpu.memory_space<vmem>>, vector<1x360x64xf32>
    %66 = vector.shape_cast %65 : vector<1x360x64xf32> to vector<360x64xf32>
    %67 = vector.shape_cast %64 : vector<360x64xf32> to vector<1x360x64xf32>
    tpu.vector_store %arg6[%c0_73, %c0_74, %c0_75], %67 {strides = array<i32>} : memref<1x360x64xf32, #tpu.memory_space<vmem>>, vector<1x360x64xf32>,
    %c0_76 = arith.constant 0 : index
    %c0_77 = arith.constant 0 : index
    %c0_78 = arith.constant 0 : index
    %68 = vector.load %arg6[%c0_76, %c0_77, %c0_78] : memref<1x360x64xf32, #tpu.memory_space<vmem>>, vector<1x360x64xf32>
    %69 = vector.shape_cast %68 : vector<1x360x64xf32> to vector<360x64xf32>
    %c24 = arith.constant 24 : index
    %c0_79 = arith.constant 0 : index
    %70 = vector.load %arg8[%c24, %c0_79] : memref<416x256xbf16, #tpu.memory_space<vmem>>, vector<360x256xbf16>
    %c4 = arith.constant 4 : index
    %c0_80 = arith.constant 0 : index
    %c0_81 = arith.constant 0 : index
    %71 = vector.load %arg4[%c4, %c0_80, %c0_81] : memref<10x256x64xbf16, #tpu.memory_space<vmem>>, vector<1x256x64xbf16>
    %72 = vector.shape_cast %71 : vector<1x256x64xbf16> to vector<256x64xbf16>
    %cst_82 = arith.constant dense<0.000000e+00> : vector<360x64xf32>
    %73 = tpu.matmul %70, %72, %cst_82 {dimension_numbers = #tpu.dot_dimension_numbers<[1], [0], [0], [1], [0, 0, 1, 1], [], []>} : vector<360x256xbf16>, vector<256x64xbf16>, vector<360x64xf32> -> vector<360x64xf32>
    %74 = arith.addf %69, %73 : vector<360x64xf32>
    %c0_83 = arith.constant 0 : index
    %c0_84 = arith.constant 0 : index
    %c0_85 = arith.constant 0 : index
    %75 = vector.load %arg6[%c0_83, %c0_84, %c0_85] : memref<1x360x64xf32, #tpu.memory_space<vmem>>, vector<1x360x64xf32>
    %76 = vector.shape_cast %75 : vector<1x360x64xf32> to vector<360x64xf32>
    %77 = vector.shape_cast %74 : vector<360x64xf32> to vector<1x360x64xf32>
    tpu.vector_store %arg6[%c0_83, %c0_84, %c0_85], %77 {strides = array<i32>} : memref<1x360x64xf32, #tpu.memory_space<vmem>>, vector<1x360x64xf32>,
    %c0_86 = arith.constant 0 : index
    %c0_87 = arith.constant 0 : index
    %c0_88 = arith.constant 0 : index
    %78 = vector.load %arg6[%c0_86, %c0_87, %c0_88] : memref<1x360x64xf32, #tpu.memory_space<vmem>>, vector<1x360x64xf32>
    %79 = vector.shape_cast %78 : vector<1x360x64xf32> to vector<360x64xf32>
    %c30 = arith.constant 30 : index
    %c0_89 = arith.constant 0 : index
    %80 = vector.load %arg8[%c30, %c0_89] : memref<416x256xbf16, #tpu.memory_space<vmem>>, vector<360x256xbf16>
    %c5 = arith.constant 5 : index
    %c0_90 = arith.constant 0 : index
    %c0_91 = arith.constant 0 : index
    %81 = vector.load %arg4[%c5, %c0_90, %c0_91] : memref<10x256x64xbf16, #tpu.memory_space<vmem>>, vector<1x256x64xbf16>
    %82 = vector.shape_cast %81 : vector<1x256x64xbf16> to vector<256x64xbf16>
    %cst_92 = arith.constant dense<0.000000e+00> : vector<360x64xf32>
    %83 = tpu.matmul %80, %82, %cst_92 {dimension_numbers = #tpu.dot_dimension_numbers<[1], [0], [0], [1], [0, 0, 1, 1], [], []>} : vector<360x256xbf16>, vector<256x64xbf16>, vector<360x64xf32> -> vector<360x64xf32>
    %84 = arith.addf %79, %83 : vector<360x64xf32>
    %c0_93 = arith.constant 0 : index
    %c0_94 = arith.constant 0 : index
    %c0_95 = arith.constant 0 : index
    %85 = vector.load %arg6[%c0_93, %c0_94, %c0_95] : memref<1x360x64xf32, #tpu.memory_space<vmem>>, vector<1x360x64xf32>
    %86 = vector.shape_cast %85 : vector<1x360x64xf32> to vector<360x64xf32>
    %87 = vector.shape_cast %84 : vector<360x64xf32> to vector<1x360x64xf32>
    tpu.vector_store %arg6[%c0_93, %c0_94, %c0_95], %87 {strides = array<i32>} : memref<1x360x64xf32, #tpu.memory_space<vmem>>, vector<1x360x64xf32>,
    %c0_96 = arith.constant 0 : index
    %c0_97 = arith.constant 0 : index
    %c0_98 = arith.constant 0 : index
    %88 = vector.load %arg6[%c0_96, %c0_97, %c0_98] : memref<1x360x64xf32, #tpu.memory_space<vmem>>, vector<1x360x64xf32>
    %89 = vector.shape_cast %88 : vector<1x360x64xf32> to vector<360x64xf32>
    %c36 = arith.constant 36 : index
    %c0_99 = arith.constant 0 : index
    %90 = vector.load %arg8[%c36, %c0_99] : memref<416x256xbf16, #tpu.memory_space<vmem>>, vector<360x256xbf16>
    %c6_100 = arith.constant 6 : index
    %c0_101 = arith.constant 0 : index
    %c0_102 = arith.constant 0 : index
    %91 = vector.load %arg4[%c6_100, %c0_101, %c0_102] : memref<10x256x64xbf16, #tpu.memory_space<vmem>>, vector<1x256x64xbf16>
    %92 = vector.shape_cast %91 : vector<1x256x64xbf16> to vector<256x64xbf16>
    %cst_103 = arith.constant dense<0.000000e+00> : vector<360x64xf32>
    %93 = tpu.matmul %90, %92, %cst_103 {dimension_numbers = #tpu.dot_dimension_numbers<[1], [0], [0], [1], [0, 0, 1, 1], [], []>} : vector<360x256xbf16>, vector<256x64xbf16>, vector<360x64xf32> -> vector<360x64xf32>
    %94 = arith.addf %89, %93 : vector<360x64xf32>
    %c0_104 = arith.constant 0 : index
    %c0_105 = arith.constant 0 : index
    %c0_106 = arith.constant 0 : index
    %95 = vector.load %arg6[%c0_104, %c0_105, %c0_106] : memref<1x360x64xf32, #tpu.memory_space<vmem>>, vector<1x360x64xf32>
    %96 = vector.shape_cast %95 : vector<1x360x64xf32> to vector<360x64xf32>
    %97 = vector.shape_cast %94 : vector<360x64xf32> to vector<1x360x64xf32>
    tpu.vector_store %arg6[%c0_104, %c0_105, %c0_106], %97 {strides = array<i32>} : memref<1x360x64xf32, #tpu.memory_space<vmem>>, vector<1x360x64xf32>,
    %c0_107 = arith.constant 0 : index
    %c0_108 = arith.constant 0 : index
    %c0_109 = arith.constant 0 : index
    %98 = vector.load %arg6[%c0_107, %c0_108, %c0_109] : memref<1x360x64xf32, #tpu.memory_space<vmem>>, vector<1x360x64xf32>
    %99 = vector.shape_cast %98 : vector<1x360x64xf32> to vector<360x64xf32>
    %c42 = arith.constant 42 : index
    %c0_110 = arith.constant 0 : index
    %100 = vector.load %arg8[%c42, %c0_110] : memref<416x256xbf16, #tpu.memory_space<vmem>>, vector<360x256xbf16>
    %c7 = arith.constant 7 : index
    %c0_111 = arith.constant 0 : index
    %c0_112 = arith.constant 0 : index
    %101 = vector.load %arg4[%c7, %c0_111, %c0_112] : memref<10x256x64xbf16, #tpu.memory_space<vmem>>, vector<1x256x64xbf16>
    %102 = vector.shape_cast %101 : vector<1x256x64xbf16> to vector<256x64xbf16>
    %cst_113 = arith.constant dense<0.000000e+00> : vector<360x64xf32>
    %103 = tpu.matmul %100, %102, %cst_113 {dimension_numbers = #tpu.dot_dimension_numbers<[1], [0], [0], [1], [0, 0, 1, 1], [], []>} : vector<360x256xbf16>, vector<256x64xbf16>, vector<360x64xf32> -> vector<360x64xf32>
    %104 = arith.addf %99, %103 : vector<360x64xf32>
    %c0_114 = arith.constant 0 : index
    %c0_115 = arith.constant 0 : index
    %c0_116 = arith.constant 0 : index
    %105 = vector.load %arg6[%c0_114, %c0_115, %c0_116] : memref<1x360x64xf32, #tpu.memory_space<vmem>>, vector<1x360x64xf32>
    %106 = vector.shape_cast %105 : vector<1x360x64xf32> to vector<360x64xf32>
    %107 = vector.shape_cast %104 : vector<360x64xf32> to vector<1x360x64xf32>
    tpu.vector_store %arg6[%c0_114, %c0_115, %c0_116], %107 {strides = array<i32>} : memref<1x360x64xf32, #tpu.memory_space<vmem>>, vector<1x360x64xf32>,
    %c0_117 = arith.constant 0 : index
    %c0_118 = arith.constant 0 : index
    %c0_119 = arith.constant 0 : index
    %108 = vector.load %arg6[%c0_117, %c0_118, %c0_119] : memref<1x360x64xf32, #tpu.memory_space<vmem>>, vector<1x360x64xf32>
    %109 = vector.shape_cast %108 : vector<1x360x64xf32> to vector<360x64xf32>
    %c48 = arith.constant 48 : index
    %c0_120 = arith.constant 0 : index
    %110 = vector.load %arg8[%c48, %c0_120] : memref<416x256xbf16, #tpu.memory_space<vmem>>, vector<360x256xbf16>
    %c8 = arith.constant 8 : index
    %c0_121 = arith.constant 0 : index
    %c0_122 = arith.constant 0 : index
    %111 = vector.load %arg4[%c8, %c0_121, %c0_122] : memref<10x256x64xbf16, #tpu.memory_space<vmem>>, vector<1x256x64xbf16>
    %112 = vector.shape_cast %111 : vector<1x256x64xbf16> to vector<256x64xbf16>
    %cst_123 = arith.constant dense<0.000000e+00> : vector<360x64xf32>
    %113 = tpu.matmul %110, %112, %cst_123 {dimension_numbers = #tpu.dot_dimension_numbers<[1], [0], [0], [1], [0, 0, 1, 1], [], []>} : vector<360x256xbf16>, vector<256x64xbf16>, vector<360x64xf32> -> vector<360x64xf32>
    %114 = arith.addf %109, %113 : vector<360x64xf32>
    %c0_124 = arith.constant 0 : index
    %c0_125 = arith.constant 0 : index
    %c0_126 = arith.constant 0 : index
    %115 = vector.load %arg6[%c0_124, %c0_125, %c0_126] : memref<1x360x64xf32, #tpu.memory_space<vmem>>, vector<1x360x64xf32>
    %116 = vector.shape_cast %115 : vector<1x360x64xf32> to vector<360x64xf32>
    %117 = vector.shape_cast %114 : vector<360x64xf32> to vector<1x360x64xf32>
    tpu.vector_store %arg6[%c0_124, %c0_125, %c0_126], %117 {strides = array<i32>} : memref<1x360x64xf32, #tpu.memory_space<vmem>>, vector<1x360x64xf32>,
    %c0_127 = arith.constant 0 : index
    %c0_128 = arith.constant 0 : index
    %c0_129 = arith.constant 0 : index
    %118 = vector.load %arg6[%c0_127, %c0_128, %c0_129] : memref<1x360x64xf32, #tpu.memory_space<vmem>>, vector<1x360x64xf32>
    %119 = vector.shape_cast %118 : vector<1x360x64xf32> to vector<360x64xf32>
    %c54 = arith.constant 54 : index
    %c0_130 = arith.constant 0 : index
    %120 = vector.load %arg8[%c54, %c0_130] : memref<416x256xbf16, #tpu.memory_space<vmem>>, vector<360x256xbf16>
    %c9 = arith.constant 9 : index
    %c0_131 = arith.constant 0 : index
    %c0_132 = arith.constant 0 : index
    %121 = vector.load %arg4[%c9, %c0_131, %c0_132] : memref<10x256x64xbf16, #tpu.memory_space<vmem>>, vector<1x256x64xbf16>
    %122 = vector.shape_cast %121 : vector<1x256x64xbf16> to vector<256x64xbf16>
    %cst_133 = arith.constant dense<0.000000e+00> : vector<360x64xf32>
    %123 = tpu.matmul %120, %122, %cst_133 {dimension_numbers = #tpu.dot_dimension_numbers<[1], [0], [0], [1], [0, 0, 1, 1], [], []>} : vector<360x256xbf16>, vector<256x64xbf16>, vector<360x64xf32> -> vector<360x64xf32>
    %124 = arith.addf %119, %123 : vector<360x64xf32>
    %c0_134 = arith.constant 0 : index
    %c0_135 = arith.constant 0 : index
    %c0_136 = arith.constant 0 : index
    %125 = vector.load %arg6[%c0_134, %c0_135, %c0_136] : memref<1x360x64xf32, #tpu.memory_space<vmem>>, vector<1x360x64xf32>
    %126 = vector.shape_cast %125 : vector<1x360x64xf32> to vector<360x64xf32>
    %127 = vector.shape_cast %124 : vector<360x64xf32> to vector<1x360x64xf32>
    tpu.vector_store %arg6[%c0_134, %c0_135, %c0_136], %127 {strides = array<i32>} : memref<1x360x64xf32, #tpu.memory_space<vmem>>, vector<1x360x64xf32>,
    %c0_137 = arith.constant 0 : index
    %c0_138 = arith.constant 0 : index
    %c0_139 = arith.constant 0 : index
    %128 = vector.load %arg6[%c0_137, %c0_138, %c0_139] : memref<1x360x64xf32, #tpu.memory_space<vmem>>, vector<1x360x64xf32>
    %129 = vector.shape_cast %128 : vector<1x360x64xf32> to vector<360x64xf32>
    %c0_140 = arith.constant 0 : index
    %c0_141 = arith.constant 0 : index
    %130 = vector.load %arg5[%c0_140, %c0_141] : memref<1x64xf32, #tpu.memory_space<vmem>>, vector<1x64xf32>
    %131 = vector.broadcast %130 : vector<1x64xf32> to vector<360x64xf32>
    %132 = arith.addf %129, %131 : vector<360x64xf32>
    %cst_142 = arith.constant 0.000000e+00 : f32
    %133 = vector.broadcast %cst_142 : f32 to vector<360x64xf32>
    %134 = arith.maximumf %132, %133 : vector<360x64xf32>
    %c0_143 = arith.constant 0 : index
    %c0_144 = arith.constant 0 : index
    %c0_145 = arith.constant 0 : index
    %135 = vector.load %arg6[%c0_143, %c0_144, %c0_145] : memref<1x360x64xf32, #tpu.memory_space<vmem>>, vector<1x360x64xf32>
    %136 = vector.shape_cast %135 : vector<1x360x64xf32> to vector<360x64xf32>
    %137 = vector.shape_cast %134 : vector<360x64xf32> to vector<1x360x64xf32>
    tpu.vector_store %arg6[%c0_143, %c0_144, %c0_145], %137 {strides = array<i32>} : memref<1x360x64xf32, #tpu.memory_space<vmem>>, vector<1x360x64xf32>,
    return
  }
  func.func @transform_0(%arg0: i32) -> (i32, i32, i32, i32) {
    %c0_i32 = arith.constant 0 : i32
    %c0_i32_0 = arith.constant 0 : i32
    %c0_i32_1 = arith.constant 0 : i32
    %c0_i32_2 = arith.constant 0 : i32
    return %arg0, %c0_i32, %c0_i32_0, %c0_i32_1 : i32, i32, i32, i32
  }
  func.func @transform_1(%arg0: i32) -> (i32, i32) {
    %c0_i32 = arith.constant 0 : i32
    %c0_i32_0 = arith.constant 0 : i32
    %c0_i32_1 = arith.constant 0 : i32
    return %c0_i32, %c0_i32_0 : i32, i32
  }
  func.func @transform_2(%arg0: i32) -> (i32, i32) {
    %c0_i32 = arith.constant 0 : i32
    %c0_i32_0 = arith.constant 0 : i32
    %c0_i32_1 = arith.constant 0 : i32
    return %c0_i32, %c0_i32_0 : i32, i32
  }
  func.func @transform_3(%arg0: i32) -> (i32, i32, i32) {
    %c0_i32 = arith.constant 0 : i32
    %c0_i32_0 = arith.constant 0 : i32
    %c0_i32_1 = arith.constant 0 : i32
    %c0_i32_2 = arith.constant 0 : i32
    return %c0_i32, %c0_i32_0, %c0_i32_1 : i32, i32, i32
  }
  func.func @transform_4(%arg0: i32) -> (i32, i32) {
    %c0_i32 = arith.constant 0 : i32
    %c0_i32_0 = arith.constant 0 : i32
    %c0_i32_1 = arith.constant 0 : i32
    return %c0_i32, %c0_i32_0 : i32, i32
  }
  func.func @transform_5(%arg0: i32) -> (i32, i32, i32) {
    %c0_i32 = arith.constant 0 : i32
    %c0_i32_0 = arith.constant 0 : i32
    %c0_i32_1 = arith.constant 0 : i32
    return %arg0, %c0_i32, %c0_i32_0 : i32, i32, i32
  }
}

</mosaic_0001>

<bundles_post_ra>
// kernel: speech_res_forward.1
= control target key start
LH: loop header
LB: loop body
LE: loop exit
PB: predicated region body
PF: predicated region fallthrough
CT: control target
= control target key end

     0   :  { %s14579_s18 = smov 0   ;;  %s19600_s0 = inlined_call_operand.vmem [shape: bf16[2,4,360,160], index: 0, kind: input, shape index: {}]   ;;  %s19601_s1 = inlined_call_operand.vmem [shape: bf16[160,64], index: 1, kind: input, shape index: {}]   ;;  %s19602_s2 = inlined_call_operand.vmem [shape: f32[1,64], index: 2, kind: input, shape index: {}]   ;;  %s19603_s3 = inlined_call_operand.vmem [shape: bf16[10,256,64], index: 3, kind: input, shape index: {}]   ;;  %s19604_s4 = inlined_call_operand.vmem [shape: f32[1,64], index: 4, kind: input, shape index: {}]   ;;  %s19605_s5 = inlined_call_operand.vmem [shape: f32[2,360,64], index: 5, kind: output, shape index: {}]  }
   0x1 LB: > { %s12370_s19 = sadd.s32 4294967295, %s14545_s18   ;;  %p12374_p0 = scmp.ge.s32.totalorder %s14545_s18, 1  ;;  %s14545_s18 = sphi %s14579_s18, %s15_s18  }
   0x2   : > { %p187_p1 = scmp.lt.s32.totalorder %s14545_s18, 3 }
   0x4   : > { %p188_p2 = pnand %p12374_p0, %p187_p1 }
   0x6   : > { %191 = sbr.rel (%p188_p2) target bundleno = 1724 (0x6bc), region = 40 }
   0xb   : > { %v14590_v0 = vld [vmem:[%s19601_s1 + $0x38] sm:$0xff]   ;;  %v19606_v1 = vmov 0   ;;  %p215_p3 = scmp.lt.s32.totalorder %s12370_s19, 1  ;;  %v14599_v2 = vld [vmem:[%s19601_s1 + $0x30] sm:$0xff]   ;;  %v14611_v3 = vld [vmem:[%s19601_s1 + $0x28] sm:$0xff]   ;;  %vm555_vm0 = vcmask 261120  }
   0xc   : > { %625 = vmatprep.subr.bf16.mxu0 %v19606_v1  ;;  %1160 = vmatprep.subr.bf16.mxu1 %v19606_v1  ;;  %v14625_v4 = vld [vmem:[%s19601_s1 + $0x20] sm:$0xff]   ;;  %v14637_v7 = vld [vmem:[%s19601_s1 + $0x18] sm:$0xff]   ;;  %v14647_v8 = vld [vmem:[%s19601_s1 + $0x10] sm:$0xff]   ;;  %vm2859_vm1 = vcmask 519168   ;;  %vm3101_vm2 = vsmask.f32 7424 }
   0xd   : > { %626 = vmatpush1.bf16.msra.mxu0 %v14590_v0  ;;  %1161 = vmatpush1.bf16.msra.mxu1 %v14590_v0  ;;  %s19778_s19 = smov (!%p215_p3, %s12370_s19), 1  ;;  %v14656_v9 = vld [vmem:[%s19601_s1 + $0x8] sm:$0xff]   ;;  %v14665_v10 = vld [vmem:[%s19601_s1] sm:$0xff]   ;;  %2905 = vst.msk [vmem:[#allocation2 + $0xb4] sm:$0xf] %vm2859_vm1, %v19606_v1  ;;  %s14548_s13 = smov 64  }
   0xe   : > { %627 = vmatprep.subr.bf16.mxu0 %v19606_v1  ;;  %1162 = vmatprep.subr.bf16.mxu1 %v19606_v1  ;;  %s13881_s24 = smul.u32 1440, %s19778_s19  ;;  %v14674_v11 = vld [vmem:[%s19601_s1 + $0x48] sm:$0xff]   ;;  %v14683_v12 = vld [vmem:[%s19601_s1 + $0x40] sm:$0xff]   ;;  %2906 = vst.msk [vmem:[#allocation2 + $0xb8] sm:$0xf] %vm2859_vm1, %v19606_v1  ;;  %vm3596_vm4 = vcmask 523264  }
   0xf   : > { %2907 = vst.msk [vmem:[#allocation2 + $0xbc] sm:$0xf] %vm2859_vm1, %v19606_v1  ;;  %2908 = vst.msk [vmem:[#allocation2 + $0xc0] sm:$0xf] %vm2859_vm1, %v19606_v1  ;;  %vm3426_vm3 = vsmask.f32 6400 }
  0x10   : > { %s14618_s29 = scalar_lea.vmem %s19600_s0, %s13881_s24  ;;  %2909 = vst.msk [vmem:[#allocation2 + $0xc4] sm:$0xf] %vm2859_vm1, %v19606_v1  ;;  %2910 = vst.msk [vmem:[#allocation2 + $0xc8] sm:$0xf] %vm2859_vm1, %v19606_v1  ;;  %vm3369_vm5 = vcmask 1046528   ;;  %vm5008_vm6 = vcmask 1044480  }
  0x11   : > { %628 = vmatpush1.bf16.msra.mxu0 %v14599_v2  ;;  %1163 = vmatpush1.bf16.msra.mxu1 %v14599_v2  ;;  %v13905_v5 = vld [vmem:[%s14618_s29 + $0x4] ss:$8 sps:$4 sm:$0xff]   ;;  %v13903_v13 = vld [vmem:[%s14618_s29] ss:$8 sps:$4 sm:$0xff]   ;;  %v13909_v15 = vld [vmem:[%s14618_s29 + $0x14] ss:$8 sps:$4 sm:$0xff]  }
  0x12   : > { %629 = vmatprep.subr.bf16.mxu0 %v19606_v1  ;;  %1164 = vmatprep.subr.bf16.mxu1 %v19606_v1  ;;  %v13908_v6 = vld [vmem:[%s14618_s29 + $0x16c] ss:$8 sps:$4 sm:$0xff]   ;;  %v13906_v14 = vld [vmem:[%s14618_s29 + $0x168] ss:$8 sps:$4 sm:$0xff]   ;;  %v13911_v16 = vld [vmem:[%s14618_s29 + $0x17c] ss:$8 sps:$4 sm:$0xff]  }
  0x13   : > { %12433 = vmatprep.mubr.msk.bf16.mxu0 %vm555_vm0, %v13905_v5  ;;  %12547 = vmatprep.mubr.msk.bf16.mxu1 %vm555_vm0, %v13908_v6  ;;  %v13913_v17 = vld [vmem:[%s14618_s29 + $0x10] ss:$8 sps:$4 sm:$0xff]   ;;  %v13915_v19 = vld [vmem:[%s14618_s29 + $0x24] ss:$8 sps:$4 sm:$0xff]   ;;  %v13919_v21 = vld [vmem:[%s14618_s29 + $0x20] ss:$8 sps:$4 sm:$0xff]  }
  0x14   : > { %v13914_v18 = vld [vmem:[%s14618_s29 + $0x178] ss:$8 sps:$4 sm:$0xff]   ;;  %v13917_v20 = vld [vmem:[%s14618_s29 + $0x18c] ss:$8 sps:$4 sm:$0xff]   ;;  %v13920_v22 = vld [vmem:[%s14618_s29 + $0x188] ss:$8 sps:$4 sm:$0xff]  }
  0x15   : > { %630 = vmatpush1.bf16.msra.mxu0 %v14611_v3  ;;  %1165 = vmatpush1.bf16.msra.mxu1 %v14611_v3  ;;  %v13921_v23 = vld [vmem:[%s14618_s29 + $0x34] ss:$8 sps:$4 sm:$0xff]   ;;  %v13925_v25 = vld [vmem:[%s14618_s29 + $0x30] ss:$8 sps:$4 sm:$0xff]   ;;  %v13927_v27 = vld [vmem:[%s14618_s29 + $0x44] ss:$8 sps:$4 sm:$0xff]  }
  0x16   : > { %631 = vmatprep.subr.bf16.mxu0 %v19606_v1  ;;  %1166 = vmatprep.subr.bf16.mxu1 %v19606_v1  ;;  %v13923_v24 = vld [vmem:[%s14618_s29 + $0x19c] ss:$8 sps:$4 sm:$0xff]   ;;  %v13926_v26 = vld [vmem:[%s14618_s29 + $0x198] ss:$8 sps:$4 sm:$0xff]   ;;  %v13929_v28 = vld [vmem:[%s14618_s29 + $0x1ac] ss:$8 sps:$4 sm:$0xff]  }
  0x17   : > { %v13931_v29 = vld [vmem:[%s14618_s29 + $0x40] ss:$8 sps:$4 sm:$0xff]   ;;  %v13933_v31 = vld [vmem:[%s14618_s29 + $0x54] ss:$8 sps:$4 sm:$0xff]   ;;  %v13937_v33 = vld [vmem:[%s14618_s29 + $0x50] ss:$8 sps:$4 sm:$0xff]  }
  0x18   : > { %v13932_v30 = vld [vmem:[%s14618_s29 + $0x1a8] ss:$8 sps:$4 sm:$0xff]   ;;  %v13935_v32 = vld [vmem:[%s14618_s29 + $0x1bc] ss:$8 sps:$4 sm:$0xff]   ;;  %v13938_v34 = vld [vmem:[%s14618_s29 + $0x1b8] ss:$8 sps:$4 sm:$0xff]  }
  0x19   : > { %632 = vmatpush1.bf16.msra.mxu0 %v14625_v4  ;;  %1167 = vmatpush1.bf16.msra.mxu1 %v14625_v4  ;;  %v13939_v35 = vld [vmem:[%s14618_s29 + $0x64] ss:$8 sps:$4 sm:$0xff]   ;;  %v13943_v37 = vld [vmem:[%s14618_s29 + $0x60] ss:$8 sps:$4 sm:$0xff]   ;;  %v13945_v39 = vld [vmem:[%s14618_s29 + $0x74] ss:$8 sps:$4 sm:$0xff]  }
  0x1a   : > { %633 = vmatprep.subr.bf16.mxu0 %v19606_v1  ;;  %1168 = vmatprep.subr.bf16.mxu1 %v19606_v1  ;;  %v13941_v36 = vld [vmem:[%s14618_s29 + $0x1cc] ss:$8 sps:$4 sm:$0xff]   ;;  %v13944_v38 = vld [vmem:[%s14618_s29 + $0x1c8] ss:$8 sps:$4 sm:$0xff]   ;;  %v13947_v40 = vld [vmem:[%s14618_s29 + $0x1dc] ss:$8 sps:$4 sm:$0xff]  }
  0x1b   : > { %v13949_v41 = vld [vmem:[%s14618_s29 + $0x70] ss:$8 sps:$4 sm:$0xff]   ;;  %v13951_v43 = vld [vmem:[%s14618_s29 + $0x84] ss:$8 sps:$4 sm:$0xff]   ;;  %v13955_v45 = vld [vmem:[%s14618_s29 + $0x80] ss:$8 sps:$4 sm:$0xff]  }
  0x1c   : > { %v13950_v42 = vld [vmem:[%s14618_s29 + $0x1d8] ss:$8 sps:$4 sm:$0xff]   ;;  %v13953_v44 = vld [vmem:[%s14618_s29 + $0x1ec] ss:$8 sps:$4 sm:$0xff]   ;;  %v13956_v46 = vld [vmem:[%s14618_s29 + $0x1e8] ss:$8 sps:$4 sm:$0xff]  }
  0x1d   : > { %634 = vmatpush1.bf16.msra.mxu0 %v14637_v7  ;;  %1169 = vmatpush1.bf16.msra.mxu1 %v14637_v7  ;;  %v13957_v47 = vld [vmem:[%s14618_s29 + $0x94] ss:$8 sps:$4 sm:$0xff]   ;;  %v13961_v49 = vld [vmem:[%s14618_s29 + $0x90] ss:$8 sps:$4 sm:$0xff]   ;;  %v13963_v51 = vld [vmem:[%s14618_s29 + $0xa4] ss:$8 sps:$4 sm:$0xff]  }
  0x1e   : > { %635 = vmatprep.subr.bf16.mxu0 %v19606_v1  ;;  %1170 = vmatprep.subr.bf16.mxu1 %v19606_v1  ;;  %v13959_v48 = vld [vmem:[%s14618_s29 + $0x1fc] ss:$8 sps:$4 sm:$0xff]   ;;  %v13962_v50 = vld [vmem:[%s14618_s29 + $0x1f8] ss:$8 sps:$4 sm:$0xff]   ;;  %v13965_v52 = vld [vmem:[%s14618_s29 + $0x20c] ss:$8 sps:$4 sm:$0xff]  }
  0x1f   : > { %v13967_v53 = vld [vmem:[%s14618_s29 + $0xa0] ss:$8 sps:$4 sm:$0xff]   ;;  %v13969_v55 = vld [vmem:[%s14618_s29 + $0xb4] ss:$8 sps:$4 sm:$0xff]   ;;  %v13973_v57 = vld [vmem:[%s14618_s29 + $0xb0] ss:$8 sps:$4 sm:$0xff]  }
  0x20   : > { %v13968_v54 = vld [vmem:[%s14618_s29 + $0x208] ss:$8 sps:$4 sm:$0xff]   ;;  %v13971_v56 = vld [vmem:[%s14618_s29 + $0x21c] ss:$8 sps:$4 sm:$0xff]   ;;  %v13974_v58 = vld [vmem:[%s14618_s29 + $0x218] ss:$8 sps:$4 sm:$0xff]  }
  0x21   : > { %636 = vmatpush1.bf16.msra.mxu0 %v14647_v8  ;;  %1171 = vmatpush1.bf16.msra.mxu1 %v14647_v8  ;;  %v13975_v59 = vld [vmem:[%s14618_s29 + $0xc4] ss:$8 sps:$4 sm:$0xff]   ;;  %v13979_v61 = vld [vmem:[%s14618_s29 + $0xc0] ss:$8 sps:$4 sm:$0xff]   ;;  %v13981_v63 = vld [vmem:[%s14618_s29 + $0xd4] ss:$8 sps:$4 sm:$0xff]  }
  0x22   : > { %637 = vmatprep.subr.bf16.mxu0 %v19606_v1  ;;  %1172 = vmatprep.subr.bf16.mxu1 %v19606_v1  ;;  %v13977_v60 = vld [vmem:[%s14618_s29 + $0x22c] ss:$8 sps:$4 sm:$0xff]   ;;  %v13980_v62 = vld [vmem:[%s14618_s29 + $0x228] ss:$8 sps:$4 sm:$0xff]   ;;  %2911 = vst.msk [vmem:[#allocation2 + $0xcc] sm:$0xf] %vm2859_vm1, %v19606_v1 }
  0x23   : > { %v13989_v5 = vld [vmem:[%s14618_s29 + $0x24c] ss:$8 sps:$4 sm:$0xff]   ;;  %v13991_v6 = vld [vmem:[%s14618_s29 + $0xe0] ss:$8 sps:$4 sm:$0xff]   ;;  %2912 = vst.msk [vmem:[#allocation2 + $0xd0] sm:$0xf] %vm2859_vm1, %v19606_v1 }
  0x24   : > { %vm5855_vm7 = vcmask 1045504   ;;  %s13882_s21 = smul.u32 360, %s19778_s19 }
  0x25   : > { %638 = vmatpush1.bf16.msra.mxu0 %v14656_v9  ;;  %1173 = vmatpush1.bf16.msra.mxu1 %v14656_v9 }
  0x26   : > { %639 = vmatprep.subr.bf16.mxu0 %v19606_v1  ;;  %1174 = vmatprep.subr.bf16.mxu1 %v19606_v1  ;;  %s16377_s26 = scalar_lea.vmem %s19605_s5, %s13882_s21 }
  0x29   : > { %640 = vmatpush1.bf16.msra.mxu0 %v14665_v10  ;;  %1175 = vmatpush1.bf16.msra.mxu1 %v14665_v10 }
  0x2a   : > { %653 = vmatprep.subr.bf16.mxu0 %v19606_v1  ;;  %1188 = vmatprep.subr.bf16.mxu1 %v19606_v1 }
  0x2d   : > { %654 = vmatpush2.bf16.msra.mxu0 %v14674_v11  ;;  %1189 = vmatpush2.bf16.msra.mxu1 %v14674_v11 }
  0x2e   : > { %655 = vmatprep.subr.bf16.mxu0 %v19606_v1  ;;  %1190 = vmatprep.subr.bf16.mxu1 %v19606_v1 }
  0x31   : > { %656 = vmatpush2.bf16.msra.mxu0 %v14683_v12  ;;  %1191 = vmatpush2.bf16.msra.mxu1 %v14683_v12 }
  0x32   : > { %1740 = vmatprep.subr.bf16.mxu0 %v19606_v1  ;;  %2320 = vmatprep.subr.bf16.mxu1 %v19606_v1 }
  0x34   : > { %658 = vmatmul.mubr.bf16.vlgmr.msra.gmra.mxu0 %v13903_v13  ;;  %1193 = vmatmul.mubr.bf16.vlgmr.msra.gmra.mxu1 %v13906_v14  ;;  %v14001_v13 = vld [vmem:[%s14618_s29 + $0x26c] ss:$8 sps:$4 sm:$0xff]   ;;  %v14003_v14 = vld [vmem:[%s14618_s29 + $0x100] ss:$8 sps:$4 sm:$0xff]  }
  0x35   : > { %1741 = vmatpush1.bf16.msra.mxu0 %v14590_v0  ;;  %2321 = vmatpush1.bf16.msra.mxu1 %v14590_v0  ;;  %v13983_v0 = vld [vmem:[%s14618_s29 + $0x23c] ss:$8 sps:$4 sm:$0xff]  }
  0x36   : > { %12434 = vmatprep.mubr.msk.bf16.mxu0 %vm555_vm0, %v13909_v15  ;;  %12548 = vmatprep.mubr.msk.bf16.mxu1 %vm555_vm0, %v13911_v16  ;;  %v14004_v15 = vld [vmem:[%s14618_s29 + $0x268] ss:$8 sps:$4 sm:$0xff]   ;;  %v14005_v16 = vld [vmem:[%s14618_s29 + $0x114] ss:$8 sps:$4 sm:$0xff]  }
  0x37   : > { %1742 = vmatprep.subr.bf16.mxu0 %v19606_v1  ;;  %2322 = vmatprep.subr.bf16.mxu1 %v19606_v1 }
  0x39   : > { %1743 = vmatpush1.bf16.msra.mxu0 %v14599_v2  ;;  %2323 = vmatpush1.bf16.msra.mxu1 %v14599_v2  ;;  %v13985_v2 = vld [vmem:[%s14618_s29 + $0xd0] ss:$8 sps:$4 sm:$0xff]  }
  0x3a   : > { %1744 = vmatprep.subr.bf16.mxu0 %v19606_v1  ;;  %2324 = vmatprep.subr.bf16.mxu1 %v19606_v1 }
  0x3c   : > { %666 = vmatmul.mubr.bf16.gmra.mxu0 %v13913_v17  ;;  %1201 = vmatmul.mubr.bf16.gmra.mxu1 %v13914_v18  ;;  %v14007_v17 = vld [vmem:[%s14618_s29 + $0x27c] ss:$8 sps:$4 sm:$0xff]   ;;  %v14009_v18 = vld [vmem:[%s14618_s29 + $0x110] ss:$8 sps:$4 sm:$0xff]  }
  0x3d   : > { %12435 = vmatprep.mubr.msk.bf16.mxu0 %vm555_vm0, %v13915_v19  ;;  %12549 = vmatprep.mubr.msk.bf16.mxu1 %vm555_vm0, %v13917_v20  ;;  %v14010_v19 = vld [vmem:[%s14618_s29 + $0x278] ss:$8 sps:$4 sm:$0xff]   ;;  %v14011_v20 = vld [vmem:[%s14618_s29 + $0x124] ss:$8 sps:$4 sm:$0xff]  }
  0x3e   : > { %1745 = vmatpush1.bf16.msra.mxu0 %v14611_v3  ;;  %2325 = vmatpush1.bf16.msra.mxu1 %v14611_v3  ;;  %v13986_v3 = vld [vmem:[%s14618_s29 + $0x238] ss:$8 sps:$4 sm:$0xff]  }
  0x3f   : > { %1746 = vmatprep.subr.bf16.mxu0 %v19606_v1  ;;  %2326 = vmatprep.subr.bf16.mxu1 %v19606_v1 }
  0x42   : > { %1747 = vmatpush1.bf16.msra.mxu0 %v14625_v4  ;;  %2327 = vmatpush1.bf16.msra.mxu1 %v14625_v4  ;;  %v13987_v4 = vld [vmem:[%s14618_s29 + $0xe4] ss:$8 sps:$4 sm:$0xff]  }
  0x43   : > { %1748 = vmatprep.subr.bf16.mxu0 %v19606_v1  ;;  %2328 = vmatprep.subr.bf16.mxu1 %v19606_v1 }
  0x44   : > { %674 = vmatmul.mubr.bf16.gmra.mxu0 %v13919_v21  ;;  %1209 = vmatmul.mubr.bf16.gmra.mxu1 %v13920_v22  ;;  %v14013_v21 = vld [vmem:[%s14618_s29 + $0x28c] ss:$8 sps:$4 sm:$0xff]   ;;  %v14015_v22 = vld [vmem:[%s14618_s29 + $0x120] ss:$8 sps:$4 sm:$0xff]  }
  0x45   : > { %12436 = vmatprep.mubr.msk.bf16.mxu0 %vm555_vm0, %v13921_v23  ;;  %12550 = vmatprep.mubr.msk.bf16.mxu1 %vm555_vm0, %v13923_v24  ;;  %v14016_v23 = vld [vmem:[%s14618_s29 + $0x288] ss:$8 sps:$4 sm:$0xff]   ;;  %v14017_v24 = vld [vmem:[%s14618_s29 + $0x134] ss:$8 sps:$4 sm:$0xff]  }
  0x46   : > { %1749 = vmatpush1.bf16.msra.mxu0 %v14637_v7  ;;  %2329 = vmatpush1.bf16.msra.mxu1 %v14637_v7  ;;  %v13992_v7 = vld [vmem:[%s14618_s29 + $0x248] ss:$8 sps:$4 sm:$0xff]  }
  0x47   : > { %1750 = vmatprep.subr.bf16.mxu0 %v19606_v1  ;;  %2330 = vmatprep.subr.bf16.mxu1 %v19606_v1 }
  0x4a   : > { %1751 = vmatpush1.bf16.msra.mxu0 %v14647_v8  ;;  %2331 = vmatpush1.bf16.msra.mxu1 %v14647_v8  ;;  %v13993_v8 = vld [vmem:[%s14618_s29 + $0xf4] ss:$8 sps:$4 sm:$0xff]  }
  0x4b   : > { %1752 = vmatprep.subr.bf16.mxu0 %v19606_v1  ;;  %2332 = vmatprep.subr.bf16.mxu1 %v19606_v1 }
  0x4c   : > { %682 = vmatmul.mubr.bf16.gmra.mxu0 %v13925_v25  ;;  %1217 = vmatmul.mubr.bf16.gmra.mxu1 %v13926_v26  ;;  %v14019_v25 = vld [vmem:[%s14618_s29 + $0x29c] ss:$8 sps:$4 sm:$0xff]   ;;  %v14021_v26 = vld [vmem:[%s14618_s29 + $0x130] ss:$8 sps:$4 sm:$0xff]  }
  0x4d   : > { %12437 = vmatprep.mubr.msk.bf16.mxu0 %vm555_vm0, %v13927_v27  ;;  %12551 = vmatprep.mubr.msk.bf16.mxu1 %vm555_vm0, %v13929_v28  ;;  %v14022_v27 = vld [vmem:[%s14618_s29 + $0x298] ss:$8 sps:$4 sm:$0xff]   ;;  %v14023_v28 = vld [vmem:[%s14618_s29 + $0x144] ss:$8 sps:$4 sm:$0xff]  }
  0x4e   : > { %1753 = vmatpush1.bf16.msra.mxu0 %v14656_v9  ;;  %2333 = vmatpush1.bf16.msra.mxu1 %v14656_v9  ;;  %v13995_v9 = vld [vmem:[%s14618_s29 + $0x25c] ss:$8 sps:$4 sm:$0xff]  }
  0x4f   : > { %1754 = vmatprep.subr.bf16.mxu0 %v19606_v1  ;;  %2334 = vmatprep.subr.bf16.mxu1 %v19606_v1 }
  0x52   : > { %1755 = vmatpush1.bf16.msra.mxu0 %v14665_v10  ;;  %2335 = vmatpush1.bf16.msra.mxu1 %v14665_v10  ;;  %v13997_v10 = vld [vmem:[%s14618_s29 + $0xf0] ss:$8 sps:$4 sm:$0xff]  }
  0x53   : > { %1768 = vmatprep.subr.bf16.mxu0 %v19606_v1  ;;  %2348 = vmatprep.subr.bf16.mxu1 %v19606_v1 }
  0x54   : > { %690 = vmatmul.mubr.bf16.gmra.mxu0 %v13931_v29  ;;  %1225 = vmatmul.mubr.bf16.gmra.mxu1 %v13932_v30  ;;  %v14025_v29 = vld [vmem:[%s14618_s29 + $0x2ac] ss:$8 sps:$4 sm:$0xff]   ;;  %v14027_v30 = vld [vmem:[%s14618_s29 + $0x140] ss:$8 sps:$4 sm:$0xff]  }
  0x55   : > { %12438 = vmatprep.mubr.msk.bf16.mxu0 %vm555_vm0, %v13933_v31  ;;  %12552 = vmatprep.mubr.msk.bf16.mxu1 %vm555_vm0, %v13935_v32  ;;  %v14028_v31 = vld [vmem:[%s14618_s29 + $0x2a8] ss:$8 sps:$4 sm:$0xff]   ;;  %v14029_v32 = vld [vmem:[%s14618_s29 + $0x154] ss:$8 sps:$4 sm:$0xff]  }
  0x56   : > { %1769 = vmatpush2.bf16.msra.mxu0 %v14674_v11  ;;  %2349 = vmatpush2.bf16.msra.mxu1 %v14674_v11  ;;  %v13998_v11 = vld [vmem:[%s14618_s29 + $0x258] ss:$8 sps:$4 sm:$0xff]  }
  0x57   : > { %1770 = vmatprep.subr.bf16.mxu0 %v19606_v1  ;;  %2350 = vmatprep.subr.bf16.mxu1 %v19606_v1 }
  0x5a   : > { %1771 = vmatpush2.bf16.msra.mxu0 %v14683_v12  ;;  %2351 = vmatpush2.bf16.msra.mxu1 %v14683_v12  ;;  %v13999_v12 = vld [vmem:[%s14618_s29 + $0x104] ss:$8 sps:$4 sm:$0xff]  }
  0x5b   : > { %4439 = vmatprep.subr.bf16.mxu0 %v19606_v1  ;;  %5241 = vmatprep.subr.bf16.mxu1 %v19606_v1 }
  0x5c   : > { %698 = vmatmul.mubr.bf16.gmra.mxu0 %v13937_v33  ;;  %1233 = vmatmul.mubr.bf16.gmra.mxu1 %v13938_v34  ;;  %v14031_v33 = vld [vmem:[%s14618_s29 + $0x2bc] ss:$8 sps:$4 sm:$0xff]  }
  0x5d   : > { %12439 = vmatprep.mubr.msk.bf16.mxu0 %vm555_vm0, %v13939_v35  ;;  %12553 = vmatprep.mubr.msk.bf16.mxu1 %vm555_vm0, %v13941_v36  ;;  %v290_v34 = vld [vmem:[%s14618_s29 + $0x160] sm:$0xff]  ;;  %v12500_v35 = vld [vmem:[%s14618_s29 + $0x2c8] sm:$0xff]  ;;  %v14033_v36 = vld [vmem:[%s14618_s29 + $0x150] ss:$8 sps:$4 sm:$0xff]  }
  0x64   : > { %706 = vmatmul.mubr.bf16.gmra.mxu0 %v13943_v37  ;;  %1241 = vmatmul.mubr.bf16.gmra.mxu1 %v13944_v38  ;;  %v14034_v37 = vld [vmem:[%s14618_s29 + $0x2b8] ss:$8 sps:$4 sm:$0xff]   ;;  %v12422_v38 = vcombine.high %v290_v34, %v290_v34 }
  0x65   : > { %12440 = vmatprep.mubr.msk.bf16.mxu0 %vm555_vm0, %v13945_v39  ;;  %12554 = vmatprep.mubr.msk.bf16.mxu1 %vm555_vm0, %v13947_v40  ;;  %v12546_v39 = vcombine.high %v12500_v35, %v12500_v35  ;;  %v12421_v40 = vcombine.low %v290_v34, %v290_v34 }
  0x6c   : > { %714 = vmatmul.mubr.bf16.gmra.mxu0 %v13949_v41  ;;  %1249 = vmatmul.mubr.bf16.gmra.mxu1 %v13950_v42  ;;  %v12545_v41 = vcombine.low %v12500_v35, %v12500_v35  ;;  %v14041_v42 = vld [vmem:[%s14618_s29 + $0x2d4] ss:$8 sps:$4 sm:$0xff]  }
  0x6d   : > { %12441 = vmatprep.mubr.msk.bf16.mxu0 %vm555_vm0, %v13951_v43  ;;  %12555 = vmatprep.mubr.msk.bf16.mxu1 %vm555_vm0, %v13953_v44  ;;  %v14044_v43 = vld [vmem:[%s14618_s29 + $0x43c] ss:$8 sps:$4 sm:$0xff]   ;;  %v14039_v44 = vld [vmem:[%s14618_s29 + $0x2d0] ss:$8 sps:$4 sm:$0xff]  }
  0x74   : > { %722 = vmatmul.mubr.bf16.gmra.mxu0 %v13955_v45  ;;  %1257 = vmatmul.mubr.bf16.gmra.mxu1 %v13956_v46  ;;  %v14042_v45 = vld [vmem:[%s14618_s29 + $0x438] ss:$8 sps:$4 sm:$0xff]   ;;  %v14045_v46 = vld [vmem:[%s14618_s29 + $0x2e4] ss:$8 sps:$4 sm:$0xff]  }
  0x75   : > { %12442 = vmatprep.mubr.msk.bf16.mxu0 %vm555_vm0, %v13957_v47  ;;  %12556 = vmatprep.mubr.msk.bf16.mxu1 %vm555_vm0, %v13959_v48  ;;  %v14047_v47 = vld [vmem:[%s14618_s29 + $0x44c] ss:$8 sps:$4 sm:$0xff]   ;;  %v14049_v48 = vld [vmem:[%s14618_s29 + $0x2e0] ss:$8 sps:$4 sm:$0xff]  }
  0x7c   : > { %730 = vmatmul.mubr.bf16.gmra.mxu0 %v13961_v49  ;;  %1265 = vmatmul.mubr.bf16.gmra.mxu1 %v13962_v50  ;;  %v14050_v49 = vld [vmem:[%s14618_s29 + $0x448] ss:$8 sps:$4 sm:$0xff]   ;;  %v14051_v50 = vld [vmem:[%s14618_s29 + $0x2f4] ss:$8 sps:$4 sm:$0xff]  }
  0x7d   : > { %12443 = vmatprep.mubr.msk.bf16.mxu0 %vm555_vm0, %v13963_v51  ;;  %12557 = vmatprep.mubr.msk.bf16.mxu1 %vm555_vm0, %v13965_v52  ;;  %v14053_v51 = vld [vmem:[%s14618_s29 + $0x45c] ss:$8 sps:$4 sm:$0xff]  }
  0x84   : > { %738 = vmatmul.mubr.bf16.gmra.mxu0 %v13967_v53  ;;  %1273 = vmatmul.mubr.bf16.gmra.mxu1 %v13968_v54 }
  0x85   : > { %12444 = vmatprep.mubr.msk.bf16.mxu0 %vm555_vm0, %v13969_v55  ;;  %12558 = vmatprep.mubr.msk.bf16.mxu1 %vm555_vm0, %v13971_v56 }
  0x8c   : > { %746 = vmatmul.mubr.bf16.gmra.mxu0 %v13973_v57  ;;  %1281 = vmatmul.mubr.bf16.gmra.mxu1 %v13974_v58 }
  0x8d   : > { %12445 = vmatprep.mubr.msk.bf16.mxu0 %vm555_vm0, %v13975_v59  ;;  %12559 = vmatprep.mubr.msk.bf16.mxu1 %vm555_vm0, %v13977_v60  ;;  %v14055_v59 = vld [vmem:[%s14618_s29 + $0x2f0] ss:$8 sps:$4 sm:$0xff]  }
  0x8e   : > { %v14056_v60 = vld [vmem:[%s14618_s29 + $0x458] ss:$8 sps:$4 sm:$0xff]  }
  0x94   : > { %754 = vmatmul.mubr.bf16.gmra.mxu0 %v13979_v61  ;;  %1289 = vmatmul.mubr.bf16.gmra.mxu1 %v13980_v62  ;;  %v14057_v62 = vld [vmem:[%s14618_s29 + $0x304] ss:$8 sps:$4 sm:$0xff]  }
  0x95   : > { %12446 = vmatprep.mubr.msk.bf16.mxu0 %vm555_vm0, %v13981_v63  ;;  %12560 = vmatprep.mubr.msk.bf16.mxu1 %vm555_vm0, %v13983_v0  ;;  %v14059_v63 = vld [vmem:[%s14618_s29 + $0x46c] ss:$8 sps:$4 sm:$0xff]  }
  0x9c   : > { %762 = vmatmul.mubr.bf16.gmra.mxu0 %v13985_v2  ;;  %1297 = vmatmul.mubr.bf16.gmra.mxu1 %v13986_v3 }
  0x9d   : > { %12447 = vmatprep.mubr.msk.bf16.mxu0 %vm555_vm0, %v13987_v4  ;;  %12561 = vmatprep.mubr.msk.bf16.mxu1 %vm555_vm0, %v13989_v5 }
  0xa4   : > { %770 = vmatmul.mubr.bf16.gmra.mxu0 %v13991_v6  ;;  %1305 = vmatmul.mubr.bf16.gmra.mxu1 %v13992_v7 }
  0xa5   : > { %12448 = vmatprep.mubr.msk.bf16.mxu0 %vm555_vm0, %v13993_v8  ;;  %12562 = vmatprep.mubr.msk.bf16.mxu1 %vm555_vm0, %v13995_v9 }
  0xac   : > { %778 = vmatmul.mubr.bf16.gmra.mxu0 %v13997_v10  ;;  %1313 = vmatmul.mubr.bf16.gmra.mxu1 %v13998_v11  ;;  %v14061_v10 = vld [vmem:[%s14618_s29 + $0x300] ss:$8 sps:$4 sm:$0xff]  }
  0xad   : > { %12449 = vmatprep.mubr.msk.bf16.mxu0 %vm555_vm0, %v13999_v12  ;;  %12563 = vmatprep.mubr.msk.bf16.mxu1 %vm555_vm0, %v14001_v13  ;;  %v14062_v11 = vld [vmem:[%s14618_s29 + $0x468] ss:$8 sps:$4 sm:$0xff]   ;;  %v14063_v13 = vld [vmem:[%s14618_s29 + $0x314] ss:$8 sps:$4 sm:$0xff]  }
  0xb4   : > { %786 = vmatmul.mubr.bf16.gmra.mxu0 %v14003_v14  ;;  %1321 = vmatmul.mubr.bf16.gmra.mxu1 %v14004_v15  ;;  %v14065_v14 = vld [vmem:[%s14618_s29 + $0x47c] ss:$8 sps:$4 sm:$0xff]  }
  0xb5   : > { %12450 = vmatprep.mubr.msk.bf16.mxu0 %vm555_vm0, %v14005_v16  ;;  %12564 = vmatprep.mubr.msk.bf16.mxu1 %vm555_vm0, %v14007_v17 }
  0xbc   : > { %794 = vmatmul.mubr.bf16.gmra.mxu0 %v14009_v18  ;;  %1329 = vmatmul.mubr.bf16.gmra.mxu1 %v14010_v19  ;;  %v14183_v19 = vld [vmem:[%s19603_s3 + $0x18] sm:$0xff]  }
  0xbd   : > { %12451 = vmatprep.mubr.msk.bf16.mxu0 %vm555_vm0, %v14011_v20  ;;  %12565 = vmatprep.mubr.msk.bf16.mxu1 %vm555_vm0, %v14013_v21 }
  0xc4   : > { %802 = vmatmul.mubr.bf16.gmra.mxu0 %v14015_v22  ;;  %1337 = vmatmul.mubr.bf16.gmra.mxu1 %v14016_v23 }
  0xc5   : > { %12452 = vmatprep.mubr.msk.bf16.mxu0 %vm555_vm0, %v14017_v24  ;;  %12566 = vmatprep.mubr.msk.bf16.mxu1 %vm555_vm0, %v14019_v25  ;;  %v14067_v24 = vld [vmem:[%s14618_s29 + $0x310] ss:$8 sps:$4 sm:$0xff]  }
  0xc6   : > { %v14068_v25 = vld [vmem:[%s14618_s29 + $0x478] ss:$8 sps:$4 sm:$0xff]  }
  0xcc   : > { %810 = vmatmul.mubr.bf16.gmra.mxu0 %v14021_v26  ;;  %1345 = vmatmul.mubr.bf16.gmra.mxu1 %v14022_v27  ;;  %v14069_v27 = vld [vmem:[%s14618_s29 + $0x324] ss:$8 sps:$4 sm:$0xff]  }
  0xcd   : > { %12453 = vmatprep.mubr.msk.bf16.mxu0 %vm555_vm0, %v14023_v28  ;;  %12567 = vmatprep.mubr.msk.bf16.mxu1 %vm555_vm0, %v14025_v29  ;;  %v14071_v28 = vld [vmem:[%s14618_s29 + $0x48c] ss:$8 sps:$4 sm:$0xff]  }
  0xd4   : > { %818 = vmatmul.mubr.bf16.gmra.mxu0 %v14027_v30  ;;  %1353 = vmatmul.mubr.bf16.gmra.mxu1 %v14028_v31 }
  0xd5   : > { %12454 = vmatprep.mubr.msk.bf16.mxu0 %vm555_vm0, %v14029_v32  ;;  %12568 = vmatprep.mubr.msk.bf16.mxu1 %vm555_vm0, %v14031_v33  ;;  %v14122_v33 = vld [vmem:[%s14618_s29 + $0x508] ss:$8 sps:$4 sm:$0xff]  }
  0xdc   : > { %826 = vmatmul.mubr.bf16.gmra.mxu0 %v14033_v36  ;;  %1361 = vmatmul.mubr.bf16.gmra.mxu1 %v14034_v37 }
  0xdd   : > { %12455 = vmatprep.mubr.msk.bf16.mxu0 %vm555_vm0, %v12422_v38  ;;  %12569 = vmatprep.mubr.msk.bf16.mxu1 %vm555_vm0, %v12546_v39  ;;  %v14073_v38 = vld [vmem:[%s14618_s29 + $0x320] ss:$8 sps:$4 sm:$0xff]  }
  0xde   : > { %v14074_v39 = vld [vmem:[%s14618_s29 + $0x488] ss:$8 sps:$4 sm:$0xff]  }
  0xe4   : > { %834 = vmatmul.mubr.bf16.gmra.mxu0 %v12421_v40  ;;  %1369 = vmatmul.mubr.bf16.gmra.mxu1 %v12545_v41  ;;  %v14075_v41 = vld [vmem:[%s14618_s29 + $0x334] ss:$8 sps:$4 sm:$0xff]  }
  0xe5   : > { %12661 = vmatprep.mubr.msk.bf16.mxu0 %vm555_vm0, %v14041_v42  ;;  %12775 = vmatprep.mubr.msk.bf16.mxu1 %vm555_vm0, %v14044_v43  ;;  %v14077_v42 = vld [vmem:[%s14618_s29 + $0x49c] ss:$8 sps:$4 sm:$0xff]  }
  0xec   : > { %1773 = vmatmul.mubr.bf16.vlgmr.msra.gmra.mxu0 %v14039_v44  ;;  %2353 = vmatmul.mubr.bf16.vlgmr.msra.gmra.mxu1 %v14042_v45 }
  0xed   : > { %12662 = vmatprep.mubr.msk.bf16.mxu0 %vm555_vm0, %v14045_v46  ;;  %12776 = vmatprep.mubr.msk.bf16.mxu1 %vm555_vm0, %v14047_v47 }
  0xf4   : > { %v14877_v52 = vpop.f32.mrf.mxu0  ;;  %v14879_v53 = vpop.f32.mrf.mxu1  ;;  %1781 = vmatmul.mubr.bf16.gmra.mxu0 %v14049_v48  ;;  %2361 = vmatmul.mubr.bf16.gmra.mxu1 %v14050_v49 }
  0xf5   : > { %12663 = vmatprep.mubr.msk.bf16.mxu0 %vm555_vm0, %v14051_v50  ;;  %12777 = vmatprep.mubr.msk.bf16.mxu1 %vm555_vm0, %v14053_v51 }
  0xf6   : > { %v661_v55 = vpop.f32.mrf.mxu0  ;;  %v1196_v56 = vpop.f32.mrf.mxu1 }
  0xf7   : > { %v14079_v55 = vld [vmem:[%s14618_s29 + $0x330] ss:$8 sps:$4 sm:$0xff]  }
  0xf8   : > { %v14885_v57 = vpop.f32.mrf.mxu0  ;;  %v14887_v58 = vpop.f32.mrf.mxu1  ;;  %v14080_v56 = vld [vmem:[%s14618_s29 + $0x498] ss:$8 sps:$4 sm:$0xff]  }
  0xfa   : > { %v664_v0 = vpop.f32.mrf.mxu0  ;;  %v1199_v2 = vpop.f32.mrf.mxu1 }
  0xfc   : > { %v14895_v3 = vpop.f32.mrf.mxu0  ;;  %v14897_v4 = vpop.f32.mrf.mxu1  ;;  %1789 = vmatmul.mubr.bf16.gmra.mxu0 %v14055_v59  ;;  %2369 = vmatmul.mubr.bf16.gmra.mxu1 %v14056_v60  ;;  %v14081_v60 = vld [vmem:[%s14618_s29 + $0x344] ss:$8 sps:$4 sm:$0xff]   ;;  %v14116_v59 = vld [vmem:[%s14618_s29 + $0x4f8] ss:$8 sps:$4 sm:$0xff]  }
  0xfd   : > { %12664 = vmatprep.mubr.msk.bf16.mxu0 %vm555_vm0, %v14057_v62  ;;  %12778 = vmatprep.mubr.msk.bf16.mxu1 %vm555_vm0, %v14059_v63  ;;  %v14083_v62 = vld [vmem:[%s14618_s29 + $0x4ac] ss:$8 sps:$4 sm:$0xff]  }
  0xfe   : > { %v669_v6 = vpop.f32.mrf.mxu0  ;;  %v1204_v7 = vpop.f32.mrf.mxu1 }
  0xff   : > { %v14115_v7 = vld [vmem:[%s14618_s29 + $0x390] ss:$8 sps:$4 sm:$0xff]  }
 0x100   : > { %v14903_v8 = vpop.f32.mrf.mxu0  ;;  %v14905_v9 = vpop.f32.mrf.mxu1 }
 0x102   : > { %v672_v15 = vpop.f32.mrf.mxu0  ;;  %v1207_v16 = vpop.f32.mrf.mxu1 }
 0x103   : > { %v14085_v15 = vld [vmem:[%s14618_s29 + $0x340] ss:$8 sps:$4 sm:$0xff]  }
 0x104   : > { %v14913_v17 = vpop.f32.mrf.mxu0  ;;  %v14915_v18 = vpop.f32.mrf.mxu1  ;;  %1797 = vmatmul.mubr.bf16.gmra.mxu0 %v14061_v10  ;;  %2377 = vmatmul.mubr.bf16.gmra.mxu1 %v14062_v11  ;;  %v14086_v16 = vld [vmem:[%s14618_s29 + $0x4a8] ss:$8 sps:$4 sm:$0xff]  }
 0x105   : > { %12665 = vmatprep.mubr.msk.bf16.mxu0 %vm555_vm0, %v14063_v13  ;;  %12779 = vmatprep.mubr.msk.bf16.mxu1 %vm555_vm0, %v14065_v14 }
 0x106   : > { %v677_v20 = vpop.f32.mrf.mxu0  ;;  %v1212_v21 = vpop.f32.mrf.mxu1 }
 0x107   : > { %v14087_v21 = vld [vmem:[%s14618_s29 + $0x354] ss:$8 sps:$4 sm:$0xff]  }
 0x108   : > { %v14921_v22 = vpop.f32.mrf.mxu0  ;;  %v14923_v23 = vpop.f32.mrf.mxu1 }
 0x10a   : > { %v680_v29 = vpop.f32.mrf.mxu0  ;;  %v1215_v30 = vpop.f32.mrf.mxu1 }
 0x10c   : > { %v14931_v31 = vpop.f32.mrf.mxu0  ;;  %v14933_v32 = vpop.f32.mrf.mxu1  ;;  %1805 = vmatmul.mubr.bf16.gmra.mxu0 %v14067_v24  ;;  %2385 = vmatmul.mubr.bf16.gmra.mxu1 %v14068_v25  ;;  %v14089_v24 = vld [vmem:[%s14618_s29 + $0x4bc] ss:$8 sps:$4 sm:$0xff]  }
 0x10d   : > { %12666 = vmatprep.mubr.msk.bf16.mxu0 %vm555_vm0, %v14069_v27  ;;  %12780 = vmatprep.mubr.msk.bf16.mxu1 %vm555_vm0, %v14071_v28  ;;  %v14175_v25 = vld [vmem:[%s19603_s3 + $0x38] sm:$0xff]  }
 0x10e   : > { %v685_v34 = vpop.f32.mrf.mxu0  ;;  %v1220_v35 = vpop.f32.mrf.mxu1  ;;  %4440 = vmatpush1.bf16.msra.mxu0 %v14175_v25 }
 0x10f   : > { %4441 = vmatprep.subr.bf16.mxu0 %v19606_v1 }
 0x110   : > { %v14939_v36 = vpop.f32.mrf.mxu0  ;;  %v14941_v37 = vpop.f32.mrf.mxu1 }
 0x112   : > { %v688_v43 = vpop.f32.mrf.mxu0  ;;  %v1223_v44 = vpop.f32.mrf.mxu1 }
 0x113   : > { %v14092_v43 = vld [vmem:[%s14618_s29 + $0x4b8] ss:$8 sps:$4 sm:$0xff]   ;;  %v14113_v44 = vld [vmem:[%s14618_s29 + $0x4fc] ss:$8 sps:$4 sm:$0xff]  }
 0x114   : > { %v14949_v45 = vpop.f32.mrf.mxu0  ;;  %v14951_v46 = vpop.f32.mrf.mxu1  ;;  %1813 = vmatmul.mubr.bf16.gmra.mxu0 %v14073_v38  ;;  %2393 = vmatmul.mubr.bf16.gmra.mxu1 %v14074_v39 }
 0x115   : > { %12667 = vmatprep.mubr.msk.bf16.mxu0 %vm555_vm0, %v14075_v41  ;;  %12781 = vmatprep.mubr.msk.bf16.mxu1 %vm555_vm0, %v14077_v42  ;;  %v14091_v42 = vld [vmem:[%s14618_s29 + $0x350] ss:$8 sps:$4 sm:$0xff]  }
 0x116   : > { %v693_v48 = vpop.f32.mrf.mxu0  ;;  %v1228_v49 = vpop.f32.mrf.mxu1 }
 0x117   : > { %v14093_v48 = vld [vmem:[%s14618_s29 + $0x364] ss:$8 sps:$4 sm:$0xff]  }
 0x118   : > { %v14957_v50 = vpop.f32.mrf.mxu0  ;;  %v14959_v51 = vpop.f32.mrf.mxu1  ;;  %v14095_v49 = vld [vmem:[%s14618_s29 + $0x4cc] ss:$8 sps:$4 sm:$0xff]  }
 0x11a   : > { %v696_v63 = vpop.f32.mrf.mxu0  ;;  %v1231_v0 = vpop.f32.mrf.mxu1 }
 0x11b   : > { %v14109_v0 = vld [vmem:[%s14618_s29 + $0x380] ss:$8 sps:$4 sm:$0xff]  }
 0x11c   : > { %v14967_v2 = vpop.f32.mrf.mxu0  ;;  %v14969_v6 = vpop.f32.mrf.mxu1  ;;  %1821 = vmatmul.mubr.bf16.gmra.mxu0 %v14079_v55  ;;  %2401 = vmatmul.mubr.bf16.gmra.mxu1 %v14080_v56 }
 0x11d   : > { %12668 = vmatprep.mubr.msk.bf16.mxu0 %vm555_vm0, %v14081_v60  ;;  %12782 = vmatprep.mubr.msk.bf16.mxu1 %vm555_vm0, %v14083_v62  ;;  %v14176_v60 = vld [vmem:[%s19603_s3 + $0xb8] sm:$0xff]  }
 0x11e   : > { %v701_v10 = vpop.f32.mrf.mxu0  ;;  %v1236_v11 = vpop.f32.mrf.mxu1  ;;  %5242 = vmatpush1.bf16.msra.mxu1 %v14176_v60 }
 0x11f   : > { %5243 = vmatprep.subr.bf16.mxu1 %v19606_v1 }
 0x120   : > { %v14975_v13 = vpop.f32.mrf.mxu0  ;;  %v14977_v14 = vpop.f32.mrf.mxu1 }
 0x122   : > { %v704_v27 = vpop.f32.mrf.mxu0  ;;  %v1239_v28 = vpop.f32.mrf.mxu1 }
 0x123   : > { %v14099_v27 = vld [vmem:[%s14618_s29 + $0x374] ss:$8 sps:$4 sm:$0xff]  }
 0x124   : > { %v14988_v29 = vpop.f32.mrf.mxu0  ;;  %v14990_v30 = vpop.f32.mrf.mxu1  ;;  %1829 = vmatmul.mubr.bf16.gmra.mxu0 %v14085_v15  ;;  %2409 = vmatmul.mubr.bf16.gmra.mxu1 %v14086_v16  ;;  %v14101_v28 = vld [vmem:[%s14618_s29 + $0x4dc] ss:$8 sps:$4 sm:$0xff]  }
 0x125   : > { %12669 = vmatprep.mubr.msk.bf16.mxu0 %vm555_vm0, %v14087_v21  ;;  %12783 = vmatprep.mubr.msk.bf16.mxu1 %vm555_vm0, %v14089_v24  ;;  %v14097_v21 = vld [vmem:[%s14618_s29 + $0x360] ss:$8 sps:$4 sm:$0xff]  }
 0x126   : > { %v709_v35 = vpop.f32.mrf.mxu0  ;;  %v1244_v38 = vpop.f32.mrf.mxu1  ;;  %v14098_v24 = vld [vmem:[%s14618_s29 + $0x4c8] ss:$8 sps:$4 sm:$0xff]  }
 0x128   : > { %v14997_v39 = vpop.f32.mrf.mxu0  ;;  %v14999_v41 = vpop.f32.mrf.mxu1 }
 0x12a   : > { %v712_v55 = vpop.f32.mrf.mxu0  ;;  %v1247_v56 = vpop.f32.mrf.mxu1 }
 0x12b   : > { %v14177_v56 = vld [vmem:[%s19603_s3 + $0x30] sm:$0xff]  }
 0x12c   : > { %v15010_v62 = vpop.f32.mrf.mxu0  ;;  %v15012_v63 = vpop.f32.mrf.mxu1  ;;  %1837 = vmatmul.mubr.bf16.gmra.mxu0 %v14091_v42  ;;  %2417 = vmatmul.mubr.bf16.gmra.mxu1 %v14092_v43 }
 0x12d   : > { %12670 = vmatprep.mubr.msk.bf16.mxu0 %vm555_vm0, %v14093_v48  ;;  %12784 = vmatprep.mubr.msk.bf16.mxu1 %vm555_vm0, %v14095_v49 }
 0x12e   : > { %v717_v10 = vpop.f32.mrf.mxu0  ;;  %v1252_v11 = vpop.f32.mrf.mxu1  ;;  %4442 = vmatpush1.bf16.msra.mxu0 %v14177_v56 }
 0x12f   : > { %v14103_v11 = vld [vmem:[%s14618_s29 + $0x370] ss:$8 sps:$4 sm:$0xff]   ;;  %4443 = vmatprep.subr.bf16.mxu0 %v19606_v1 }
 0x130   : > { %v15019_v15 = vpop.f32.mrf.mxu0  ;;  %v15021_v16 = vpop.f32.mrf.mxu1 }
 0x132   : > { %v720_v35 = vpop.f32.mrf.mxu0  ;;  %v1255_v38 = vpop.f32.mrf.mxu1 }
 0x134   : > { %v15029_v42 = vpop.f32.mrf.mxu0  ;;  %v15031_v43 = vpop.f32.mrf.mxu1  ;;  %1845 = vmatmul.mubr.bf16.gmra.mxu0 %v14097_v21  ;;  %2425 = vmatmul.mubr.bf16.gmra.mxu1 %v14098_v24  ;;  %v14104_v21 = vld [vmem:[%s14618_s29 + $0x4d8] ss:$8 sps:$4 sm:$0xff]   ;;  %v14111_v24 = vld [vmem:[%s14618_s29 + $0x394] ss:$8 sps:$4 sm:$0xff]  }
 0x135   : > { %12671 = vmatprep.mubr.msk.bf16.mxu0 %vm555_vm0, %v14099_v27  ;;  %12785 = vmatprep.mubr.msk.bf16.mxu1 %vm555_vm0, %v14101_v28  ;;  %v14105_v27 = vld [vmem:[%s14618_s29 + $0x384] ss:$8 sps:$4 sm:$0xff]  }
 0x136   : > { %v725_v49 = vpop.f32.mrf.mxu0  ;;  %v1260_v55 = vpop.f32.mrf.mxu1  ;;  %v14107_v28 = vld [vmem:[%s14618_s29 + $0x4ec] ss:$8 sps:$4 sm:$0xff]  }
 0x138   : > { %v15056_v60 = vpop.f32.mrf.mxu0  ;;  %v15058_v10 = vpop.f32.mrf.mxu1 }
 0x13a   : > { %v728_v35 = vpop.f32.mrf.mxu0  ;;  %v1263_v38 = vpop.f32.mrf.mxu1 }
 0x13b   : > { %v14178_v38 = vld [vmem:[%s19603_s3 + $0xb0] sm:$0xff]  }
 0x13c   : > { %v15067_v49 = vpop.f32.mrf.mxu0  ;;  %v15069_v55 = vpop.f32.mrf.mxu1  ;;  %1853 = vmatmul.mubr.bf16.gmra.mxu0 %v14103_v11  ;;  %2433 = vmatmul.mubr.bf16.gmra.mxu1 %v14104_v21  ;;  %v14110_v11 = vld [vmem:[%s14618_s29 + $0x4e8] ss:$8 sps:$4 sm:$0xff]  }
 0x13d   : > { %12672 = vmatprep.mubr.msk.bf16.mxu0 %vm555_vm0, %v14105_v27  ;;  %12786 = vmatprep.mubr.msk.bf16.mxu1 %vm555_vm0, %v14107_v28 }
 0x13e   : > { %v733_v56 = vpop.f32.mrf.mxu0  ;;  %v1268_v35 = vpop.f32.mrf.mxu1  ;;  %5244 = vmatpush1.bf16.msra.mxu1 %v14178_v38  ;;  %v14119_v38 = vld [vmem:[%s14618_s29 + $0x50c] ss:$8 sps:$4 sm:$0xff]  }
 0x13f   : > { %5245 = vmatprep.subr.bf16.mxu1 %v19606_v1  ;;  %v14179_v56 = vld [vmem:[%s19603_s3 + $0x28] sm:$0xff]  }
 0x140   : > { %v15078_v48 = vpop.f32.mrf.mxu0  ;;  %v15080_v25 = vpop.f32.mrf.mxu1  ;;  %4444 = vmatpush1.bf16.msra.mxu0 %v14179_v56 }
 0x141   : > { %4445 = vmatprep.subr.bf16.mxu0 %v19606_v1 }
 0x142   : > { %v736_v27 = vpop.f32.mrf.mxu0  ;;  %v1271_v28 = vpop.f32.mrf.mxu1 }
 0x144   : > { %v15092_v35 = vpop.f32.mrf.mxu0  ;;  %v15094_v34 = vpop.f32.mrf.mxu1  ;;  %1861 = vmatmul.mubr.bf16.gmra.mxu0 %v14109_v0  ;;  %2441 = vmatmul.mubr.bf16.gmra.mxu1 %v14110_v11  ;;  %v14117_v11 = vld [vmem:[%s14618_s29 + $0x3a4] ss:$8 sps:$4 sm:$0xff]  }
 0x145   : > { %12673 = vmatprep.mubr.msk.bf16.mxu0 %vm555_vm0, %v14111_v24  ;;  %12787 = vmatprep.mubr.msk.bf16.mxu1 %vm555_vm0, %v14113_v44  ;;  %v14180_v44 = vld [vmem:[%s19603_s3 + $0xa8] sm:$0xff]   ;;  %v14181_v0 = vld [vmem:[%s19603_s3 + $0x20] sm:$0xff]  }
 0x146   : > { %v741_v27 = vpop.f32.mrf.mxu0  ;;  %v1276_v28 = vpop.f32.mrf.mxu1  ;;  %5246 = vmatpush1.bf16.msra.mxu1 %v14180_v44  ;;  %4446 = vmatpush1.bf16.msra.mxu0 %v14181_v0 }
 0x147   : > { %5247 = vmatprep.subr.bf16.mxu1 %v19606_v1  ;;  %v14123_v28 = vld [vmem:[%s14618_s29 + $0x3b4] ss:$8 sps:$4 sm:$0xff]   ;;  %4447 = vmatprep.subr.bf16.mxu0 %v19606_v1 }
 0x148   : > { %v15101_v21 = vpop.f32.mrf.mxu0  ;;  %v15103_v20 = vpop.f32.mrf.mxu1 }
 0x14a   : > { %v744_v47 = vpop.f32.mrf.mxu0  ;;  %v1279_v24 = vpop.f32.mrf.mxu1  ;;  %4448 = vmatpush1.bf16.msra.mxu0 %v14183_v19 }
 0x14b   : > { %4449 = vmatprep.subr.bf16.mxu0 %v19606_v1 }
 0x14c   : > { %v15114_v56 = vpop.f32.mrf.mxu0  ;;  %v15116_v27 = vpop.f32.mrf.mxu1  ;;  %1869 = vmatmul.mubr.bf16.gmra.mxu0 %v14115_v7  ;;  %2449 = vmatmul.mubr.bf16.gmra.mxu1 %v14116_v59  ;;  %v14121_v59 = vld [vmem:[%s14618_s29 + $0x3a0] ss:$8 sps:$4 sm:$0xff]  }
 0x14d   : > { %12674 = vmatprep.mubr.msk.bf16.mxu0 %vm555_vm0, %v14117_v11  ;;  %12788 = vmatprep.mubr.msk.bf16.mxu1 %vm555_vm0, %v14119_v38  ;;  %v14125_v38 = vld [vmem:[%s14618_s29 + $0x51c] ss:$8 sps:$4 sm:$0xff]   ;;  %v14128_v11 = vld [vmem:[%s14618_s29 + $0x518] ss:$8 sps:$4 sm:$0xff]  }
 0x14e   : > { %v749_v47 = vpop.f32.mrf.mxu0  ;;  %v1284_v24 = vpop.f32.mrf.mxu1 }
 0x150   : > { %v15126_v40 = vpop.f32.mrf.mxu0  ;;  %v15128_v7 = vpop.f32.mrf.mxu1 }
 0x151   : > { %19649 = vst [vmem:[#allocation4_spill] sm:$0xff] %v15128_v7 }
 0x152   : > { %v752_v47 = vpop.f32.mrf.mxu0  ;;  %v1287_v44 = vpop.f32.mrf.mxu1 }
 0x153   : > { %v14182_v44 = vld [vmem:[%s19603_s3 + $0xa0] sm:$0xff]  }
 0x154   : > { %v15137_v24 = vpop.f32.mrf.mxu0  ;;  %v15139_v26 = vpop.f32.mrf.mxu1  ;;  %1877 = vmatmul.mubr.bf16.gmra.mxu0 %v14121_v59  ;;  %2457 = vmatmul.mubr.bf16.gmra.mxu1 %v14122_v33  ;;  %v14127_v59 = vld [vmem:[%s14618_s29 + $0x3b0] ss:$8 sps:$4 sm:$0xff]  }
 0x155   : > { %19650 = vst [vmem:[#allocation5_spill] sm:$0xff] %v15137_v24  ;;  %19651 = vst [vmem:[#allocation6_spill] sm:$0xff] %v15139_v26  ;;  %12675 = vmatprep.mubr.msk.bf16.mxu0 %vm555_vm0, %v14123_v28  ;;  %12789 = vmatprep.mubr.msk.bf16.mxu1 %vm555_vm0, %v14125_v38  ;;  %v14129_v38 = vld [vmem:[%s14618_s29 + $0x3c4] ss:$8 sps:$4 sm:$0xff]  }
 0x156   : > { %v757_v0 = vpop.f32.mrf.mxu0  ;;  %v1292_v47 = vpop.f32.mrf.mxu1  ;;  %5248 = vmatpush1.bf16.msra.mxu1 %v14182_v44  ;;  %v19660_v44 = vmov 0  }
 0x157   : > { %v14131_v0 = vld [vmem:[%s14618_s29 + $0x52c] ss:$8 sps:$4 sm:$0xff]   ;;  %5249 = vmatprep.subr.bf16.mxu1 %v19606_v1  ;;  %v14133_v1 = vld [vmem:[%s14618_s29 + $0x3c0] ss:$8 sps:$4 sm:$0xff]  }
 0x158   : > { %v15151_v12 = vpop.f32.mrf.mxu0  ;;  %v15153_v33 = vpop.f32.mrf.mxu1 }
 0x159   : > { %19652 = vst [vmem:[#allocation7_spill] sm:$0xff] %v15151_v12  ;;  %19653 = vst [vmem:[#allocation8_spill] sm:$0xff] %v15153_v33  ;;  %v14134_v33 = vld [vmem:[%s14618_s29 + $0x528] ss:$8 sps:$4 sm:$0xff]  }
 0x15a   : > { %v760_v47 = vpop.f32.mrf.mxu0  ;;  %v1295_v5 = vpop.f32.mrf.mxu1 }
 0x15c   : > { %v15163_v61 = vpop.f32.mrf.mxu0  ;;  %v15165_v54 = vpop.f32.mrf.mxu1  ;;  %1885 = vmatmul.mubr.bf16.gmra.mxu0 %v14127_v59  ;;  %2465 = vmatmul.mubr.bf16.gmra.mxu1 %v14128_v11  ;;  %v14135_v59 = vld [vmem:[%s14618_s29 + $0x3d4] ss:$8 sps:$4 sm:$0xff]  }
 0x15d   : > { %19654 = vst [vmem:[#allocation9_spill] sm:$0xff] %v15163_v61  ;;  %19655 = vst [vmem:[#allocation10_spill] sm:$0xff] %v15165_v54  ;;  %12676 = vmatprep.mubr.msk.bf16.mxu0 %vm555_vm0, %v14129_v38  ;;  %12790 = vmatprep.mubr.msk.bf16.mxu1 %vm555_vm0, %v14131_v0  ;;  %v14137_v11 = vld [vmem:[%s14618_s29 + $0x53c] ss:$8 sps:$4 sm:$0xff]   ;;  %v14188_v0 = vld [vmem:[%s19603_s3 + $0x10] sm:$0xff]  }
 0x15e   : > { %v765_v5 = vpop.f32.mrf.mxu0  ;;  %v1300_v19 = vpop.f32.mrf.mxu1  ;;  %v14186_v38 = vld [vmem:[%s19603_s3 + $0x98] sm:$0xff]   ;;  %4450 = vmatpush1.bf16.msra.mxu0 %v14188_v0 }
 0x15f   : > { %5250 = vmatpush1.bf16.msra.mxu1 %v14186_v38  ;;  %4451 = vmatprep.subr.bf16.mxu0 %v19660_v44 }
 0x160   : > { %v15171_v47 = vpop.f32.mrf.mxu0  ;;  %v15173_v28 = vpop.f32.mrf.mxu1  ;;  %5251 = vmatprep.subr.bf16.mxu1 %v19660_v44 }
 0x161   : > { %19656 = vst [vmem:[#allocation11_spill] sm:$0xff] %v15171_v47  ;;  %19657 = vst [vmem:[#allocation12_spill] sm:$0xff] %v15173_v28  ;;  %v14140_v47 = vld [vmem:[%s14618_s29 + $0x538] ss:$8 sps:$4 sm:$0xff]  }
 0x162   : > { %v768_v26 = vpop.f32.mrf.mxu0  ;;  %v1303_v24 = vpop.f32.mrf.mxu1 }
 0x164   : > { %v15187_v5 = vpop.f32.mrf.mxu0  ;;  %v15189_v19 = vpop.f32.mrf.mxu1  ;;  %1893 = vmatmul.mubr.bf16.gmra.mxu0 %v14133_v1  ;;  %2473 = vmatmul.mubr.bf16.gmra.mxu1 %v14134_v33  ;;  %v14139_v33 = vld [vmem:[%s14618_s29 + $0x3d0] ss:$8 sps:$4 sm:$0xff]  }
 0x165   : > { %19658 = vst [vmem:[#allocation13_spill] sm:$0xff] %v15187_v5  ;;  %19659 = vst [vmem:[#allocation14_spill] sm:$0xff] %v15189_v19  ;;  %12677 = vmatprep.mubr.msk.bf16.mxu0 %vm555_vm0, %v14135_v59  ;;  %12791 = vmatprep.mubr.msk.bf16.mxu1 %vm555_vm0, %v14137_v11  ;;  %v14141_v59 = vld [vmem:[%s14618_s29 + $0x3e4] ss:$8 sps:$4 sm:$0xff]  }
 0x166   : > { %v773_v24 = vpop.f32.mrf.mxu0  ;;  %v1308_v12 = vpop.f32.mrf.mxu1  ;;  %v14143_v19 = vld [vmem:[%s14618_s29 + $0x54c] ss:$8 sps:$4 sm:$0xff]  }
 0x167   : > { %v14146_v24 = vld [vmem:[%s14618_s29 + $0x548] ss:$8 sps:$4 sm:$0xff]  }
 0x168   : > { %v15197_v28 = vpop.f32.mrf.mxu0  ;;  %v15199_v1 = vpop.f32.mrf.mxu1 }
 0x169   : > { %19661 = vst [vmem:[#allocation15_spill] sm:$0xff] %v15197_v28  ;;  %19662 = vst [vmem:[#allocation16_spill] sm:$0xff] %v15199_v1 }
 0x16a   : > { %v776_v11 = vpop.f32.mrf.mxu0  ;;  %v1311_v12 = vpop.f32.mrf.mxu1 }
 0x16b   : > { %v14190_v11 = vld [vmem:[%s19603_s3 + $0x90] sm:$0xff]   ;;  %v14191_v12 = vld [vmem:[%s19603_s3 + $0x8] sm:$0xff]  }
 0x16c   : > { %v15207_v38 = vpop.f32.mrf.mxu0  ;;  %v15209_v0 = vpop.f32.mrf.mxu1  ;;  %1901 = vmatmul.mubr.bf16.gmra.mxu0 %v14139_v33  ;;  %2481 = vmatmul.mubr.bf16.gmra.mxu1 %v14140_v47  ;;  %v14145_v33 = vld [vmem:[%s14618_s29 + $0x3e0] ss:$8 sps:$4 sm:$0xff]  }
 0x16d   : > { %19663 = vst [vmem:[#allocation17_spill] sm:$0xff] %v15207_v38  ;;  %19664 = vst [vmem:[#allocation18_spill] sm:$0xff] %v15209_v0  ;;  %12678 = vmatprep.mubr.msk.bf16.mxu0 %vm555_vm0, %v14141_v59  ;;  %12792 = vmatprep.mubr.msk.bf16.mxu1 %vm555_vm0, %v14143_v19  ;;  %v14147_v19 = vld [vmem:[%s14618_s29 + $0x3f4] ss:$8 sps:$4 sm:$0xff]  }
 0x16e   : > { %v781_v26 = vpop.f32.mrf.mxu0  ;;  %v1316_v1 = vpop.f32.mrf.mxu1  ;;  %5252 = vmatpush1.bf16.msra.mxu1 %v14190_v11  ;;  %4452 = vmatpush1.bf16.msra.mxu0 %v14191_v12 }
 0x16f   : > { %v14149_v26 = vld [vmem:[%s14618_s29 + $0x55c] ss:$8 sps:$4 sm:$0xff]   ;;  %5253 = vmatprep.subr.bf16.mxu1 %v19660_v44  ;;  %4453 = vmatprep.subr.bf16.mxu0 %v19660_v44 }
 0x170   : > { %v15221_v28 = vpop.f32.mrf.mxu0  ;;  %v15223_v47 = vpop.f32.mrf.mxu1 }
 0x171   : > { %19665 = vst [vmem:[#allocation19_spill] sm:$0xff] %v15221_v28  ;;  %19666 = vst [vmem:[#allocation20_spill] sm:$0xff] %v15223_v47  ;;  %v14151_v47 = vld [vmem:[%s14618_s29 + $0x3f0] ss:$8 sps:$4 sm:$0xff]  }
 0x172   : > { %v784_v1 = vpop.f32.mrf.mxu0  ;;  %v1319_v0 = vpop.f32.mrf.mxu1  ;;  %v14152_v28 = vld [vmem:[%s14618_s29 + $0x558] ss:$8 sps:$4 sm:$0xff]  }
 0x174   : > { %v15233_v38 = vpop.f32.mrf.mxu0  ;;  %v15235_v5 = vpop.f32.mrf.mxu1  ;;  %1909 = vmatmul.mubr.bf16.gmra.mxu0 %v14145_v33  ;;  %2489 = vmatmul.mubr.bf16.gmra.mxu1 %v14146_v24  ;;  %v14153_v33 = vld [vmem:[%s14618_s29 + $0x404] ss:$8 sps:$4 sm:$0xff]  }
 0x175   : > { %19667 = vst [vmem:[#allocation21_spill] sm:$0xff] %v15233_v38  ;;  %19668 = vst [vmem:[#allocation22_spill] sm:$0xff] %v15235_v5  ;;  %12679 = vmatprep.mubr.msk.bf16.mxu0 %vm555_vm0, %v14147_v19  ;;  %12793 = vmatprep.mubr.msk.bf16.mxu1 %vm555_vm0, %v14149_v26  ;;  %v14155_v24 = vld [vmem:[%s14618_s29 + $0x56c] ss:$8 sps:$4 sm:$0xff]   ;;  %v14194_v26 = vld [vmem:[%s19603_s3] sm:$0xff]  }
 0x176   : > { %v789_v0 = vpop.f32.mrf.mxu0  ;;  %v1324_v12 = vpop.f32.mrf.mxu1  ;;  %v14193_v19 = vld [vmem:[%s19603_s3 + $0x88] sm:$0xff]   ;;  %4454 = vmatpush1.bf16.msra.mxu0 %v14194_v26 }
 0x177   : > { %5254 = vmatpush1.bf16.msra.mxu1 %v14193_v19  ;;  %4455 = vmatprep.subr.bf16.mxu0 %v19660_v44 }
 0x178   : > { %v15241_v1 = vpop.f32.mrf.mxu0  ;;  %v15243_v59 = vpop.f32.mrf.mxu1  ;;  %5255 = vmatprep.subr.bf16.mxu1 %v19660_v44 }
 0x179   : > { %19669 = vst [vmem:[#allocation23_spill] sm:$0xff] %v15241_v1  ;;  %19670 = vst [vmem:[#allocation24_spill] sm:$0xff] %v15243_v59  ;;  %v14158_v59 = vld [vmem:[%s14618_s29 + $0x568] ss:$8 sps:$4 sm:$0xff]  }
 0x17a   : > { %v792_v61 = vpop.f32.mrf.mxu0  ;;  %v1327_v7 = vpop.f32.mrf.mxu1 }
 0x17c   : > { %v15257_v0 = vpop.f32.mrf.mxu0  ;;  %v15259_v12 = vpop.f32.mrf.mxu1  ;;  %1917 = vmatmul.mubr.bf16.gmra.mxu0 %v14151_v47  ;;  %2497 = vmatmul.mubr.bf16.gmra.mxu1 %v14152_v28  ;;  %v14157_v28 = vld [vmem:[%s14618_s29 + $0x400] ss:$8 sps:$4 sm:$0xff]  }
 0x17d   : > { %19671 = vst [vmem:[#allocation25_spill] sm:$0xff] %v15257_v0  ;;  %19672 = vst [vmem:[#allocation26_spill] sm:$0xff] %v15259_v12  ;;  %12680 = vmatprep.mubr.msk.bf16.mxu0 %vm555_vm0, %v14153_v33  ;;  %12794 = vmatprep.mubr.msk.bf16.mxu1 %vm555_vm0, %v14155_v24  ;;  %v14159_v33 = vld [vmem:[%s14618_s29 + $0x414] ss:$8 sps:$4 sm:$0xff]   ;;  %v14164_v0 = vld [vmem:[%s14618_s29 + $0x578] ss:$8 sps:$4 sm:$0xff]  }
 0x17e   : > { %v797_v7 = vpop.f32.mrf.mxu0  ;;  %v1332_v54 = vpop.f32.mrf.mxu1  ;;  %v14161_v12 = vld [vmem:[%s14618_s29 + $0x57c] ss:$8 sps:$4 sm:$0xff]  }
 0x17f   : > { %v14197_v54 = vld [vmem:[%s19603_s3 + $0x80] sm:$0xff]  }
 0x180   : > { %v15267_v11 = vpop.f32.mrf.mxu0  ;;  %v15269_v47 = vpop.f32.mrf.mxu1  ;;  %5256 = vmatpush1.bf16.msra.mxu1 %v14197_v54 }
 0x181   : > { %19673 = vst [vmem:[#allocation27_spill] sm:$0xff] %v15267_v11  ;;  %19674 = vst [vmem:[#allocation28_spill] sm:$0xff] %v15269_v47  ;;  %v14198_v47 = vld [vmem:[%s19603_s3 + $0x78] sm:$0xff]   ;;  %5257 = vmatprep.subr.bf16.mxu1 %v19660_v44 }
 0x182   : > { %v800_v24 = vpop.f32.mrf.mxu0  ;;  %v1335_v7 = vpop.f32.mrf.mxu1  ;;  %4456 = vmatpush2.bf16.msra.mxu0 %v14198_v47 }
 0x183   : > { %4457 = vmatprep.subr.bf16.mxu0 %v19660_v44 }
 0x184   : > { %v15280_v19 = vpop.f32.mrf.mxu0  ;;  %v15282_v26 = vpop.f32.mrf.mxu1  ;;  %1925 = vmatmul.mubr.bf16.gmra.mxu0 %v14157_v28  ;;  %2505 = vmatmul.mubr.bf16.gmra.mxu1 %v14158_v59  ;;  %v14163_v59 = vld [vmem:[%s14618_s29 + $0x410] ss:$8 sps:$4 sm:$0xff]  }
 0x185   : > { %19675 = vst [vmem:[#allocation29_spill] sm:$0xff] %v15280_v19  ;;  %19676 = vst [vmem:[#allocation30_spill] sm:$0xff] %v15282_v26  ;;  %12681 = vmatprep.mubr.msk.bf16.mxu0 %vm555_vm0, %v14159_v33  ;;  %12795 = vmatprep.mubr.msk.bf16.mxu1 %vm555_vm0, %v14161_v12  ;;  %v14165_v12 = vld [vmem:[%s14618_s29 + $0x424] ss:$8 sps:$4 sm:$0xff]  }
 0x186   : > { %v805_v24 = vpop.f32.mrf.mxu0  ;;  %v1340_v7 = vpop.f32.mrf.mxu1 }
 0x187   : > { %v14167_v24 = vld [vmem:[%s14618_s29 + $0x58c] ss:$8 sps:$4 sm:$0xff]  }
 0x188   : > { %v15292_v11 = vpop.f32.mrf.mxu0  ;;  %v15294_v28 = vpop.f32.mrf.mxu1 }
 0x189   : > { %19677 = vst [vmem:[#allocation31_spill] sm:$0xff] %v15292_v11  ;;  %19678 = vst [vmem:[#allocation32_spill] sm:$0xff] %v15294_v28  ;;  %v12728_v28 = vld [vmem:[%s14618_s29 + $0x598] sm:$0xff] }
 0x18a   : > { %v808_v54 = vpop.f32.mrf.mxu0  ;;  %v1343_v7 = vpop.f32.mrf.mxu1  ;;  %v14200_v11 = vld [vmem:[%s19603_s3 + $0xf8] sm:$0xff]   ;;  %v12773_v38 = vcombine.low %v12728_v28, %v12728_v28 }
 0x18b   : > { %v12614_v7 = vld [vmem:[%s14618_s29 + $0x430] sm:$0xff]  ;;  %5258 = vmatpush2.bf16.msra.mxu1 %v14200_v11 }
 0x18c   : > { %v15303_v61 = vpop.f32.mrf.mxu0  ;;  %v15305_v26 = vpop.f32.mrf.mxu1  ;;  %1933 = vmatmul.mubr.bf16.gmra.mxu0 %v14163_v59  ;;  %2513 = vmatmul.mubr.bf16.gmra.mxu1 %v14164_v0  ;;  %v14169_v0 = vld [vmem:[%s14618_s29 + $0x420] ss:$8 sps:$4 sm:$0xff]  }
 0x18d   : > { %19679 = vst [vmem:[#allocation33_spill] sm:$0xff] %v15303_v61  ;;  %19680 = vst [vmem:[#allocation34_spill] sm:$0xff] %v15305_v26  ;;  %12682 = vmatprep.mubr.msk.bf16.mxu0 %vm555_vm0, %v14165_v12  ;;  %12796 = vmatprep.mubr.msk.bf16.mxu1 %vm555_vm0, %v14167_v24  ;;  %v14170_v59 = vld [vmem:[%s14618_s29 + $0x588] ss:$8 sps:$4 sm:$0xff]   ;;  %v12660_v12 = vcombine.high %v12614_v7, %v12614_v7  ;;  %v12774_v26 = vcombine.high %v12728_v28, %v12728_v28 }
 0x18e   : > { %v813_v47 = vpop.f32.mrf.mxu0  ;;  %v1348_v54 = vpop.f32.mrf.mxu1  ;;  %5259 = vmatprep.subr.bf16.mxu1 %v19660_v44 }
 0x18f   : > { %v14201_v54 = vld [vmem:[%s19603_s3 + $0x70] sm:$0xff]  }
 0x190   : > { %v15316_v19 = vpop.f32.mrf.mxu0  ;;  %v15318_v1 = vpop.f32.mrf.mxu1  ;;  %4458 = vmatpush2.bf16.msra.mxu0 %v14201_v54 }
 0x191   : > { %19681 = vst [vmem:[#allocation35_spill] sm:$0xff] %v15316_v19  ;;  %19682 = vst [vmem:[#allocation36_spill] sm:$0xff] %v15318_v1  ;;  %4459 = vmatprep.subr.bf16.mxu0 %v19660_v44  ;;  %v12659_v19 = vcombine.low %v12614_v7, %v12614_v7 }
 0x192   : > { %v816_v24 = vpop.f32.mrf.mxu0  ;;  %v1351_v47 = vpop.f32.mrf.mxu1 }
 0x194   : > { %v15328_v61 = vpop.f32.mrf.mxu0  ;;  %v15330_v5 = vpop.f32.mrf.mxu1  ;;  %1941 = vmatmul.mubr.bf16.gmra.mxu0 %v14169_v0  ;;  %2521 = vmatmul.mubr.bf16.gmra.mxu1 %v14170_v59 }
 0x195   : > { %12683 = vmatprep.mubr.msk.bf16.mxu0 %vm555_vm0, %v12660_v12  ;;  %12797 = vmatprep.mubr.msk.bf16.mxu1 %vm555_vm0, %v12774_v26  ;;  %v14204_v26 = vld [vmem:[%s19603_s3 + $0xf0] sm:$0xff]   ;;  %v14205_v12 = vld [vmem:[%s19603_s3 + $0x68] sm:$0xff]  }
 0x196   : > { %v821_v11 = vpop.f32.mrf.mxu0  ;;  %v1356_v24 = vpop.f32.mrf.mxu1  ;;  %5260 = vmatpush2.bf16.msra.mxu1 %v14204_v26  ;;  %4460 = vmatpush2.bf16.msra.mxu0 %v14205_v12 }
 0x197   : > { %5261 = vmatprep.subr.bf16.mxu1 %v19660_v44  ;;  %4461 = vmatprep.subr.bf16.mxu0 %v19660_v44 }
 0x198   : > { %v15337_v47 = vpop.f32.mrf.mxu0  ;;  %v15339_v1 = vpop.f32.mrf.mxu1 }
 0x199   : > { %19683 = vst [vmem:[#allocation37_spill] sm:$0xff] %v15337_v47  ;;  %19684 = vst [vmem:[#allocation38_spill] sm:$0xff] %v15339_v1 }
 0x19a   : > { %v824_v59 = vpop.f32.mrf.mxu0  ;;  %v1359_v33 = vpop.f32.mrf.mxu1 }
 0x19c   : > { %v15349_v54 = vpop.f32.mrf.mxu0  ;;  %v15351_v11 = vpop.f32.mrf.mxu1  ;;  %1949 = vmatmul.mubr.bf16.gmra.mxu0 %v12659_v19  ;;  %2529 = vmatmul.mubr.bf16.gmra.mxu1 %v12773_v38 }
 0x19d   : > { %19685 = vst [vmem:[#allocation39_spill] sm:$0xff] %v15349_v54  ;;  %19686 = vst [vmem:[#allocation40_spill] sm:$0xff] %v15351_v11 }
 0x19e   : > { %v829_v33 = vpop.f32.mrf.mxu0  ;;  %v1364_v7 = vpop.f32.mrf.mxu1 }
 0x19f   : > { %v14207_v7 = vld [vmem:[%s19603_s3 + $0xe8] sm:$0xff]  }
 0x1a0   : > { %v15357_v24 = vpop.f32.mrf.mxu0  ;;  %v15359_v59 = vpop.f32.mrf.mxu1  ;;  %5262 = vmatpush2.bf16.msra.mxu1 %v14207_v7 }
 0x1a1   : > { %19687 = vst [vmem:[#allocation41_spill] sm:$0xff] %v15357_v24  ;;  %19688 = vst [vmem:[#allocation42_spill] sm:$0xff] %v15359_v59  ;;  %5263 = vmatprep.subr.bf16.mxu1 %v19660_v44 }
 0x1a2   : > { %v832_v19 = vpop.f32.mrf.mxu0  ;;  %v1367_v38 = vpop.f32.mrf.mxu1 }
 0x1a3   : > { %v14208_v19 = vld [vmem:[%s19603_s3 + $0x60] sm:$0xff]  }
 0x1a4   : > { %v15363_v1 = vpop.f32.mrf.mxu0  ;;  %v15365_v28 = vpop.f32.mrf.mxu1  ;;  %4462 = vmatpush2.bf16.msra.mxu0 %v14208_v19 }
 0x1a5   : > { %19689 = vst [vmem:[#allocation43_spill] sm:$0xff] %v15363_v1  ;;  %19690 = vst [vmem:[#allocation44_spill] sm:$0xff] %v15365_v28  ;;  %4463 = vmatprep.subr.bf16.mxu0 %v19660_v44  ;;  %v19692_v1 = vmax.f32 %v14885_v57, %v14887_v58  ;;  %v19693_v57 = vmax.f32 %v14895_v3, %v14897_v4  ;;  %v19694_v3 = vmax.f32 %v14903_v8, %v14905_v9 }
 0x1a6   : > { %v837_v12 = vpop.f32.mrf.mxu0  ;;  %v1372_v33 = vpop.f32.mrf.mxu1 }
 0x1a7   : > { %v19691_v12 = vmax.f32 %v14877_v52, %v14879_v53 }
 0x1a8   : > { %v838_v11 = vpop.f32.mrf.mxu0  ;;  %v1373_v54 = vpop.f32.mrf.mxu1 }
 0x1a9   : > { %v15382_v54 = vld [vmem:[%s19602_s2] ss:$0 sm:$0xff] }
 0x1aa   : > { %v839_v47 = vpop.f32.mrf.mxu0  ;;  %v1374_v0 = vpop.f32.mrf.mxu1 }
 0x1ac   : > { %v1774_v38 = vpop.f32.mrf.mxu0  ;;  %v2354_v59 = vpop.f32.mrf.mxu1 }
 0x1ad   : > { %v1956_v33 = vmax.f32 %v19691_v12, %v1774_v38 }
 0x1ae   : > { %v1776_v47 = vpop.f32.mrf.mxu0  ;;  %v2356_v0 = vpop.f32.mrf.mxu1 }
 0x1af   : > { %v2536_v11 = vmax.f32 %v1956_v33, %v2354_v59  ;;  %v14210_v47 = vld [vmem:[%s19603_s3 + $0xe0] sm:$0xff]   ;;  %v14212_v59 = vld [vmem:[%s19603_s3 + $0x58] sm:$0xff]  }
 0x1b0   : > { %v1777_v7 = vpop.f32.mrf.mxu0  ;;  %v2357_v26 = vpop.f32.mrf.mxu1  ;;  %5264 = vmatpush2.bf16.msra.mxu1 %v14210_v47  ;;  %4464 = vmatpush2.bf16.msra.mxu0 %v14212_v59 }
 0x1b1   : > { %v2588_v28 = vadd.f32 %v15382_v54, %v2536_v11  ;;  %v1957_v52 = vmax.f32 %v19692_v1, %v1777_v7  ;;  %5265 = vmatprep.subr.bf16.mxu1 %v19660_v44  ;;  %4465 = vmatprep.subr.bf16.mxu0 %v19660_v44 }
 0x1b2   : > { %v1779_v53 = vpop.f32.mrf.mxu0  ;;  %v2359_v19 = vpop.f32.mrf.mxu1 }
 0x1b3   : > { %v2633_v38 = vmax.f32 %v2588_v28, 0.0  ;;  %v2537_v12 = vmax.f32 %v1957_v52, %v2357_v26 }
 0x1b4   : > { %v1782_v33 = vpop.f32.mrf.mxu0  ;;  %v2362_v0 = vpop.f32.mrf.mxu1 }
 0x1b5   : > { %v13836_v24 = vpack.c.bf16 %v2633_v38, %v2633_v38  ;;  %v2589_v11 = vadd.f32 %v15382_v54, %v2537_v12  ;;  %v1958_v58 = vmax.f32 %v19693_v57, %v1782_v33 }
 0x1b6   : > { %v1784_v1 = vpop.f32.mrf.mxu0  ;;  %v2364_v28 = vpop.f32.mrf.mxu1 }
 0x1b7   : > { %2860 = vst.msk [vmem:[#allocation2] sm:$0xf] %vm2859_vm1, %v13836_v24  ;;  %v2634_v26 = vmax.f32 %v2589_v11, 0.0  ;;  %v2538_v7 = vmax.f32 %v1958_v58, %v2362_v0  ;;  %v19695_v11 = vmax.f32 %v14913_v17, %v14915_v18  ;;  %v19696_v18 = vmax.f32 %v14921_v22, %v14923_v23 }
 0x1b8   : > { %v1785_v52 = vpop.f32.mrf.mxu0  ;;  %v2365_v53 = vpop.f32.mrf.mxu1 }
 0x1b9   : > { %v13837_v19 = vpack.c.bf16 %v2634_v26, %v2634_v26  ;;  %v2590_v38 = vadd.f32 %v15382_v54, %v2538_v7  ;;  %v1959_v4 = vmax.f32 %v19694_v3, %v1785_v52  ;;  %v14214_v7 = vld [vmem:[%s19603_s3 + $0xd8] sm:$0xff]   ;;  %v14215_v52 = vld [vmem:[%s19603_s3 + $0x50] sm:$0xff]  }
 0x1ba   : > { %v1787_v12 = vpop.f32.mrf.mxu0  ;;  %v2367_v47 = vpop.f32.mrf.mxu1  ;;  %5266 = vmatpush2.bf16.msra.mxu1 %v14214_v7  ;;  %4466 = vmatpush2.bf16.msra.mxu0 %v14215_v52  ;;  %v14218_v52 = vld [vmem:[%s19603_s3 + $0x48] sm:$0xff]  }
 0x1bb   : > { %2861 = vst.msk [vmem:[#allocation2 + $0x4] sm:$0xf] %vm2859_vm1, %v13837_v19  ;;  %v2635_v59 = vmax.f32 %v2590_v38, 0.0  ;;  %v2539_v33 = vmax.f32 %v1959_v4, %v2365_v53  ;;  %5267 = vmatprep.subr.bf16.mxu1 %v19660_v44  ;;  %4467 = vmatprep.subr.bf16.mxu0 %v19660_v44 }
 0x1bc   : > { %v1790_v57 = vpop.f32.mrf.mxu0  ;;  %v2370_v1 = vpop.f32.mrf.mxu1 }
 0x1bd   : > { %v13838_v24 = vpack.c.bf16 %v2635_v59, %v2635_v59  ;;  %v2591_v0 = vadd.f32 %v15382_v54, %v2539_v33  ;;  %v1960_v58 = vmax.f32 %v19695_v11, %v1790_v57 }
 0x1be   : > { %v1792_v28 = vpop.f32.mrf.mxu0  ;;  %v2372_v26 = vpop.f32.mrf.mxu1  ;;  %v2913_v47 = vld [vmem:[#allocation2] sm:$0xf]  ;;  %4468 = vmatpush2.bf16.msra.mxu0 %v14218_v52  ;;  %v19699_v52 = vmax.f32 %v14949_v45, %v14951_v46 }
 0x1bf   : > { %2862 = vst.msk [vmem:[#allocation2 + $0x8] sm:$0xf] %vm2859_vm1, %v13838_v24  ;;  %v2636_v8 = vmax.f32 %v2591_v0, 0.0  ;;  %v2540_v9 = vmax.f32 %v1960_v58, %v2370_v1  ;;  %v2966_v24 = vld [vmem:[#allocation2] sm:$0xe]  ;;  %v19697_v28 = vmax.f32 %v14931_v31, %v14933_v32  ;;  %v19698_v32 = vmax.f32 %v14939_v36, %v14941_v37  ;;  %4469 = vmatprep.subr.bf16.mxu0 %v19660_v44 }
 0x1c0   : > { %v1793_v53 = vpop.f32.mrf.mxu0  ;;  %v2373_v19 = vpop.f32.mrf.mxu1  ;;  %v14222_v36 = vld [vmem:[%s19603_s3 + $0x40] sm:$0xff]  }
 0x1c1   : > { %v13839_v38 = vpack.c.bf16 %v2636_v8, %v2636_v8  ;;  %v2592_v17 = vadd.f32 %v15382_v54, %v2540_v9  ;;  %v1961_v3 = vmax.f32 %v19696_v18, %v1793_v53 }
 0x1c2   : > { %v1795_v4 = vpop.f32.mrf.mxu0  ;;  %v2375_v12 = vpop.f32.mrf.mxu1  ;;  %v2914_v59 = vld [vmem:[#allocation2 + $0x4] sm:$0xf]  ;;  %4470 = vmatpush2.bf16.msra.mxu0 %v14222_v36 }
 0x1c3   : > { %2863 = vst.msk [vmem:[#allocation2 + $0xc] sm:$0xf] %vm2859_vm1, %v13839_v38  ;;  %v2637_v33 = vmax.f32 %v2592_v17, 0.0  ;;  %v2541_v57 = vmax.f32 %v1961_v3, %v2373_v19  ;;  %v15425_v1 = vcombine.low %v2913_v47, %v2914_v59  ;;  %v15427_v23 = vcombine.low %v2966_v24, %v2914_v59  ;;  %6088 = vmatprep.subr.bf16.mxu0 %v19660_v44 }
 0x1c4   : > { %v1798_v0 = vpop.f32.mrf.mxu0  ;;  %v2378_v22 = vpop.f32.mrf.mxu1 }
 0x1c5   : > { %v13840_v11 = vpack.c.bf16 %v2637_v33, %v2637_v33  ;;  %v2593_v58 = vadd.f32 %v15382_v54, %v2541_v57  ;;  %v1962_v26 = vmax.f32 %v19697_v28, %v1798_v0  ;;  %v3105_v7 = vshll.u32 %v15425_v1, 16 }
 0x1c6   : > { %v1800_v8 = vpop.f32.mrf.mxu0  ;;  %v2380_v9 = vpop.f32.mrf.mxu1  ;;  %v3428_v18 = vshrl.u32 %v15427_v23, 16  ;;  %v3431_v12 = vshll.u32 %v15427_v23, 16 }
 0x1c7   : > { %2864 = vst.msk [vmem:[#allocation2 + $0x10] sm:$0xf] %vm2859_vm1, %v13840_v11  ;;  %v2638_v53 = vmax.f32 %v2593_v58, 0.0  ;;  %v2542_v19 = vmax.f32 %v1962_v26, %v2378_v22  ;;  %v3107_v57 = vrot.slane %v3105_v7, 1  ;;  %v14217_v22 = vld [vmem:[%s19603_s3 + $0xd0] sm:$0xff]   ;;  %v3103_v58 = vshrl.u32 %v15425_v1, 16 }
 0x1c8   : > { %v1801_v38 = vpop.f32.mrf.mxu0  ;;  %v2381_v17 = vpop.f32.mrf.mxu1  ;;  %v3430_v8 = vrot.slane %v3428_v18, 1  ;;  %5268 = vmatpush2.bf16.msra.mxu1 %v14217_v22 }
 0x1c9   : > { %v13841_v3 = vpack.c.bf16 %v2638_v53, %v2638_v53  ;;  %v2594_v31 = vadd.f32 %v15382_v54, %v2542_v19  ;;  %v1963_v4 = vmax.f32 %v19698_v32, %v1801_v38  ;;  %v3433_v19 = vrot.slane %v3431_v12, 2  ;;  %5269 = vmatprep.subr.bf16.mxu1 %v19660_v44 }
 0x1ca   : > { %v1803_v47 = vpop.f32.mrf.mxu0  ;;  %v2383_v59 = vpop.f32.mrf.mxu1  ;;  %v15445_v33 = vld [vmem:[#allocation2 + $0x8] sm:$0xff]  }
 0x1cb   : > { %2865 = vst.msk [vmem:[#allocation2 + $0x14] sm:$0xf] %vm2859_vm1, %v13841_v3  ;;  %v2639_v24 = vmax.f32 %v2594_v31, 0.0  ;;  %v2543_v0 = vmax.f32 %v1963_v4, %v2381_v17  ;;  %v3110_v28 = vshll.u32 %v15445_v33, 16  ;;  %v3114_v26 = vshrl.u32 %v15445_v33, 16 }
 0x1cc   : > { %v1806_v37 = vpop.f32.mrf.mxu0  ;;  %v2386_v11 = vpop.f32.mrf.mxu1  ;;  %v3108_v3 = vor.u32 %v3107_v57, %v3103_v58  ;;  %v19700_v57 = vmax.f32 %v14957_v50, %v14959_v51  ;;  %v14221_v58 = vld [vmem:[%s19603_s3 + $0xc8] sm:$0xff]  }
 0x1cd   : > { %v13842_v9 = vpack.c.bf16 %v2639_v24, %v2639_v24  ;;  %v2595_v7 = vadd.f32 %v15382_v54, %v2543_v0  ;;  %v1964_v53 = vmax.f32 %v19699_v52, %v1806_v37  ;;  %v3112_v31 = vrot.slane %v3110_v28, 1  ;;  %5270 = vmatpush2.bf16.msra.mxu1 %v14221_v58 }
 0x1ce   : > { %v1808_v38 = vpop.f32.mrf.mxu0  ;;  %v2388_v17 = vpop.f32.mrf.mxu1  ;;  %v3435_v32 = vrot.slane %v3114_v26, 1  ;;  %v3436_v4 = vrot.slane %v3110_v28, 2  ;;  %v3434_v37 = vor.u32 %v3433_v19, %v3430_v8  ;;  %v19701_v8 = vmax.f32 %v14967_v2, %v14969_v6  ;;  %5271 = vmatprep.subr.bf16.mxu1 %v19660_v44 }
 0x1cf   : > { %2866 = vst.msk [vmem:[#allocation2 + $0x18] sm:$0xf] %vm2859_vm1, %v13842_v9  ;;  %v2640_v18 = vmax.f32 %v2595_v7, 0.0  ;;  %v2544_v47 = vmax.f32 %v1964_v53, %v2386_v11  ;;  %v3113_v46 = vsel %vm3101_vm2, %v3108_v3, %v3112_v31 }
 0x1d0   : > { %v1809_v59 = vpop.f32.mrf.mxu0  ;;  %v2389_v45 = vpop.f32.mrf.mxu1  ;;  %v3437_v12 = vor.u32 %v3436_v4, %v3435_v32  ;;  %3314 = vrot.lane.b32.xlu0 %v3113_v46, %s14548_s13  ;;  %v3116_v4 = vor.u32 %v3114_v26, %v3112_v31  ;;  %v19702_v31 = vmax.f32 %v14975_v13, %v14977_v14 }
 0x1d1   : > { %v13843_v33 = vpack.c.bf16 %v2640_v18, %v2640_v18  ;;  %v2596_v24 = vadd.f32 %v15382_v54, %v2544_v47  ;;  %v1965_v0 = vmax.f32 %v19700_v57, %v1809_v59 }
 0x1d2   : > { %v2391_v22 = vpop.f32.mrf.mxu1  ;;  %v1811_v36 = vpop.f32.mrf.mxu0  ;;  %v14187_v11 = vld [vmem:[#allocation2 + $0x10] sm:$0xff]   ;;  %v3438_v50 = vsel %vm3426_vm3, %v3434_v37, %v3437_v12 }
 0x1d3   : > { %2867 = vst.msk [vmem:[#allocation2 + $0x1c] sm:$0xf] %vm2859_vm1, %v13843_v33  ;;  %v2641_v28 = vmax.f32 %v2596_v24, 0.0  ;;  %v2545_v9 = vmax.f32 %v1965_v0, %v2389_v45  ;;  %v3118_v51 = vshll.u32 %v14187_v11, 16  ;;  %v3122_v53 = vshrl.u32 %v14187_v11, 16  ;;  %v14224_v45 = vld [vmem:[%s19603_s3 + $0xc0] sm:$0xff]  }
 0x1d4   : > { %v1814_v7 = vpop.f32.mrf.mxu0  ;;  %v2394_v52 = vpop.f32.mrf.mxu1  ;;  %3544 = vrot.lane.b32.xlu0 %v3438_v50, %s14548_s13  ;;  %5272 = vmatpush2.bf16.msra.mxu1 %v14224_v45 }
 0x1d5   : > { %v13844_v38 = vpack.c.bf16 %v2641_v28, %v2641_v28  ;;  %v2597_v17 = vadd.f32 %v15382_v54, %v2545_v9  ;;  %v1966_v19 = vmax.f32 %v19701_v8, %v1814_v7  ;;  %v3120_v18 = vrot.slane %v3118_v51, 1  ;;  %6934 = vmatprep.subr.bf16.mxu1 %v19660_v44 }
 0x1d6   : > { %v2396_v3 = vpop.f32.mrf.mxu1  ;;  %v1816_v32 = vpop.f32.mrf.mxu0  ;;  %v3439_v47 = vrot.slane %v3122_v53, 1  ;;  %v3440_v59 = vrot.slane %v3118_v51, 2 }
 0x1d7   : > { %2868 = vst.msk [vmem:[#allocation2 + $0x20] sm:$0xf] %vm2859_vm1, %v13844_v38  ;;  %v2642_v46 = vmax.f32 %v2597_v17, 0.0  ;;  %v2546_v33 = vmax.f32 %v1966_v19, %v2394_v52  ;;  %v3121_v24 = vsel %vm3101_vm2, %v3116_v4, %v3120_v18  ;;  %v19703_v38 = vmax.f32 %v14988_v29, %v14990_v30 }
 0x1d8   : > { %v1817_v2 = vpop.f32.mrf.mxu0  ;;  %v2397_v6 = vpop.f32.mrf.mxu1  ;;  %v3441_v57 = vor.u32 %v3440_v59, %v3439_v47  ;;  %3316 = vrot.lane.b32.xlu1 %v3121_v24, %s14548_s13  ;;  %v3124_v3 = vor.u32 %v3122_v53, %v3120_v18  ;;  %v19704_v30 = vmax.f32 %v14997_v39, %v14999_v41 }
 0x1d9   : > { %v13845_v0 = vpack.c.bf16 %v2642_v46, %v2642_v46  ;;  %v2598_v26 = vadd.f32 %v15382_v54, %v2546_v33  ;;  %v1967_v22 = vmax.f32 %v19702_v31, %v1817_v2 }
 0x1da   : > { %v2399_v36 = vpop.f32.mrf.mxu1  ;;  %v1819_v37 = vpop.f32.mrf.mxu0  ;;  %v15492_v11 = vld [vmem:[#allocation2 + $0x18] sm:$0xff]   ;;  %v3442_v52 = vsel %vm3426_vm3, %v3437_v12, %v3441_v57 }
 0x1db   : > { %2869 = vst.msk [vmem:[#allocation2 + $0x24] sm:$0xf] %vm2859_vm1, %v13845_v0  ;;  %v2643_v58 = vmax.f32 %v2598_v26, 0.0  ;;  %v2547_v28 = vmax.f32 %v1967_v22, %v2397_v6  ;;  %v3126_v50 = vshll.u32 %v15492_v11, 16  ;;  %v3130_v13 = vshrl.u32 %v15492_v11, 16 }
 0x1dc   : > { %v1822_v9 = vpop.f32.mrf.mxu0  ;;  %v2402_v7 = vpop.f32.mrf.mxu1  ;;  %3546 = vrot.lane.b32.xlu1 %v3442_v52, %s14548_s13 }
 0x1dd   : > { %v13846_v14 = vpack.c.bf16 %v2643_v58, %v2643_v58  ;;  %v2599_v51 = vadd.f32 %v15382_v54, %v2547_v28  ;;  %v1968_v17 = vmax.f32 %v19703_v38, %v1822_v9  ;;  %v3128_v32 = vrot.slane %v3126_v50, 1 }
 0x1de   : > { %v2404_v8 = vpop.f32.mrf.mxu1  ;;  %v1824_v19 = vpop.f32.mrf.mxu0  ;;  %v3443_v4 = vrot.slane %v3130_v13, 1  ;;  %v3444_v47 = vrot.slane %v3126_v50, 2 }
 0x1df   : > { %2870 = vst.msk [vmem:[#allocation2 + $0x28] sm:$0xf] %vm2859_vm1, %v13846_v14  ;;  %v2644_v12 = vmax.f32 %v2599_v51, 0.0  ;;  %v2548_v59 = vmax.f32 %v1968_v17, %v2402_v7  ;;  %v3129_v33 = vsel %vm3101_vm2, %v3124_v3, %v3128_v32  ;;  %v3132_v50 = vor.u32 %v3130_v13, %v3128_v32 }
 0x1e0   : > { %v1825_v45 = vpop.f32.mrf.mxu0  ;;  %v2405_v46 = vpop.f32.mrf.mxu1  ;;  %v3445_v2 = vor.u32 %v3444_v47, %v3443_v4  ;;  %3318 = vrot.lane.b32.xlu0 %v3129_v33, %s14548_s13 }
 0x1e1   : > { %v13847_v6 = vpack.c.bf16 %v2644_v12, %v2644_v12  ;;  %v2600_v29 = vadd.f32 %v15382_v54, %v2548_v59  ;;  %v1969_v24 = vmax.f32 %v19704_v30, %v1825_v45 }
 0x1e2   : > { %v2407_v53 = vpop.f32.mrf.mxu1  ;;  %v1827_v18 = vpop.f32.mrf.mxu0  ;;  %v3446_v0 = vsel %vm3426_vm3, %v3441_v57, %v3445_v2  ;;  %v15511_v26 = vld [vmem:[#allocation2 + $0x20] sm:$0xff]   ;;  %v19705_v57 = vmax.f32 %v15010_v62, %v15012_v63  ;;  %v19706_v62 = vmax.f32 %v15019_v15, %v15021_v16  ;;  %v19707_v16 = vmax.f32 %v15029_v42, %v15031_v43 }
 0x1e3   : > { %2871 = vst.msk [vmem:[#allocation2 + $0x2c] sm:$0xf] %vm2859_vm1, %v13847_v6  ;;  %v2645_v31 = vmax.f32 %v2600_v29, 0.0  ;;  %v2549_v22 = vmax.f32 %v1969_v24, %v2405_v46  ;;  %3548 = vrot.lane.b32.xlu1 %v3446_v0, %s14548_s13  ;;  %v3134_v58 = vshll.u32 %v15511_v26, 16  ;;  %v3138_v39 = vshrl.u32 %v15511_v26, 16 }
 0x1e4   : > { %v2410_v36 = vpop.f32.mrf.mxu1  ;;  %v1830_v37 = vpop.f32.mrf.mxu0  ;;  %v19708_v42 = vmax.f32 %v15056_v60, %v15058_v10  ;;  %v19709_v10 = vmax.f32 %v15067_v49, %v15069_v55  ;;  %v19710_v49 = vmax.f32 %v15078_v48, %v15080_v25  ;;  %v19711_v48 = vmax.f32 %v15092_v35, %v15094_v34 }
 0x1e5   : > { %v13848_v41 = vpack.c.bf16 %v2645_v31, %v2645_v31  ;;  %v2601_v28 = vadd.f32 %v15382_v54, %v2549_v22  ;;  %v1970_v9 = vmax.f32 %v19705_v57, %v1830_v37  ;;  %v3136_v14 = vrot.slane %v3134_v58, 1 }
 0x1e6   : > { %v1832_v7 = vpop.f32.mrf.mxu0  ;;  %v2412_v52 = vpop.f32.mrf.mxu1  ;;  %v3447_v51 = vrot.slane %v3138_v39, 1  ;;  %v3448_v38 = vrot.slane %v3134_v58, 2  ;;  %v19712_v34 = vmax.f32 %v15101_v21, %v15103_v20  ;;  %v19713_v21 = vmax.f32 %v15114_v56, %v15116_v27  ;;  %v19714_v56 = vld [vmem:[#allocation4_spill] sm:$0xff] }
 0x1e7   : > { %2872 = vst.msk [vmem:[#allocation2 + $0x30] sm:$0xf] %vm2859_vm1, %v13848_v41  ;;  %v2646_v17 = vmax.f32 %v2601_v28, 0.0  ;;  %v2550_v8 = vmax.f32 %v1970_v9, %v2410_v36  ;;  %v3137_v4 = vsel %vm3101_vm2, %v3132_v50, %v3136_v14  ;;  %v3140_v22 = vor.u32 %v3138_v39, %v3136_v14 }
 0x1e8   : > { %v1833_v19 = vpop.f32.mrf.mxu0  ;;  %v2413_v3 = vpop.f32.mrf.mxu1  ;;  %v3449_v47 = vor.u32 %v3448_v38, %v3447_v51  ;;  %3320 = vrot.lane.b32.xlu0 %v3137_v4, %s14548_s13  ;;  %v19715_v27 = vmax.f32 %v15126_v40, %v19714_v56 }
 0x1e9   : > { %v13849_v12 = vpack.c.bf16 %v2646_v17, %v2646_v17  ;;  %v2602_v59 = vadd.f32 %v15382_v54, %v2550_v8  ;;  %v1971_v63 = vmax.f32 %v19706_v62, %v1833_v19 }
 0x1ea   : > { %v2415_v13 = vpop.f32.mrf.mxu1  ;;  %v1835_v32 = vpop.f32.mrf.mxu0  ;;  %v3450_v45 = vsel %vm3426_vm3, %v3445_v2, %v3449_v47  ;;  %v14195_v46 = vld [vmem:[#allocation2 + $0x28] sm:$0xff]  }
 0x1eb   : > { %2873 = vst.msk [vmem:[#allocation2 + $0x34] sm:$0xf] %vm2859_vm1, %v13849_v12  ;;  %v2647_v33 = vmax.f32 %v2602_v59, 0.0  ;;  %v2551_v6 = vmax.f32 %v1971_v63, %v2413_v3  ;;  %3550 = vrot.lane.b32.xlu1 %v3450_v45, %s14548_s13  ;;  %v3142_v24 = vshll.u32 %v14195_v46, 16  ;;  %v3146_v53 = vshrl.u32 %v14195_v46, 16 }
 0x1ec   : > { %v2418_v29 = vpop.f32.mrf.mxu1  ;;  %v1838_v30 = vpop.f32.mrf.mxu0 }
 0x1ed   : > { %v13850_v18 = vpack.c.bf16 %v2647_v33, %v2647_v33  ;;  %v2603_v15 = vadd.f32 %v15382_v54, %v2551_v6  ;;  %v1972_v0 = vmax.f32 %v19707_v16, %v1838_v30  ;;  %v3144_v36 = vrot.slane %v3142_v24, 1 }
 0x1ee   : > { %v1840_v31 = vpop.f32.mrf.mxu0  ;;  %v2420_v2 = vpop.f32.mrf.mxu1  ;;  %v3451_v37 = vrot.slane %v3146_v53, 1  ;;  %v3452_v58 = vrot.slane %v3142_v24, 2 }
 0x1ef   : > { %2874 = vst.msk [vmem:[#allocation2 + $0x38] sm:$0xf] %vm2859_vm1, %v13850_v18  ;;  %v2648_v41 = vmax.f32 %v2603_v15, 0.0  ;;  %v2552_v28 = vmax.f32 %v1972_v0, %v2418_v29  ;;  %v3145_v7 = vsel %vm3101_vm2, %v3140_v22, %v3144_v36  ;;  %v3148_v32 = vor.u32 %v3146_v53, %v3144_v36 }
 0x1f0   : > { %v1841_v57 = vpop.f32.mrf.mxu0  ;;  %v2421_v9 = vpop.f32.mrf.mxu1  ;;  %v3453_v52 = vor.u32 %v3452_v58, %v3451_v37  ;;  %3322 = vrot.lane.b32.xlu0 %v3145_v7, %s14548_s13 }
 0x1f1   : > { %v13851_v50 = vpack.c.bf16 %v2648_v41, %v2648_v41  ;;  %v2604_v51 = vadd.f32 %v15382_v54, %v2552_v28  ;;  %v1973_v43 = vmax.f32 %v19708_v42, %v1841_v57 }
 0x1f2   : > { %v2423_v39 = vpop.f32.mrf.mxu1  ;;  %v1843_v14 = vpop.f32.mrf.mxu0  ;;  %v3454_v38 = vsel %vm3426_vm3, %v3449_v47, %v3453_v52  ;;  %v14196_v17 = vld [vmem:[#allocation2 + $0x30] sm:$0xff]  }
 0x1f3   : > { %2875 = vst.msk [vmem:[#allocation2 + $0x3c] sm:$0xf] %vm2859_vm1, %v13851_v50  ;;  %v2649_v8 = vmax.f32 %v2604_v51, 0.0  ;;  %v2553_v19 = vmax.f32 %v1973_v43, %v2421_v9  ;;  %3552 = vrot.lane.b32.xlu1 %v3454_v38, %s14548_s13  ;;  %v3150_v12 = vshll.u32 %v14196_v17, 16  ;;  %v3154_v59 = vshrl.u32 %v14196_v17, 16 }
 0x1f4   : > { %v2426_v3 = vpop.f32.mrf.mxu1  ;;  %v1846_v4 = vpop.f32.mrf.mxu0 }
 0x1f5   : > { %v13852_v62 = vpack.c.bf16 %v2649_v8, %v2649_v8  ;;  %v2605_v60 = vadd.f32 %v15382_v54, %v2553_v19  ;;  %v1974_v63 = vmax.f32 %v19709_v10, %v1846_v4  ;;  %v3152_v45 = vrot.slane %v3150_v12, 1 }
 0x1f6   : > { %v1848_v13 = vpop.f32.mrf.mxu0  ;;  %v2428_v47 = vpop.f32.mrf.mxu1  ;;  %v3455_v46 = vrot.slane %v3154_v59, 1  ;;  %v3456_v33 = vrot.slane %v3150_v12, 2 }
 0x1f7   : > { %2876 = vst.msk [vmem:[#allocation2 + $0x40] sm:$0xf] %vm2859_vm1, %v13852_v62  ;;  %v2650_v6 = vmax.f32 %v2605_v60, 0.0  ;;  %v2554_v29 = vmax.f32 %v1974_v63, %v2426_v3  ;;  %v3153_v18 = vsel %vm3101_vm2, %v3148_v32, %v3152_v45  ;;  %v3156_v51 = vor.u32 %v3154_v59, %v3152_v45 }
 0x1f8   : > { %v1849_v30 = vpop.f32.mrf.mxu0  ;;  %v2429_v24 = vpop.f32.mrf.mxu1  ;;  %v3457_v15 = vor.u32 %v3456_v33, %v3455_v46  ;;  %3324 = vrot.lane.b32.xlu0 %v3153_v18, %s14548_s13 }
 0x1f9   : > { %v13853_v16 = vpack.c.bf16 %v2650_v6, %v2650_v6  ;;  %v2606_v0 = vadd.f32 %v15382_v54, %v2554_v29  ;;  %v1975_v55 = vmax.f32 %v19710_v49, %v1849_v30 }
 0x1fa   : > { %v2431_v53 = vpop.f32.mrf.mxu1  ;;  %v1851_v31 = vpop.f32.mrf.mxu0  ;;  %v3458_v2 = vsel %vm3426_vm3, %v3453_v52, %v3457_v15  ;;  %v14199_v22 = vld [vmem:[#allocation2 + $0x38] sm:$0xff]  }
 0x1fb   : > { %2877 = vst.msk [vmem:[#allocation2 + $0x44] sm:$0xf] %vm2859_vm1, %v13853_v16  ;;  %v2651_v36 = vmax.f32 %v2606_v0, 0.0  ;;  %v2555_v37 = vmax.f32 %v1975_v55, %v2429_v24  ;;  %3554 = vrot.lane.b32.xlu1 %v3458_v2, %s14548_s13  ;;  %v3158_v28 = vshll.u32 %v14199_v22, 16  ;;  %v3162_v57 = vshrl.u32 %v14199_v22, 16 }
 0x1fc   : > { %v2434_v58 = vpop.f32.mrf.mxu1  ;;  %v1854_v41 = vpop.f32.mrf.mxu0 }
 0x1fd   : > { %v13854_v9 = vpack.c.bf16 %v2651_v36, %v2651_v36  ;;  %v2607_v25 = vadd.f32 %v15382_v54, %v2555_v37  ;;  %v1976_v7 = vmax.f32 %v19711_v48, %v1854_v41  ;;  %v3160_v42 = vrot.slane %v3158_v28, 1 }
 0x1fe   : > { %v1856_v50 = vpop.f32.mrf.mxu0  ;;  %v2436_v52 = vpop.f32.mrf.mxu1  ;;  %v3459_v43 = vrot.slane %v3162_v57, 1  ;;  %v3460_v39 = vrot.slane %v3158_v28, 2 }
 0x1ff   : > { %2878 = vst.msk [vmem:[#allocation2 + $0x48] sm:$0xf] %vm2859_vm1, %v13854_v9  ;;  %v2652_v14 = vmax.f32 %v2607_v25, 0.0  ;;  %v2556_v38 = vmax.f32 %v1976_v7, %v2434_v58  ;;  %v3161_v19 = vsel %vm3101_vm2, %v3156_v51, %v3160_v42  ;;  %v3164_v24 = vor.u32 %v3162_v57, %v3160_v42  ;;  %v19716_v42 = vld [vmem:[#allocation5_spill] sm:$0xff] }
 0x200   : > { %v1857_v17 = vpop.f32.mrf.mxu0  ;;  %v2437_v8 = vpop.f32.mrf.mxu1  ;;  %v3461_v3 = vor.u32 %v3460_v39, %v3459_v43  ;;  %3326 = vrot.lane.b32.xlu0 %v3161_v19, %s14548_s13  ;;  %v19717_v43 = vld [vmem:[#allocation6_spill] sm:$0xff] }
 0x201   : > { %v13855_v4 = vpack.c.bf16 %v2652_v14, %v2652_v14  ;;  %v2608_v12 = vadd.f32 %v15382_v54, %v2556_v38  ;;  %v1977_v35 = vmax.f32 %v19712_v34, %v1857_v17  ;;  %v19718_v39 = vmax.f32 %v19716_v42, %v19717_v43 }
 0x202   : > { %v2439_v59 = vpop.f32.mrf.mxu1  ;;  %v1859_v62 = vpop.f32.mrf.mxu0  ;;  %v3462_v60 = vsel %vm3426_vm3, %v3457_v15, %v3461_v3  ;;  %v14202_v10 = vld [vmem:[#allocation2 + $0x40] sm:$0xff]  }
 0x203   : > { %2879 = vst.msk [vmem:[#allocation2 + $0x4c] sm:$0xf] %vm2859_vm1, %v13855_v4  ;;  %v2653_v63 = vmax.f32 %v2608_v12, 0.0  ;;  %v2557_v13 = vmax.f32 %v1977_v35, %v2437_v8  ;;  %3556 = vrot.lane.b32.xlu1 %v3462_v60, %s14548_s13  ;;  %v3166_v45 = vshll.u32 %v14202_v10, 16  ;;  %v3170_v46 = vshrl.u32 %v14202_v10, 16 }
 0x204   : > { %v2442_v47 = vpop.f32.mrf.mxu1  ;;  %v1862_v32 = vpop.f32.mrf.mxu0 }
 0x205   : > { %v13856_v33 = vpack.c.bf16 %v2653_v63, %v2653_v63  ;;  %v2609_v20 = vadd.f32 %v15382_v54, %v2557_v13  ;;  %v1978_v6 = vmax.f32 %v19713_v21, %v1862_v32  ;;  %v3168_v18 = vrot.slane %v3166_v45, 1  ;;  %v19719_v13 = vld [vmem:[#allocation7_spill] sm:$0xff] }
 0x206   : > { %v1864_v29 = vpop.f32.mrf.mxu0  ;;  %v2444_v30 = vpop.f32.mrf.mxu1  ;;  %v3463_v15 = vrot.slane %v3170_v46, 1  ;;  %v3464_v16 = vrot.slane %v3166_v45, 2 }
 0x207   : > { %2880 = vst.msk [vmem:[#allocation2 + $0x50] sm:$0xf] %vm2859_vm1, %v13856_v33  ;;  %v2654_v0 = vmax.f32 %v2609_v20, 0.0  ;;  %v2558_v49 = vmax.f32 %v1978_v6, %v2442_v47  ;;  %v3169_v31 = vsel %vm3101_vm2, %v3164_v24, %v3168_v18  ;;  %v3172_v8 = vor.u32 %v3170_v46, %v3168_v18  ;;  %v19720_v47 = vld [vmem:[#allocation8_spill] sm:$0xff] }
 0x208   : > { %v1865_v55 = vpop.f32.mrf.mxu0  ;;  %v2445_v53 = vpop.f32.mrf.mxu1  ;;  %v3465_v2 = vor.u32 %v3464_v16, %v3463_v15  ;;  %3328 = vrot.lane.b32.xlu0 %v3169_v31, %s14548_s13  ;;  %v19721_v32 = vmax.f32 %v19719_v13, %v19720_v47 }
 0x209   : > { %v13857_v22 = vpack.c.bf16 %v2654_v0, %v2654_v0  ;;  %v2610_v36 = vadd.f32 %v15382_v54, %v2558_v49  ;;  %v1979_v37 = vmax.f32 %v19715_v27, %v1865_v55  ;;  %v19722_v49 = vld [vmem:[#allocation9_spill] sm:$0xff]  ;;  %v19723_v55 = vld [vmem:[#allocation10_spill] sm:$0xff] }
 0x20a   : > { %v2447_v58 = vpop.f32.mrf.mxu1  ;;  %v1867_v41 = vpop.f32.mrf.mxu0  ;;  %v3466_v28 = vsel %vm3426_vm3, %v3461_v3, %v3465_v2  ;;  %v14203_v57 = vld [vmem:[#allocation2 + $0x48] sm:$0xff]  }
 0x20b   : > { %2881 = vst.msk [vmem:[#allocation2 + $0x54] sm:$0xf] %vm2859_vm1, %v13857_v22  ;;  %v2655_v9 = vmax.f32 %v2610_v36, 0.0  ;;  %v2559_v25 = vmax.f32 %v1979_v37, %v2445_v53  ;;  %3558 = vrot.lane.b32.xlu1 %v3466_v28, %s14548_s13  ;;  %v3174_v50 = vshll.u32 %v14203_v57, 16  ;;  %v3178_v52 = vshrl.u32 %v14203_v57, 16 }
 0x20c   : > { %v2450_v48 = vpop.f32.mrf.mxu1  ;;  %v1870_v7 = vpop.f32.mrf.mxu0  ;;  %v19724_v53 = vmax.f32 %v19722_v49, %v19723_v55 }
 0x20d   : > { %v13858_v51 = vpack.c.bf16 %v2655_v9, %v2655_v9  ;;  %v2611_v40 = vadd.f32 %v15382_v54, %v2559_v25  ;;  %v1980_v14 = vmax.f32 %v19718_v39, %v1870_v7  ;;  %v3176_v19 = vrot.slane %v3174_v50, 1 }
 0x20e   : > { %v1872_v38 = vpop.f32.mrf.mxu0  ;;  %v2452_v17 = vpop.f32.mrf.mxu1  ;;  %v3467_v3 = vrot.slane %v3178_v52, 1  ;;  %v3468_v4 = vrot.slane %v3174_v50, 2  ;;  %v19725_v50 = vld [vmem:[#allocation11_spill] sm:$0xff] }
 0x20f   : > { %2882 = vst.msk [vmem:[#allocation2 + $0x58] sm:$0xf] %vm2859_vm1, %v13858_v51  ;;  %v2656_v12 = vmax.f32 %v2611_v40, 0.0  ;;  %v2560_v34 = vmax.f32 %v1980_v14, %v2450_v48  ;;  %v3177_v62 = vsel %vm3101_vm2, %v3172_v8, %v3176_v19  ;;  %v3180_v36 = vor.u32 %v3178_v52, %v3176_v19  ;;  %v19726_v51 = vld [vmem:[#allocation12_spill] sm:$0xff] }
 0x210   : > { %v1873_v35 = vpop.f32.mrf.mxu0  ;;  %v2453_v59 = vpop.f32.mrf.mxu1  ;;  %v3469_v60 = vor.u32 %v3468_v4, %v3467_v3  ;;  %3330 = vrot.lane.b32.xlu0 %v3177_v62, %s14548_s13  ;;  %v19727_v40 = vmax.f32 %v19725_v50, %v19726_v51 }
 0x211   : > { %v13859_v10 = vpack.c.bf16 %v2656_v12, %v2656_v12  ;;  %v2612_v63 = vadd.f32 %v15382_v54, %v2560_v34  ;;  %v1981_v45 = vmax.f32 %v19721_v32, %v1873_v35  ;;  %v19728_v35 = vld [vmem:[#allocation13_spill] sm:$0xff] }
 0x212   : > { %v2455_v46 = vpop.f32.mrf.mxu1  ;;  %v1875_v33 = vpop.f32.mrf.mxu0  ;;  %v3470_v20 = vsel %vm3426_vm3, %v3465_v2, %v3469_v60  ;;  %v14206_v21 = vld [vmem:[#allocation2 + $0x50] sm:$0xff]  }
 0x213   : > { %2883 = vst.msk [vmem:[#allocation2 + $0x5c] sm:$0xf] %vm2859_vm1, %v13859_v10  ;;  %v2657_v6 = vmax.f32 %v2612_v63, 0.0  ;;  %v2561_v29 = vmax.f32 %v1981_v45, %v2453_v59  ;;  %3560 = vrot.lane.b32.xlu1 %v3470_v20, %s14548_s13  ;;  %v3182_v18 = vshll.u32 %v14206_v21, 16  ;;  %v3186_v15 = vshrl.u32 %v14206_v21, 16  ;;  %v19729_v59 = vld [vmem:[#allocation14_spill] sm:$0xff] }
 0x214   : > { %v2458_v30 = vpop.f32.mrf.mxu1  ;;  %v1878_v24 = vpop.f32.mrf.mxu0  ;;  %v19730_v62 = vmax.f32 %v19728_v35, %v19729_v59 }
 0x215   : > { %v13860_v16 = vpack.c.bf16 %v2657_v6, %v2657_v6  ;;  %v2613_v0 = vadd.f32 %v15382_v54, %v2561_v29  ;;  %v1982_v31 = vmax.f32 %v19724_v53, %v1878_v24  ;;  %v3184_v56 = vrot.slane %v3182_v18, 1 }
 0x216   : > { %v1880_v22 = vpop.f32.mrf.mxu0  ;;  %v2460_v2 = vpop.f32.mrf.mxu1  ;;  %v3471_v27 = vrot.slane %v3186_v15, 1  ;;  %v3472_v37 = vrot.slane %v3182_v18, 2  ;;  %v19731_v18 = vld [vmem:[#allocation15_spill] sm:$0xff] }
 0x217   : > { %2884 = vst.msk [vmem:[#allocation2 + $0x60] sm:$0xf] %vm2859_vm1, %v13860_v16  ;;  %v2658_v58 = vmax.f32 %v2613_v0, 0.0  ;;  %v2562_v41 = vmax.f32 %v1982_v31, %v2458_v30  ;;  %v3185_v9 = vsel %vm3101_vm2, %v3180_v36, %v3184_v56  ;;  %v3188_v13 = vor.u32 %v3186_v15, %v3184_v56  ;;  %v19732_v16 = vld [vmem:[#allocation16_spill] sm:$0xff] }
 0x218   : > { %v1881_v28 = vpop.f32.mrf.mxu0  ;;  %v2461_v57 = vpop.f32.mrf.mxu1  ;;  %v3473_v25 = vor.u32 %v3472_v37, %v3471_v27  ;;  %3332 = vrot.lane.b32.xlu0 %v3185_v9, %s14548_s13  ;;  %v19733_v0 = vmax.f32 %v19731_v18, %v19732_v16 }
 0x219   : > { %v13861_v48 = vpack.c.bf16 %v2658_v58, %v2658_v58  ;;  %v2614_v7 = vadd.f32 %v15382_v54, %v2562_v41  ;;  %v1983_v42 = vmax.f32 %v19727_v40, %v1881_v28  ;;  %v19734_v28 = vld [vmem:[#allocation17_spill] sm:$0xff] }
 0x21a   : > { %v2463_v52 = vpop.f32.mrf.mxu1  ;;  %v1883_v43 = vpop.f32.mrf.mxu0  ;;  %v3474_v39 = vsel %vm3426_vm3, %v3469_v60, %v3473_v25  ;;  %v14209_v14 = vld [vmem:[#allocation2 + $0x58] sm:$0xff]  }
 0x21b   : > { %2885 = vst.msk [vmem:[#allocation2 + $0x64] sm:$0xf] %vm2859_vm1, %v13861_v48  ;;  %v2659_v38 = vmax.f32 %v2614_v7, 0.0  ;;  %v2563_v17 = vmax.f32 %v1983_v42, %v2461_v57  ;;  %3562 = vrot.lane.b32.xlu1 %v3474_v39, %s14548_s13  ;;  %v3190_v3 = vshll.u32 %v14209_v14, 16  ;;  %v3194_v4 = vshrl.u32 %v14209_v14, 16  ;;  %v19735_v57 = vld [vmem:[#allocation18_spill] sm:$0xff] }
 0x21c   : > { %v2466_v8 = vpop.f32.mrf.mxu1  ;;  %v1886_v19 = vpop.f32.mrf.mxu0  ;;  %v19736_v9 = vmax.f32 %v19734_v28, %v19735_v57 }
 0x21d   : > { %v13862_v12 = vpack.c.bf16 %v2659_v38, %v2659_v38  ;;  %v2615_v34 = vadd.f32 %v15382_v54, %v2563_v17  ;;  %v1984_v10 = vmax.f32 %v19730_v62, %v1886_v19  ;;  %v3192_v47 = vrot.slane %v3190_v3, 1 }
 0x21e   : > { %v1888_v63 = vpop.f32.mrf.mxu0  ;;  %v2468_v60 = vpop.f32.mrf.mxu1  ;;  %v3475_v32 = vrot.slane %v3194_v4, 1  ;;  %v3476_v45 = vrot.slane %v3190_v3, 2  ;;  %v19737_v3 = vld [vmem:[#allocation19_spill] sm:$0xff] }
 0x21f   : > { %2886 = vst.msk [vmem:[#allocation2 + $0x68] sm:$0xf] %vm2859_vm1, %v13862_v12  ;;  %v2660_v46 = vmax.f32 %v2615_v34, 0.0  ;;  %v2564_v33 = vmax.f32 %v1984_v10, %v2466_v8  ;;  %v3193_v6 = vsel %vm3101_vm2, %v3188_v13, %v3192_v47  ;;  %v3196_v50 = vor.u32 %v3194_v4, %v3192_v47  ;;  %v15638_v8 = vld [vmem:[%s19602_s2] ss:$0 sm:$0xff]  ;;  %v19738_v4 = vld [vmem:[#allocation20_spill] sm:$0xff] }
 0x220   : > { %v1889_v20 = vpop.f32.mrf.mxu0  ;;  %v2469_v21 = vpop.f32.mrf.mxu1  ;;  %v3477_v29 = vor.u32 %v3476_v45, %v3475_v32  ;;  %3334 = vrot.lane.b32.xlu0 %v3193_v6, %s14548_s13  ;;  %v19739_v12 = vmax.f32 %v19737_v3, %v19738_v4 }
 0x221   : > { %v13863_v30 = vpack.c.bf16 %v2660_v46, %v2660_v46  ;;  %v2616_v24 = vadd.f32 %v15382_v54, %v2564_v33  ;;  %v1985_v49 = vmax.f32 %v19733_v0, %v1889_v20  ;;  %v19740_v20 = vld [vmem:[#allocation21_spill] sm:$0xff] }
 0x222   : > { %v2471_v15 = vpop.f32.mrf.mxu1  ;;  %v1891_v55 = vpop.f32.mrf.mxu0  ;;  %v3478_v53 = vsel %vm3426_vm3, %v3473_v25, %v3477_v29  ;;  %v14211_v31 = vld [vmem:[#allocation2 + $0x60] sm:$0xff]  }
 0x223   : > { %2887 = vst.msk [vmem:[#allocation2 + $0x6c] sm:$0xf] %vm2859_vm1, %v13863_v30  ;;  %v2661_v22 = vmax.f32 %v2616_v24, 0.0  ;;  %v2565_v2 = vmax.f32 %v1985_v49, %v2469_v21  ;;  %3564 = vrot.lane.b32.xlu1 %v3478_v53, %s14548_s13  ;;  %v3198_v27 = vshll.u32 %v14211_v31, 16  ;;  %v3202_v37 = vshrl.u32 %v14211_v31, 16  ;;  %v19741_v21 = vld [vmem:[#allocation22_spill] sm:$0xff] }
 0x224   : > { %v2474_v36 = vpop.f32.mrf.mxu1  ;;  %v1894_v56 = vpop.f32.mrf.mxu0  ;;  %v19742_v6 = vmax.f32 %v19740_v20, %v19741_v21 }
 0x225   : > { %v13864_v58 = vpack.c.bf16 %v2661_v22, %v2661_v22  ;;  %v2617_v41 = vadd.f32 %v15382_v54, %v2565_v2  ;;  %v1986_v48 = vmax.f32 %v19736_v9, %v1894_v56  ;;  %v3200_v51 = vrot.slane %v3198_v27, 1 }
 0x226   : > { %v1896_v7 = vpop.f32.mrf.mxu0  ;;  %v2476_v25 = vpop.f32.mrf.mxu1  ;;  %v3479_v40 = vrot.slane %v3202_v37, 1  ;;  %v3480_v42 = vrot.slane %v3198_v27, 2  ;;  %v19743_v27 = vld [vmem:[#allocation23_spill] sm:$0xff] }
 0x227   : > { %2888 = vst.msk [vmem:[#allocation2 + $0x70] sm:$0xf] %vm2859_vm1, %v13864_v58  ;;  %v2662_v52 = vmax.f32 %v2617_v41, 0.0  ;;  %v2566_v43 = vmax.f32 %v1986_v48, %v2474_v36  ;;  %v3201_v38 = vsel %vm3101_vm2, %v3196_v50, %v3200_v51  ;;  %v3204_v18 = vor.u32 %v3202_v37, %v3200_v51  ;;  %v19744_v58 = vld [vmem:[#allocation24_spill] sm:$0xff] }
 0x228   : > { %v1897_v39 = vpop.f32.mrf.mxu0  ;;  %v2477_v14 = vpop.f32.mrf.mxu1  ;;  %v3481_v17 = vor.u32 %v3480_v42, %v3479_v40  ;;  %3336 = vrot.lane.b32.xlu0 %v3201_v38, %s14548_s13  ;;  %v19745_v41 = vmax.f32 %v19743_v27, %v19744_v58 }
 0x229   : > { %v13865_v54 = vpack.c.bf16 %v2662_v52, %v2662_v52  ;;  %v2618_v19 = vadd.f32 %v15638_v8, %v2566_v43  ;;  %v1987_v34 = vmax.f32 %v19739_v12, %v1897_v39  ;;  %v19746_v39 = vld [vmem:[#allocation25_spill] sm:$0xff] }
 0x22a   : > { %v2479_v35 = vpop.f32.mrf.mxu1  ;;  %v1899_v59 = vpop.f32.mrf.mxu0  ;;  %v3482_v62 = vsel %vm3426_vm3, %v3477_v29, %v3481_v17  ;;  %v14213_v10 = vld [vmem:[#allocation2 + $0x68] sm:$0xff]  }
 0x22b   : > { %2889 = vst.msk [vmem:[#allocation2 + $0x74] sm:$0xf] %vm2859_vm1, %v13865_v54  ;;  %v2663_v63 = vmax.f32 %v2618_v19, 0.0  ;;  %v2567_v60 = vmax.f32 %v1987_v34, %v2477_v14  ;;  %3566 = vrot.lane.b32.xlu1 %v3482_v62, %s14548_s13  ;;  %v3206_v32 = vshll.u32 %v14213_v10, 16  ;;  %v3210_v45 = vshrl.u32 %v14213_v10, 16  ;;  %v19747_v14 = vld [vmem:[#allocation26_spill] sm:$0xff] }
 0x22c   : > { %v2482_v13 = vpop.f32.mrf.mxu1  ;;  %v1902_v47 = vpop.f32.mrf.mxu0  ;;  %v19748_v38 = vmax.f32 %v19746_v39, %v19747_v14 }
 0x22d   : > { %v13866_v46 = vpack.c.bf16 %v2663_v63, %v2663_v63  ;;  %v2619_v33 = vadd.f32 %v15638_v8, %v2567_v60  ;;  %v1988_v30 = vmax.f32 %v19742_v6, %v1902_v47  ;;  %v3208_v16 = vrot.slane %v3206_v32, 1 }
 0x22e   : > { %v1904_v24 = vpop.f32.mrf.mxu0  ;;  %v2484_v29 = vpop.f32.mrf.mxu1  ;;  %v3483_v0 = vrot.slane %v3210_v45, 1  ;;  %v3484_v49 = vrot.slane %v3206_v32, 2  ;;  %v19749_v32 = vld [vmem:[#allocation27_spill] sm:$0xff] }
 0x22f   : > { %2890 = vst.msk [vmem:[#allocation2 + $0x78] sm:$0xf] %vm2859_vm1, %v13866_v46  ;;  %v2664_v15 = vmax.f32 %v2619_v33, 0.0  ;;  %v2568_v55 = vmax.f32 %v1988_v30, %v2482_v13  ;;  %v3209_v22 = vsel %vm3101_vm2, %v3204_v18, %v3208_v16  ;;  %v3212_v3 = vor.u32 %v3210_v45, %v3208_v16  ;;  %v19750_v46 = vld [vmem:[#allocation28_spill] sm:$0xff] }
 0x230   : > { %v1905_v53 = vpop.f32.mrf.mxu0  ;;  %v2485_v31 = vpop.f32.mrf.mxu1  ;;  %v3485_v2 = vor.u32 %v3484_v49, %v3483_v0  ;;  %3338 = vrot.lane.b32.xlu0 %v3209_v22, %s14548_s13  ;;  %v19751_v33 = vmax.f32 %v19749_v32, %v19750_v46  ;;  %v3370_v46 = vrot.slane %v15427_v23, 1 }
 0x231   : > { %v13867_v36 = vpack.c.bf16 %v2664_v15, %v2664_v15  ;;  %v2620_v56 = vadd.f32 %v15638_v8, %v2568_v55  ;;  %v1989_v28 = vmax.f32 %v19745_v41, %v1905_v53  ;;  %v19752_v53 = vld [vmem:[#allocation29_spill] sm:$0xff] }
 0x232   : > { %v2487_v37 = vpop.f32.mrf.mxu1  ;;  %v1907_v57 = vpop.f32.mrf.mxu0  ;;  %v3486_v9 = vsel %vm3426_vm3, %v3481_v17, %v3485_v2  ;;  %v14216_v48 = vld [vmem:[#allocation2 + $0x70] sm:$0xff]  }
 0x233   : > { %2891 = vst.msk [vmem:[#allocation2 + $0x7c] sm:$0xf] %vm2859_vm1, %v13867_v36  ;;  %v2665_v7 = vmax.f32 %v2620_v56, 0.0  ;;  %v2569_v25 = vmax.f32 %v1989_v28, %v2485_v31  ;;  %3568 = vrot.lane.b32.xlu1 %v3486_v9, %s14548_s13  ;;  %v3214_v40 = vshll.u32 %v14216_v48, 16  ;;  %v3218_v42 = vshrl.u32 %v14216_v48, 16  ;;  %v19753_v31 = vld [vmem:[#allocation30_spill] sm:$0xff] }
 0x234   : > { %v2490_v50 = vpop.f32.mrf.mxu1  ;;  %v1910_v51 = vpop.f32.mrf.mxu0  ;;  %v19754_v22 = vmax.f32 %v19752_v53, %v19753_v31 }
 0x235   : > { %v13868_v52 = vpack.c.bf16 %v2665_v7, %v2665_v7  ;;  %v2621_v43 = vadd.f32 %v15638_v8, %v2569_v25  ;;  %v1990_v54 = vmax.f32 %v19748_v38, %v1910_v51  ;;  %v3216_v4 = vrot.slane %v3214_v40, 1 }
 0x236   : > { %v1912_v19 = vpop.f32.mrf.mxu0  ;;  %v2492_v17 = vpop.f32.mrf.mxu1  ;;  %v3487_v12 = vrot.slane %v3218_v42, 1  ;;  %v3488_v34 = vrot.slane %v3214_v40, 2  ;;  %v19755_v40 = vld [vmem:[#allocation31_spill] sm:$0xff] }
 0x237   : > { %2892 = vst.msk [vmem:[#allocation2 + $0x80] sm:$0xf] %vm2859_vm1, %v13868_v52  ;;  %v2666_v35 = vmax.f32 %v2621_v43, 0.0  ;;  %v2570_v59 = vmax.f32 %v1990_v54, %v2490_v50  ;;  %v3217_v63 = vsel %vm3101_vm2, %v3212_v3, %v3216_v4  ;;  %v3220_v27 = vor.u32 %v3218_v42, %v3216_v4  ;;  %v19756_v52 = vld [vmem:[#allocation32_spill] sm:$0xff]  ;;  %v15692_v4 = vld [vmem:[#allocation2 + $0x8] sm:$0xff]  }
 0x238   : > { %v1913_v62 = vpop.f32.mrf.mxu0  ;;  %v2493_v10 = vpop.f32.mrf.mxu1  ;;  %v3489_v60 = vor.u32 %v3488_v34, %v3487_v12  ;;  %3340 = vrot.lane.b32.xlu0 %v3217_v63, %s14548_s13  ;;  %v19757_v43 = vmax.f32 %v19755_v40, %v19756_v52  ;;  %v3371_v12 = vrot.slane %v15692_v4, 1  ;;  %v14225_v40 = vld [vmem:[%s19603_s3 + $0x138] sm:$0xff]  }
 0x239   : > { %v13869_v13 = vpack.c.bf16 %v2666_v35, %v2666_v35  ;;  %v2622_v47 = vadd.f32 %v15638_v8, %v2570_v59  ;;  %v1991_v20 = vmax.f32 %v19751_v33, %v1913_v62 }
 0x23a   : > { %v2495_v45 = vpop.f32.mrf.mxu1  ;;  %v1915_v21 = vpop.f32.mrf.mxu0  ;;  %v3490_v6 = vsel %vm3426_vm3, %v3485_v2, %v3489_v60  ;;  %v14219_v30 = vld [vmem:[#allocation2 + $0x78] sm:$0xff]  }
 0x23b   : > { %2893 = vst.msk [vmem:[#allocation2 + $0x84] sm:$0xf] %vm2859_vm1, %v13869_v13  ;;  %v2667_v24 = vmax.f32 %v2622_v47, 0.0  ;;  %v2571_v29 = vmax.f32 %v1991_v20, %v2493_v10  ;;  %3570 = vrot.lane.b32.xlu1 %v3490_v6, %s14548_s13  ;;  %v3222_v0 = vshll.u32 %v14219_v30, 16  ;;  %v3226_v49 = vshrl.u32 %v14219_v30, 16  ;;  %v19759_v13 = vld [vmem:[#allocation34_spill] sm:$0xff] }
 0x23c   : > { %v2498_v18 = vpop.f32.mrf.mxu1  ;;  %v1918_v16 = vpop.f32.mrf.mxu0 }
 0x23d   : > { %v13870_v15 = vpack.c.bf16 %v2667_v24, %v2667_v24  ;;  %v2623_v55 = vadd.f32 %v15638_v8, %v2571_v29  ;;  %v1992_v36 = vmax.f32 %v19754_v22, %v1918_v16  ;;  %v3224_v58 = vrot.slane %v3222_v0, 1 }
 0x23e   : > { %v1920_v56 = vpop.f32.mrf.mxu0  ;;  %v2500_v2 = vpop.f32.mrf.mxu1  ;;  %v3491_v41 = vrot.slane %v3226_v49, 1  ;;  %v3492_v28 = vrot.slane %v3222_v0, 2  ;;  %v15704_v0 = vld [vmem:[#allocation2 + $0x10] sm:$0xff]  }
 0x23f   : > { %2894 = vst.msk [vmem:[#allocation2 + $0x88] sm:$0xf] %vm2859_vm1, %v13870_v15  ;;  %v2668_v37 = vmax.f32 %v2623_v55, 0.0  ;;  %v2572_v57 = vmax.f32 %v1992_v36, %v2498_v18  ;;  %v3225_v7 = vsel %vm3101_vm2, %v3220_v27, %v3224_v58  ;;  %v3228_v45 = vor.u32 %v3226_v49, %v3224_v58  ;;  %v19761_v58 = vld [vmem:[#allocation35_spill] sm:$0xff] }
 0x240   : > { %v1921_v9 = vpop.f32.mrf.mxu0  ;;  %v2501_v48 = vpop.f32.mrf.mxu1  ;;  %v3493_v25 = vor.u32 %v3492_v28, %v3491_v41  ;;  %3342 = vrot.lane.b32.xlu0 %v3225_v7, %s14548_s13  ;;  %v3372_v18 = vsel %vm3369_vm5, %v3370_v46, %v3371_v12  ;;  %v3373_v15 = vrot.slane %v15704_v0, 1 }
 0x241   : > { %v13871_v50 = vpack.c.bf16 %v2668_v37, %v2668_v37  ;;  %v2624_v51 = vadd.f32 %v15638_v8, %v2572_v57  ;;  %v1993_v39 = vmax.f32 %v19757_v43, %v1921_v9 }
 0x242   : > { %v2503_v42 = vpop.f32.mrf.mxu1  ;;  %v1923_v14 = vpop.f32.mrf.mxu0  ;;  %v3494_v38 = vsel %vm3426_vm3, %v3489_v60, %v3493_v25  ;;  %v15688_v54 = vld [vmem:[#allocation2 + $0x80] sm:$0xff]  }
 0x243   : > { %2895 = vst.msk [vmem:[#allocation2 + $0x8c] sm:$0xf] %vm2859_vm1, %v13871_v50  ;;  %v2669_v19 = vmax.f32 %v2624_v51, 0.0  ;;  %v2573_v17 = vmax.f32 %v1993_v39, %v2501_v48  ;;  %v3315_v3 = vpop.permute.xlu0 %3314  ;;  %3572 = vrot.lane.b32.xlu1 %v3494_v38, %s14548_s13  ;;  %v3230_v59 = vshll.u32 %v15688_v54, 16  ;;  %v3234_v62 = vshrl.u32 %v15688_v54, 16  ;;  %v19758_v60 = vld [vmem:[#allocation33_spill] sm:$0xff] }
 0x244   : > { %v2506_v34 = vpop.f32.mrf.mxu1  ;;  %v1926_v35 = vpop.f32.mrf.mxu0  ;;  %v19760_v47 = vmax.f32 %v19758_v60, %v19759_v13  ;;  %v3598_v23 = vsel %vm3596_vm4, %v15425_v1, %v3315_v3  ;;  %v19762_v1 = vld [vmem:[#allocation36_spill] sm:$0xff]  ;;  %v3375_v51 = vrot.slane %v15492_v11, 1  ;;  %v19764_v38 = vmax.f32 %v15328_v61, %v15330_v5 }
 0x245   : > { %v13872_v10 = vpack.c.bf16 %v2669_v19, %v2669_v19  ;;  %v2625_v63 = vadd.f32 %v15638_v8, %v2573_v17  ;;  %v3232_v21 = vrot.slane %v3230_v59, 1  ;;  %v3495_v6 = vrot.slane %v3234_v62, 1 }
 0x246   : > { %v1994_v32 = vmax.f32 %v19760_v47, %v1926_v35  ;;  %v1928_v33 = vpop.f32.mrf.mxu0  ;;  %v2508_v20 = vpop.f32.mrf.mxu1  ;;  %v3496_v30 = vrot.slane %v3230_v59, 2  ;;  %v19763_v41 = vmax.f32 %v19761_v58, %v19762_v1  ;;  %v3374_v19 = vsel %vm3369_vm5, %v3371_v12, %v3373_v15  ;;  %v14232_v1 = vld [vmem:[%s19603_s3 + $0x128] sm:$0xff]  }
 0x247   : > { %2896 = vst.msk [vmem:[#allocation2 + $0x90] sm:$0xf] %vm2859_vm1, %v13872_v10  ;;  %v2670_v24 = vmax.f32 %v2625_v63, 0.0  ;;  %v3545_v16 = vpop.permute.xlu0 %3544  ;;  %v3233_v31 = vsel %vm3101_vm2, %v3228_v45, %v3232_v21  ;;  %v3236_v17 = vor.u32 %v3234_v62, %v3232_v21  ;;  %v3376_v12 = vsel %vm3369_vm5, %v3373_v15, %v3375_v51  ;;  %v14229_v62 = vld [vmem:[%s19603_s3 + $0x130] sm:$0xff]  }
 0x248   : > { %v2574_v29 = vmax.f32 %v1994_v32, %v2506_v34  ;;  %v2509_v55 = vpop.f32.mrf.mxu1  ;;  %v15710_v49 = vsel %vm3596_vm4, %v3372_v18, %v3545_v16  ;;  %v1929_v53 = vpop.f32.mrf.mxu0  ;;  %v3497_v22 = vor.u32 %v3496_v30, %v3495_v6  ;;  %3344 = vrot.lane.b32.xlu0 %v3233_v31, %s14548_s13  ;;  %v19765_v6 = vld [vmem:[#allocation37_spill] sm:$0xff]  ;;  %v19766_v30 = vld [vmem:[#allocation38_spill] sm:$0xff]  ;;  %v3377_v31 = vrot.slane %v15511_v26, 1 }
 0x249   : > { %v13873_v36 = vpack.c.bf16 %v2670_v24, %v2670_v24  ;;  %v12873_v2 = vcombine.low %v3598_v23, %v15710_v49  ;;  %v15716_v27 = vcombine.high %v3598_v23, %v15710_v49  ;;  %v1995_v28 = vmax.f32 %v19763_v41, %v1929_v53  ;;  %4471 = vmatprep.mubr.bf16.mxu0 %v15710_v49 }
 0x24a   : > { %v2626_v56 = vadd.f32 %v15638_v8, %v2574_v29  ;;  %v2511_v37 = vpop.f32.mrf.mxu1  ;;  %v1931_v57 = vpop.f32.mrf.mxu0  ;;  %v3498_v9 = vsel %vm3426_vm3, %v3493_v25, %v3497_v22  ;;  %v14223_v48 = vld [vmem:[#allocation2 + $0x88] sm:$0xff]   ;;  %4472 = vmatmul.mubr.bf16.vlgmr.msra.gmra.mxu0 %v3598_v23  ;;  %v19767_v24 = vmax.f32 %v19765_v6, %v19766_v30  ;;  %v3378_v30 = vsel %vm3369_vm5, %v3375_v51, %v3377_v31  ;;  %v14241_v51 = vld [vmem:[%s19603_s3 + $0x118] sm:$0xff]  }
 0x24b   : > { %2897 = vst.msk [vmem:[#allocation2 + $0x94] sm:$0xf] %vm2859_vm1, %v13873_v36  ;;  %3987 = vst [vmem:[#allocation3 + $0xb0] sm:$0xff] %v12873_v2  ;;  %v3317_v50 = vpop.permute.xlu1 %3316  ;;  %3574 = vrot.lane.b32.xlu1 %v3498_v9, %s14548_s13  ;;  %v2575_v52 = vmax.f32 %v1995_v28, %v2509_v55  ;;  %v3238_v25 = vshll.u32 %v14223_v48, 16  ;;  %v3242_v42 = vshrl.u32 %v14223_v48, 16  ;;  %6089 = vmatpush1.bf16.msra.mxu0 %v14225_v40  ;;  %v19769_v40 = vld [vmem:[#allocation40_spill] sm:$0xff] }
 0x24c   : > { %v2671_v7 = vmax.f32 %v2626_v56, 0.0  ;;  %3988 = vst [vmem:[#allocation3 + $0xd0] sm:$0xff] %v15716_v27  ;;  %v2514_v43 = vpop.f32.mrf.mxu1  ;;  %v1934_v39 = vpop.f32.mrf.mxu0  ;;  %v15739_v60 = vsel %vm3596_vm4, %v15692_v4, %v3317_v50  ;;  %6090 = vmatprep.subr.bf16.mxu0 %v19660_v44  ;;  %v19768_v50 = vld [vmem:[#allocation39_spill] sm:$0xff] }
 0x24d   : > { %v1996_v54 = vmax.f32 %v19764_v38, %v1934_v39  ;;  %v2627_v3 = vadd.f32 %v15638_v8, %v2575_v52  ;;  %v3240_v59 = vrot.slane %v3238_v25, 1  ;;  %v3499_v10 = vrot.slane %v3242_v42, 1 }
 0x24e   : > { %v13874_v14 = vpack.c.bf16 %v2671_v7, %v2671_v7  ;;  %v1936_v34 = vpop.f32.mrf.mxu0  ;;  %v2516_v35 = vpop.f32.mrf.mxu1  ;;  %v3500_v63 = vrot.slane %v3238_v25, 2  ;;  %v19770_v52 = vmax.f32 %v19768_v50, %v19769_v40 }
 0x24f   : > { %v2576_v5 = vmax.f32 %v1996_v54, %v2514_v43  ;;  %v3547_v61 = vpop.permute.xlu1 %3546  ;;  %v2672_v13 = vmax.f32 %v2627_v3, 0.0  ;;  %v3241_v4 = vsel %vm3101_vm2, %v3236_v17, %v3240_v59  ;;  %v3244_v53 = vor.u32 %v3242_v42, %v3240_v59  ;;  %6091 = vmatpush1.bf16.msra.mxu0 %v14229_v62  ;;  %v14237_v34 = vld [vmem:[%s19603_s3 + $0x120] sm:$0xff]  }
 0x250   : > { %2898 = vst.msk [vmem:[#allocation2 + $0x98] sm:$0xf] %vm2859_vm1, %v13874_v14  ;;  %v2517_v47 = vpop.f32.mrf.mxu1  ;;  %v15748_v32 = vsel %vm3596_vm4, %v3374_v19, %v3547_v61  ;;  %v1937_v46 = vpop.f32.mrf.mxu0  ;;  %v15751_v33 = vor.u32 %v3500_v63, %v3499_v10  ;;  %3346 = vrot.lane.b32.xlu0 %v3241_v4, %s14548_s13  ;;  %6092 = vmatprep.subr.bf16.mxu0 %v19660_v44  ;;  %v5010_v61 = vrot.slane %v15739_v60, 3 }
 0x251   : > { %v2628_v20 = vadd.f32 %v15638_v8, %v2576_v5  ;;  %v12875_v45 = vcombine.low %v15739_v60, %v15748_v32  ;;  %v12876_v21 = vcombine.high %v15739_v60, %v15748_v32  ;;  %v1997_v29 = vmax.f32 %v19767_v24, %v1937_v46  ;;  %4479 = vmatprep.mubr.bf16.mxu0 %v15748_v32 }
 0x252   : > { %v13875_v18 = vpack.c.bf16 %v2672_v13, %v2672_v13  ;;  %v2519_v16 = vpop.f32.mrf.mxu1  ;;  %v1939_v15 = vpop.f32.mrf.mxu0  ;;  %v3502_v23 = vsel %vm3426_vm3, %v3497_v22, %v15751_v33  ;;  %v15765_v55 = vld [vmem:[#allocation2 + $0x90] sm:$0xff]   ;;  %v4745_v36 = vld [vmem:[#allocation3 + $0xb0] sm:$0x88]  ;;  %4480 = vmatmul.mubr.bf16.gmra.mxu0 %v15739_v60  ;;  %v19771_v13 = vld [vmem:[#allocation41_spill] sm:$0xff]  ;;  %v5013_v24 = vrot.slane %v15748_v32, 3 }
 0x253   : > { %v2673_v56 = vmax.f32 %v2628_v20, 0.0  ;;  %3989 = vst [vmem:[#allocation3 + $0x10] sm:$0xff] %v12875_v45  ;;  %3990 = vst [vmem:[#allocation3 + $0x48] sm:$0xff] %v12876_v21  ;;  %v2577_v2 = vmax.f32 %v1997_v29, %v2517_v47  ;;  %v3319_v58 = vpop.permute.xlu0 %3318  ;;  %3576 = vrot.lane.b32.xlu1 %v3502_v23, %s14548_s13  ;;  %v3246_v37 = vshll.u32 %v15765_v55, 16  ;;  %v3250_v57 = vshrl.u32 %v15765_v55, 16  ;;  %6093 = vmatpush1.bf16.msra.mxu0 %v14232_v1  ;;  %v19772_v47 = vld [vmem:[#allocation42_spill] sm:$0xff] }
 0x254   : > { %2899 = vst.msk [vmem:[#allocation2 + $0x9c] sm:$0xf] %vm2859_vm1, %v13875_v18  ;;  %v2522_v22 = vpop.f32.mrf.mxu1  ;;  %v15775_v41 = vsel %vm3596_vm4, %v15704_v0, %v3319_v58  ;;  %v1942_v28 = vpop.f32.mrf.mxu0  ;;  %v13019_v9 = vcombine.low %v4745_v36, %v15716_v27  ;;  %v14535_v0 = vcombine.high %v4745_v36, %v15710_v49  ;;  %6094 = vmatprep.subr.bf16.mxu0 %v19660_v44  ;;  %v14228_v18 = vld [vmem:[%s19603_s3 + $0x1b8] sm:$0xff]  }
 0x255   : > { %v13876_v48 = vpack.c.bf16 %v2673_v56, %v2673_v56  ;;  %v2629_v7 = vadd.f32 %v15638_v8, %v2577_v2  ;;  %v1998_v43 = vmax.f32 %v19770_v52, %v1942_v28  ;;  %v3549_v39 = vpop.permute.xlu1 %3548  ;;  %v3248_v27 = vrot.slane %v3246_v37, 1  ;;  %v14513_v32 = vld [vmem:[#allocation2 + $0x18] sm:$0xff]   ;;  %v15835_v2 = vld [vmem:[#allocation2 + $0x28] sm:$0xff]  }
 0x256   : > { %v2524_v25 = vpop.f32.mrf.mxu1  ;;  %v15788_v42 = vsel %vm3596_vm4, %v3376_v12, %v3549_v39  ;;  %v1944_v14 = vpop.f32.mrf.mxu0  ;;  %v3503_v38 = vrot.slane %v3250_v57, 1  ;;  %v3504_v54 = vrot.slane %v3246_v37, 2  ;;  %v5009_v5 = vrot.slane %v13019_v9, 3  ;;  %v19774_v28 = vld [vmem:[#allocation43_spill] sm:$0xff]  ;;  %v19775_v37 = vld [vmem:[#allocation44_spill] sm:$0xff] }
 0x257   : > { %2900 = vst.msk [vmem:[#allocation2 + $0xa0] sm:$0xf] %vm2859_vm1, %v13876_v48  ;;  %v2674_v19 = vmax.f32 %v2629_v7, 0.0  ;;  %v2578_v17 = vmax.f32 %v1998_v43, %v2522_v22  ;;  %v12877_v3 = vcombine.low %v15775_v41, %v15788_v42  ;;  %v12878_v49 = vcombine.high %v15775_v41, %v15788_v42  ;;  %6095 = vmatpush1.bf16.msra.mxu0 %v14237_v34 }
 0x258   : > { %v1945_v35 = vpop.f32.mrf.mxu0  ;;  %v2525_v59 = vpop.f32.mrf.mxu1  ;;  %v3249_v10 = vsel %vm3101_vm2, %v3244_v53, %v3248_v27  ;;  %v15800_v63 = vor.u32 %v3504_v54, %v3503_v38  ;;  %v19773_v46 = vmax.f32 %v19771_v13, %v19772_v47  ;;  %v5012_v20 = vrot.slane %v14535_v0, 3  ;;  %6096 = vmatprep.subr.bf16.mxu0 %v19660_v44  ;;  %4487 = vmatprep.mubr.bf16.mxu0 %v15788_v42  ;;  %v14231_v54 = vld [vmem:[%s19603_s3 + $0x1b0] sm:$0xff]  }
 0x259   : > { %v13877_v12 = vpack.c.bf16 %v2674_v19, %v2674_v19  ;;  %v2630_v62 = vadd.f32 %v15638_v8, %v2578_v17  ;;  %3991 = vst [vmem:[#allocation3 + $0x160] sm:$0xff] %v12877_v3  ;;  %3992 = vst [vmem:[#allocation3 + $0x128] sm:$0xff] %v12878_v49  ;;  %3348 = vrot.lane.b32.xlu0 %v3249_v10, %s14548_s13  ;;  %v5011_v29 = vsel %vm5008_vm6, %v5009_v5, %v5010_v61  ;;  %v14243_v5 = vld [vmem:[%s19603_s3 + $0x110] sm:$0xff]  }
 0x25a   : > { %v1999_v4 = vmax.f32 %v19773_v46, %v1945_v35  ;;  %v2527_v45 = vpop.f32.mrf.mxu1  ;;  %v1947_v21 = vpop.f32.mrf.mxu0  ;;  %v3506_v6 = vsel %vm3426_vm3, %v15751_v33, %v15800_v63  ;;  %v5014_v36 = vsel %vm5008_vm6, %v5012_v20, %v5013_v24  ;;  %v3252_v56 = vor.u32 %v3250_v57, %v3248_v27  ;;  %4488 = vmatmul.mubr.bf16.gmra.mxu0 %v15775_v41 }
 0x25b   : > { %2901 = vst.msk [vmem:[#allocation2 + $0xa4] sm:$0xf] %vm2859_vm1, %v13877_v12  ;;  %v2675_v16 = vmax.f32 %v2630_v62, 0.0  ;;  %v3321_v15 = vpop.permute.xlu0 %3320  ;;  %3578 = vrot.lane.b32.xlu1 %v3506_v6, %s14548_s13  ;;  %v15826_v11 = vld [vmem:[#allocation2 + $0x98] sm:$0xff]   ;;  %v3379_v58 = vrot.slane %v15835_v2, 1  ;;  %v19776_v9 = vmax.f32 %v19774_v28, %v19775_v37  ;;  %5273 = vmatprep.mubr.bf16.mxu1 %v5014_v36  ;;  %v5017_v39 = vrot.slane %v15788_v42, 3 }
 0x25c   : > { %v2579_v33 = vmax.f32 %v1999_v4, %v2525_v59  ;;  %v15832_v23 = vsel %vm3596_vm4, %v14513_v32, %v3321_v15  ;;  %v1950_v55 = vpop.f32.mrf.mxu0  ;;  %v2530_v53 = vpop.f32.mrf.mxu1  ;;  %v3254_v50 = vshll.u32 %v15826_v11, 16  ;;  %5274 = vmatmul.mubr.bf16.vlgmr.msra.gmra.mxu1 %v5011_v29  ;;  %v3258_v43 = vshrl.u32 %v15826_v11, 16  ;;  %6097 = vmatpush1.bf16.msra.mxu0 %v14241_v51  ;;  %v15884_v21 = vld [vmem:[#allocation2 + $0x30] sm:$0xff]   ;;  %v14516_v29 = vld [vmem:[#allocation2 + $0x20] sm:$0xff]  }
 0x25d   : > { %v13878_v1 = vpack.c.bf16 %v2675_v16, %v2675_v16  ;;  %v2000_v48 = vmax.f32 %v19776_v9, %v1950_v55  ;;  %v3551_v7 = vpop.permute.xlu1 %3550  ;;  %v5015_v0 = vrot.slane %v15775_v41, 3  ;;  %6935 = vmatpush1.bf16.msra.mxu1 %v14228_v18  ;;  %v5018_v35 = vsel %vm5008_vm6, %v5013_v24, %v5017_v39  ;;  %6098 = vmatprep.subr.bf16.mxu0 %v19660_v44  ;;  %v15890_v24 = vld [vmem:[#allocation2 + $0xb8] sm:$0xff]   ;;  %v14240_v42 = vld [vmem:[%s19603_s3 + $0x1a0] sm:$0xff]  }
 0x25e   : > { %v2631_v22 = vadd.f32 %v15638_v8, %v2579_v33  ;;  %v15846_v57 = vsel %vm3596_vm4, %v3378_v30, %v3551_v7  ;;  %v1952_v40 = vpop.f32.mrf.mxu0  ;;  %v2532_v52 = vpop.f32.mrf.mxu1  ;;  %v3256_v17 = vrot.slane %v3254_v50, 1  ;;  %v3507_v49 = vrot.slane %v3258_v43, 1  ;;  %6936 = vmatprep.subr.bf16.mxu1 %v19660_v44  ;;  %5281 = vmatprep.mubr.bf16.mxu1 %v5018_v35  ;;  %v14235_v30 = vld [vmem:[%s19603_s3 + $0x1a8] sm:$0xff]   ;;  %v14247_v9 = vld [vmem:[%s19603_s3 + $0x100] sm:$0xff]  }
 0x25f   : > { %2902 = vst.msk [vmem:[#allocation2 + $0xa8] sm:$0xf] %vm2859_vm1, %v13878_v1  ;;  %v2580_v14 = vmax.f32 %v2000_v48, %v2530_v53  ;;  %v12879_v27 = vcombine.low %v15832_v23, %v15846_v57  ;;  %v12880_v38 = vcombine.high %v15832_v23, %v15846_v57  ;;  %v3508_v34 = vrot.slane %v3254_v50, 2  ;;  %4495 = vmatprep.mubr.bf16.mxu0 %v15846_v57 }
 0x260   : > { %v2676_v25 = vmax.f32 %v2631_v22, 0.0  ;;  %v1953_v19 = vpop.f32.mrf.mxu0  ;;  %v2533_v3 = vpop.f32.mrf.mxu1  ;;  %v3257_v12 = vsel %vm3101_vm2, %v3252_v56, %v3256_v17  ;;  %v3380_v20 = vsel %vm3369_vm5, %v3377_v31, %v3379_v58  ;;  %v5016_v45 = vsel %vm5008_vm6, %v5010_v61, %v5015_v0  ;;  %6099 = vmatpush1.bf16.msra.mxu0 %v14243_v5 }
 0x261   : > { %v2632_v10 = vadd.f32 %v15638_v8, %v2580_v14  ;;  %3993 = vst [vmem:[#allocation3 + $0x40] sm:$0xff] %v12879_v27  ;;  %3994 = vst [vmem:[#allocation3 + $0x178] sm:$0xff] %v12880_v38  ;;  %v3509_v13 = vor.u32 %v3508_v34, %v3507_v49  ;;  %3350 = vrot.lane.b32.xlu0 %v3257_v12, %s14548_s13  ;;  %v3381_v6 = vrot.slane %v15884_v21, 1  ;;  %6937 = vmatpush1.bf16.msra.mxu1 %v14231_v54  ;;  %v14242_v38 = vld [vmem:[%s19603_s3 + $0x198] sm:$0xff]  }
 0x262   : > { %v13879_v59 = vpack.c.bf16 %v2676_v25, %v2676_v25  ;;  %v1954_v62 = vpop.f32.mrf.mxu0  ;;  %v2534_v47 = vpop.f32.mrf.mxu1  ;;  %v15870_v46 = vld [vmem:[#allocation2 + $0xa0] sm:$0xff]   ;;  %6938 = vmatprep.subr.bf16.mxu1 %v19660_v44  ;;  %v3260_v33 = vor.u32 %v3258_v43, %v3256_v17  ;;  %v5021_v15 = vrot.slane %v15846_v57, 3  ;;  %4496 = vmatmul.mubr.bf16.gmra.mxu0 %v15832_v23  ;;  %v3286_v1 = vshll.u32 %v15890_v24, 16  ;;  %v15966_v3 = vld [vmem:[#allocation2 + $0x38] sm:$0xff]  }
 0x263   : > { %v2677_v4 = vmax.f32 %v2632_v10, 0.0  ;;  %v3323_v8 = vpop.permute.xlu0 %3322  ;;  %v3510_v26 = vsel %vm3426_vm3, %v15800_v63, %v3509_v13  ;;  %v3262_v31 = vshll.u32 %v15870_v46, 16  ;;  %v3266_v60 = vshrl.u32 %v15870_v46, 16  ;;  %v14245_v63 = vld [vmem:[%s19603_s3 + $0x108] sm:$0xff]   ;;  %6100 = vmatprep.subr.bf16.mxu0 %v19660_v44  ;;  %v15950_v25 = vld [vmem:[#allocation2 + $0xc0] sm:$0xff]   ;;  %v14249_v49 = vld [vmem:[%s19603_s3 + $0x178] sm:$0xff]  }
 0x264   : > { %2903 = vst.msk [vmem:[#allocation2 + $0xac] sm:$0xf] %vm2859_vm1, %v13879_v59  ;;  %v15899_v18 = vsel %vm3596_vm4, %v14516_v29, %v3323_v8  ;;  %3580 = vrot.lane.b32.xlu1 %v3510_v26, %s14548_s13  ;;  %5282 = vmatmul.mubr.bf16.gmra.mxu1 %v5016_v45  ;;  %v5022_v56 = vsel %vm5008_vm6, %v5017_v39, %v5021_v15  ;;  %v5019_v37 = vrot.slane %v15832_v23, 3  ;;  %v15945_v52 = vrot.slane %v3286_v1, 1  ;;  %v15993_v45 = vld [vmem:[#allocation2 + $0xc8] sm:$0xff]  }
 0x265   : > { %v13880_v61 = vpack.c.bf16 %v2677_v4, %v2677_v4  ;;  %v3553_v16 = vpop.permute.xlu1 %3552  ;;  %v3264_v51 = vrot.slane %v3262_v31, 1  ;;  %v3511_v32 = vrot.slane %v3266_v60, 1  ;;  %v3512_v55 = vrot.slane %v3262_v31, 2  ;;  %6939 = vmatpush1.bf16.msra.mxu1 %v14235_v30  ;;  %5289 = vmatprep.mubr.bf16.mxu1 %v5022_v56  ;;  %v14244_v30 = vld [vmem:[%s19603_s3 + $0x190] sm:$0xff]   ;;  %v14246_v56 = vld [vmem:[%s19603_s3 + $0x188] sm:$0xff]  }
 0x266   : > { %v15907_v11 = vsel %vm3596_vm4, %v3380_v20, %v3553_v16  ;;  %6940 = vmatprep.subr.bf16.mxu1 %v19660_v44  ;;  %6101 = vmatpush1.bf16.msra.mxu0 %v14245_v63  ;;  %v3382_v7 = vsel %vm3369_vm5, %v3379_v58, %v3381_v6  ;;  %v3290_v43 = vshrl.u32 %v15890_v24, 16  ;;  %v15948_v39 = vrot.slane %v3286_v1, 2 }
 0x267   : > { %2904 = vst.msk [vmem:[#allocation2 + $0xb0] sm:$0xf] %vm2859_vm1, %v13880_v61  ;;  %v12881_v53 = vcombine.low %v15899_v18, %v15907_v11  ;;  %v12882_v36 = vcombine.high %v15899_v18, %v15907_v11  ;;  %v3265_v22 = vsel %vm3101_vm2, %v3260_v33, %v3264_v51  ;;  %v15921_v28 = vor.u32 %v3512_v55, %v3511_v32 }
 0x268   : > { %3352 = vrot.lane.b32.xlu0 %v3265_v22, %s14548_s13  ;;  %6102 = vmatprep.subr.bf16.mxu0 %v19660_v44  ;;  %v5025_v40 = vrot.slane %v15907_v11, 3  ;;  %v5020_v58 = vsel %vm5008_vm6, %v5015_v0, %v5019_v37  ;;  %v3268_v17 = vor.u32 %v3266_v60, %v3264_v51  ;;  %v3383_v41 = vrot.slane %v15966_v3, 1 }
 0x269   : > { %3995 = vst [vmem:[#allocation3 + $0x108] sm:$0xff] %v12881_v53  ;;  %3996 = vst [vmem:[#allocation3 + $0x110] sm:$0xff] %v12882_v36  ;;  %v3514_v48 = vsel %vm3426_vm3, %v3509_v13, %v15921_v28  ;;  %4503 = vmatprep.mubr.bf16.mxu0 %v15907_v11  ;;  %6941 = vmatpush1.bf16.msra.mxu1 %v14240_v42  ;;  %v3294_v62 = vshll.u32 %v15950_v25, 16  ;;  %v3298_v13 = vshrl.u32 %v15950_v25, 16  ;;  %v3523_v20 = vrot.slane %v3290_v43, 1 }
 0x26a   : > { %v3325_v57 = vpop.permute.xlu0 %3324  ;;  %3582 = vrot.lane.b32.xlu1 %v3514_v48, %s14548_s13  ;;  %v5026_v0 = vsel %vm5008_vm6, %v5021_v15, %v5025_v40  ;;  %6942 = vmatprep.subr.bf16.mxu1 %v19660_v44  ;;  %v3384_v26 = vsel %vm3369_vm5, %v3381_v6, %v3383_v41  ;;  %v5023_v60 = vrot.slane %v15899_v18, 3  ;;  %v3302_v36 = vshll.u32 %v15993_v45, 16 }
 0x26b   : > { %v15939_v50 = vld [vmem:[#allocation2 + $0xa8] sm:$0xff]   ;;  %v15964_v54 = vsel %vm3596_vm4, %v15835_v2, %v3325_v57  ;;  %6103 = vmatpush1.bf16.msra.mxu0 %v14247_v9  ;;  %v3527_v51 = vrot.slane %v3298_v13, 1  ;;  %v3528_v32 = vrot.slane %v3294_v62, 2  ;;  %v3306_v9 = vshrl.u32 %v15993_v45, 16 }
 0x26c   : > { %v3270_v14 = vshll.u32 %v15939_v50, 16  ;;  %v3274_v27 = vshrl.u32 %v15939_v50, 16  ;;  %5290 = vmatmul.mubr.bf16.gmra.mxu1 %v5020_v58  ;;  %4504 = vmatmul.mubr.bf16.gmra.mxu0 %v15899_v18  ;;  %v3292_v23 = vor.u32 %v3290_v43, %v15945_v52  ;;  %v3296_v11 = vrot.slane %v3294_v62, 1  ;;  %v16054_v43 = vld [vmem:[#allocation2 + $0x40] sm:$0xff]  }
 0x26d   : > { %v3555_v19 = vpop.permute.xlu1 %3554  ;;  %5297 = vmatprep.mubr.bf16.mxu1 %v5026_v0  ;;  %6104 = vmatprep.subr.bf16.mxu0 %v19660_v44  ;;  %v3525_v58 = vor.u32 %v15948_v39, %v3523_v20  ;;  %v5027_v39 = vrot.slane %v15964_v54, 3 }
 0x26e   : > { %v15977_v2 = vsel %vm3596_vm4, %v3382_v7, %v3555_v19  ;;  %v3272_v34 = vrot.slane %v3270_v14, 1  ;;  %v3515_v35 = vrot.slane %v3274_v27, 1  ;;  %v3516_v59 = vrot.slane %v3270_v14, 2  ;;  %v15979_v10 = vld [vmem:[#allocation2 + $0xb0] sm:$0xff]   ;;  %6943 = vmatpush1.bf16.msra.mxu1 %v14242_v38  ;;  %v14248_v38 = vld [vmem:[%s19603_s3 + $0x180] sm:$0xff]  }
 0x26f   : > { %v12883_v5 = vcombine.low %v15964_v54, %v15977_v2  ;;  %v12884_v12 = vcombine.high %v15964_v54, %v15977_v2  ;;  %v3278_v8 = vshll.u32 %v15979_v10, 16  ;;  %v3282_v31 = vshrl.u32 %v15979_v10, 16  ;;  %6944 = vmatprep.subr.bf16.mxu1 %v19660_v44  ;;  %6105 = vmatpush2.bf16.msra.mxu0 %v14249_v49 }
 0x270   : > { %v3273_v47 = vsel %vm3101_vm2, %v3268_v17, %v3272_v34  ;;  %v3517_v4 = vor.u32 %v3516_v59, %v3515_v35  ;;  %v3276_v29 = vor.u32 %v3274_v27, %v3272_v34  ;;  %4511 = vmatprep.mubr.bf16.mxu0 %v15977_v2  ;;  %v5029_v6 = vrot.slane %v15977_v2, 3  ;;  %6106 = vmatprep.subr.bf16.mxu0 %v19660_v44  ;;  %v14253_v35 = vld [vmem:[%s19603_s3 + $0x168] sm:$0xff]  }
 0x271   : > { %3997 = vst [vmem:[#allocation3 + $0x90] sm:$0xff] %v12883_v5  ;;  %3998 = vst [vmem:[#allocation3 + $0x118] sm:$0xff] %v12884_v12  ;;  %3354 = vrot.lane.b32.xlu0 %v3273_v47, %s14548_s13  ;;  %v3280_v16 = vrot.slane %v3278_v8, 1  ;;  %v3520_v33 = vrot.slane %v3278_v8, 2  ;;  %v3519_v63 = vrot.slane %v3282_v31, 1  ;;  %v3385_v14 = vrot.slane %v16054_v43, 1 }
 0x272   : > { %v3518_v61 = vsel %vm3426_vm3, %v15921_v28, %v3517_v4  ;;  %v3327_v15 = vpop.permute.xlu0 %3326  ;;  %6945 = vmatpush1.bf16.msra.mxu1 %v14244_v30  ;;  %v5024_v28 = vsel %vm5008_vm6, %v5019_v37, %v5023_v60  ;;  %v5030_v42 = vsel %vm5008_vm6, %v5025_v40, %v5029_v6  ;;  %v14251_v37 = vld [vmem:[%s19603_s3 + $0x170] sm:$0xff]   ;;  %v3529_v27 = vor.u32 %v3528_v32, %v3527_v51  ;;  %v14250_v12 = vld [vmem:[%s19603_s3 + $0x1f8] sm:$0xff]  }
 0x273   : > { %3584 = vrot.lane.b32.xlu1 %v3518_v61, %s14548_s13  ;;  %v3281_v55 = vsel %vm3101_vm2, %v3276_v29, %v3280_v16  ;;  %v3284_v53 = vor.u32 %v3282_v31, %v3280_v16  ;;  %v3521_v22 = vor.u32 %v3520_v33, %v3519_v63  ;;  %6946 = vmatprep.subr.bf16.mxu1 %v19660_v44  ;;  %v3531_v19 = vrot.slane %v3306_v9, 1  ;;  %v14254_v63 = vld [vmem:[%s19603_s3 + $0x1e8] sm:$0xff]  }
 0x274   : > { %v16033_v48 = vsel %vm3596_vm4, %v15884_v21, %v3327_v15  ;;  %5298 = vmatmul.mubr.bf16.gmra.mxu1 %v5024_v28  ;;  %4512 = vmatmul.mubr.bf16.gmra.mxu0 %v15964_v54  ;;  %v3297_v17 = vsel %vm3101_vm2, %v3292_v23, %v3296_v11  ;;  %v3300_v0 = vor.u32 %v3298_v13, %v3296_v11  ;;  %v16068_v49 = vrot.slane %v3302_v36, 1  ;;  %v14257_v15 = vld [vmem:[%s19603_s3 + $0x158] sm:$0xff]   ;;  %v14256_v28 = vld [vmem:[%s19603_s3 + $0x1e0] sm:$0xff]  }
 0x275   : > { %v3557_v1 = vpop.permute.xlu1 %3556  ;;  %3356 = vrot.lane.b32.xlu0 %v3281_v55, %s14548_s13  ;;  %v3522_v40 = vsel %vm3426_vm3, %v3517_v4, %v3521_v22  ;;  %5305 = vmatprep.mubr.bf16.mxu1 %v5030_v42  ;;  %v3289_v24 = vsel %vm3101_vm2, %v3284_v53, %v15945_v52  ;;  %v3532_v52 = vrot.slane %v3302_v36, 2  ;;  %v3526_v34 = vsel %vm3426_vm3, %v3521_v22, %v3525_v58  ;;  %v14259_v22 = vld [vmem:[%s19603_s3 + $0x150] sm:$0xff]  }
 0x276   : > { %v16036_v7 = vsel %vm3596_vm4, %v3384_v26, %v3557_v1  ;;  %6947 = vmatpush1.bf16.msra.mxu1 %v14246_v56  ;;  %6107 = vmatpush2.bf16.msra.mxu0 %v14251_v37  ;;  %v3386_v59 = vsel %vm3369_vm5, %v3383_v41, %v3385_v14  ;;  %v3530_v5 = vsel %vm3426_vm3, %v3525_v58, %v3529_v27  ;;  %v14252_v26 = vld [vmem:[%s19603_s3 + $0x1f0] sm:$0xff]   ;;  %v5031_v29 = vrot.slane %v16033_v48, 3  ;;  %v14261_v37 = vld [vmem:[%s19603_s3 + $0x148] sm:$0xff]  }
 0x277   : > { %v12885_v57 = vcombine.low %v16033_v48, %v16036_v7  ;;  %v12886_v21 = vcombine.high %v16033_v48, %v16036_v7  ;;  %3586 = vrot.lane.b32.xlu1 %v3522_v40, %s14548_s13  ;;  %6948 = vmatprep.subr.bf16.mxu1 %v19660_v44  ;;  %v5033_v54 = vrot.slane %v16036_v7, 3  ;;  %v5028_v13 = vsel %vm5008_vm6, %v5023_v60, %v5027_v39  ;;  %v14519_v60 = vld [vmem:[#allocation2 + $0x48] sm:$0xff]   ;;  %v14520_v42 = vld [vmem:[#allocation2 + $0x50] sm:$0xff]  }
 0x278   : > { %4519 = vmatprep.mubr.bf16.mxu0 %v16036_v7  ;;  %6108 = vmatprep.subr.bf16.mxu0 %v19660_v44  ;;  %v16091_v47 = vor.u32 %v3532_v52, %v3531_v19  ;;  %v3305_v20 = vsel %vm3101_vm2, %v3300_v0, %v16068_v49  ;;  %v3387_v61 = vrot.slane %v14519_v60, 1  ;;  %v5032_v32 = vsel %vm5008_vm6, %v5027_v39, %v5031_v29  ;;  %v14263_v39 = vld [vmem:[%s19603_s3 + $0x140] sm:$0xff]   ;;  %v14260_v19 = vld [vmem:[%s19603_s3 + $0x1d0] sm:$0xff]   ;;  %v14521_v52 = vld [vmem:[#allocation2 + $0x58] sm:$0xff]  }
 0x279   : > { %3999 = vst [vmem:[#allocation3 + $0x148] sm:$0xff] %v12885_v57  ;;  %4000 = vst [vmem:[#allocation3 + $0x100] sm:$0xff] %v12886_v21  ;;  %3358 = vrot.lane.b32.xlu0 %v3289_v24, %s14548_s13  ;;  %v5034_v4 = vsel %vm5008_vm6, %v5029_v6, %v5033_v54  ;;  %v14258_v57 = vld [vmem:[%s19603_s3 + $0x1d8] sm:$0xff]  }
 0x27a   : > { %v3329_v2 = vpop.permute.xlu0 %3328  ;;  %6949 = vmatpush1.bf16.msra.mxu1 %v14248_v38  ;;  %6109 = vmatpush2.bf16.msra.mxu0 %v14253_v35  ;;  %v3534_v31 = vsel %vm3426_vm3, %v3529_v27, %v16091_v47  ;;  %v3388_v6 = vsel %vm3369_vm5, %v3385_v14, %v3387_v61 }
 0x27b   : > { %3588 = vrot.lane.b32.xlu1 %v3526_v34, %s14548_s13  ;;  %6950 = vmatprep.subr.bf16.mxu1 %v19660_v44  ;;  %v16097_v41 = vsel %vm3596_vm4, %v15966_v3, %v3329_v2  ;;  %v14255_v3 = vld [vmem:[%s19603_s3 + $0x160] sm:$0xff]  }
 0x27c   : > { %5306 = vmatmul.mubr.bf16.gmra.mxu1 %v5028_v13  ;;  %4520 = vmatmul.mubr.bf16.gmra.mxu0 %v16033_v48  ;;  %v3389_v48 = vrot.slane %v14520_v42, 1  ;;  %v5035_v7 = vrot.slane %v16097_v41, 3 }
 0x27d   : > { %v3559_v62 = vpop.permute.xlu1 %3558  ;;  %3360 = vrot.lane.b32.xlu0 %v3297_v17, %s14548_s13  ;;  %5313 = vmatprep.mubr.bf16.mxu1 %v5034_v4  ;;  %v3391_v17 = vrot.slane %v14521_v52, 1 }
 0x27e   : > { %v16100_v8 = vsel %vm3596_vm4, %v3386_v59, %v3559_v62  ;;  %6951 = vmatpush2.bf16.msra.mxu1 %v14250_v12  ;;  %6110 = vmatprep.subr.bf16.mxu0 %v19660_v44  ;;  %v3390_v21 = vsel %vm3369_vm5, %v3387_v61, %v3389_v48  ;;  %v5036_v58 = vsel %vm5008_vm6, %v5031_v29, %v5035_v7 }
 0x27f   : > { %v12887_v18 = vcombine.low %v16097_v41, %v16100_v8  ;;  %v12888_v30 = vcombine.high %v16097_v41, %v16100_v8  ;;  %3590 = vrot.lane.b32.xlu1 %v3530_v5, %s14548_s13  ;;  %6952 = vmatprep.subr.bf16.mxu1 %v19660_v44  ;;  %v5037_v33 = vrot.slane %v16100_v8, 3  ;;  %v3392_v35 = vsel %vm3369_vm5, %v3389_v48, %v3391_v17 }
 0x280   : > { %4527 = vmatprep.mubr.bf16.mxu0 %v16100_v8  ;;  %6111 = vmatpush2.bf16.msra.mxu0 %v14255_v3  ;;  %v14267_v8 = vld [vmem:[%s19603_s3 + $0x1c0] sm:$0xff]  }
 0x281   : > { %4001 = vst [vmem:[#allocation3 + $0x58] sm:$0xff] %v12887_v18  ;;  %4002 = vst [vmem:[#allocation3 + $0xd8] sm:$0xff] %v12888_v30  ;;  %3362 = vrot.lane.b32.xlu0 %v3305_v20, %s14548_s13  ;;  %v5038_v55 = vsel %vm5008_vm6, %v5033_v54, %v5037_v33  ;;  %6112 = vmatprep.subr.bf16.mxu0 %v19660_v44  ;;  %v14262_v54 = vld [vmem:[%s19603_s3 + $0x1c8] sm:$0xff]   ;;  %v14522_v20 = vld [vmem:[#allocation2 + $0x60] sm:$0xff]  }
 0x282   : > { %v3331_v16 = vpop.permute.xlu0 %3330  ;;  %6953 = vmatpush2.bf16.msra.mxu1 %v14252_v26  ;;  %v3393_v18 = vrot.slane %v14522_v20, 1 }
 0x283   : > { %3592 = vrot.lane.b32.xlu1 %v3534_v31, %s14548_s13  ;;  %6954 = vmatprep.subr.bf16.mxu1 %v19660_v44  ;;  %v16140_v53 = vsel %vm3596_vm4, %v16054_v43, %v3331_v16 }
 0x284   : > { %5314 = vmatmul.mubr.bf16.gmra.mxu1 %v5032_v32  ;;  %4528 = vmatmul.mubr.bf16.gmra.mxu0 %v16097_v41  ;;  %v5039_v0 = vrot.slane %v16140_v53, 3  ;;  %v3394_v31 = vsel %vm3369_vm5, %v3391_v17, %v3393_v18 }
 0x285   : > { %v3561_v51 = vpop.permute.xlu1 %3560  ;;  %5321 = vmatprep.mubr.bf16.mxu1 %v5038_v55  ;;  %6113 = vmatpush2.bf16.msra.mxu0 %v14257_v15 }
 0x286   : > { %v3675_v36 = vsel %vm3596_vm4, %v3388_v6, %v3561_v51  ;;  %6955 = vmatpush2.bf16.msra.mxu1 %v14254_v63  ;;  %6114 = vmatprep.subr.bf16.mxu0 %v19660_v44  ;;  %v5040_v5 = vsel %vm5008_vm6, %v5035_v7, %v5039_v0  ;;  %v14523_v6 = vld [vmem:[#allocation2 + $0x68] sm:$0xff]  }
 0x287   : > { %v12889_v56 = vcombine.low %v16140_v53, %v3675_v36  ;;  %v12890_v1 = vcombine.high %v16140_v53, %v3675_v36  ;;  %6956 = vmatprep.subr.bf16.mxu1 %v19660_v44  ;;  %4535 = vmatprep.mubr.bf16.mxu0 %v3675_v36  ;;  %v5041_v11 = vrot.slane %v3675_v36, 3  ;;  %v3395_v51 = vrot.slane %v14523_v6, 1 }
 0x289   : > { %4003 = vst [vmem:[#allocation3 + $0x180] sm:$0xff] %v12889_v56  ;;  %4004 = vst [vmem:[#allocation3 + $0x130] sm:$0xff] %v12890_v1  ;;  %6115 = vmatpush2.bf16.msra.mxu0 %v14259_v22  ;;  %v5042_v24 = vsel %vm5008_vm6, %v5037_v33, %v5041_v11  ;;  %v3396_v36 = vsel %vm3369_vm5, %v3393_v18, %v3395_v51 }
 0x28a   : > { %v3333_v23 = vpop.permute.xlu0 %3332  ;;  %6957 = vmatpush2.bf16.msra.mxu1 %v14256_v28  ;;  %6116 = vmatprep.subr.bf16.mxu0 %v19660_v44 }
 0x28b   : > { %6958 = vmatprep.subr.bf16.mxu1 %v19660_v44  ;;  %v16167_v43 = vsel %vm3596_vm4, %v14519_v60, %v3333_v23  ;;  %v14524_v23 = vld [vmem:[#allocation2 + $0x70] sm:$0xff]  }
 0x28c   : > { %5322 = vmatmul.mubr.bf16.gmra.mxu1 %v5036_v58  ;;  %4536 = vmatmul.mubr.bf16.gmra.mxu0 %v16140_v53  ;;  %v5043_v30 = vrot.slane %v16167_v43, 3 }
 0x28d   : > { %v3563_v40 = vpop.permute.xlu1 %3562  ;;  %5329 = vmatprep.mubr.bf16.mxu1 %v5042_v24  ;;  %6117 = vmatpush2.bf16.msra.mxu0 %v14261_v37 }
 0x28e   : > { %v3678_v14 = vsel %vm3596_vm4, %v3390_v21, %v3563_v40  ;;  %6959 = vmatpush2.bf16.msra.mxu1 %v14258_v57  ;;  %6118 = vmatprep.subr.bf16.mxu0 %v19660_v44  ;;  %v5044_v61 = vsel %vm5008_vm6, %v5039_v0, %v5043_v30  ;;  %v14282_v0 = vld [vmem:[#allocation2 + $0xd0] ss:$0 sps:$4 sm:$0x33]  }
 0x28f   : > { %v12891_v27 = vcombine.low %v16167_v43, %v3678_v14  ;;  %v12892_v38 = vcombine.high %v16167_v43, %v3678_v14  ;;  %6960 = vmatprep.subr.bf16.mxu1 %v19660_v44  ;;  %4543 = vmatprep.mubr.bf16.mxu0 %v3678_v14  ;;  %v5045_v34 = vrot.slane %v3678_v14, 3 }
 0x291   : > { %4005 = vst [vmem:[#allocation3 + $0x138] sm:$0xff] %v12891_v27  ;;  %4006 = vst [vmem:[#allocation3 + $0x78] sm:$0xff] %v12892_v38  ;;  %6119 = vmatpush2.bf16.msra.mxu0 %v14263_v39  ;;  %v5046_v12 = vsel %vm5008_vm6, %v5041_v11, %v5045_v34  ;;  %v3397_v11 = vrot.slane %v14524_v23, 1 }
 0x292   : > { %v3335_v2 = vpop.permute.xlu0 %3334  ;;  %6961 = vmatpush2.bf16.msra.mxu1 %v14260_v19  ;;  %7686 = vmatprep.subr.bf16.mxu0 %v19660_v44  ;;  %v14525_v19 = vld [vmem:[#allocation2 + $0x78] sm:$0xff]  }
 0x293   : > { %6962 = vmatprep.subr.bf16.mxu1 %v19660_v44  ;;  %v3618_v62 = vsel %vm3596_vm4, %v14520_v42, %v3335_v2  ;;  %v3398_v40 = vsel %vm3369_vm5, %v3395_v51, %v3397_v11  ;;  %v16230_v2 = vld [vmem:[#allocation2 + $0xd0] ss:$0 sps:$4 sm:$0x11]  }
 0x294   : > { %5330 = vmatmul.mubr.bf16.gmra.mxu1 %v5040_v5  ;;  %4544 = vmatmul.mubr.bf16.gmra.mxu0 %v16167_v43  ;;  %v5047_v32 = vrot.slane %v3618_v62, 3 }
 0x295   : > { %v3565_v59 = vpop.permute.xlu1 %3564  ;;  %5337 = vmatprep.mubr.bf16.mxu1 %v5046_v12  ;;  %v3308_v12 = vor.u32 %v3306_v9, %v16068_v49 }
 0x296   : > { %v3681_v13 = vsel %vm3596_vm4, %v3392_v35, %v3565_v59  ;;  %6963 = vmatpush2.bf16.msra.mxu1 %v14262_v54  ;;  %v5048_v1 = vsel %vm5008_vm6, %v5043_v30, %v5047_v32  ;;  %v3536_v35 = vshrl.u32 %v14282_v0, 16  ;;  %v3539_v59 = vshll.u32 %v14282_v0, 16 }
 0x297   : > { %v12893_v4 = vcombine.low %v3618_v62, %v3681_v13  ;;  %v12894_v41 = vcombine.high %v3618_v62, %v3681_v13  ;;  %6964 = vmatprep.subr.bf16.mxu1 %v19660_v44  ;;  %4551 = vmatprep.mubr.bf16.mxu0 %v3681_v13  ;;  %v5049_v26 = vrot.slane %v3681_v13, 3 }
 0x299   : > { %4007 = vst [vmem:[#allocation3 + $0xa0] sm:$0xff] %v12893_v4  ;;  %4008 = vst [vmem:[#allocation3] sm:$0xff] %v12894_v41  ;;  %v5050_v29 = vsel %vm5008_vm6, %v5045_v34, %v5049_v26 }
 0x29a   : > { %v3337_v3 = vpop.permute.xlu0 %3336  ;;  %6965 = vmatpush2.bf16.msra.mxu1 %v14267_v8  ;;  %v3538_v8 = vrot.slane %v3536_v35, 1 }
 0x29b   : > { %8532 = vmatprep.subr.bf16.mxu1 %v19660_v44  ;;  %v16203_v16 = vsel %vm3596_vm4, %v14521_v52, %v3337_v3  ;;  %v3399_v52 = vrot.slane %v14525_v19, 1 }
 0x29c   : > { %5338 = vmatmul.mubr.bf16.gmra.mxu1 %v5044_v61  ;;  %4552 = vmatmul.mubr.bf16.gmra.mxu0 %v3618_v62  ;;  %v5051_v37 = vrot.slane %v16203_v16, 3  ;;  %v3310_v62 = vshll.u32 %v16230_v2, 16 }
 0x29d   : > { %v3567_v60 = vpop.permute.xlu1 %3566  ;;  %5345 = vmatprep.mubr.bf16.mxu1 %v5050_v29  ;;  %v3400_v5 = vsel %vm3369_vm5, %v3397_v11, %v3399_v52 }
 0x29e   : > { %v3684_v33 = vsel %vm3596_vm4, %v3394_v31, %v3567_v60  ;;  %v5052_v24 = vsel %vm5008_vm6, %v5047_v32, %v5051_v37  ;;  %v3312_v3 = vrot.slane %v3310_v62, 1  ;;  %v14526_v60 = vld [vmem:[#allocation2 + $0x80] sm:$0xff]  }
 0x29f   : > { %v12895_v15 = vcombine.low %v16203_v16, %v3684_v33  ;;  %v12896_v63 = vcombine.high %v16203_v16, %v3684_v33  ;;  %4559 = vmatprep.mubr.bf16.mxu0 %v3684_v33  ;;  %v5053_v53 = vrot.slane %v3684_v33, 3  ;;  %v3401_v61 = vrot.slane %v14526_v60, 1 }
 0x2a0   : > { %v3313_v31 = vsel %vm3101_vm2, %v3308_v12, %v3312_v3 }
 0x2a1   : > { %4009 = vst [vmem:[#allocation3 + $0x20] sm:$0xff] %v12895_v15  ;;  %4010 = vst [vmem:[#allocation3 + $0xe0] sm:$0xff] %v12896_v63  ;;  %v5054_v22 = vsel %vm5008_vm6, %v5049_v26, %v5053_v53  ;;  %3364 = vrot.lane.b32.xlu0 %v3313_v31, %s14548_s13  ;;  %v3402_v63 = vsel %vm3369_vm5, %v3399_v52, %v3401_v61 }
 0x2a2   : > { %v3339_v55 = vpop.permute.xlu0 %3338 }
 0x2a3   : > { %v16212_v28 = vsel %vm3596_vm4, %v14522_v20, %v3339_v55  ;;  %v3541_v20 = vrot.slane %v3539_v59, 2  ;;  %v14529_v59 = vld [vmem:[#allocation2 + $0x98] sm:$0xff]  }
 0x2a4   : > { %5346 = vmatmul.mubr.bf16.gmra.mxu1 %v5048_v1  ;;  %4560 = vmatmul.mubr.bf16.gmra.mxu0 %v16203_v16  ;;  %v5055_v17 = vrot.slane %v16212_v28, 3 }
 0x2a5   : > { %v3569_v56 = vpop.permute.xlu1 %3568  ;;  %5353 = vmatprep.mubr.bf16.mxu1 %v5054_v22  ;;  %v3542_v26 = vor.u32 %v3541_v20, %v3538_v8 }
 0x2a6   : > { %v3687_v42 = vsel %vm3596_vm4, %v3396_v36, %v3569_v56  ;;  %v5056_v4 = vsel %vm5008_vm6, %v5051_v37, %v5055_v17  ;;  %v14527_v56 = vld [vmem:[#allocation2 + $0x88] sm:$0xff]  }
 0x2a7   : > { %v12897_v48 = vcombine.low %v16212_v28, %v3687_v42  ;;  %v12898_v7 = vcombine.high %v16212_v28, %v3687_v42  ;;  %4567 = vmatprep.mubr.bf16.mxu0 %v3687_v42  ;;  %v5057_v21 = vrot.slane %v3687_v42, 3  ;;  %v3543_v16 = vsel %vm3426_vm3, %v16091_v47, %v3542_v26 }
 0x2a8   : > { %3594 = vrot.lane.b32.xlu1 %v3543_v16, %s14548_s13  ;;  %v3403_v1 = vrot.slane %v14527_v56, 1 }
 0x2a9   : > { %4011 = vst [vmem:[#allocation3 + $0xf0] sm:$0xff] %v12897_v48  ;;  %4012 = vst [vmem:[#allocation3 + $0x188] sm:$0xff] %v12898_v7  ;;  %v5058_v43 = vsel %vm5008_vm6, %v5053_v53, %v5057_v21 }
 0x2aa   : > { %v3341_v57 = vpop.permute.xlu0 %3340  ;;  %v3404_v48 = vsel %vm3369_vm5, %v3401_v61, %v3403_v1 }
 0x2ab   : > { %v16223_v14 = vsel %vm3596_vm4, %v14523_v6, %v3341_v57 }
 0x2ac   : > { %5354 = vmatmul.mubr.bf16.gmra.mxu1 %v5052_v24  ;;  %4568 = vmatmul.mubr.bf16.gmra.mxu0 %v16212_v28  ;;  %v5059_v29 = vrot.slane %v16223_v14, 3 }
 0x2ad   : > { %v3571_v58 = vpop.permute.xlu1 %3570  ;;  %5361 = vmatprep.mubr.bf16.mxu1 %v5058_v43 }
 0x2ae   : > { %v3690_v27 = vsel %vm3596_vm4, %v3398_v40, %v3571_v58  ;;  %v5060_v51 = vsel %vm5008_vm6, %v5055_v17, %v5059_v29  ;;  %v14528_v58 = vld [vmem:[#allocation2 + $0x90] sm:$0xff]  }
 0x2af   : > { %v12899_v38 = vcombine.low %v16223_v14, %v3690_v27  ;;  %v12900_v39 = vcombine.high %v16223_v14, %v3690_v27  ;;  %4575 = vmatprep.mubr.bf16.mxu0 %v3690_v27  ;;  %v5061_v54 = vrot.slane %v3690_v27, 3  ;;  %v3405_v24 = vrot.slane %v14528_v58, 1 }
 0x2b1   : > { %4013 = vst [vmem:[#allocation3 + $0xa8] sm:$0xff] %v12899_v38  ;;  %4014 = vst [vmem:[#allocation3 + $0x88] sm:$0xff] %v12900_v39  ;;  %v5062_v41 = vsel %vm5008_vm6, %v5057_v21, %v5061_v54  ;;  %v3406_v38 = vsel %vm3369_vm5, %v3403_v1, %v3405_v24  ;;  %v14530_v1 = vld [vmem:[#allocation2 + $0xa0] sm:$0xff]  }
 0x2b2   : > { %v3343_v34 = vpop.permute.xlu0 %3342 }
 0x2b3   : > { %v16240_v18 = vsel %vm3596_vm4, %v14524_v23, %v3343_v34 }
 0x2b4   : > { %5362 = vmatmul.mubr.bf16.gmra.mxu1 %v5056_v4  ;;  %4576 = vmatmul.mubr.bf16.gmra.mxu0 %v16223_v14  ;;  %v5063_v22 = vrot.slane %v16240_v18, 3 }
 0x2b5   : > { %v3573_v13 = vpop.permute.xlu1 %3572  ;;  %5369 = vmatprep.mubr.bf16.mxu1 %v5062_v41 }
 0x2b6   : > { %v3693_v30 = vsel %vm3596_vm4, %v3400_v5, %v3573_v13  ;;  %v5064_v23 = vsel %vm5008_vm6, %v5059_v29, %v5063_v22  ;;  %v3407_v5 = vrot.slane %v14529_v59, 1 }
 0x2b7   : > { %v12901_v9 = vcombine.low %v16240_v18, %v3693_v30  ;;  %v12902_v49 = vcombine.high %v16240_v18, %v3693_v30  ;;  %4583 = vmatprep.mubr.bf16.mxu0 %v3693_v30  ;;  %v5065_v15 = vrot.slane %v3693_v30, 3 }
 0x2b8   : > { %v3408_v41 = vsel %vm3369_vm5, %v3405_v24, %v3407_v5 }
 0x2b9   : > { %4015 = vst [vmem:[#allocation3 + $0xb8] sm:$0xff] %v12901_v9  ;;  %4016 = vst [vmem:[#allocation3 + $0x170] sm:$0xff] %v12902_v49  ;;  %v5066_v32 = vsel %vm5008_vm6, %v5061_v54, %v5065_v15  ;;  %v3409_v9 = vrot.slane %v15870_v46, 1 }
 0x2ba   : > { %v3345_v33 = vpop.permute.xlu0 %3344 }
 0x2bb   : > { %v3628_v55 = vsel %vm3596_vm4, %v14525_v19, %v3345_v33  ;;  %v3410_v31 = vsel %vm3369_vm5, %v3407_v5, %v3409_v9 }
 0x2bc   : > { %5370 = vmatmul.mubr.bf16.gmra.mxu1 %v5060_v51  ;;  %4584 = vmatmul.mubr.bf16.gmra.mxu0 %v16240_v18  ;;  %v5067_v43 = vrot.slane %v3628_v55, 3 }
 0x2bd   : > { %v3575_v6 = vpop.permute.xlu1 %3574  ;;  %5377 = vmatprep.mubr.bf16.mxu1 %v5066_v32 }
 0x2be   : > { %v3696_v53 = vsel %vm3596_vm4, %v3402_v63, %v3575_v6  ;;  %v5068_v19 = vsel %vm5008_vm6, %v5063_v22, %v5067_v43  ;;  %v3411_v6 = vrot.slane %v15939_v50, 1 }
 0x2bf   : > { %v12903_v47 = vcombine.low %v3628_v55, %v3696_v53  ;;  %v12904_v36 = vcombine.high %v3628_v55, %v3696_v53  ;;  %4591 = vmatprep.mubr.bf16.mxu0 %v3696_v53  ;;  %v5069_v42 = vrot.slane %v3696_v53, 3 }
 0x2c0   : > { %v3412_v53 = vsel %vm3369_vm5, %v3409_v9, %v3411_v6  ;;  %v14532_v9 = vld [vmem:[#allocation2 + $0xc0] sm:$0xff]  }
 0x2c1   : > { %4017 = vst [vmem:[#allocation3 + $0xc0] sm:$0xff] %v12903_v47  ;;  %4018 = vst [vmem:[#allocation3 + $0x140] sm:$0xff] %v12904_v36  ;;  %v5070_v11 = vsel %vm5008_vm6, %v5065_v15, %v5069_v42 }
 0x2c2   : > { %v3347_v28 = vpop.permute.xlu0 %3346 }
 0x2c3   : > { %v3630_v37 = vsel %vm3596_vm4, %v14526_v60, %v3347_v28 }
 0x2c4   : > { %5378 = vmatmul.mubr.bf16.gmra.mxu1 %v5064_v23  ;;  %4592 = vmatmul.mubr.bf16.gmra.mxu0 %v3628_v55  ;;  %v5071_v35 = vrot.slane %v3630_v37, 3 }
 0x2c5   : > { %v3577_v7 = vpop.permute.xlu1 %3576  ;;  %5385 = vmatprep.mubr.bf16.mxu1 %v5070_v11 }
 0x2c6   : > { %v3699_v57 = vsel %vm3596_vm4, %v3404_v48, %v3577_v7  ;;  %v5072_v13 = vsel %vm5008_vm6, %v5067_v43, %v5071_v35 }
 0x2c7   : > { %v12905_v21 = vcombine.low %v3630_v37, %v3699_v57  ;;  %v12906_v40 = vcombine.high %v3630_v37, %v3699_v57  ;;  %4599 = vmatprep.mubr.bf16.mxu0 %v3699_v57  ;;  %v5073_v27 = vrot.slane %v3699_v57, 3 }
 0x2c9   : > { %4019 = vst [vmem:[#allocation3 + $0x50] sm:$0xff] %v12905_v21  ;;  %4020 = vst [vmem:[#allocation3 + $0x168] sm:$0xff] %v12906_v40  ;;  %v5074_v52 = vsel %vm5008_vm6, %v5069_v42, %v5073_v27  ;;  %v3413_v42 = vrot.slane %v15979_v10, 1  ;;  %v14531_v21 = vld [vmem:[#allocation2 + $0xb8] sm:$0xff]  }
 0x2ca   : > { %v3415_v40 = vrot.slane %v14531_v21, 1 }
 0x2cb   : > { %v3349_v14 = vpop.permute.xlu0 %3348 }
 0x2cc   : > { %v3632_v17 = vsel %vm3596_vm4, %v14527_v56, %v3349_v14  ;;  %5386 = vmatmul.mubr.bf16.gmra.mxu1 %v5068_v19  ;;  %4600 = vmatmul.mubr.bf16.gmra.mxu0 %v3630_v37  ;;  %v3414_v37 = vsel %vm3369_vm5, %v3411_v6, %v3413_v42 }
 0x2cd   : > { %v3579_v39 = vpop.permute.xlu1 %3578  ;;  %5393 = vmatprep.mubr.bf16.mxu1 %v5074_v52  ;;  %v5075_v49 = vrot.slane %v3632_v17, 3 }
 0x2ce   : > { %v3702_v0 = vsel %vm3596_vm4, %v3406_v38, %v3579_v39  ;;  %v3417_v39 = vrot.slane %v15950_v25, 1  ;;  %v3419_v25 = vrot.slane %v15993_v45, 1  ;;  %v14294_v45 = vld [vmem:[%s19603_s3 + $0x288] sm:$0xff]  }
 0x2cf   : > { %v12907_v34 = vcombine.low %v3632_v17, %v3702_v0  ;;  %v12908_v54 = vcombine.high %v3632_v17, %v3702_v0  ;;  %4607 = vmatprep.mubr.bf16.mxu0 %v3702_v0  ;;  %v5077_v12 = vrot.slane %v3702_v0, 3  ;;  %v5076_v61 = vsel %vm5008_vm6, %v5071_v35, %v5075_v49 }
 0x2d0   : > { %v3418_v5 = vsel %vm3369_vm5, %v3415_v40, %v3417_v39 }
 0x2d1   : > { %4021 = vst [vmem:[#allocation3 + $0x190] sm:$0xff] %v12907_v34  ;;  %4022 = vst [vmem:[#allocation3 + $0x38] sm:$0xff] %v12908_v54  ;;  %v5078_v4 = vsel %vm5008_vm6, %v5073_v27, %v5077_v12 }
 0x2d3   : > { %v3351_v62 = vpop.permute.xlu0 %3350 }
 0x2d4   : > { %5394 = vmatmul.mubr.bf16.gmra.mxu1 %v5072_v13  ;;  %4608 = vmatmul.mubr.bf16.gmra.mxu0 %v3632_v17  ;;  %v3634_v20 = vsel %vm3596_vm4, %v14528_v58, %v3351_v62 }
 0x2d5   : > { %5401 = vmatprep.mubr.bf16.mxu1 %v5078_v4  ;;  %v5079_v51 = vrot.slane %v3634_v20, 3 }
 0x2d6   : > { %v3581_v8 = vpop.permute.xlu1 %3580 }
 0x2d7   : > { %v3705_v18 = vsel %vm3596_vm4, %v3408_v41, %v3581_v8  ;;  %v5080_v36 = vsel %vm5008_vm6, %v5075_v49, %v5079_v51  ;;  %v3420_v41 = vsel %vm3369_vm5, %v3417_v39, %v3419_v25 }
 0x2d8   : > { %v12909_v30 = vcombine.low %v3634_v20, %v3705_v18  ;;  %v12910_v3 = vcombine.high %v3634_v20, %v3705_v18  ;;  %4615 = vmatprep.mubr.bf16.mxu0 %v3705_v18  ;;  %v5081_v29 = vrot.slane %v3705_v18, 3 }
 0x2da   : > { %4023 = vst [vmem:[#allocation3 + $0x60] sm:$0xff] %v12909_v30  ;;  %4024 = vst [vmem:[#allocation3 + $0x18] sm:$0xff] %v12910_v3  ;;  %v3353_v26 = vpop.permute.xlu0 %3352  ;;  %v5082_v63 = vsel %vm5008_vm6, %v5077_v12, %v5081_v29 }
 0x2db   : > { %v16278_v16 = vsel %vm3596_vm4, %v14529_v59, %v3353_v26 }
 0x2dc   : > { %v3583_v60 = vpop.permute.xlu1 %3582  ;;  %5402 = vmatmul.mubr.bf16.gmra.mxu1 %v5076_v61  ;;  %4616 = vmatmul.mubr.bf16.gmra.mxu0 %v3634_v20  ;;  %v5083_v11 = vrot.slane %v16278_v16, 3  ;;  %v16331_v20 = vld [vmem:[#allocation3 + $0x160] sm:$0xff]  ;;  %v16336_v61 = vld [vmem:[#allocation3 + $0x48] sm:$0xff] }
 0x2dd   : > { %v3708_v33 = vsel %vm3596_vm4, %v3410_v31, %v3583_v60  ;;  %5409 = vmatprep.mubr.bf16.mxu1 %v5082_v63  ;;  %v5593_v60 = vld [vmem:[#allocation3 + $0x10] sm:$0xff] }
 0x2de   : > { %v12911_v46 = vcombine.low %v16278_v16, %v3708_v33  ;;  %v12912_v15 = vcombine.high %v16278_v16, %v3708_v33  ;;  %4623 = vmatprep.mubr.bf16.mxu0 %v3708_v33  ;;  %v5085_v55 = vrot.slane %v3708_v33, 3  ;;  %v5084_v19 = vsel %vm5008_vm6, %v5079_v51, %v5083_v11 }
 0x2e0   : > { %4025 = vst [vmem:[#allocation3 + $0x158] sm:$0xff] %v12911_v46  ;;  %4026 = vst [vmem:[#allocation3 + $0x120] sm:$0xff] %v12912_v15  ;;  %v5086_v56 = vsel %vm5008_vm6, %v5081_v29, %v5085_v55  ;;  %v5592_v46 = vld [vmem:[#allocation3 + $0xd0] sm:$0xcc] }
 0x2e1   : > { %v13114_v6 = vcombine.high %v5592_v46, %v5593_v60 }
 0x2e3   : > { %v3355_v32 = vpop.permute.xlu0 %3354 }
 0x2e4   : > { %v16289_v22 = vsel %vm3596_vm4, %v14530_v1, %v3355_v32  ;;  %5410 = vmatmul.mubr.bf16.gmra.mxu1 %v5080_v36  ;;  %4624 = vmatmul.mubr.bf16.gmra.mxu0 %v16278_v16  ;;  %v13116_v16 = vcombine.high %v16336_v61, %v16331_v20  ;;  %v5859_v1 = vrot.slane %v13114_v6, 2 }
 0x2e5   : > { %v3585_v47 = vpop.permute.xlu1 %3584  ;;  %5417 = vmatprep.mubr.bf16.mxu1 %v5086_v56 }
 0x2e6   : > { %v3711_v28 = vsel %vm3596_vm4, %v3412_v53, %v3585_v47  ;;  %v5860_v53 = vrot.slane %v13116_v16, 2  ;;  %v16343_v47 = vld [vmem:[#allocation3 + $0x40] sm:$0xff] }
 0x2e7   : > { %v12913_v48 = vcombine.low %v16289_v22, %v3711_v28  ;;  %v12914_v7 = vcombine.high %v16289_v22, %v3711_v28  ;;  %v3357_v23 = vpop.permute.xlu0 %3356  ;;  %4631 = vmatprep.mubr.bf16.mxu0 %v3711_v28  ;;  %v5089_v14 = vrot.slane %v3711_v28, 3  ;;  %v13115_v28 = vcombine.low %v16336_v61, %v16331_v20 }
 0x2e8   : > { %v16300_v58 = vsel %vm3596_vm4, %v15939_v50, %v3357_v23  ;;  %v3416_v50 = vsel %vm3369_vm5, %v3413_v42, %v3415_v40  ;;  %v5861_v23 = vsel %vm5855_vm7, %v5859_v1, %v5860_v53 }
 0x2e9   : > { %4027 = vst [vmem:[#allocation3 + $0x198] sm:$0xff] %v12913_v48  ;;  %4028 = vst [vmem:[#allocation3 + $0x68] sm:$0xff] %v12914_v7  ;;  %v3587_v57 = vpop.permute.xlu1 %3586  ;;  %v5090_v52 = vsel %vm5008_vm6, %v5085_v55, %v5089_v14  ;;  %v5091_v51 = vrot.slane %v16300_v58, 3  ;;  %v5596_v48 = vld [vmem:[#allocation3 + $0x128] sm:$0xff] }
 0x2ea   : > { %v16303_v24 = vsel %vm3596_vm4, %v3414_v37, %v3587_v57  ;;  %v13113_v37 = vcombine.low %v5592_v46, %v5593_v60  ;;  %v5857_v57 = vrot.slane %v13115_v28, 2  ;;  %v13117_v39 = vcombine.low %v5596_v48, %v16343_v47 }
 0x2eb   : > { %v3359_v43 = vpop.permute.xlu0 %3358  ;;  %v12915_v27 = vcombine.low %v16300_v58, %v16303_v24  ;;  %v12916_v38 = vcombine.high %v16300_v58, %v16303_v24  ;;  %v5093_v12 = vrot.slane %v16303_v24, 3 }
 0x2ec   : > { %5418 = vmatmul.mubr.bf16.gmra.mxu1 %v5084_v19  ;;  %4632 = vmatmul.mubr.bf16.gmra.mxu0 %v16289_v22  ;;  %v16316_v0 = vsel %vm3596_vm4, %v15979_v10, %v3359_v43  ;;  %v5087_v10 = vrot.slane %v16289_v22, 3  ;;  %v14268_v43 = vld [vmem:[%s19603_s3 + $0x238] sm:$0xff]   ;;  %v16362_v19 = vld [vmem:[#allocation3 + $0x178] sm:$0xff] }
 0x2ed   : > { %4029 = vst [vmem:[#allocation3 + $0x30] sm:$0xff] %v12915_v27  ;;  %4030 = vst [vmem:[#allocation3 + $0xc8] sm:$0xff] %v12916_v38  ;;  %v3589_v17 = vpop.permute.xlu1 %3588  ;;  %5425 = vmatprep.mubr.bf16.mxu1 %v5090_v52  ;;  %4639 = vmatprep.mubr.bf16.mxu0 %v16303_v24  ;;  %v5094_v3 = vsel %vm5008_vm6, %v5089_v14, %v5093_v12  ;;  %v14537_v36 = vcombine.low %v16316_v0, %v16316_v0  ;;  %v16354_v24 = vld [vmem:[#allocation3 + $0x108] sm:$0xff]  ;;  %v6439_v38 = vld [vmem:[#allocation3 + $0x10] sm:$0xee] }
 0x2ee   : > { %v3717_v34 = vsel %vm3596_vm4, %v3416_v50, %v3589_v17  ;;  %v5088_v26 = vsel %vm5008_vm6, %v5083_v11, %v5087_v10  ;;  %v5092_v22 = vsel %vm5008_vm6, %v5087_v10, %v5091_v51  ;;  %v13118_v11 = vcombine.high %v5596_v48, %v16343_v47  ;;  %v14278_v10 = vld [vmem:[%s19603_s3 + $0x228] sm:$0xff]  }
 0x2ef   : > { %v3361_v54 = vpop.permute.xlu0 %3360  ;;  %v12917_v35 = vcombine.low %v16316_v0, %v3717_v34  ;;  %v12918_v59 = vcombine.high %v16316_v0, %v3717_v34  ;;  %v14536_v31 = vcombine.low %v3717_v34, %v3717_v34  ;;  %v13210_v50 = vcombine.high %v16331_v20, %v5596_v48  ;;  %v14275_v34 = vld [vmem:[%s19603_s3 + $0x230] sm:$0xff]  }
 0x2f0   : > { %v3644_v62 = vsel %vm3596_vm4, %v14531_v21, %v3361_v54  ;;  %v5864_v40 = vrot.slane %v13118_v11, 2  ;;  %v13120_v17 = vcombine.high %v16362_v19, %v16354_v24  ;;  %v5862_v54 = vrot.slane %v13117_v39, 2 }
 0x2f1   : > { %4031 = vst [vmem:[#allocation3 + $0xf8] sm:$0xff] %v12917_v35  ;;  %4032 = vst [vmem:[#allocation3 + $0x28] sm:$0xff] %v12918_v59  ;;  %v3591_v13 = vpop.permute.xlu1 %3590 }
 0x2f2   : > { %v3720_v4 = vsel %vm3596_vm4, %v3418_v5, %v3591_v13  ;;  %v5865_v52 = vsel %vm5855_vm7, %v5860_v53, %v5864_v40  ;;  %v5868_v59 = vrot.slane %v13120_v17, 2  ;;  %v13209_v5 = vcombine.low %v16331_v20, %v5596_v48 }
 0x2f3   : > { %v3363_v8 = vpop.permute.xlu0 %3362  ;;  %v12919_v18 = vcombine.low %v3644_v62, %v3720_v4  ;;  %v12920_v30 = vcombine.high %v3644_v62, %v3720_v4  ;;  %v16380_v62 = vld [vmem:[#allocation3 + $0x90] sm:$0xff]  ;;  %v13207_v13 = vcombine.low %v6439_v38, %v16336_v61  ;;  %v5863_v4 = vsel %vm5855_vm7, %v5857_v57, %v5862_v54 }
 0x2f4   : > { %v3646_v49 = vsel %vm3596_vm4, %v14532_v9, %v3363_v8  ;;  %5426 = vmatmul.mubr.bf16.gmra.mxu1 %v5088_v26  ;;  %4640 = vmatmul.mubr.bf16.gmra.mxu0 %v16300_v58  ;;  %v5856_v58 = vrot.slane %v13113_v37, 2  ;;  %v14290_v37 = vld [vmem:[%s19603_s3 + $0x210] sm:$0xff]  }
 0x2f5   : > { %4033 = vst [vmem:[#allocation3 + $0x8] sm:$0xff] %v12919_v18  ;;  %4034 = vst [vmem:[#allocation3 + $0x80] sm:$0xff] %v12920_v30  ;;  %v3593_v29 = vpop.permute.xlu1 %3592  ;;  %5433 = vmatprep.mubr.bf16.mxu1 %v5094_v3  ;;  %4647 = vmatprep.mubr.bf16.mxu0 %v14536_v31  ;;  %v5869_v18 = vsel %vm5855_vm7, %v5864_v40, %v5868_v59  ;;  %v13212_v30 = vcombine.high %v16343_v47, %v16362_v19  ;;  %v16394_v3 = vld [vmem:[#allocation3 + $0x110] sm:$0xff]  ;;  %v16445_v40 = vld [vmem:[#allocation3 + $0x58] sm:$0xff] }
 0x2f6   : > { %v3723_v33 = vsel %vm3596_vm4, %v3420_v41, %v3593_v29  ;;  %v5858_v27 = vsel %vm5855_vm7, %v5856_v58, %v5857_v57  ;;  %v13119_v41 = vcombine.low %v16362_v19, %v16354_v24  ;;  %v13122_v9 = vcombine.high %v16394_v3, %v16380_v62  ;;  %v14281_v31 = vld [vmem:[%s19603_s3 + $0x220] sm:$0xff]  }
 0x2f7   : > { %v12921_v15 = vcombine.low %v3646_v49, %v3723_v33  ;;  %v12922_v63 = vcombine.high %v3646_v49, %v3723_v33  ;;  %v6703_v49 = vrot.slane %v13209_v5, 1  ;;  %v6710_v16 = vrot.slane %v13212_v30, 1  ;;  %v14274_v33 = vld [vmem:[%s19603_s3 + $0x2b8] sm:$0xff]  }
 0x2f8   : > { %v4790_v32 = vld [vmem:[#allocation3 + $0x28] sm:$0x77]  ;;  %v5866_v60 = vrot.slane %v13119_v41, 2  ;;  %v5872_v46 = vrot.slane %v13122_v9, 2  ;;  %v13121_v53 = vcombine.low %v16394_v3, %v16380_v62 }
 0x2f9   : > { %4035 = vst [vmem:[#allocation3 + $0x98] sm:$0xff] %v12921_v15  ;;  %4036 = vst [vmem:[#allocation3 + $0x150] sm:$0xff] %v12922_v63  ;;  %v13064_v55 = vcombine.high %v12917_v35, %v4790_v32  ;;  %v14538_v42 = vcombine.low %v16316_v0, %v4790_v32  ;;  %v13208_v0 = vcombine.high %v6439_v38, %v16336_v61  ;;  %v6706_v35 = vrot.slane %v13210_v50, 1  ;;  %v16409_v15 = vld [vmem:[#allocation3 + $0x148] sm:$0xff] }
 0x2fa   : > { %v6702_v61 = vrot.slane %v13207_v13, 1  ;;  %v13211_v32 = vcombine.low %v16343_v47, %v16362_v19  ;;  %v5873_v28 = vsel %vm5855_vm7, %v5868_v59, %v5872_v46  ;;  %v5870_v11 = vrot.slane %v13121_v53, 2  ;;  %v14285_v13 = vld [vmem:[%s19603_s3 + $0x2a0] sm:$0xff]  }
 0x2fb   : > { %v5097_v56 = vrot.slane %v13064_v55, 3  ;;  %v5095_v21 = vrot.slane %v14538_v42, 3  ;;  %v13214_v55 = vcombine.high %v16354_v24, %v16394_v3  ;;  %v6711_v1 = vsel %vm3369_vm5, %v6706_v35, %v6710_v16  ;;  %v14276_v42 = vld [vmem:[%s19603_s3 + $0x2b0] sm:$0xff]   ;;  %v14295_v41 = vld [vmem:[%s19603_s3 + $0x200] sm:$0xff]  }
 0x2fc   : > { %5434 = vmatmul.mubr.bf16.gmra.mxu1 %v5092_v22  ;;  %4648 = vmatmul.mubr.bf16.gmra.mxu0 %v14537_v36  ;;  %v6704_v63 = vsel %vm3369_vm5, %v6702_v61, %v6703_v49  ;;  %v16419_v36 = vld [vmem:[#allocation3 + $0x118] sm:$0xff]  ;;  %v5871_v39 = vsel %vm5855_vm7, %v5866_v60, %v5870_v11 }
 0x2fd   : > { %v5098_v7 = vsel %vm5008_vm6, %v5093_v12, %v5097_v56  ;;  %6120 = vmatprep.mubr.bf16.mxu0 %v5861_v23  ;;  %v5096_v14 = vsel %vm5008_vm6, %v5091_v51, %v5095_v21  ;;  %v6705_v12 = vrot.slane %v13208_v0, 1  ;;  %v5867_v51 = vsel %vm5855_vm7, %v5862_v54, %v5866_v60 }
 0x2fe   : > { %5441 = vmatprep.mubr.bf16.mxu1 %v5098_v7  ;;  %v13124_v47 = vcombine.high %v16419_v36, %v16409_v15  ;;  %v6708_v7 = vrot.slane %v13211_v32, 1  ;;  %v16435_v23 = vrot.slane %v13214_v55, 1  ;;  %v13123_v19 = vcombine.low %v16419_v36, %v16409_v15 }
 0x2ff   : > { %v6707_v8 = vsel %vm3369_vm5, %v6705_v12, %v6706_v35  ;;  %v13216_v54 = vcombine.high %v16380_v62, %v16419_v36  ;;  %v13215_v61 = vcombine.low %v16380_v62, %v16419_v36  ;;  %v14298_v62 = vld [vmem:[%s19603_s3 + $0x278] sm:$0xff]  }
 0x300   : > { %v6715_v38 = vsel %vm3369_vm5, %v6710_v16, %v16435_v23 }
 0x301   : > { %v16488_v30 = vrot.slane %v13216_v54, 1 }
 0x303   : > { %v6719_v32 = vsel %vm3369_vm5, %v16435_v23, %v16488_v30 }
 0x304   : > { %5442 = vmatmul.mubr.bf16.gmra.mxu1 %v5096_v14  ;;  %6121 = vmatmul.mubr.bf16.vlgmr.msra.gmra.mxu0 %v5858_v27  ;;  %v14280_v14 = vld [vmem:[%s19603_s3 + $0x2a8] sm:$0xff]   ;;  %v6709_v27 = vsel %vm3369_vm5, %v6703_v49, %v6708_v7  ;;  %v16495_v49 = vld [vmem:[#allocation3 + $0x180] sm:$0xff] }
 0x305   : > { %5449 = vmatprep.mubr.bf16.mxu1 %v5097_v56  ;;  %6128 = vmatprep.mubr.bf16.mxu0 %v5865_v52  ;;  %v14286_v56 = vld [vmem:[%s19603_s3 + $0x218] sm:$0xff]  }
 0x306   : > { %7687 = vmatpush1.bf16.msra.mxu0 %v14268_v43  ;;  %v13213_v43 = vcombine.low %v16354_v24, %v16394_v3  ;;  %v16459_v52 = vld [vmem:[#allocation3 + $0x100] sm:$0xff]  ;;  %v14292_v24 = vld [vmem:[%s19603_s3 + $0x208] sm:$0xff]  }
 0x307   : > { %7688 = vmatprep.subr.bf16.mxu0 %v19660_v44  ;;  %v13126_v35 = vcombine.high %v16459_v52, %v16445_v40 }
 0x309   : > { %v16490_v3 = vrot.slane %v13126_v35, 2 }
 0x30a   : > { %7689 = vmatpush1.bf16.msra.mxu0 %v14275_v34  ;;  %v4473_v20 = vpop.f32.mrf.mxu0 }
 0x30b   : > { %7690 = vmatprep.subr.bf16.mxu0 %v19660_v44  ;;  %4655 = vst.msk [vmem:[%s16377_s26] sm:$0xff] %vm3596_vm4, %v4473_v20 }
 0x30c   : > { %5450 = vmatmul.mubr.bf16.gmra.mxu1 %v5095_v21  ;;  %6129 = vmatmul.mubr.bf16.gmra.mxu0 %v5863_v4  ;;  %v4475_v26 = vpop.f32.mrf.mxu0  ;;  %v16440_v21 = vrot.slane %v13124_v47, 2  ;;  %v16481_v4 = vrot.slane %v13123_v19, 2  ;;  %v13217_v19 = vcombine.low %v16409_v15, %v16459_v52 }
 0x30d   : > { %6966 = vmatprep.mubr.bf16.mxu1 %v6707_v8  ;;  %6136 = vmatprep.mubr.bf16.mxu0 %v5869_v18 }
 0x30e   : > { %7691 = vmatpush1.bf16.msra.mxu0 %v14278_v10  ;;  %v4476_v29 = vpop.f32.mrf.mxu0  ;;  %v5877_v34 = vsel %vm5855_vm7, %v5872_v46, %v16440_v21  ;;  %v16473_v10 = vrot.slane %v13213_v43, 1  ;;  %v5875_v16 = vsel %vm5855_vm7, %v5870_v11, %v16481_v4  ;;  %v13125_v46 = vcombine.low %v16459_v52, %v16445_v40 }
 0x30f   : > { %7692 = vmatprep.subr.bf16.mxu0 %v19660_v44  ;;  %4656 = vst.msk [vmem:[%s16377_s26 + $0x8] sm:$0xff] %vm3596_vm4, %v4476_v29  ;;  %v14289_v29 = vld [vmem:[%s19603_s3 + $0x298] sm:$0xff]   ;;  %v5881_v53 = vsel %vm5855_vm7, %v16440_v21, %v16490_v3 }
 0x310   : > { %v4478_v6 = vpop.f32.mrf.mxu0 }
 0x312   : > { %7693 = vmatpush1.bf16.msra.mxu0 %v14281_v31  ;;  %v4481_v22 = vpop.f32.mrf.mxu0  ;;  %v4700_v50 = vld [vmem:[%s16377_s26] sm:$0xff]  ;;  %v6713_v31 = vsel %vm3369_vm5, %v6708_v7, %v16473_v10  ;;  %v16540_v7 = vrot.slane %v13125_v46, 2  ;;  %v16613_v46 = vld [vmem:[#allocation3 + $0xa0] sm:$0xff] }
 0x313   : > { %7694 = vmatprep.subr.bf16.mxu0 %v19660_v44  ;;  %4657 = vst.msk [vmem:[%s16377_s26 + $0x10] sm:$0xff] %vm3596_vm4, %v4481_v22 }
 0x314   : > { %6967 = vmatmul.mubr.bf16.vlgmr.msra.gmra.mxu1 %v6704_v63  ;;  %6137 = vmatmul.mubr.bf16.gmra.mxu0 %v5867_v51  ;;  %v4483_v48 = vpop.f32.mrf.mxu0  ;;  %v16512_v63 = vld [vmem:[#allocation3 + $0xd8] sm:$0xff] }
 0x315   : > { %6974 = vmatprep.mubr.bf16.mxu1 %v6711_v1  ;;  %8533 = vmatpush1.bf16.msra.mxu1 %v14274_v33  ;;  %v13218_v33 = vcombine.high %v16409_v15, %v16459_v52  ;;  %v13128_v36 = vcombine.high %v16512_v63, %v16495_v49  ;;  %v3421_v1 = vrot.slane %v16230_v2, 1  ;;  %v14302_v2 = vld [vmem:[%s19603_s3 + $0x270] sm:$0xff]   ;;  %v5879_v15 = vsel %vm5855_vm7, %v16481_v4, %v16540_v7 }
 0x316   : > { %6144 = vmatprep.mubr.bf16.mxu0 %v5873_v28  ;;  %8534 = vmatprep.subr.bf16.mxu1 %v19660_v44  ;;  %v4484_v57 = vpop.f32.mrf.mxu0  ;;  %v4701_v8 = vld [vmem:[%s16377_s26 + $0x8] sm:$0xff]  ;;  %v16530_v28 = vrot.slane %v13215_v61, 1  ;;  %v13127_v52 = vcombine.low %v16512_v63, %v16495_v49 }
 0x317   : > { %7695 = vmatpush1.bf16.msra.mxu0 %v14286_v56  ;;  %4658 = vst.msk [vmem:[%s16377_s26 + $0x18] sm:$0xff] %vm3596_vm4, %v4484_v57  ;;  %v16538_v48 = vrot.slane %v13218_v33, 1  ;;  %v16547_v57 = vrot.slane %v13128_v36, 2  ;;  %v3422_v43 = vsel %vm3369_vm5, %v3419_v25, %v3421_v1  ;;  %v14533_v25 = vld [vmem:[#allocation2 + $0xc8] sm:$0xff]  }
 0x318   : > { %7696 = vmatprep.subr.bf16.mxu0 %v19660_v44  ;;  %v4486_v58 = vpop.f32.mrf.mxu0  ;;  %v16632_v1 = vld [vmem:[#allocation3 + $0x78] sm:$0xff] }
 0x319   : > { %8535 = vmatpush1.bf16.msra.mxu1 %v14276_v42  ;;  %v14291_v42 = vld [vmem:[%s19603_s3 + $0x290] sm:$0xff]  }
 0x31a   : > { %8536 = vmatprep.subr.bf16.mxu1 %v19660_v44  ;;  %v4489_v0 = vpop.f32.mrf.mxu0  ;;  %v4702_v6 = vld [vmem:[%s16377_s26 + $0x10] sm:$0xff]  ;;  %v3595_v54 = vpop.permute.xlu1 %3594 }
 0x31b   : > { %7697 = vmatpush1.bf16.msra.mxu0 %v14290_v37  ;;  %4659 = vst.msk [vmem:[%s16377_s26 + $0x20] sm:$0xff] %vm3596_vm4, %v4489_v0  ;;  %v16552_v58 = vld [vmem:[#allocation3 + $0x138] sm:$0xff]  ;;  %v16578_v0 = vld [vmem:[#allocation3 + $0x130] sm:$0xff] }
 0x31c   : > { %v5275_v17 = vpop.f32.mrf.mxu1  ;;  %6975 = vmatmul.mubr.bf16.gmra.mxu1 %v6709_v27  ;;  %6145 = vmatmul.mubr.bf16.gmra.mxu0 %v5871_v39  ;;  %v4491_v12 = vpop.f32.mrf.mxu0  ;;  %v13222_v36 = vcombine.high %v16495_v49, %v16578_v0 }
 0x31d   : > { %v5457_v59 = vadd.f32 %v5275_v17, %v4700_v50  ;;  %6982 = vmatprep.mubr.bf16.mxu1 %v6715_v38  ;;  %6152 = vmatprep.mubr.bf16.mxu0 %v5877_v34  ;;  %v6717_v38 = vsel %vm3369_vm5, %v16473_v10, %v16530_v28  ;;  %v6723_v17 = vsel %vm3369_vm5, %v16488_v30, %v16538_v48  ;;  %v14305_v34 = vld [vmem:[%s19603_s3 + $0x268] sm:$0xff]   ;;  %v16593_v30 = vrot.slane %v13217_v19, 1 }
 0x31e   : > { %v5277_v5 = vpop.f32.mrf.mxu1  ;;  %8537 = vmatpush1.bf16.msra.mxu1 %v14280_v14  ;;  %7698 = vmatprep.subr.bf16.mxu0 %v19660_v44  ;;  %v4492_v18 = vpop.f32.mrf.mxu0  ;;  %v4703_v23 = vld [vmem:[%s16377_s26 + $0x18] sm:$0xff]  ;;  %v5885_v12 = vsel %vm5855_vm7, %v16490_v3, %v16547_v57  ;;  %v13130_v10 = vcombine.high %v16578_v0, %v16552_v58  ;;  %v14297_v3 = vld [vmem:[%s19603_s3 + $0x280] sm:$0xff]  }
 0x31f   : > { %5502 = vst.msk [vmem:[%s16377_s26] sm:$0xff] %vm3596_vm4, %v5457_v59  ;;  %8538 = vmatprep.subr.bf16.mxu1 %v19660_v44  ;;  %7699 = vmatpush1.bf16.msra.mxu0 %v14292_v24  ;;  %4660 = vst.msk [vmem:[%s16377_s26 + $0x28] sm:$0xff] %vm3596_vm4, %v4492_v18  ;;  %v3365_v14 = vpop.permute.xlu0 %3364  ;;  %v13220_v24 = vcombine.high %v16445_v40, %v16512_v63 }
 0x320   : > { %v5278_v20 = vpop.f32.mrf.mxu1  ;;  %7700 = vmatprep.subr.bf16.mxu0 %v19660_v44  ;;  %v4494_v60 = vpop.f32.mrf.mxu0  ;;  %v3648_v50 = vsel %vm3596_vm4, %v14533_v25, %v3365_v14 }
 0x321   : > { %v5458_v9 = vadd.f32 %v5278_v20, %v4701_v8 }
 0x322   : > { %v5280_v26 = vpop.f32.mrf.mxu1  ;;  %8539 = vmatpush1.bf16.msra.mxu1 %v14285_v13  ;;  %v4497_v55 = vpop.f32.mrf.mxu0  ;;  %v4704_v35 = vld [vmem:[%s16377_s26 + $0x20] sm:$0xff]  ;;  %v3726_v13 = vsel %vm3596_vm4, %v3422_v43, %v3595_v54  ;;  %v14314_v43 = vld [vmem:[%s19603_s3 + $0x250] sm:$0xff]   ;;  %v13131_v54 = vcombine.low %v16632_v1, %v16613_v46 }
 0x323   : > { %5503 = vst.msk [vmem:[%s16377_s26 + $0x8] sm:$0xff] %vm3596_vm4, %v5458_v9  ;;  %8540 = vmatprep.subr.bf16.mxu1 %v19660_v44  ;;  %7701 = vmatpush1.bf16.msra.mxu0 %v14295_v41  ;;  %4661 = vst.msk [vmem:[%s16377_s26 + $0x30] sm:$0xff] %vm3596_vm4, %v4497_v55  ;;  %v12923_v41 = vcombine.low %v3648_v50, %v3726_v13  ;;  %v12924_v8 = vcombine.high %v3648_v50, %v3726_v13  ;;  %v16601_v9 = vrot.slane %v13127_v52, 2  ;;  %v14308_v26 = vld [vmem:[%s19603_s3 + $0x260] sm:$0xff]   ;;  %v14300_v55 = vld [vmem:[%s19603_s3 + $0x2f8] sm:$0xff]  }
 0x324   : > { %v5283_v51 = vpop.f32.mrf.mxu1  ;;  %6983 = vmatmul.mubr.bf16.gmra.mxu1 %v6713_v31  ;;  %6153 = vmatmul.mubr.bf16.gmra.mxu0 %v5875_v16  ;;  %v4499_v47 = vpop.f32.mrf.mxu0  ;;  %v16608_v16 = vrot.slane %v13130_v10, 2  ;;  %v13224_v10 = vcombine.high %v16552_v58, %v16632_v1 }
 0x325   : > { %v5459_v56 = vadd.f32 %v5283_v51, %v4702_v6  ;;  %6990 = vmatprep.mubr.bf16.mxu1 %v6719_v32  ;;  %6160 = vmatprep.mubr.bf16.mxu0 %v5881_v53  ;;  %4037 = vst [vmem:[#allocation3 + $0xe8] sm:$0xff] %v12923_v41  ;;  %4038 = vst [vmem:[#allocation3 + $0x70] sm:$0xff] %v12924_v8  ;;  %v6721_v6 = vsel %vm3369_vm5, %v16530_v28, %v16593_v30 }
 0x326   : > { %v5285_v22 = vpop.f32.mrf.mxu1  ;;  %8541 = vmatpush1.bf16.msra.mxu1 %v14289_v29  ;;  %7702 = vmatprep.subr.bf16.mxu0 %v19660_v44  ;;  %v4500_v37 = vpop.f32.mrf.mxu0  ;;  %v4705_v31 = vld [vmem:[%s16377_s26 + $0x28] sm:$0xff]  ;;  %v6726_v29 = vrot.slane %v13220_v24, 1  ;;  %v13219_v32 = vcombine.low %v16445_v40, %v16512_v63  ;;  %v5883_v53 = vsel %vm5855_vm7, %v16540_v7, %v16601_v9  ;;  %v14311_v40 = vld [vmem:[%s19603_s3 + $0x258] sm:$0xff]   ;;  %v13132_v7 = vcombine.high %v16632_v1, %v16613_v46 }
 0x327   : > { %5504 = vst.msk [vmem:[%s16377_s26 + $0x10] sm:$0xff] %vm3596_vm4, %v5459_v56  ;;  %8542 = vmatprep.subr.bf16.mxu1 %v19660_v44  ;;  %7703 = vmatpush2.bf16.msra.mxu0 %v14298_v62  ;;  %4662 = vst.msk [vmem:[%s16377_s26 + $0x38] sm:$0xff] %vm3596_vm4, %v4500_v37  ;;  %v13129_v56 = vcombine.low %v16578_v0, %v16552_v58  ;;  %v16670_v24 = vld [vmem:[#allocation3 + $0x20] sm:$0xff] }
 0x328   : > { %v5286_v11 = vpop.f32.mrf.mxu1  ;;  %7704 = vmatprep.subr.bf16.mxu0 %v19660_v44  ;;  %v4502_v39 = vpop.f32.mrf.mxu0  ;;  %v6727_v47 = vsel %vm3369_vm5, %v16538_v48, %v6726_v29  ;;  %v16648_v37 = vrot.slane %v13219_v32, 1  ;;  %v14304_v48 = vld [vmem:[%s19603_s3 + $0x2f0] sm:$0xff]   ;;  %v14313_v32 = vld [vmem:[%s19603_s3 + $0x2d8] sm:$0xff]  }
 0x329   : > { %v5460_v21 = vadd.f32 %v5286_v11, %v4703_v23  ;;  %v16665_v39 = vrot.slane %v13132_v7, 2 }
 0x32a   : > { %v5288_v27 = vpop.f32.mrf.mxu1  ;;  %8543 = vmatpush1.bf16.msra.mxu1 %v14291_v42  ;;  %v4706_v63 = vld [vmem:[%s16377_s26 + $0x30] sm:$0xff]  ;;  %v5889_v42 = vsel %vm5855_vm7, %v16547_v57, %v16608_v16  ;;  %v16656_v57 = vrot.slane %v13222_v36, 1  ;;  %v6725_v25 = vsel %vm3369_vm5, %v16593_v30, %v16648_v37  ;;  %v16711_v30 = vrot.slane %v13131_v54, 2 }
 0x32b   : > { %5505 = vst.msk [vmem:[%s16377_s26 + $0x18] sm:$0xff] %vm3596_vm4, %v5460_v21  ;;  %8544 = vmatprep.subr.bf16.mxu1 %v19660_v44  ;;  %7705 = vmatpush2.bf16.msra.mxu0 %v14302_v2  ;;  %v16658_v21 = vrot.slane %v13129_v56, 2  ;;  %v16741_v56 = vld [vmem:[#allocation3 + $0xe0] sm:$0xff] }
 0x32c   : > { %v5291_v59 = vpop.f32.mrf.mxu1  ;;  %6991 = vmatmul.mubr.bf16.gmra.mxu1 %v6717_v38  ;;  %v4505_v5 = vpop.f32.mrf.mxu0  ;;  %6161 = vmatmul.mubr.bf16.gmra.mxu0 %v5879_v15  ;;  %v14307_v15 = vld [vmem:[%s19603_s3 + $0x2e8] sm:$0xff]   ;;  %v6731_v52 = vsel %vm3369_vm5, %v6726_v29, %v16656_v57 }
 0x32d   : > { %v5461_v4 = vadd.f32 %v5291_v59, %v4704_v35  ;;  %6998 = vmatprep.mubr.bf16.mxu1 %v6723_v17  ;;  %4663 = vst.msk [vmem:[%s16377_s26 + $0x40] sm:$0xff] %vm3596_vm4, %v4505_v5  ;;  %6168 = vmatprep.mubr.bf16.mxu0 %v5885_v12  ;;  %v13221_v17 = vcombine.low %v16495_v49, %v16578_v0  ;;  %v16689_v35 = vld [vmem:[#allocation3] sm:$0xff]  ;;  %v14317_v49 = vld [vmem:[%s19603_s3 + $0x248] sm:$0xff]  }
 0x32e   : > { %v5293_v20 = vpop.f32.mrf.mxu1  ;;  %v4507_v18 = vpop.f32.mrf.mxu0  ;;  %8545 = vmatpush1.bf16.msra.mxu1 %v14294_v45  ;;  %7706 = vmatprep.subr.bf16.mxu0 %v19660_v44  ;;  %v4707_v14 = vld [vmem:[%s16377_s26 + $0x38] sm:$0xff]  ;;  %v5893_v12 = vsel %vm5855_vm7, %v16608_v16, %v16665_v39  ;;  %v13134_v13 = vcombine.high %v16689_v35, %v16670_v24  ;;  %v16723_v16 = vld [vmem:[#allocation3 + $0xf0] sm:$0xff]  ;;  %v13133_v36 = vcombine.low %v16689_v35, %v16670_v24 }
 0x32f   : > { %5506 = vst.msk [vmem:[%s16377_s26 + $0x20] sm:$0xff] %vm3596_vm4, %v5461_v4  ;;  %8546 = vmatprep.subr.bf16.mxu1 %v19660_v44  ;;  %7707 = vmatpush2.bf16.msra.mxu0 %v14305_v34  ;;  %v5887_v34 = vsel %vm5855_vm7, %v16601_v9, %v16658_v21  ;;  %v6728_v20 = vrot.slane %v13221_v17, 1  ;;  %v14310_v18 = vld [vmem:[%s19603_s3 + $0x2e0] sm:$0xff]   ;;  %v13225_v17 = vcombine.low %v16613_v46, %v16689_v35 }
 0x330   : > { %v5294_v60 = vpop.f32.mrf.mxu1  ;;  %v4508_v61 = vpop.f32.mrf.mxu0  ;;  %7708 = vmatprep.subr.bf16.mxu0 %v19660_v44 }
 0x331   : > { %v5462_v33 = vadd.f32 %v5294_v60, %v4705_v31  ;;  %4664 = vst.msk [vmem:[%s16377_s26 + $0x48] sm:$0xff] %vm3596_vm4, %v4508_v61  ;;  %v6734_v60 = vrot.slane %v13224_v10, 1  ;;  %v16718_v61 = vrot.slane %v13134_v13, 2  ;;  %v14327_v10 = vld [vmem:[%s19603_s3 + $0x2c0] sm:$0xff]   ;;  %v6736_v13 = vrot.slane %v13225_v17, 1 }
 0x332   : > { %v5296_v62 = vpop.f32.mrf.mxu1  ;;  %v4510_v51 = vpop.f32.mrf.mxu0  ;;  %8547 = vmatpush1.bf16.msra.mxu1 %v14297_v3  ;;  %v14321_v3 = vld [vmem:[%s19603_s3 + $0x240] sm:$0xff]  }
 0x333   : > { %5507 = vst.msk [vmem:[%s16377_s26 + $0x28] sm:$0xff] %vm3596_vm4, %v5462_v33  ;;  %8548 = vmatprep.subr.bf16.mxu1 %v19660_v44  ;;  %7709 = vmatpush2.bf16.msra.mxu0 %v14308_v26  ;;  %v6729_v62 = vsel %vm3369_vm5, %v16648_v37, %v6728_v20  ;;  %v13223_v51 = vcombine.low %v16552_v58, %v16632_v1  ;;  %v5894_v37 = vrot.slane %v13133_v36, 2 }
 0x334   : > { %v5299_v22 = vpop.f32.mrf.mxu1  ;;  %6999 = vmatmul.mubr.bf16.gmra.mxu1 %v6721_v6  ;;  %v4513_v28 = vpop.f32.mrf.mxu0  ;;  %6169 = vmatmul.mubr.bf16.gmra.mxu0 %v5883_v53  ;;  %v4708_v0 = vld [vmem:[%s16377_s26 + $0x40] sm:$0xff]  ;;  %v13226_v53 = vcombine.high %v16613_v46, %v16689_v35  ;;  %v13228_v46 = vcombine.high %v16670_v24, %v16741_v56 }
 0x335   : > { %v5463_v2 = vadd.f32 %v5299_v22, %v4706_v63  ;;  %7006 = vmatprep.mubr.bf16.mxu1 %v6727_v47  ;;  %4665 = vst.msk [vmem:[%s16377_s26 + $0x50] sm:$0xff] %vm3596_vm4, %v4513_v28  ;;  %6176 = vmatprep.mubr.bf16.mxu0 %v5889_v42  ;;  %v5897_v22 = vsel %vm5855_vm7, %v16665_v39, %v16718_v61 }
 0x336   : > { %v5301_v23 = vpop.f32.mrf.mxu1  ;;  %v4515_v11 = vpop.f32.mrf.mxu0  ;;  %8549 = vmatpush2.bf16.msra.mxu1 %v14300_v55  ;;  %7710 = vmatprep.subr.bf16.mxu0 %v19660_v44  ;;  %v5891_v55 = vsel %vm5855_vm7, %v16658_v21, %v16711_v30  ;;  %v13136_v47 = vcombine.high %v16741_v56, %v16723_v16 }
 0x337   : > { %5508 = vst.msk [vmem:[%s16377_s26 + $0x30] sm:$0xff] %vm3596_vm4, %v5463_v2  ;;  %8550 = vmatprep.subr.bf16.mxu1 %v19660_v44  ;;  %7711 = vmatpush2.bf16.msra.mxu0 %v14311_v40  ;;  %v6735_v40 = vsel %vm3369_vm5, %v16656_v57, %v6734_v60  ;;  %v6732_v2 = vrot.slane %v13223_v51, 1  ;;  %v14316_v23 = vld [vmem:[%s19603_s3 + $0x2d0] sm:$0xff]   ;;  %v16760_v11 = vrot.slane %v13226_v53, 1 }
 0x338   : > { %v5302_v27 = vpop.f32.mrf.mxu1  ;;  %v4516_v38 = vpop.f32.mrf.mxu0  ;;  %7712 = vmatprep.subr.bf16.mxu0 %v19660_v44  ;;  %v4709_v9 = vld [vmem:[%s16377_s26 + $0x48] sm:$0xff] }
 0x339   : > { %v5464_v19 = vadd.f32 %v5302_v27, %v4707_v14  ;;  %4666 = vst.msk [vmem:[%s16377_s26 + $0x58] sm:$0xff] %vm3596_vm4, %v4516_v38  ;;  %v16766_v27 = vld [vmem:[#allocation3 + $0xa8] sm:$0xff]  ;;  %v6733_v39 = vsel %vm3369_vm5, %v6728_v20, %v6732_v2 }
 0x33a   : > { %v5304_v45 = vpop.f32.mrf.mxu1  ;;  %v4518_v50 = vpop.f32.mrf.mxu0  ;;  %8551 = vmatpush2.bf16.msra.mxu1 %v14304_v48 }
 0x33b   : > { %5509 = vst.msk [vmem:[%s16377_s26 + $0x38] sm:$0xff] %vm3596_vm4, %v5464_v19  ;;  %8552 = vmatprep.subr.bf16.mxu1 %v19660_v44  ;;  %7713 = vmatpush2.bf16.msra.mxu0 %v14314_v43  ;;  %v5900_v43 = vrot.slane %v13136_v47, 2  ;;  %v14320_v45 = vld [vmem:[%s19603_s3 + $0x2c8] sm:$0xff]   ;;  %v5895_v50 = vsel %vm5855_vm7, %v16711_v30, %v5894_v37 }
 0x33c   : > { %v5307_v59 = vpop.f32.mrf.mxu1  ;;  %7007 = vmatmul.mubr.bf16.gmra.mxu1 %v6725_v25  ;;  %v4521_v5 = vpop.f32.mrf.mxu0  ;;  %6177 = vmatmul.mubr.bf16.gmra.mxu0 %v5887_v34  ;;  %v4710_v58 = vld [vmem:[%s16377_s26 + $0x50] sm:$0xff]  ;;  %v6739_v25 = vsel %vm3369_vm5, %v6734_v60, %v16760_v11  ;;  %v13227_v60 = vcombine.low %v16670_v24, %v16741_v56 }
 0x33d   : > { %v5465_v4 = vadd.f32 %v5307_v59, %v4708_v0  ;;  %7014 = vmatprep.mubr.bf16.mxu1 %v6731_v52  ;;  %4667 = vst.msk [vmem:[%s16377_s26 + $0x60] sm:$0xff] %vm3596_vm4, %v4521_v5  ;;  %6184 = vmatprep.mubr.bf16.mxu0 %v5893_v12  ;;  %v16782_v52 = vld [vmem:[#allocation3 + $0x188] sm:$0xff]  ;;  %v5901_v0 = vsel %vm5855_vm7, %v16718_v61, %v5900_v43 }
 0x33e   : > { %v5309_v41 = vpop.f32.mrf.mxu1  ;;  %v4523_v8 = vpop.f32.mrf.mxu0  ;;  %8553 = vmatpush2.bf16.msra.mxu1 %v14307_v15  ;;  %7714 = vmatprep.subr.bf16.mxu0 %v19660_v44  ;;  %v13135_v15 = vcombine.low %v16741_v56, %v16723_v16  ;;  %v13138_v35 = vcombine.high %v16782_v52, %v16766_v27  ;;  %v6737_v61 = vsel %vm3369_vm5, %v6732_v2, %v6736_v13 }
 0x33f   : > { %5510 = vst.msk [vmem:[%s16377_s26 + $0x40] sm:$0xff] %vm3596_vm4, %v5465_v4  ;;  %8554 = vmatprep.subr.bf16.mxu1 %v19660_v44  ;;  %7715 = vmatpush2.bf16.msra.mxu0 %v14317_v49 }
 0x340   : > { %v5310_v26 = vpop.f32.mrf.mxu1  ;;  %v4524_v31 = vpop.f32.mrf.mxu0  ;;  %7716 = vmatprep.subr.bf16.mxu0 %v19660_v44  ;;  %v4711_v48 = vld [vmem:[%s16377_s26 + $0x58] sm:$0xff]  ;;  %v5898_v4 = vrot.slane %v13135_v15, 2  ;;  %v5904_v30 = vrot.slane %v13138_v35, 2 }
 0x341   : > { %v5466_v29 = vadd.f32 %v5310_v26, %v4709_v9  ;;  %4668 = vst.msk [vmem:[%s16377_s26 + $0x68] sm:$0xff] %vm3596_vm4, %v4524_v31  ;;  %v16803_v9 = vld [vmem:[#allocation3 + $0xb8] sm:$0xff] }
 0x342   : > { %v5312_v33 = vpop.f32.mrf.mxu1  ;;  %v4526_v6 = vpop.f32.mrf.mxu0  ;;  %8555 = vmatpush2.bf16.msra.mxu1 %v14310_v18  ;;  %v6742_v18 = vrot.slane %v13228_v46, 1  ;;  %v5905_v53 = vsel %vm5855_vm7, %v5900_v43, %v5904_v30  ;;  %v13229_v43 = vcombine.low %v16723_v16, %v16782_v52 }
 0x343   : > { %5511 = vst.msk [vmem:[%s16377_s26 + $0x48] sm:$0xff] %vm3596_vm4, %v5466_v29  ;;  %8556 = vmatprep.subr.bf16.mxu1 %v19660_v44  ;;  %7717 = vmatpush2.bf16.msra.mxu0 %v14321_v3  ;;  %v5899_v29 = vsel %vm5855_vm7, %v5894_v37, %v5898_v4  ;;  %v13230_v33 = vcombine.high %v16723_v16, %v16782_v52  ;;  %v16815_v6 = vld [vmem:[#allocation3 + $0x88] sm:$0xff] }
 0x344   : > { %v5315_v1 = vpop.f32.mrf.mxu1  ;;  %7015 = vmatmul.mubr.bf16.gmra.mxu1 %v6729_v62  ;;  %v4529_v63 = vpop.f32.mrf.mxu0  ;;  %6185 = vmatmul.mubr.bf16.gmra.mxu0 %v5891_v55  ;;  %v4712_v34 = vld [vmem:[%s16377_s26 + $0x60] sm:$0xff]  ;;  %v13137_v62 = vcombine.low %v16782_v52, %v16766_v27  ;;  %v13140_v36 = vcombine.high %v16815_v6, %v16803_v9 }
 0x345   : > { %v5467_v28 = vadd.f32 %v5315_v1, %v4710_v58  ;;  %7022 = vmatprep.mubr.bf16.mxu1 %v6735_v40  ;;  %4669 = vst.msk [vmem:[%s16377_s26 + $0x70] sm:$0xff] %vm3596_vm4, %v4529_v63  ;;  %6192 = vmatprep.mubr.bf16.mxu0 %v5897_v22  ;;  %v6740_v40 = vrot.slane %v13227_v60, 1  ;;  %v6746_v63 = vrot.slane %v13230_v33, 1 }
 0x346   : > { %v5317_v42 = vpop.f32.mrf.mxu1  ;;  %v4531_v7 = vpop.f32.mrf.mxu0  ;;  %8557 = vmatpush2.bf16.msra.mxu1 %v14313_v32  ;;  %9378 = vmatprep.subr.bf16.mxu0 %v19660_v44  ;;  %v6743_v32 = vsel %vm3369_vm5, %v16760_v11, %v6742_v18  ;;  %v5902_v22 = vrot.slane %v13137_v62, 2 }
 0x347   : > { %5512 = vst.msk [vmem:[%s16377_s26 + $0x50] sm:$0xff] %vm3596_vm4, %v5467_v28  ;;  %8558 = vmatprep.subr.bf16.mxu1 %v19660_v44  ;;  %v5908_v7 = vrot.slane %v13140_v36, 2  ;;  %v6741_v37 = vsel %vm3369_vm5, %v6736_v13, %v6740_v40 }
 0x348   : > { %v5318_v57 = vpop.f32.mrf.mxu1  ;;  %v4532_v21 = vpop.f32.mrf.mxu0  ;;  %v4713_v41 = vld [vmem:[%s16377_s26 + $0x68] sm:$0xff] }
 0x349   : > { %v5468_v14 = vadd.f32 %v5318_v57, %v4711_v48  ;;  %4670 = vst.msk [vmem:[%s16377_s26 + $0x78] sm:$0xff] %vm3596_vm4, %v4532_v21  ;;  %v6747_v57 = vsel %vm3369_vm5, %v6742_v18, %v6746_v63  ;;  %v5903_v21 = vsel %vm5855_vm7, %v5898_v4, %v5902_v22  ;;  %v13231_v4 = vcombine.low %v16766_v27, %v16815_v6 }
 0x34a   : > { %v5320_v38 = vpop.f32.mrf.mxu1  ;;  %v4534_v19 = vpop.f32.mrf.mxu0  ;;  %8559 = vmatpush2.bf16.msra.mxu1 %v14316_v23  ;;  %v16831_v23 = vld [vmem:[#allocation3 + $0xc0] sm:$0xff] }
 0x34b   : > { %5513 = vst.msk [vmem:[%s16377_s26 + $0x58] sm:$0xff] %vm3596_vm4, %v5468_v14  ;;  %8560 = vmatprep.subr.bf16.mxu1 %v19660_v44  ;;  %v13139_v14 = vcombine.low %v16815_v6, %v16803_v9  ;;  %v16842_v38 = vld [vmem:[#allocation3 + $0x170] sm:$0xff] }
 0x34c   : > { %v5323_v54 = vpop.f32.mrf.mxu1  ;;  %7023 = vmatmul.mubr.bf16.gmra.mxu1 %v6733_v39  ;;  %v4537_v49 = vpop.f32.mrf.mxu0  ;;  %6193 = vmatmul.mubr.bf16.gmra.mxu0 %v5895_v50  ;;  %v4714_v24 = vld [vmem:[%s16377_s26 + $0x70] sm:$0xff]  ;;  %v13232_v50 = vcombine.high %v16766_v27, %v16815_v6  ;;  %v13142_v16 = vcombine.high %v16842_v38, %v16831_v23  ;;  %v13141_v18 = vcombine.low %v16842_v38, %v16831_v23  ;;  %v6748_v6 = vrot.slane %v13231_v4, 1 }
 0x34d   : > { %v5469_v59 = vadd.f32 %v5323_v54, %v4712_v34  ;;  %7030 = vmatprep.mubr.bf16.mxu1 %v6739_v25  ;;  %4671 = vst.msk [vmem:[%s16377_s26 + $0x80] sm:$0xff] %vm3596_vm4, %v4537_v49  ;;  %6200 = vmatprep.mubr.bf16.mxu0 %v5901_v0  ;;  %v5909_v25 = vsel %vm5855_vm7, %v5904_v30, %v5908_v7  ;;  %v6744_v34 = vrot.slane %v13229_v43, 1  ;;  %v5906_v54 = vrot.slane %v13139_v14, 2  ;;  %v16869_v30 = vld [vmem:[#allocation3 + $0x140] sm:$0xff] }
 0x34e   : > { %v5325_v5 = vpop.f32.mrf.mxu1  ;;  %v4539_v12 = vpop.f32.mrf.mxu0  ;;  %8561 = vmatpush2.bf16.msra.mxu1 %v14320_v45  ;;  %v6750_v35 = vrot.slane %v13232_v50, 1 }
 0x34f   : > { %5514 = vst.msk [vmem:[%s16377_s26 + $0x60] sm:$0xff] %vm3596_vm4, %v5469_v59  ;;  %8562 = vmatprep.subr.bf16.mxu1 %v19660_v44  ;;  %v5912_v59 = vrot.slane %v13142_v16, 2  ;;  %v16857_v12 = vld [vmem:[#allocation3 + $0x50] sm:$0xff] }
 0x350   : > { %v5326_v8 = vpop.f32.mrf.mxu1  ;;  %v4540_v20 = vpop.f32.mrf.mxu0  ;;  %v4715_v47 = vld [vmem:[%s16377_s26 + $0x78] sm:$0xff]  ;;  %v6751_v27 = vsel %vm3369_vm5, %v6746_v63, %v6750_v35 }
 0x351   : > { %v5470_v3 = vadd.f32 %v5326_v8, %v4713_v41  ;;  %4672 = vst.msk [vmem:[%s16377_s26 + $0x88] sm:$0xff] %vm3596_vm4, %v4540_v20  ;;  %v6745_v41 = vsel %vm3369_vm5, %v6740_v40, %v6744_v34  ;;  %v5907_v8 = vsel %vm5855_vm7, %v5902_v22, %v5906_v54  ;;  %v13234_v20 = vcombine.high %v16803_v9, %v16842_v38 }
 0x352   : > { %v5328_v26 = vpop.f32.mrf.mxu1  ;;  %v4542_v31 = vpop.f32.mrf.mxu0  ;;  %8563 = vmatpush2.bf16.msra.mxu1 %v14327_v10  ;;  %v5913_v60 = vsel %vm5855_vm7, %v5908_v7, %v5912_v59  ;;  %v6749_v40 = vsel %vm3369_vm5, %v6744_v34, %v6748_v6  ;;  %v16894_v7 = vld [vmem:[#allocation3 + $0x168] sm:$0xff] }
 0x353   : > { %5515 = vst.msk [vmem:[%s16377_s26 + $0x68] sm:$0xff] %vm3596_vm4, %v5470_v3  ;;  %10224 = vmatprep.subr.bf16.mxu1 %v19660_v44 }
 0x354   : > { %v5331_v51 = vpop.f32.mrf.mxu1  ;;  %7031 = vmatmul.mubr.bf16.gmra.mxu1 %v6737_v61  ;;  %v4545_v55 = vpop.f32.mrf.mxu0  ;;  %6201 = vmatmul.mubr.bf16.gmra.mxu0 %v5899_v29  ;;  %v4716_v39 = vld [vmem:[%s16377_s26 + $0x80] sm:$0xff]  ;;  %v13144_v61 = vcombine.high %v16869_v30, %v16857_v12 }
 0x355   : > { %v5471_v56 = vadd.f32 %v5331_v51, %v4714_v24  ;;  %7038 = vmatprep.mubr.bf16.mxu1 %v6743_v32  ;;  %4673 = vst.msk [vmem:[%s16377_s26 + $0x90] sm:$0xff] %vm3596_vm4, %v4545_v55  ;;  %6208 = vmatprep.mubr.bf16.mxu0 %v5905_v53  ;;  %v6754_v24 = vrot.slane %v13234_v20, 1  ;;  %v5910_v51 = vrot.slane %v13141_v18, 2 }
 0x356   : > { %v5333_v58 = vpop.f32.mrf.mxu1  ;;  %v4547_v1 = vpop.f32.mrf.mxu0  ;;  %v5916_v36 = vrot.slane %v13144_v61, 2 }
 0x357   : > { %5516 = vst.msk [vmem:[%s16377_s26 + $0x70] sm:$0xff] %vm3596_vm4, %v5471_v56  ;;  %v16883_v58 = vld [vmem:[#allocation3 + $0x190] sm:$0xff]  ;;  %v6755_v22 = vsel %vm3369_vm5, %v6750_v35, %v6754_v24 }
 0x358   : > { %v5334_v28 = vpop.f32.mrf.mxu1  ;;  %v4548_v42 = vpop.f32.mrf.mxu0  ;;  %v4717_v49 = vld [vmem:[%s16377_s26 + $0x88] sm:$0xff]  ;;  %v13145_v35 = vcombine.low %v16894_v7, %v16883_v58 }
 0x359   : > { %v5472_v2 = vadd.f32 %v5334_v28, %v4715_v47  ;;  %4674 = vst.msk [vmem:[%s16377_s26 + $0x98] sm:$0xff] %vm3596_vm4, %v4548_v42  ;;  %v5911_v47 = vsel %vm5855_vm7, %v5906_v54, %v5910_v51  ;;  %v13233_v28 = vcombine.low %v16803_v9, %v16842_v38  ;;  %v13143_v42 = vcombine.low %v16869_v30, %v16857_v12 }
 0x35a   : > { %v5336_v11 = vpop.f32.mrf.mxu1  ;;  %v4550_v48 = vpop.f32.mrf.mxu0  ;;  %v13146_v9 = vcombine.high %v16894_v7, %v16883_v58  ;;  %v13235_v54 = vcombine.low %v16831_v23, %v16869_v30 }
 0x35b   : > { %5517 = vst.msk [vmem:[%s16377_s26 + $0x78] sm:$0xff] %vm3596_vm4, %v5472_v2  ;;  %v5917_v48 = vsel %vm5855_vm7, %v5912_v59, %v5916_v36  ;;  %v6752_v38 = vrot.slane %v13233_v28, 1  ;;  %v16921_v59 = vld [vmem:[#allocation3 + $0x38] sm:$0xff] }
 0x35c   : > { %v5339_v19 = vpop.f32.mrf.mxu1  ;;  %7039 = vmatmul.mubr.bf16.gmra.mxu1 %v6741_v37  ;;  %v4553_v45 = vpop.f32.mrf.mxu0  ;;  %6209 = vmatmul.mubr.bf16.gmra.mxu0 %v5903_v21  ;;  %v4718_v3 = vld [vmem:[%s16377_s26 + $0x90] sm:$0xff]  ;;  %v5920_v16 = vrot.slane %v13146_v9, 2 }
 0x35d   : > { %v5473_v17 = vadd.f32 %v5339_v19, %v4716_v39  ;;  %7046 = vmatprep.mubr.bf16.mxu1 %v6747_v57  ;;  %4675 = vst.msk [vmem:[%s16377_s26 + $0xa0] sm:$0xff] %vm3596_vm4, %v4553_v45  ;;  %6216 = vmatprep.mubr.bf16.mxu0 %v5909_v25  ;;  %v13236_v57 = vcombine.high %v16831_v23, %v16869_v30  ;;  %v5914_v39 = vrot.slane %v13143_v42, 2  ;;  %v6756_v30 = vrot.slane %v13235_v54, 1 }
 0x35e   : > { %v5341_v15 = vpop.f32.mrf.mxu1  ;;  %v4555_v52 = vpop.f32.mrf.mxu0  ;;  %v5921_v4 = vsel %vm5855_vm7, %v5916_v36, %v5920_v16  ;;  %v16946_v36 = vld [vmem:[#allocation3 + $0x18] sm:$0xff] }
 0x35f   : > { %5518 = vst.msk [vmem:[%s16377_s26 + $0x80] sm:$0xff] %vm3596_vm4, %v5473_v17  ;;  %v6758_v50 = vrot.slane %v13236_v57, 1  ;;  %v16909_v15 = vld [vmem:[#allocation3 + $0x60] sm:$0xff] }
 0x360   : > { %v5342_v0 = vpop.f32.mrf.mxu1  ;;  %v4556_v46 = vpop.f32.mrf.mxu0  ;;  %v4719_v32 = vld [vmem:[%s16377_s26 + $0x98] sm:$0xff] }
 0x361   : > { %v5474_v5 = vadd.f32 %v5342_v0, %v4717_v49  ;;  %4676 = vst.msk [vmem:[%s16377_s26 + $0xa8] sm:$0xff] %vm3596_vm4, %v4556_v46  ;;  %v6753_v49 = vsel %vm3369_vm5, %v6748_v6, %v6752_v38  ;;  %v5915_v0 = vsel %vm5855_vm7, %v5910_v51, %v5914_v39  ;;  %v13238_v46 = vcombine.high %v16857_v12, %v16894_v7 }
 0x362   : > { %v5344_v10 = vpop.f32.mrf.mxu1  ;;  %v4558_v13 = vpop.f32.mrf.mxu0  ;;  %v6759_v23 = vsel %vm3369_vm5, %v6754_v24, %v6758_v50  ;;  %v6757_v6 = vsel %vm3369_vm5, %v6752_v38, %v6756_v30 }
 0x363   : > { %5519 = vst.msk [vmem:[%s16377_s26 + $0x88] sm:$0xff] %vm3596_vm4, %v5474_v5 }
 0x364   : > { %v5347_v26 = vpop.f32.mrf.mxu1  ;;  %7047 = vmatmul.mubr.bf16.gmra.mxu1 %v6745_v41  ;;  %v4561_v31 = vpop.f32.mrf.mxu0  ;;  %6217 = vmatmul.mubr.bf16.gmra.mxu0 %v5907_v8  ;;  %v4720_v2 = vld [vmem:[%s16377_s26 + $0xa0] sm:$0xff]  ;;  %v13148_v41 = vcombine.high %v16921_v59, %v16909_v15 }
 0x365   : > { %v5475_v29 = vadd.f32 %v5347_v26, %v4718_v3  ;;  %7054 = vmatprep.mubr.bf16.mxu1 %v6751_v27  ;;  %4677 = vst.msk [vmem:[%s16377_s26 + $0xb0] sm:$0xff] %vm3596_vm4, %v4561_v31  ;;  %6224 = vmatprep.mubr.bf16.mxu0 %v5913_v60  ;;  %v6762_v3 = vrot.slane %v13238_v46, 1  ;;  %v5918_v26 = vrot.slane %v13145_v35, 2 }
 0x366   : > { %v5349_v33 = vpop.f32.mrf.mxu1  ;;  %v4563_v62 = vpop.f32.mrf.mxu0  ;;  %v5924_v61 = vrot.slane %v13148_v41, 2 }
 0x367   : > { %5520 = vst.msk [vmem:[%s16377_s26 + $0x90] sm:$0xff] %vm3596_vm4, %v5475_v29  ;;  %v16935_v33 = vld [vmem:[#allocation3 + $0x158] sm:$0xff]  ;;  %v6763_v51 = vsel %vm3369_vm5, %v6758_v50, %v6762_v3 }
 0x368   : > { %v5350_v55 = vpop.f32.mrf.mxu1  ;;  %v4564_v53 = vpop.f32.mrf.mxu0  ;;  %v4721_v19 = vld [vmem:[%s16377_s26 + $0xa8] sm:$0xff]  ;;  %v13149_v50 = vcombine.low %v16946_v36, %v16935_v33 }
 0x369   : > { %v5476_v56 = vadd.f32 %v5350_v55, %v4719_v32  ;;  %4678 = vst.msk [vmem:[%s16377_s26 + $0xb8] sm:$0xff] %vm3596_vm4, %v4564_v53  ;;  %v5919_v32 = vsel %vm5855_vm7, %v5914_v39, %v5918_v26  ;;  %v13237_v55 = vcombine.low %v16857_v12, %v16894_v7  ;;  %v13147_v53 = vcombine.low %v16921_v59, %v16909_v15 }
 0x36a   : > { %v5352_v1 = vpop.f32.mrf.mxu1  ;;  %v4566_v63 = vpop.f32.mrf.mxu0  ;;  %v13150_v12 = vcombine.high %v16946_v36, %v16935_v33  ;;  %v13239_v39 = vcombine.low %v16883_v58, %v16921_v59 }
 0x36b   : > { %5521 = vst.msk [vmem:[%s16377_s26 + $0x98] sm:$0xff] %vm3596_vm4, %v5476_v56  ;;  %v5925_v63 = vsel %vm5855_vm7, %v5920_v16, %v5924_v61  ;;  %v6760_v7 = vrot.slane %v13237_v55, 1  ;;  %v16973_v16 = vld [vmem:[#allocation3 + $0x120] sm:$0xff] }
 0x36c   : > { %v5355_v11 = vpop.f32.mrf.mxu1  ;;  %7055 = vmatmul.mubr.bf16.gmra.mxu1 %v6749_v40  ;;  %v4569_v37 = vpop.f32.mrf.mxu0  ;;  %6225 = vmatmul.mubr.bf16.gmra.mxu0 %v5911_v47  ;;  %v4722_v5 = vld [vmem:[%s16377_s26 + $0xb0] sm:$0xff]  ;;  %v5928_v9 = vrot.slane %v13150_v12, 2 }
 0x36d   : > { %v5477_v21 = vadd.f32 %v5355_v11, %v4720_v2  ;;  %7062 = vmatprep.mubr.bf16.mxu1 %v6755_v22  ;;  %4679 = vst.msk [vmem:[%s16377_s26 + $0xc0] sm:$0xff] %vm3596_vm4, %v4569_v37  ;;  %6232 = vmatprep.mubr.bf16.mxu0 %v5917_v48  ;;  %v13240_v22 = vcombine.high %v16883_v58, %v16921_v59  ;;  %v5922_v2 = vrot.slane %v13147_v53, 2  ;;  %v6764_v59 = vrot.slane %v13239_v39, 1 }
 0x36e   : > { %v5357_v43 = vpop.f32.mrf.mxu1  ;;  %v4571_v14 = vpop.f32.mrf.mxu0  ;;  %v5929_v54 = vsel %vm5855_vm7, %v5924_v61, %v5928_v9  ;;  %v16998_v61 = vld [vmem:[#allocation3 + $0x68] sm:$0xff] }
 0x36f   : > { %5522 = vst.msk [vmem:[%s16377_s26 + $0xa0] sm:$0xff] %vm3596_vm4, %v5477_v21  ;;  %v6766_v57 = vrot.slane %v13240_v22, 1  ;;  %v16961_v43 = vld [vmem:[#allocation3 + $0x198] sm:$0xff] }
 0x370   : > { %v5358_v45 = vpop.f32.mrf.mxu1  ;;  %v4572_v25 = vpop.f32.mrf.mxu0  ;;  %v4723_v27 = vld [vmem:[%s16377_s26 + $0xb8] sm:$0xff] }
 0x371   : > { %v5478_v17 = vadd.f32 %v5358_v45, %v4721_v19  ;;  %4680 = vst.msk [vmem:[%s16377_s26 + $0xc8] sm:$0xff] %vm3596_vm4, %v4572_v25  ;;  %v6761_v19 = vsel %vm3369_vm5, %v6756_v30, %v6760_v7  ;;  %v5923_v45 = vsel %vm5855_vm7, %v5918_v26, %v5922_v2  ;;  %v13242_v25 = vcombine.high %v16909_v15, %v16946_v36 }
 0x372   : > { %v5360_v52 = vpop.f32.mrf.mxu1  ;;  %v4574_v34 = vpop.f32.mrf.mxu0  ;;  %v6767_v58 = vsel %vm3369_vm5, %v6762_v3, %v6766_v57  ;;  %v6765_v30 = vsel %vm3369_vm5, %v6760_v7, %v6764_v59 }
 0x373   : > { %5523 = vst.msk [vmem:[%s16377_s26 + $0xa8] sm:$0xff] %vm3596_vm4, %v5478_v17 }
 0x374   : > { %v5363_v10 = vpop.f32.mrf.mxu1  ;;  %7063 = vmatmul.mubr.bf16.gmra.mxu1 %v6753_v49  ;;  %v4577_v13 = vpop.f32.mrf.mxu0  ;;  %6233 = vmatmul.mubr.bf16.gmra.mxu0 %v5915_v0  ;;  %v4724_v56 = vld [vmem:[%s16377_s26 + $0xc0] sm:$0xff]  ;;  %v13152_v49 = vcombine.high %v16973_v16, %v16961_v43 }
 0x375   : > { %v5479_v8 = vadd.f32 %v5363_v10, %v4722_v5  ;;  %7070 = vmatprep.mubr.bf16.mxu1 %v6759_v23  ;;  %4681 = vst.msk [vmem:[%s16377_s26 + $0xd0] sm:$0xff] %vm3596_vm4, %v4577_v13  ;;  %6240 = vmatprep.mubr.bf16.mxu0 %v5921_v4  ;;  %v6770_v5 = vrot.slane %v13242_v25, 1  ;;  %v5926_v10 = vrot.slane %v13149_v50, 2 }
 0x376   : > { %v5365_v20 = vpop.f32.mrf.mxu1  ;;  %v4579_v18 = vpop.f32.mrf.mxu0  ;;  %v5932_v41 = vrot.slane %v13152_v49, 2 }
 0x377   : > { %5524 = vst.msk [vmem:[%s16377_s26 + $0xb0] sm:$0xff] %vm3596_vm4, %v5479_v8  ;;  %v16987_v20 = vld [vmem:[#allocation3 + $0x30] sm:$0xff]  ;;  %v6771_v26 = vsel %vm3369_vm5, %v6766_v57, %v6770_v5 }
 0x378   : > { %v5366_v31 = vpop.f32.mrf.mxu1  ;;  %v4580_v60 = vpop.f32.mrf.mxu0  ;;  %v4725_v11 = vld [vmem:[%s16377_s26 + $0xc8] sm:$0xff]  ;;  %v13153_v57 = vcombine.low %v16998_v61, %v16987_v20 }
 0x379   : > { %v5480_v29 = vadd.f32 %v5366_v31, %v4723_v27  ;;  %4682 = vst.msk [vmem:[%s16377_s26 + $0xd8] sm:$0xff] %vm3596_vm4, %v4580_v60  ;;  %v5927_v27 = vsel %vm5855_vm7, %v5922_v2, %v5926_v10  ;;  %v13241_v31 = vcombine.low %v16909_v15, %v16946_v36  ;;  %v13151_v60 = vcombine.low %v16973_v16, %v16961_v43 }
 0x37a   : > { %v5368_v62 = vpop.f32.mrf.mxu1  ;;  %v4582_v24 = vpop.f32.mrf.mxu0  ;;  %v13154_v15 = vcombine.high %v16998_v61, %v16987_v20  ;;  %v13243_v2 = vcombine.low %v16935_v33, %v16973_v16 }
 0x37b   : > { %5525 = vst.msk [vmem:[%s16377_s26 + $0xb8] sm:$0xff] %vm3596_vm4, %v5480_v29  ;;  %v5933_v24 = vsel %vm5855_vm7, %v5928_v9, %v5932_v41  ;;  %v6768_v36 = vrot.slane %v13241_v31, 1  ;;  %v17025_v9 = vld [vmem:[#allocation3 + $0xc8] sm:$0xff] }
 0x37c   : > { %v5371_v1 = vpop.f32.mrf.mxu1  ;;  %7071 = vmatmul.mubr.bf16.gmra.mxu1 %v6757_v6  ;;  %v4585_v40 = vpop.f32.mrf.mxu0  ;;  %6241 = vmatmul.mubr.bf16.gmra.mxu0 %v5919_v32  ;;  %v4726_v17 = vld [vmem:[%s16377_s26 + $0xd0] sm:$0xff]  ;;  %v5936_v12 = vrot.slane %v13154_v15, 2 }
 0x37d   : > { %v5481_v47 = vadd.f32 %v5371_v1, %v4724_v56  ;;  %7078 = vmatprep.mubr.bf16.mxu1 %v6763_v51  ;;  %4683 = vst.msk [vmem:[%s16377_s26 + $0xe0] sm:$0xff] %vm3596_vm4, %v4585_v40  ;;  %6248 = vmatprep.mubr.bf16.mxu0 %v5925_v63  ;;  %v13244_v51 = vcombine.high %v16935_v33, %v16973_v16  ;;  %v5930_v56 = vrot.slane %v13151_v60, 2  ;;  %v6772_v16 = vrot.slane %v13243_v2, 1 }
 0x37e   : > { %v5373_v28 = vpop.f32.mrf.mxu1  ;;  %v4587_v42 = vpop.f32.mrf.mxu0  ;;  %v5937_v39 = vsel %vm5855_vm7, %v5932_v41, %v5936_v12  ;;  %v17048_v41 = vld [vmem:[#allocation3 + $0x28] sm:$0xff] }
 0x37f   : > { %5526 = vst.msk [vmem:[%s16377_s26 + $0xc0] sm:$0xff] %vm3596_vm4, %v5481_v47  ;;  %v6774_v22 = vrot.slane %v13244_v51, 1  ;;  %v17013_v28 = vld [vmem:[#allocation3 + $0xf8] sm:$0xff] }
 0x380   : > { %v5374_v37 = vpop.f32.mrf.mxu1  ;;  %v4588_v48 = vpop.f32.mrf.mxu0  ;;  %v4727_v23 = vld [vmem:[%s16377_s26 + $0xd8] sm:$0xff] }
 0x381   : > { %v5482_v21 = vadd.f32 %v5374_v37, %v4725_v11  ;;  %4684 = vst.msk [vmem:[%s16377_s26 + $0xe8] sm:$0xff] %vm3596_vm4, %v4588_v48  ;;  %v6769_v11 = vsel %vm3369_vm5, %v6764_v59, %v6768_v36  ;;  %v5931_v37 = vsel %vm5855_vm7, %v5926_v10, %v5930_v56  ;;  %v13246_v48 = vcombine.high %v16961_v43, %v16998_v61 }
 0x382   : > { %v5376_v14 = vpop.f32.mrf.mxu1  ;;  %v4590_v38 = vpop.f32.mrf.mxu0  ;;  %v6775_v33 = vsel %vm3369_vm5, %v6770_v5, %v6774_v22  ;;  %v6773_v59 = vsel %vm3369_vm5, %v6768_v36, %v6772_v16 }
 0x383   : > { %5527 = vst.msk [vmem:[%s16377_s26 + $0xc8] sm:$0xff] %vm3596_vm4, %v5482_v21 }
 0x384   : > { %v5379_v52 = vpop.f32.mrf.mxu1  ;;  %7079 = vmatmul.mubr.bf16.gmra.mxu1 %v6761_v19  ;;  %v4593_v34 = vpop.f32.mrf.mxu0  ;;  %6249 = vmatmul.mubr.bf16.gmra.mxu0 %v5923_v45  ;;  %v4728_v29 = vld [vmem:[%s16377_s26 + $0xe0] sm:$0xff]  ;;  %v13156_v19 = vcombine.high %v17025_v9, %v17013_v28 }
 0x385   : > { %v5483_v0 = vadd.f32 %v5379_v52, %v4726_v17  ;;  %7086 = vmatprep.mubr.bf16.mxu1 %v6767_v58  ;;  %4685 = vst.msk [vmem:[%s16377_s26 + $0xf0] sm:$0xff] %vm3596_vm4, %v4593_v34  ;;  %6256 = vmatprep.mubr.bf16.mxu0 %v5929_v54  ;;  %v6778_v17 = vrot.slane %v13246_v48, 1  ;;  %v5934_v52 = vrot.slane %v13153_v57, 2 }
 0x386   : > { %v5381_v46 = vpop.f32.mrf.mxu1  ;;  %v4595_v35 = vpop.f32.mrf.mxu0  ;;  %v5940_v49 = vrot.slane %v13156_v19, 2 }
 0x387   : > { %5528 = vst.msk [vmem:[%s16377_s26 + $0xd0] sm:$0xff] %vm3596_vm4, %v5483_v0  ;;  %v5637_v46 = vld [vmem:[#allocation3 + $0x8] sm:$0x33]  ;;  %v6779_v10 = vsel %vm3369_vm5, %v6774_v22, %v6778_v17 }
 0x388   : > { %v5382_v13 = vpop.f32.mrf.mxu1  ;;  %v4596_v4 = vpop.f32.mrf.mxu0  ;;  %v4729_v1 = vld [vmem:[%s16377_s26 + $0xe8] sm:$0xff] }
 0x389   : > { %v5484_v8 = vadd.f32 %v5382_v13, %v4727_v23  ;;  %4686 = vst.msk [vmem:[%s16377_s26 + $0xf8] sm:$0xff] %vm3596_vm4, %v4596_v4  ;;  %v5935_v23 = vsel %vm5855_vm7, %v5930_v56, %v5934_v52  ;;  %v13245_v13 = vcombine.low %v16961_v43, %v16998_v61  ;;  %v13155_v4 = vcombine.low %v17025_v9, %v17013_v28 }
 0x38a   : > { %v5384_v18 = vpop.f32.mrf.mxu1  ;;  %v4598_v3 = vpop.f32.mrf.mxu0 }
 0x38b   : > { %5529 = vst.msk [vmem:[%s16377_s26 + $0xd8] sm:$0xff] %vm3596_vm4, %v5484_v8  ;;  %v5941_v3 = vsel %vm5855_vm7, %v5936_v12, %v5940_v49  ;;  %v6776_v61 = vrot.slane %v13245_v13, 1 }
 0x38c   : > { %v5387_v62 = vpop.f32.mrf.mxu1  ;;  %7087 = vmatmul.mubr.bf16.gmra.mxu1 %v6765_v30  ;;  %v4601_v6 = vpop.f32.mrf.mxu0  ;;  %6257 = vmatmul.mubr.bf16.gmra.mxu0 %v5927_v27  ;;  %v4730_v21 = vld [vmem:[%s16377_s26 + $0xf0] sm:$0xff]  ;;  %v13158_v27 = vcombine.high %v17048_v41, %v5637_v46 }
 0x38d   : > { %v5485_v32 = vadd.f32 %v5387_v62, %v4728_v29  ;;  %7094 = vmatprep.mubr.bf16.mxu1 %v6771_v26  ;;  %4687 = vst.msk [vmem:[%s16377_s26 + $0x100] sm:$0xff] %vm3596_vm4, %v4601_v6  ;;  %6264 = vmatprep.mubr.bf16.mxu0 %v5933_v24  ;;  %v13248_v26 = vcombine.high %v16987_v20, %v17025_v9  ;;  %v5938_v29 = vrot.slane %v13155_v4, 2 }
 0x38e   : > { %v5389_v55 = vpop.f32.mrf.mxu1  ;;  %v4603_v53 = vpop.f32.mrf.mxu0  ;;  %v5944_v15 = vrot.slane %v13158_v27, 2  ;;  %v6777_v36 = vsel %vm3369_vm5, %v6772_v16, %v6776_v61 }
 0x38f   : > { %5530 = vst.msk [vmem:[%s16377_s26 + $0xe0] sm:$0xff] %vm3596_vm4, %v5485_v32  ;;  %v6782_v51 = vrot.slane %v13248_v26, 1  ;;  %v5939_v56 = vsel %vm5855_vm7, %v5934_v52, %v5938_v29 }
 0x390   : > { %v5390_v40 = vpop.f32.mrf.mxu1  ;;  %v4604_v63 = vpop.f32.mrf.mxu0  ;;  %v4731_v58 = vld [vmem:[%s16377_s26 + $0xf8] sm:$0xff] }
 0x391   : > { %v5486_v47 = vadd.f32 %v5390_v40, %v4729_v1  ;;  %4688 = vst.msk [vmem:[%s16377_s26 + $0x108] sm:$0xff] %vm3596_vm4, %v4604_v63  ;;  %v13247_v1 = vcombine.low %v16987_v20, %v17025_v9  ;;  %v13157_v40 = vcombine.low %v17048_v41, %v5637_v46  ;;  %v6783_v12 = vsel %vm3369_vm5, %v6778_v17, %v6782_v51 }
 0x392   : > { %v5392_v42 = vpop.f32.mrf.mxu1  ;;  %v4606_v7 = vpop.f32.mrf.mxu0 }
 0x393   : > { %5531 = vst.msk [vmem:[%s16377_s26 + $0xe8] sm:$0xff] %vm3596_vm4, %v5486_v47  ;;  %v5945_v42 = vsel %vm5855_vm7, %v5940_v49, %v5944_v15  ;;  %v13250_v7 = vcombine.high %v17013_v28, %v17048_v41  ;;  %v5942_v48 = vrot.slane %v13157_v40, 2 }
 0x394   : > { %v5395_v14 = vpop.f32.mrf.mxu1  ;;  %7095 = vmatmul.mubr.bf16.gmra.mxu1 %v6769_v11  ;;  %v4609_v38 = vpop.f32.mrf.mxu0  ;;  %6265 = vmatmul.mubr.bf16.gmra.mxu0 %v5931_v37  ;;  %v4732_v8 = vld [vmem:[%s16377_s26 + $0x100] sm:$0xff]  ;;  %v6780_v37 = vrot.slane %v13247_v1, 1 }
 0x395   : > { %v5487_v45 = vadd.f32 %v5395_v14, %v4730_v21  ;;  %7102 = vmatprep.mubr.bf16.mxu1 %v6775_v33  ;;  %4689 = vst.msk [vmem:[%s16377_s26 + $0x110] sm:$0xff] %vm3596_vm4, %v4609_v38  ;;  %6272 = vmatprep.mubr.bf16.mxu0 %v5937_v39  ;;  %v6786_v14 = vrot.slane %v13250_v7, 1  ;;  %v17118_v1 = vld [vmem:[#allocation3 + $0x12c] ss:$-232 sps:$4 sm:$0xff]  }
 0x396   : > { %v5397_v25 = vpop.f32.mrf.mxu1  ;;  %v4611_v50 = vpop.f32.mrf.mxu0  ;;  %v6781_v19 = vsel %vm3369_vm5, %v6776_v61, %v6780_v37 }
 0x397   : > { %5532 = vst.msk [vmem:[%s16377_s26 + $0xf0] sm:$0xff] %vm3596_vm4, %v5487_v45  ;;  %v5943_v45 = vsel %vm5855_vm7, %v5938_v29, %v5942_v48  ;;  %v13249_v25 = vcombine.low %v17013_v28, %v17048_v41  ;;  %v6787_v17 = vsel %vm3369_vm5, %v6782_v51, %v6786_v14 }
 0x398   : > { %v5398_v34 = vpop.f32.mrf.mxu1  ;;  %v4612_v54 = vpop.f32.mrf.mxu0  ;;  %v4733_v62 = vld [vmem:[%s16377_s26 + $0x108] sm:$0xff] }
 0x399   : > { %v5488_v0 = vadd.f32 %v5398_v34, %v4731_v58  ;;  %4690 = vst.msk [vmem:[%s16377_s26 + $0x118] sm:$0xff] %vm3596_vm4, %v4612_v54  ;;  %v14318_v58 = vld [vmem:[#allocation3 + $0xc] ss:$120 sps:$4 sm:$0x1f]   ;;  %v6784_v28 = vrot.slane %v13249_v25, 1 }
 0x39a   : > { %v5400_v35 = vpop.f32.mrf.mxu1  ;;  %v4614_v5 = vpop.f32.mrf.mxu0 }
 0x39b   : > { %5533 = vst.msk [vmem:[%s16377_s26 + $0xf8] sm:$0xff] %vm3596_vm4, %v5488_v0  ;;  %v17093_v0 = vld [vmem:[#allocation3 + $0x160] sm:$0xff]  ;;  %v6483_v5 = vld [vmem:[#allocation3 + $0x8] sm:$0xff] }
 0x39c   : > { %v5403_v18 = vpop.f32.mrf.mxu1  ;;  %7103 = vmatmul.mubr.bf16.gmra.mxu1 %v6773_v59  ;;  %v4617_v30 = vpop.f32.mrf.mxu0  ;;  %6273 = vmatmul.mubr.bf16.gmra.mxu0 %v5935_v23  ;;  %v4734_v63 = vld [vmem:[%s16377_s26 + $0x110] sm:$0xff]  ;;  %v6790_v23 = vrot.slane %v14318_v58, 1 }
 0x39d   : > { %v5489_v43 = vadd.f32 %v5403_v18, %v4732_v8  ;;  %7110 = vmatprep.mubr.bf16.mxu1 %v6779_v10  ;;  %4691 = vst.msk [vmem:[%s16377_s26 + $0x120] sm:$0xff] %vm3596_vm4, %v4617_v30  ;;  %6280 = vmatprep.mubr.bf16.mxu0 %v5941_v3  ;;  %v6484_v10 = vld [vmem:[#allocation3 + $0x80] sm:$0x11]  ;;  %v7285_v8 = vld [vmem:[#allocation3 + $0x48] sm:$0xff]  ;;  %v6785_v18 = vsel %vm3369_vm5, %v6780_v37, %v6784_v28 }
 0x39e   : > { %v5405_v31 = vpop.f32.mrf.mxu1  ;;  %v4619_v60 = vpop.f32.mrf.mxu0  ;;  %v13302_v30 = vcombine.high %v7285_v8, %v17093_v0  ;;  %v13251_v3 = vcombine.low %v6483_v5, %v6484_v10 }
 0x39f   : > { %5534 = vst.msk [vmem:[%s16377_s26 + $0x100] sm:$0xff] %vm3596_vm4, %v5489_v43  ;;  %v6791_v43 = vsel %vm3369_vm5, %v6786_v14, %v6790_v23  ;;  %v17133_v14 = vld [vmem:[#allocation3 + $0x128] ss:$-232 sps:$4 sm:$0xff]  }
 0x3a0   : > { %v5406_v6 = vpop.f32.mrf.mxu1  ;;  %v4620_v24 = vpop.f32.mrf.mxu0  ;;  %v4735_v57 = vld [vmem:[%s16377_s26 + $0x118] sm:$0xff] }
 0x3a1   : > { %v5490_v32 = vadd.f32 %v5406_v6, %v4733_v62  ;;  %4692 = vst.msk [vmem:[%s16377_s26 + $0x128] sm:$0xff] %vm3596_vm4, %v4620_v24  ;;  %v6788_v62 = vrot.slane %v13251_v3, 1 }
 0x3a2   : > { %v5408_v55 = vpop.f32.mrf.mxu1  ;;  %v4622_v53 = vpop.f32.mrf.mxu0 }
 0x3a3   : > { %5535 = vst.msk [vmem:[%s16377_s26 + $0x108] sm:$0xff] %vm3596_vm4, %v5490_v32  ;;  %v13301_v55 = vcombine.low %v7285_v8, %v17093_v0  ;;  %v7292_v8 = vld [vmem:[#allocation3 + $0x90] sm:$0xff] }
 0x3a4   : > { %v5411_v22 = vpop.f32.mrf.mxu1  ;;  %7111 = vmatmul.mubr.bf16.gmra.mxu1 %v6777_v36  ;;  %v4625_v47 = vpop.f32.mrf.mxu0  ;;  %6281 = vmatmul.mubr.bf16.gmra.mxu0 %v5939_v56  ;;  %v4736_v50 = vld [vmem:[%s16377_s26 + $0x120] sm:$0xff]  ;;  %v14328_v36 = vld [vmem:[%s19603_s3 + $0x338] sm:$0xff]   ;;  %v6789_v56 = vsel %vm3369_vm5, %v6784_v28, %v6788_v62 }
 0x3a5   : > { %v5491_v2 = vadd.f32 %v5411_v22, %v4734_v63  ;;  %7118 = vmatprep.mubr.bf16.mxu1 %v6783_v12  ;;  %4693 = vst.msk [vmem:[%s16377_s26 + $0x130] sm:$0xff] %vm3596_vm4, %v4625_v47  ;;  %6288 = vmatprep.mubr.bf16.mxu0 %v5945_v42  ;;  %v8037_v47 = vld [vmem:[#allocation3 + $0x48] sm:$0x88] }
 0x3a6   : > { %v5413_v20 = vpop.f32.mrf.mxu1  ;;  %v4627_v11 = vpop.f32.mrf.mxu0  ;;  %v13395_v58 = vcombine.low %v8037_v47, %v17093_v0  ;;  %v14343_v28 = vld [vmem:[%s19603_s3 + $0x320] sm:$0xff]  }
 0x3a7   : > { %5536 = vst.msk [vmem:[%s16377_s26 + $0x110] sm:$0xff] %vm3596_vm4, %v5491_v2  ;;  %v13396_v2 = vcombine.high %v8037_v47, %v17093_v0  ;;  %v14333_v20 = vld [vmem:[%s19603_s3 + $0x330] sm:$0xff]  }
 0x3a8   : > { %v5414_v9 = vpop.f32.mrf.mxu1  ;;  %v4628_v21 = vpop.f32.mrf.mxu0  ;;  %v4737_v46 = vld [vmem:[%s16377_s26 + $0x128] sm:$0xff] }
 0x3a9   : > { %v5492_v33 = vadd.f32 %v5414_v9, %v4735_v57  ;;  %4694 = vst.msk [vmem:[%s16377_s26 + $0x138] sm:$0xff] %vm3596_vm4, %v4628_v21  ;;  %v8304_v57 = vrot.slane %v17118_v1, 3 }
 0x3aa   : > { %v5416_v38 = vpop.f32.mrf.mxu1  ;;  %v4630_v39 = vpop.f32.mrf.mxu0 }
 0x3ab   : > { %5537 = vst.msk [vmem:[%s16377_s26 + $0x118] sm:$0xff] %vm3596_vm4, %v5492_v33  ;;  %v8303_v33 = vrot.slane %v13396_v2, 3  ;;  %v14338_v39 = vld [vmem:[%s19603_s3 + $0x328] sm:$0xff]  }
 0x3ac   : > { %v5419_v16 = vpop.f32.mrf.mxu1  ;;  %7119 = vmatmul.mubr.bf16.gmra.mxu1 %v6781_v19  ;;  %v4633_v52 = vpop.f32.mrf.mxu0  ;;  %6289 = vmatmul.mubr.bf16.gmra.mxu0 %v5943_v45  ;;  %v4738_v26 = vld [vmem:[%s16377_s26 + $0x130] sm:$0xff]  ;;  %v14342_v2 = vld [vmem:[%s19603_s3 + $0x3a8] sm:$0xff]  }
 0x3ad   : > { %v5493_v34 = vadd.f32 %v5419_v16, %v4736_v50  ;;  %7126 = vmatprep.mubr.bf16.mxu1 %v6787_v17  ;;  %4695 = vst.msk [vmem:[%s16377_s26 + $0x140] sm:$0xff] %vm3596_vm4, %v4633_v52  ;;  %6296 = vmatprep.mubr.bf16.mxu0 %v5944_v15  ;;  %v17140_v19 = vld [vmem:[#allocation3 + $0x17c] ss:$-112 sps:$4 sm:$0xff]   ;;  %v8305_v50 = vsel %vm5008_vm6, %v8303_v33, %v8304_v57 }
 0x3ae   : > { %v5421_v54 = vpop.f32.mrf.mxu1  ;;  %v4635_v49 = vpop.f32.mrf.mxu0  ;;  %v5547_v16 = vld [vmem:[%s16377_s26] sm:$0xff]  ;;  %v8308_v10 = vrot.slane %v17140_v19, 3 }
 0x3af   : > { %5538 = vst.msk [vmem:[%s16377_s26 + $0x120] sm:$0xff] %vm3596_vm4, %v5493_v34 }
 0x3b0   : > { %v5422_v35 = vpop.f32.mrf.mxu1  ;;  %v4636_v59 = vpop.f32.mrf.mxu0  ;;  %v4739_v6 = vld [vmem:[%s16377_s26 + $0x138] sm:$0xff] }
 0x3b1   : > { %v5494_v13 = vadd.f32 %v5422_v35, %v4737_v46  ;;  %4696 = vst.msk [vmem:[%s16377_s26 + $0x148] sm:$0xff] %vm3596_vm4, %v4636_v59  ;;  %v8301_v46 = vrot.slane %v17133_v14, 3  ;;  %v5548_v59 = vld [vmem:[%s16377_s26 + $0x8] sm:$0xff] }
 0x3b2   : > { %v5424_v4 = vpop.f32.mrf.mxu1  ;;  %v4638_v41 = vpop.f32.mrf.mxu0 }
 0x3b3   : > { %5539 = vst.msk [vmem:[%s16377_s26 + $0x128] sm:$0xff] %vm3596_vm4, %v5494_v13  ;;  %v14332_v41 = vld [vmem:[%s19603_s3 + $0x3b8] sm:$0xff]  }
 0x3b4   : > { %v5427_v27 = vpop.f32.mrf.mxu1  ;;  %7127 = vmatmul.mubr.bf16.gmra.mxu1 %v6785_v18  ;;  %v4641_v31 = vpop.f32.mrf.mxu0  ;;  %6297 = vmatmul.mubr.bf16.gmra.mxu0 %v5942_v48  ;;  %v4740_v40 = vld [vmem:[%s16377_s26 + $0x140] sm:$0xff] }
 0x3b5   : > { %v5495_v60 = vadd.f32 %v5427_v27, %v4738_v26  ;;  %7134 = vmatprep.mubr.bf16.mxu1 %v6791_v43  ;;  %4697 = vst.msk [vmem:[%s16377_s26 + $0x150] sm:$0xff] %vm3596_vm4, %v4641_v31  ;;  %7718 = vmatprep.mubr.bf16.mxu0 %v13302_v30  ;;  %v17164_v30 = vld [vmem:[#allocation3 + $0x178] ss:$-112 sps:$4 sm:$0xff]   ;;  %v7291_v27 = vld [vmem:[#allocation3 + $0x110] sm:$0xff] }
 0x3b6   : > { %v5429_v61 = vpop.f32.mrf.mxu1  ;;  %v4643_v29 = vpop.f32.mrf.mxu0  ;;  %v14348_v43 = vld [vmem:[%s19603_s3 + $0x318] sm:$0xff]   ;;  %v17197_v47 = vcombine.low %v7291_v27, %v7292_v8 }
 0x3b7   : > { %5540 = vst.msk [vmem:[%s16377_s26 + $0x130] sm:$0xff] %vm3596_vm4, %v5495_v60  ;;  %v8309_v61 = vsel %vm5008_vm6, %v8304_v57, %v8308_v10  ;;  %v5549_v29 = vld [vmem:[%s16377_s26 + $0x10] sm:$0xff] }
 0x3b8   : > { %v5430_v24 = vpop.f32.mrf.mxu1  ;;  %v4644_v51 = vpop.f32.mrf.mxu0  ;;  %v4741_v11 = vld [vmem:[%s16377_s26 + $0x148] sm:$0xff] }
 0x3b9   : > { %v5496_v15 = vadd.f32 %v5430_v24, %v4739_v6  ;;  %4698 = vst.msk [vmem:[%s16377_s26 + $0x158] sm:$0xff] %vm3596_vm4, %v4644_v51  ;;  %v17179_v6 = vcombine.high %v7291_v27, %v7292_v8  ;;  %v14357_v27 = vld [vmem:[%s19603_s3 + $0x390] sm:$0xff]  }
 0x3ba   : > { %v5432_v32 = vpop.f32.mrf.mxu1  ;;  %v4646_v53 = vpop.f32.mrf.mxu0 }
 0x3bb   : > { %5541 = vst.msk [vmem:[%s16377_s26 + $0x138] sm:$0xff] %vm3596_vm4, %v5496_v15  ;;  %v14334_v15 = vld [vmem:[%s19603_s3 + $0x3b0] sm:$0xff]   ;;  %v8306_v53 = vrot.slane %v17164_v30, 3 }
 0x3bc   : > { %v5435_v63 = vpop.f32.mrf.mxu1  ;;  %7135 = vmatmul.mubr.bf16.gmra.mxu1 %v6789_v56  ;;  %v4649_v22 = vpop.f32.mrf.mxu0  ;;  %7719 = vmatmul.mubr.bf16.vlgmr.msra.gmra.mxu0 %v13301_v55  ;;  %v4742_v45 = vld [vmem:[%s16377_s26 + $0x150] sm:$0xff] }
 0x3bd   : > { %v5497_v12 = vadd.f32 %v5435_v63, %v4740_v40  ;;  %7142 = vmatprep.mubr.bf16.mxu1 %v6790_v23  ;;  %4699 = vst.msk [vmem:[%s16377_s26 + $0x160] sm:$0xff] %vm3596_vm4, %v4649_v22  ;;  %7726 = vmatprep.mubr.bf16.mxu0 %v17118_v1  ;;  %v8300_v23 = vrot.slane %v13395_v58, 3  ;;  %v5550_v1 = vld [vmem:[%s16377_s26 + $0x18] sm:$0xff]  ;;  %v8312_v63 = vrot.slane %v17179_v6, 3 }
 0x3be   : > { %v5437_v42 = vpop.f32.mrf.mxu1  ;;  %v4651_v7 = vpop.f32.mrf.mxu0  ;;  %9379 = vmatpush1.bf16.msra.mxu0 %v14328_v36  ;;  %v14356_v36 = vld [vmem:[%s19603_s3 + $0x310] sm:$0xff]  }
 0x3bf   : > { %5542 = vst.msk [vmem:[%s16377_s26 + $0x140] sm:$0xff] %vm3596_vm4, %v5497_v12  ;;  %9380 = vmatprep.subr.bf16.mxu0 %v19660_v44  ;;  %v8302_v26 = vsel %vm5008_vm6, %v8300_v23, %v8301_v46  ;;  %v8313_v57 = vsel %vm5008_vm6, %v8308_v10, %v8312_v63  ;;  %v14368_v10 = vld [vmem:[%s19603_s3 + $0x378] sm:$0xff]  }
 0x3c0   : > { %v5438_v37 = vpop.f32.mrf.mxu1  ;;  %v4652_v48 = vpop.f32.mrf.mxu0  ;;  %v4743_v0 = vld [vmem:[%s16377_s26 + $0x158] sm:$0xff] }
 0x3c1   : > { %v5498_v9 = vadd.f32 %v5438_v37, %v4741_v11  ;;  %v17207_v11 = vld [vmem:[#allocation3 + $0x11c] ss:$48 sps:$4 sm:$0xff]   ;;  %v14358_v37 = vld [vmem:[%s19603_s3 + $0x308] sm:$0xff]  }
 0x3c2   : > { %v5440_v21 = vpop.f32.mrf.mxu1  ;;  %v4653_v38 = vpop.f32.mrf.mxu0  ;;  %9381 = vmatpush1.bf16.msra.mxu0 %v14333_v20  ;;  %v8307_v20 = vsel %vm5008_vm6, %v8301_v46, %v8306_v53  ;;  %v8316_v58 = vrot.slane %v17207_v11, 3 }
 0x3c3   : > { %5543 = vst.msk [vmem:[%s16377_s26 + $0x148] sm:$0xff] %vm3596_vm4, %v5498_v9  ;;  %9382 = vmatprep.subr.bf16.mxu0 %v19660_v44  ;;  %v5551_v9 = vld [vmem:[%s16377_s26 + $0x20] sm:$0xff] }
 0x3c4   : > { %v5443_v25 = vpop.f32.mrf.mxu1  ;;  %7143 = vmatmul.mubr.bf16.gmra.mxu1 %v6788_v62  ;;  %v6122_v17 = vpop.f32.mrf.mxu0  ;;  %7727 = vmatmul.mubr.bf16.gmra.mxu0 %v17133_v14  ;;  %v4744_v31 = vld [vmem:[%s16377_s26 + $0x160] sm:$0xff] }
 0x3c5   : > { %v5499_v52 = vadd.f32 %v5443_v25, %v4742_v45  ;;  %8564 = vmatprep.mubr.bf16.mxu1 %v8305_v50  ;;  %v6304_v34 = vadd.f32 %v6122_v17, %v5547_v16  ;;  %7734 = vmatprep.mubr.bf16.mxu0 %v17140_v19  ;;  %v14347_v45 = vld [vmem:[%s19603_s3 + $0x3a0] sm:$0xff]   ;;  %v8310_v25 = vrot.slane %v17197_v47, 3  ;;  %v5552_v17 = vld [vmem:[%s16377_s26 + $0x28] sm:$0xff] }
 0x3c6   : > { %v5445_v54 = vpop.f32.mrf.mxu1  ;;  %v6124_v49 = vpop.f32.mrf.mxu0  ;;  %9383 = vmatpush1.bf16.msra.mxu0 %v14338_v39  ;;  %v14363_v50 = vld [vmem:[%s19603_s3 + $0x300] sm:$0xff]  }
 0x3c7   : > { %5544 = vst.msk [vmem:[%s16377_s26 + $0x150] sm:$0xff] %vm3596_vm4, %v5499_v52  ;;  %6349 = vst.msk [vmem:[%s16377_s26] sm:$0xff] %vm3596_vm4, %v6304_v34  ;;  %9384 = vmatprep.subr.bf16.mxu0 %v19660_v44 }
 0x3c8   : > { %v5446_v35 = vpop.f32.mrf.mxu1  ;;  %v6125_v5 = vpop.f32.mrf.mxu0 }
 0x3c9   : > { %v5500_v13 = vadd.f32 %v5446_v35, %v4743_v0  ;;  %v6305_v4 = vadd.f32 %v6125_v5, %v5548_v59  ;;  %v14355_v35 = vld [vmem:[%s19603_s3 + $0x398] sm:$0xff]   ;;  %v8311_v59 = vsel %vm5008_vm6, %v8306_v53, %v8310_v25  ;;  %v14362_v53 = vld [vmem:[%s19603_s3 + $0x388] sm:$0xff]  }
 0x3ca   : > { %v5448_v18 = vpop.f32.mrf.mxu1  ;;  %v6127_v3 = vpop.f32.mrf.mxu0  ;;  %9385 = vmatpush1.bf16.msra.mxu0 %v14343_v28  ;;  %v17233_v28 = vld [vmem:[#allocation3 + $0x118] ss:$48 sps:$4 sm:$0xff]   ;;  %v17244_v5 = vld [vmem:[#allocation3 + $0x104] ss:$-168 sps:$4 sm:$0xff]  }
 0x3cb   : > { %5545 = vst.msk [vmem:[%s16377_s26 + $0x158] sm:$0xff] %vm3596_vm4, %v5500_v13  ;;  %6350 = vst.msk [vmem:[%s16377_s26 + $0x8] sm:$0xff] %vm3596_vm4, %v6305_v4  ;;  %9386 = vmatprep.subr.bf16.mxu0 %v19660_v44  ;;  %v8317_v13 = vsel %vm5008_vm6, %v8312_v63, %v8316_v58  ;;  %v5553_v4 = vld [vmem:[%s16377_s26 + $0x30] sm:$0xff] }
 0x3cc   : > { %v5451_v60 = vpop.f32.mrf.mxu1  ;;  %8565 = vmatmul.mubr.bf16.vlgmr.msra.gmra.mxu1 %v8302_v26  ;;  %v6130_v62 = vpop.f32.mrf.mxu0  ;;  %7735 = vmatmul.mubr.bf16.gmra.mxu0 %v17164_v30 }
 0x3cd   : > { %v5501_v24 = vadd.f32 %v5451_v60, %v4744_v31  ;;  %8572 = vmatprep.mubr.bf16.mxu1 %v8309_v61  ;;  %10225 = vmatpush1.bf16.msra.mxu1 %v14332_v41  ;;  %v6306_v51 = vadd.f32 %v6130_v62, %v5549_v29  ;;  %v14376_v31 = vld [vmem:[%s19603_s3 + $0x370] sm:$0xff]   ;;  %v5554_v61 = vld [vmem:[%s16377_s26 + $0x38] sm:$0xff]  ;;  %v8320_v62 = vrot.slane %v17244_v5, 3 }
 0x3ce   : > { %v5453_v32 = vpop.f32.mrf.mxu1  ;;  %7742 = vmatprep.mubr.bf16.mxu0 %v17179_v6  ;;  %v6132_v55 = vpop.f32.mrf.mxu0  ;;  %10226 = vmatprep.subr.bf16.mxu1 %v19660_v44  ;;  %v6394_v42 = vld [vmem:[%s16377_s26] sm:$0xff] }
 0x3cf   : > { %5546 = vst.msk [vmem:[%s16377_s26 + $0x160] sm:$0xff] %vm3596_vm4, %v5501_v24  ;;  %6351 = vst.msk [vmem:[%s16377_s26 + $0x10] sm:$0xff] %vm3596_vm4, %v6306_v51  ;;  %9387 = vmatpush1.bf16.msra.mxu0 %v14348_v43  ;;  %v8314_v43 = vrot.slane %v17233_v28, 3  ;;  %v8321_v63 = vsel %vm5008_vm6, %v8316_v58, %v8320_v62 }
 0x3d0   : > { %v5454_v56 = vpop.f32.mrf.mxu1  ;;  %v6133_v40 = vpop.f32.mrf.mxu0  ;;  %9388 = vmatprep.subr.bf16.mxu0 %v19660_v44 }
 0x3d1   : > { %v6307_v22 = vadd.f32 %v6133_v40, %v5550_v1  ;;  %10227 = vmatpush1.bf16.msra.mxu1 %v14334_v15  ;;  %v17271_v15 = vld [vmem:[#allocation3 + $0x100] ss:$-168 sps:$4 sm:$0xff]   ;;  %v17282_v56 = vld [vmem:[#allocation3 + $0xdc] ss:$168 sps:$4 sm:$0xff]  }
 0x3d2   : > { %v5455_v12 = vpop.f32.mrf.mxu1  ;;  %v6135_v7 = vpop.f32.mrf.mxu0  ;;  %10228 = vmatprep.subr.bf16.mxu1 %v19660_v44  ;;  %v6395_v39 = vld [vmem:[%s16377_s26 + $0x8] sm:$0xff] }
 0x3d3   : > { %6352 = vst.msk [vmem:[%s16377_s26 + $0x18] sm:$0xff] %vm3596_vm4, %v6307_v22  ;;  %9389 = vmatpush1.bf16.msra.mxu0 %v14356_v36  ;;  %v8315_v36 = vsel %vm5008_vm6, %v8310_v25, %v8314_v43  ;;  %v14381_v1 = vld [vmem:[%s19603_s3 + $0x368] sm:$0xff]   ;;  %v5555_v22 = vld [vmem:[%s16377_s26 + $0x40] sm:$0xff] }
 0x3d4   : > { %v6968_v48 = vpop.f32.mrf.mxu1  ;;  %8573 = vmatmul.mubr.bf16.gmra.mxu1 %v8307_v20  ;;  %v6138_v21 = vpop.f32.mrf.mxu0  ;;  %7743 = vmatmul.mubr.bf16.gmra.mxu0 %v17197_v47 }
 0x3d5   : > { %v7150_v14 = vadd.f32 %v6968_v48, %v6394_v42  ;;  %8580 = vmatprep.mubr.bf16.mxu1 %v8313_v57  ;;  %v6308_v33 = vadd.f32 %v6138_v21, %v5551_v9  ;;  %7750 = vmatprep.mubr.bf16.mxu0 %v17207_v11  ;;  %v14367_v11 = vld [vmem:[%s19603_s3 + $0x380] sm:$0xff]   ;;  %v5556_v9 = vld [vmem:[%s16377_s26 + $0x48] sm:$0xff] }
 0x3d6   : > { %v6970_v38 = vpop.f32.mrf.mxu1  ;;  %v6140_v19 = vpop.f32.mrf.mxu0  ;;  %10229 = vmatpush1.bf16.msra.mxu1 %v14342_v2  ;;  %9390 = vmatprep.subr.bf16.mxu0 %v19660_v44  ;;  %v6396_v46 = vld [vmem:[%s16377_s26 + $0x10] sm:$0xff]  ;;  %v14386_v48 = vld [vmem:[%s19603_s3 + $0x360] sm:$0xff]  }
 0x3d7   : > { %7195 = vst.msk [vmem:[%s16377_s26] sm:$0xff] %vm3596_vm4, %v7150_v14  ;;  %6353 = vst.msk [vmem:[%s16377_s26 + $0x20] sm:$0xff] %vm3596_vm4, %v6308_v33  ;;  %10230 = vmatprep.subr.bf16.mxu1 %v19660_v44  ;;  %9391 = vmatpush1.bf16.msra.mxu0 %v14358_v37  ;;  %v8318_v37 = vrot.slane %v17271_v15, 3  ;;  %v8324_v14 = vrot.slane %v17282_v56, 3  ;;  %v17309_v19 = vld [vmem:[#allocation3 + $0xd8] ss:$168 sps:$4 sm:$0xff]  }
 0x3d8   : > { %v6971_v16 = vpop.f32.mrf.mxu1  ;;  %v6141_v52 = vpop.f32.mrf.mxu0  ;;  %9392 = vmatprep.subr.bf16.mxu0 %v19660_v44 }
 0x3d9   : > { %v7151_v34 = vadd.f32 %v6971_v16, %v6395_v39  ;;  %v6309_v54 = vadd.f32 %v6141_v52, %v5552_v17  ;;  %v8319_v16 = vsel %vm5008_vm6, %v8314_v43, %v8318_v37  ;;  %v17320_v17 = vld [vmem:[#allocation3 + $0x134] ss:$8 sps:$4 sm:$0xff]   ;;  %v14391_v52 = vld [vmem:[%s19603_s3 + $0x358] sm:$0xff]  }
 0x3da   : > { %v6973_v49 = vpop.f32.mrf.mxu1  ;;  %v6143_v0 = vpop.f32.mrf.mxu0  ;;  %10231 = vmatpush1.bf16.msra.mxu1 %v14347_v45  ;;  %v6397_v3 = vld [vmem:[%s16377_s26 + $0x18] sm:$0xff] }
 0x3db   : > { %7196 = vst.msk [vmem:[%s16377_s26 + $0x8] sm:$0xff] %vm3596_vm4, %v7151_v34  ;;  %6354 = vst.msk [vmem:[%s16377_s26 + $0x28] sm:$0xff] %vm3596_vm4, %v6309_v54  ;;  %10232 = vmatprep.subr.bf16.mxu1 %v19660_v44  ;;  %9393 = vmatpush1.bf16.msra.mxu0 %v14363_v50  ;;  %v14372_v50 = vld [vmem:[%s19603_s3 + $0x3f8] sm:$0xff]   ;;  %v8325_v34 = vsel %vm5008_vm6, %v8320_v62, %v8324_v14  ;;  %v5557_v54 = vld [vmem:[%s16377_s26 + $0x50] sm:$0xff] }
 0x3dc   : > { %v6976_v23 = vpop.f32.mrf.mxu1  ;;  %8581 = vmatmul.mubr.bf16.gmra.mxu1 %v8311_v59  ;;  %v6146_v41 = vpop.f32.mrf.mxu0  ;;  %7751 = vmatmul.mubr.bf16.gmra.mxu0 %v17233_v28 }
 0x3dd   : > { %v7152_v8 = vadd.f32 %v6976_v23, %v6396_v46  ;;  %8588 = vmatprep.mubr.bf16.mxu1 %v8317_v13  ;;  %v6310_v18 = vadd.f32 %v6146_v41, %v5553_v4  ;;  %7758 = vmatprep.mubr.bf16.mxu0 %v17244_v5  ;;  %v14380_v5 = vld [vmem:[%s19603_s3 + $0x3f0] sm:$0xff]   ;;  %v5558_v4 = vld [vmem:[%s16377_s26 + $0x58] sm:$0xff] }
 0x3de   : > { %v6978_v30 = vpop.f32.mrf.mxu1  ;;  %v6148_v26 = vpop.f32.mrf.mxu0  ;;  %10233 = vmatpush1.bf16.msra.mxu1 %v14355_v35  ;;  %9394 = vmatprep.subr.bf16.mxu0 %v19660_v44  ;;  %v6398_v32 = vld [vmem:[%s16377_s26 + $0x20] sm:$0xff]  ;;  %v14396_v23 = vld [vmem:[%s19603_s3 + $0x350] sm:$0xff]  }
 0x3df   : > { %7197 = vst.msk [vmem:[%s16377_s26 + $0x10] sm:$0xff] %vm3596_vm4, %v7152_v8  ;;  %6355 = vst.msk [vmem:[%s16377_s26 + $0x30] sm:$0xff] %vm3596_vm4, %v6310_v18  ;;  %10234 = vmatprep.subr.bf16.mxu1 %v19660_v44  ;;  %9395 = vmatpush2.bf16.msra.mxu0 %v14368_v10  ;;  %v8322_v10 = vrot.slane %v17309_v19, 3  ;;  %v8328_v8 = vrot.slane %v17320_v17, 3  ;;  %v17347_v26 = vld [vmem:[#allocation3 + $0x130] ss:$8 sps:$4 sm:$0xff]  }
 0x3e0   : > { %v6979_v60 = vpop.f32.mrf.mxu1  ;;  %v6149_v29 = vpop.f32.mrf.mxu0  ;;  %9396 = vmatprep.subr.bf16.mxu0 %v19660_v44 }
 0x3e1   : > { %v7153_v6 = vadd.f32 %v6979_v60, %v6397_v3  ;;  %v6311_v24 = vadd.f32 %v6149_v29, %v5554_v61  ;;  %v8323_v60 = vsel %vm5008_vm6, %v8318_v37, %v8322_v10  ;;  %v17360_v61 = vld [vmem:[#allocation3 + $0x7c] ss:$40 sps:$4 sm:$0xff]   ;;  %v14401_v29 = vld [vmem:[%s19603_s3 + $0x348] sm:$0xff]  }
 0x3e2   : > { %v6981_v51 = vpop.f32.mrf.mxu1  ;;  %v6151_v55 = vpop.f32.mrf.mxu0  ;;  %10235 = vmatpush1.bf16.msra.mxu1 %v14357_v27  ;;  %v6399_v2 = vld [vmem:[%s16377_s26 + $0x28] sm:$0xff] }
 0x3e3   : > { %7198 = vst.msk [vmem:[%s16377_s26 + $0x18] sm:$0xff] %vm3596_vm4, %v7153_v6  ;;  %6356 = vst.msk [vmem:[%s16377_s26 + $0x38] sm:$0xff] %vm3596_vm4, %v6311_v24  ;;  %10236 = vmatprep.subr.bf16.mxu1 %v19660_v44  ;;  %9397 = vmatpush2.bf16.msra.mxu0 %v14376_v31  ;;  %v14385_v31 = vld [vmem:[%s19603_s3 + $0x3e8] sm:$0xff]   ;;  %v8329_v6 = vsel %vm5008_vm6, %v8324_v14, %v8328_v8  ;;  %v5559_v24 = vld [vmem:[%s16377_s26 + $0x60] sm:$0xff] }
 0x3e4   : > { %v6984_v40 = vpop.f32.mrf.mxu1  ;;  %8589 = vmatmul.mubr.bf16.gmra.mxu1 %v8315_v36  ;;  %v6154_v12 = vpop.f32.mrf.mxu0  ;;  %7759 = vmatmul.mubr.bf16.gmra.mxu0 %v17271_v15 }
 0x3e5   : > { %v7154_v47 = vadd.f32 %v6984_v40, %v6398_v32  ;;  %8596 = vmatprep.mubr.bf16.mxu1 %v8321_v63  ;;  %v6312_v42 = vadd.f32 %v6154_v12, %v5555_v22  ;;  %7766 = vmatprep.mubr.bf16.mxu0 %v17282_v56  ;;  %v14390_v56 = vld [vmem:[%s19603_s3 + $0x3e0] sm:$0xff]   ;;  %v5560_v22 = vld [vmem:[%s16377_s26 + $0x68] sm:$0xff] }
 0x3e6   : > { %v6986_v7 = vpop.f32.mrf.mxu1  ;;  %v6156_v20 = vpop.f32.mrf.mxu0  ;;  %10237 = vmatpush1.bf16.msra.mxu1 %v14362_v53  ;;  %9398 = vmatprep.subr.bf16.mxu0 %v19660_v44  ;;  %v6400_v45 = vld [vmem:[%s16377_s26 + $0x30] sm:$0xff]  ;;  %v14405_v40 = vld [vmem:[%s19603_s3 + $0x340] sm:$0xff]  }
 0x3e7   : > { %7199 = vst.msk [vmem:[%s16377_s26 + $0x20] sm:$0xff] %vm3596_vm4, %v7154_v47  ;;  %6357 = vst.msk [vmem:[%s16377_s26 + $0x40] sm:$0xff] %vm3596_vm4, %v6312_v42  ;;  %10238 = vmatprep.subr.bf16.mxu1 %v19660_v44  ;;  %9399 = vmatpush2.bf16.msra.mxu0 %v14381_v1  ;;  %v8326_v1 = vrot.slane %v17347_v26, 3  ;;  %v8332_v47 = vrot.slane %v17360_v61, 3  ;;  %v7304_v42 = vld [vmem:[#allocation3 + $0x20] sm:$0xff] }
 0x3e8   : > { %v6987_v57 = vpop.f32.mrf.mxu1  ;;  %v6157_v21 = vpop.f32.mrf.mxu0  ;;  %9400 = vmatprep.subr.bf16.mxu0 %v19660_v44 }
 0x3e9   : > { %v7155_v33 = vadd.f32 %v6987_v57, %v6399_v2  ;;  %v6313_v38 = vadd.f32 %v6157_v21, %v5556_v9  ;;  %v17389_v2 = vld [vmem:[#allocation3 + $0x78] ss:$40 sps:$4 sm:$0xff]   ;;  %v14395_v9 = vld [vmem:[%s19603_s3 + $0x3d8] sm:$0xff]   ;;  %v8327_v21 = vsel %vm5008_vm6, %v8322_v10, %v8326_v1 }
 0x3ea   : > { %v6989_v39 = vpop.f32.mrf.mxu1  ;;  %v6159_v25 = vpop.f32.mrf.mxu0  ;;  %10239 = vmatpush1.bf16.msra.mxu1 %v14367_v11  ;;  %v6401_v35 = vld [vmem:[%s16377_s26 + $0x38] sm:$0xff] }
 0x3eb   : > { %7200 = vst.msk [vmem:[%s16377_s26 + $0x28] sm:$0xff] %vm3596_vm4, %v7155_v33  ;;  %6358 = vst.msk [vmem:[%s16377_s26 + $0x48] sm:$0xff] %vm3596_vm4, %v6313_v38  ;;  %10240 = vmatprep.subr.bf16.mxu1 %v19660_v44  ;;  %9401 = vmatpush2.bf16.msra.mxu0 %v14386_v48  ;;  %v7303_v57 = vld [vmem:[#allocation3] sm:$0xff]  ;;  %v8333_v38 = vsel %vm5008_vm6, %v8328_v8, %v8332_v47 }
 0x3ec   : > { %v6992_v58 = vpop.f32.mrf.mxu1  ;;  %8597 = vmatmul.mubr.bf16.gmra.mxu1 %v8319_v16  ;;  %v6162_v49 = vpop.f32.mrf.mxu0  ;;  %7767 = vmatmul.mubr.bf16.gmra.mxu0 %v17309_v19  ;;  %v17402_v14 = vcombine.high %v7303_v57, %v7304_v42  ;;  %v5561_v39 = vld [vmem:[%s16377_s26 + $0x70] sm:$0xff] }
 0x3ed   : > { %v7156_v28 = vadd.f32 %v6992_v58, %v6400_v45  ;;  %8604 = vmatprep.mubr.bf16.mxu1 %v8325_v34  ;;  %v6314_v46 = vadd.f32 %v6162_v49, %v5557_v54  ;;  %7774 = vmatprep.mubr.bf16.mxu0 %v17320_v17  ;;  %v14400_v17 = vld [vmem:[%s19603_s3 + $0x3d0] sm:$0xff]   ;;  %v8330_v58 = vrot.slane %v17389_v2, 3  ;;  %v5562_v54 = vld [vmem:[%s16377_s26 + $0x78] sm:$0xff] }
 0x3ee   : > { %v6994_v0 = vpop.f32.mrf.mxu1  ;;  %v6164_v59 = vpop.f32.mrf.mxu0  ;;  %10241 = vmatpush2.bf16.msra.mxu1 %v14372_v50  ;;  %9402 = vmatprep.subr.bf16.mxu0 %v19660_v44  ;;  %v6402_v27 = vld [vmem:[%s16377_s26 + $0x40] sm:$0xff] }
 0x3ef   : > { %7201 = vst.msk [vmem:[%s16377_s26 + $0x30] sm:$0xff] %vm3596_vm4, %v7156_v28  ;;  %6359 = vst.msk [vmem:[%s16377_s26 + $0x50] sm:$0xff] %vm3596_vm4, %v6314_v46  ;;  %10242 = vmatprep.subr.bf16.mxu1 %v19660_v44  ;;  %9403 = vmatpush2.bf16.msra.mxu0 %v14391_v52  ;;  %v8336_v28 = vrot.slane %v17402_v14, 3  ;;  %v17424_v59 = vcombine.low %v7303_v57, %v7304_v42 }
 0x3f0   : > { %v6995_v13 = vpop.f32.mrf.mxu1  ;;  %v6165_v41 = vpop.f32.mrf.mxu0  ;;  %9404 = vmatprep.subr.bf16.mxu0 %v19660_v44 }
 0x3f1   : > { %v7157_v18 = vadd.f32 %v6995_v13, %v6401_v35  ;;  %v6315_v30 = vadd.f32 %v6165_v41, %v5558_v4  ;;  %v8331_v13 = vsel %vm5008_vm6, %v8326_v1, %v8330_v58  ;;  %v17435_v4 = vld [vmem:[#allocation3 + $0xe4] ss:$16 sps:$4 sm:$0xff]   ;;  %v8337_v8 = vsel %vm5008_vm6, %v8332_v47, %v8336_v28  ;;  %v7307_v1 = vld [vmem:[#allocation3 + $0x188] sm:$0xff]  ;;  %v5565_v47 = vld [vmem:[%s16377_s26 + $0x90] sm:$0xff] }
 0x3f2   : > { %v6997_v3 = vpop.f32.mrf.mxu1  ;;  %v6167_v43 = vpop.f32.mrf.mxu0  ;;  %10243 = vmatpush2.bf16.msra.mxu1 %v14380_v5  ;;  %v6403_v53 = vld [vmem:[%s16377_s26 + $0x48] sm:$0xff] }
 0x3f3   : > { %7202 = vst.msk [vmem:[%s16377_s26 + $0x38] sm:$0xff] %vm3596_vm4, %v7157_v18  ;;  %6360 = vst.msk [vmem:[%s16377_s26 + $0x58] sm:$0xff] %vm3596_vm4, %v6315_v30  ;;  %10244 = vmatprep.subr.bf16.mxu1 %v19660_v44  ;;  %9405 = vmatpush2.bf16.msra.mxu0 %v14396_v23  ;;  %v14404_v23 = vld [vmem:[%s19603_s3 + $0x3c8] sm:$0xff]   ;;  %v5563_v18 = vld [vmem:[%s16377_s26 + $0x80] sm:$0xff] }
 0x3f4   : > { %v7000_v62 = vpop.f32.mrf.mxu1  ;;  %8605 = vmatmul.mubr.bf16.gmra.mxu1 %v8323_v60  ;;  %v6170_v51 = vpop.f32.mrf.mxu0  ;;  %7775 = vmatmul.mubr.bf16.gmra.mxu0 %v17347_v26  ;;  %v14412_v60 = vld [vmem:[%s19603_s3 + $0x3c0] sm:$0xff]  }
 0x3f5   : > { %v7158_v15 = vadd.f32 %v7000_v62, %v6402_v27  ;;  %8612 = vmatprep.mubr.bf16.mxu1 %v8329_v6  ;;  %v6316_v32 = vadd.f32 %v6170_v51, %v5559_v24  ;;  %7782 = vmatprep.mubr.bf16.mxu0 %v17360_v61  ;;  %v8334_v61 = vrot.slane %v17424_v59, 3  ;;  %v5564_v62 = vld [vmem:[%s16377_s26 + $0x88] sm:$0xff]  ;;  %v8340_v24 = vrot.slane %v17435_v4, 3  ;;  %v7308_v51 = vld [vmem:[#allocation3 + $0xa8] sm:$0xff] }
 0x3f6   : > { %v7002_v55 = vpop.f32.mrf.mxu1  ;;  %v6172_v36 = vpop.f32.mrf.mxu0  ;;  %10245 = vmatpush2.bf16.msra.mxu1 %v14385_v31  ;;  %9406 = vmatprep.subr.bf16.mxu0 %v19660_v44  ;;  %v6404_v37 = vld [vmem:[%s16377_s26 + $0x50] sm:$0xff] }
 0x3f7   : > { %7203 = vst.msk [vmem:[%s16377_s26 + $0x40] sm:$0xff] %vm3596_vm4, %v7158_v15  ;;  %6361 = vst.msk [vmem:[%s16377_s26 + $0x60] sm:$0xff] %vm3596_vm4, %v6316_v32  ;;  %10246 = vmatprep.subr.bf16.mxu1 %v19660_v44  ;;  %9407 = vmatpush2.bf16.msra.mxu0 %v14401_v29 }
 0x3f8   : > { %v7003_v63 = vpop.f32.mrf.mxu1  ;;  %v6173_v12 = vpop.f32.mrf.mxu0  ;;  %9408 = vmatprep.subr.bf16.mxu0 %v19660_v44 }
 0x3f9   : > { %v7159_v7 = vadd.f32 %v7003_v63, %v6403_v53  ;;  %v6317_v20 = vadd.f32 %v6173_v12, %v5560_v22  ;;  %v17454_v53 = vld [vmem:[#allocation3 + $0xe0] ss:$16 sps:$4 sm:$0xff]   ;;  %v17462_v63 = vcombine.high %v7307_v1, %v7308_v51  ;;  %v8341_v12 = vsel %vm5008_vm6, %v8336_v28, %v8340_v24 }
 0x3fa   : > { %v7005_v11 = vpop.f32.mrf.mxu1  ;;  %v6175_v48 = vpop.f32.mrf.mxu0  ;;  %10247 = vmatpush2.bf16.msra.mxu1 %v14390_v56  ;;  %v6405_v16 = vld [vmem:[%s16377_s26 + $0x58] sm:$0xff] }
 0x3fb   : > { %7204 = vst.msk [vmem:[%s16377_s26 + $0x48] sm:$0xff] %vm3596_vm4, %v7159_v7  ;;  %6362 = vst.msk [vmem:[%s16377_s26 + $0x68] sm:$0xff] %vm3596_vm4, %v6317_v20  ;;  %10248 = vmatprep.subr.bf16.mxu1 %v19660_v44  ;;  %9409 = vmatpush2.bf16.msra.mxu0 %v14405_v40  ;;  %v8335_v40 = vsel %vm5008_vm6, %v8330_v58, %v8334_v61  ;;  %v8338_v48 = vrot.slane %v17454_v53, 3  ;;  %v5567_v58 = vld [vmem:[%s16377_s26 + $0xa0] sm:$0xff] }
 0x3fc   : > { %v7008_v33 = vpop.f32.mrf.mxu1  ;;  %8613 = vmatmul.mubr.bf16.gmra.mxu1 %v8327_v21  ;;  %v6178_v19 = vpop.f32.mrf.mxu0  ;;  %7783 = vmatmul.mubr.bf16.gmra.mxu0 %v17389_v2 }
 0x3fd   : > { %v7160_v45 = vadd.f32 %v7008_v33, %v6404_v37  ;;  %8620 = vmatprep.mubr.bf16.mxu1 %v8333_v38  ;;  %v6318_v25 = vadd.f32 %v6178_v19, %v5561_v39  ;;  %7790 = vmatprep.mubr.bf16.mxu0 %v17402_v14  ;;  %v8344_v14 = vrot.slane %v17462_v63, 3  ;;  %v17477_v19 = vcombine.low %v7307_v1, %v7308_v51 }
 0x3fe   : > { %v7010_v50 = vpop.f32.mrf.mxu1  ;;  %v6180_v52 = vpop.f32.mrf.mxu0  ;;  %10249 = vmatpush2.bf16.msra.mxu1 %v14395_v9  ;;  %10976 = vmatprep.subr.bf16.mxu0 %v19660_v44  ;;  %v6406_v5 = vld [vmem:[%s16377_s26 + $0x60] sm:$0xff]  ;;  %v5566_v9 = vld [vmem:[%s16377_s26 + $0x98] sm:$0xff] }
 0x3ff   : > { %7205 = vst.msk [vmem:[%s16377_s26 + $0x50] sm:$0xff] %vm3596_vm4, %v7160_v45  ;;  %6363 = vst.msk [vmem:[%s16377_s26 + $0x70] sm:$0xff] %vm3596_vm4, %v6318_v25  ;;  %10250 = vmatprep.subr.bf16.mxu1 %v19660_v44  ;;  %v8339_v50 = vsel %vm5008_vm6, %v8334_v61, %v8338_v48 }
 0x400   : > { %v7011_v34 = vpop.f32.mrf.mxu1  ;;  %v6181_v49 = vpop.f32.mrf.mxu0 }
 0x401   : > { %v7161_v46 = vadd.f32 %v7011_v34, %v6405_v16  ;;  %v6319_v0 = vadd.f32 %v6181_v49, %v5562_v54  ;;  %v17485_v16 = vld [vmem:[#allocation3 + $0x8c] ss:$48 sps:$4 sm:$0xff]  }
 0x402   : > { %v7013_v35 = vpop.f32.mrf.mxu1  ;;  %v6183_v10 = vpop.f32.mrf.mxu0  ;;  %10251 = vmatpush2.bf16.msra.mxu1 %v14400_v17  ;;  %v6407_v43 = vld [vmem:[%s16377_s26 + $0x68] sm:$0xff]  ;;  %v8345_v17 = vsel %vm5008_vm6, %v8340_v24, %v8344_v14 }
 0x403   : > { %7206 = vst.msk [vmem:[%s16377_s26 + $0x58] sm:$0xff] %vm3596_vm4, %v7161_v46  ;;  %6364 = vst.msk [vmem:[%s16377_s26 + $0x78] sm:$0xff] %vm3596_vm4, %v6319_v0  ;;  %10252 = vmatprep.subr.bf16.mxu1 %v19660_v44  ;;  %v8342_v35 = vrot.slane %v17477_v19, 3 }
 0x404   : > { %v7016_v41 = vpop.f32.mrf.mxu1  ;;  %8621 = vmatmul.mubr.bf16.gmra.mxu1 %v8331_v13  ;;  %v6186_v30 = vpop.f32.mrf.mxu0  ;;  %7791 = vmatmul.mubr.bf16.gmra.mxu0 %v17424_v59 }
 0x405   : > { %v7162_v3 = vadd.f32 %v7016_v41, %v6406_v5  ;;  %8628 = vmatprep.mubr.bf16.mxu1 %v8337_v8  ;;  %v6320_v26 = vadd.f32 %v6186_v30, %v5563_v18  ;;  %7798 = vmatprep.mubr.bf16.mxu0 %v17435_v4  ;;  %v5568_v5 = vld [vmem:[%s16377_s26 + $0xa8] sm:$0xff] }
 0x406   : > { %v7018_v27 = vpop.f32.mrf.mxu1  ;;  %v6188_v31 = vpop.f32.mrf.mxu0  ;;  %10253 = vmatpush2.bf16.msra.mxu1 %v14404_v23  ;;  %v6408_v36 = vld [vmem:[%s16377_s26 + $0x70] sm:$0xff]  ;;  %v8348_v23 = vrot.slane %v17485_v16, 3  ;;  %v17499_v8 = vld [vmem:[#allocation3 + $0x88] ss:$48 sps:$4 sm:$0xff]  }
 0x407   : > { %7207 = vst.msk [vmem:[%s16377_s26 + $0x60] sm:$0xff] %vm3596_vm4, %v7162_v3  ;;  %6365 = vst.msk [vmem:[%s16377_s26 + $0x80] sm:$0xff] %vm3596_vm4, %v6320_v26  ;;  %10254 = vmatprep.subr.bf16.mxu1 %v19660_v44  ;;  %v8343_v3 = vsel %vm5008_vm6, %v8338_v48, %v8342_v35  ;;  %v17507_v26 = vld [vmem:[#allocation3 + $0x174] ss:$-176 sps:$4 sm:$0xff]   ;;  %v5569_v31 = vld [vmem:[%s16377_s26 + $0xb0] sm:$0xff]  ;;  %v8346_v51 = vrot.slane %v17499_v8, 3 }
 0x408   : > { %v7019_v29 = vpop.f32.mrf.mxu1  ;;  %v6189_v6 = vpop.f32.mrf.mxu0 }
 0x409   : > { %v7163_v15 = vadd.f32 %v7019_v29, %v6407_v43  ;;  %v6321_v32 = vadd.f32 %v6189_v6, %v5564_v62  ;;  %v8349_v43 = vsel %vm5008_vm6, %v8344_v14, %v8348_v23 }
 0x40a   : > { %v7021_v55 = vpop.f32.mrf.mxu1  ;;  %v6191_v56 = vpop.f32.mrf.mxu0  ;;  %10255 = vmatpush2.bf16.msra.mxu1 %v14412_v60  ;;  %v6409_v11 = vld [vmem:[%s16377_s26 + $0x78] sm:$0xff] }
 0x40b   : > { %7208 = vst.msk [vmem:[%s16377_s26 + $0x68] sm:$0xff] %vm3596_vm4, %v7163_v15  ;;  %6366 = vst.msk [vmem:[%s16377_s26 + $0x88] sm:$0xff] %vm3596_vm4, %v6321_v32  ;;  %11822 = vmatprep.subr.bf16.mxu1 %v19660_v44  ;;  %v5570_v32 = vld [vmem:[%s16377_s26 + $0xb8] sm:$0xff] }
 0x40c   : > { %v7024_v22 = vpop.f32.mrf.mxu1  ;;  %8629 = vmatmul.mubr.bf16.gmra.mxu1 %v8335_v40  ;;  %v6194_v42 = vpop.f32.mrf.mxu0  ;;  %7799 = vmatmul.mubr.bf16.gmra.mxu0 %v17454_v53  ;;  %v8352_v53 = vrot.slane %v17507_v26, 3  ;;  %v17521_v40 = vld [vmem:[#allocation3 + $0x170] ss:$-176 sps:$4 sm:$0xff]  }
 0x40d   : > { %v7164_v7 = vadd.f32 %v7024_v22, %v6408_v36  ;;  %8636 = vmatprep.mubr.bf16.mxu1 %v8341_v12  ;;  %v6322_v2 = vadd.f32 %v6194_v42, %v5565_v47  ;;  %7806 = vmatprep.mubr.bf16.mxu0 %v17462_v63  ;;  %v8347_v12 = vsel %vm5008_vm6, %v8342_v35, %v8346_v51  ;;  %v17529_v47 = vld [vmem:[#allocation3 + $0x144] ss:$-240 sps:$4 sm:$0xff]  }
 0x40e   : > { %v7026_v20 = vpop.f32.mrf.mxu1  ;;  %v6196_v37 = vpop.f32.mrf.mxu0  ;;  %v6410_v45 = vld [vmem:[%s16377_s26 + $0x80] sm:$0xff] }
 0x40f   : > { %7209 = vst.msk [vmem:[%s16377_s26 + $0x70] sm:$0xff] %vm3596_vm4, %v7164_v7  ;;  %6367 = vst.msk [vmem:[%s16377_s26 + $0x90] sm:$0xff] %vm3596_vm4, %v6322_v2  ;;  %v8353_v7 = vsel %vm5008_vm6, %v8348_v23, %v8352_v53  ;;  %v5571_v2 = vld [vmem:[%s16377_s26 + $0xc0] sm:$0xff] }
 0x410   : > { %v7027_v57 = vpop.f32.mrf.mxu1  ;;  %v6197_v21 = vpop.f32.mrf.mxu0 }
 0x411   : > { %v7165_v33 = vadd.f32 %v7027_v57, %v6409_v11  ;;  %v6323_v38 = vadd.f32 %v6197_v21, %v5566_v9  ;;  %v8350_v21 = vrot.slane %v17521_v40, 3 }
 0x412   : > { %v7029_v39 = vpop.f32.mrf.mxu1  ;;  %v6199_v25 = vpop.f32.mrf.mxu0  ;;  %v6411_v46 = vld [vmem:[%s16377_s26 + $0x88] sm:$0xff] }
 0x413   : > { %7210 = vst.msk [vmem:[%s16377_s26 + $0x78] sm:$0xff] %vm3596_vm4, %v7165_v33  ;;  %6368 = vst.msk [vmem:[%s16377_s26 + $0x98] sm:$0xff] %vm3596_vm4, %v6323_v38  ;;  %v5572_v33 = vld [vmem:[%s16377_s26 + $0xc8] sm:$0xff]  ;;  %v8356_v39 = vrot.slane %v17529_v47, 3 }
 0x414   : > { %v7032_v52 = vpop.f32.mrf.mxu1  ;;  %8637 = vmatmul.mubr.bf16.gmra.mxu1 %v8339_v50  ;;  %v6202_v34 = vpop.f32.mrf.mxu0  ;;  %7807 = vmatmul.mubr.bf16.gmra.mxu0 %v17477_v19  ;;  %v17543_v50 = vld [vmem:[#allocation3 + $0x140] ss:$-240 sps:$4 sm:$0xff]  }
 0x415   : > { %v7166_v54 = vadd.f32 %v7032_v52, %v6410_v45  ;;  %8644 = vmatprep.mubr.bf16.mxu1 %v8345_v17  ;;  %v6324_v49 = vadd.f32 %v6202_v34, %v5567_v58  ;;  %7814 = vmatprep.mubr.bf16.mxu0 %v17485_v16  ;;  %v8351_v17 = vsel %vm5008_vm6, %v8346_v51, %v8350_v21  ;;  %v17551_v58 = vld [vmem:[#allocation3 + $0x16c] ss:$40 sps:$4 sm:$0xff]  }
 0x416   : > { %v7034_v28 = vpop.f32.mrf.mxu1  ;;  %v6204_v0 = vpop.f32.mrf.mxu0  ;;  %v6412_v18 = vld [vmem:[%s16377_s26 + $0x90] sm:$0xff] }
 0x417   : > { %7211 = vst.msk [vmem:[%s16377_s26 + $0x80] sm:$0xff] %vm3596_vm4, %v7166_v54  ;;  %6369 = vst.msk [vmem:[%s16377_s26 + $0xa0] sm:$0xff] %vm3596_vm4, %v6324_v49  ;;  %v8357_v54 = vsel %vm5008_vm6, %v8352_v53, %v8356_v39  ;;  %v5573_v49 = vld [vmem:[%s16377_s26 + $0xd0] sm:$0xff] }
 0x418   : > { %v7035_v59 = vpop.f32.mrf.mxu1  ;;  %v6205_v10 = vpop.f32.mrf.mxu0 }
 0x419   : > { %v7167_v13 = vadd.f32 %v7035_v59, %v6411_v46  ;;  %v6325_v4 = vadd.f32 %v6205_v10, %v5568_v5  ;;  %v8354_v10 = vrot.slane %v17543_v50, 3 }
 0x41a   : > { %v7037_v41 = vpop.f32.mrf.mxu1  ;;  %v6207_v30 = vpop.f32.mrf.mxu0  ;;  %v6413_v6 = vld [vmem:[%s16377_s26 + $0x98] sm:$0xff] }
 0x41b   : > { %7212 = vst.msk [vmem:[%s16377_s26 + $0x88] sm:$0xff] %vm3596_vm4, %v7167_v13  ;;  %6370 = vst.msk [vmem:[%s16377_s26 + $0xa8] sm:$0xff] %vm3596_vm4, %v6325_v4  ;;  %v5574_v13 = vld [vmem:[%s16377_s26 + $0xd8] sm:$0xff]  ;;  %v8360_v41 = vrot.slane %v17551_v58, 3 }
 0x41c   : > { %v7040_v27 = vpop.f32.mrf.mxu1  ;;  %8645 = vmatmul.mubr.bf16.gmra.mxu1 %v8343_v3  ;;  %v6210_v60 = vpop.f32.mrf.mxu0  ;;  %7815 = vmatmul.mubr.bf16.gmra.mxu0 %v17499_v8  ;;  %v17565_v3 = vld [vmem:[#allocation3 + $0x168] ss:$40 sps:$4 sm:$0xff]  }
 0x41d   : > { %v7168_v61 = vadd.f32 %v7040_v27, %v6412_v18  ;;  %8652 = vmatprep.mubr.bf16.mxu1 %v8349_v43  ;;  %v6326_v29 = vadd.f32 %v6210_v60, %v5569_v31  ;;  %7822 = vmatprep.mubr.bf16.mxu0 %v17507_v26  ;;  %v8355_v43 = vsel %vm5008_vm6, %v8350_v21, %v8354_v10  ;;  %v17573_v31 = vld [vmem:[#allocation3 + $0x3c] ss:$40 sps:$4 sm:$0xff]  }
 0x41e   : > { %v7042_v62 = vpop.f32.mrf.mxu1  ;;  %v6212_v24 = vpop.f32.mrf.mxu0  ;;  %v6414_v63 = vld [vmem:[%s16377_s26 + $0xa0] sm:$0xff] }
 0x41f   : > { %7213 = vst.msk [vmem:[%s16377_s26 + $0x90] sm:$0xff] %vm3596_vm4, %v7168_v61  ;;  %6371 = vst.msk [vmem:[%s16377_s26 + $0xb0] sm:$0xff] %vm3596_vm4, %v6326_v29  ;;  %v8361_v61 = vsel %vm5008_vm6, %v8356_v39, %v8360_v41  ;;  %v5575_v29 = vld [vmem:[%s16377_s26 + $0xe0] sm:$0xff] }
 0x420   : > { %v7043_v15 = vpop.f32.mrf.mxu1  ;;  %v6213_v55 = vpop.f32.mrf.mxu0 }
 0x421   : > { %v7169_v36 = vadd.f32 %v7043_v15, %v6413_v6  ;;  %v6327_v56 = vadd.f32 %v6213_v55, %v5570_v32  ;;  %v8358_v55 = vrot.slane %v17565_v3, 3 }
 0x422   : > { %v7045_v1 = vpop.f32.mrf.mxu1  ;;  %v6215_v22 = vpop.f32.mrf.mxu0  ;;  %v6415_v57 = vld [vmem:[%s16377_s26 + $0xa8] sm:$0xff] }
 0x423   : > { %7214 = vst.msk [vmem:[%s16377_s26 + $0x98] sm:$0xff] %vm3596_vm4, %v7169_v36  ;;  %6372 = vst.msk [vmem:[%s16377_s26 + $0xb8] sm:$0xff] %vm3596_vm4, %v6327_v56  ;;  %v5576_v36 = vld [vmem:[%s16377_s26 + $0xe8] sm:$0xff]  ;;  %v8364_v1 = vrot.slane %v17573_v31, 3 }
 0x424   : > { %v7048_v42 = vpop.f32.mrf.mxu1  ;;  %8653 = vmatmul.mubr.bf16.gmra.mxu1 %v8347_v12  ;;  %v6218_v20 = vpop.f32.mrf.mxu0  ;;  %7823 = vmatmul.mubr.bf16.gmra.mxu0 %v17521_v40  ;;  %v7320_v40 = vld [vmem:[#allocation3 + $0x158] sm:$0xff] }
 0x425   : > { %v7170_v11 = vadd.f32 %v7048_v42, %v6414_v63  ;;  %8660 = vmatprep.mubr.bf16.mxu1 %v8353_v7  ;;  %v6328_v37 = vadd.f32 %v6218_v20, %v5571_v2  ;;  %7830 = vmatprep.mubr.bf16.mxu0 %v17529_v47  ;;  %v17587_v47 = vld [vmem:[#allocation3 + $0x38] ss:$40 sps:$4 sm:$0xff]   ;;  %v8359_v20 = vsel %vm5008_vm6, %v8354_v10, %v8358_v55 }
 0x426   : > { %v7050_v48 = vpop.f32.mrf.mxu1  ;;  %v6220_v9 = vpop.f32.mrf.mxu0  ;;  %v6416_v16 = vld [vmem:[%s16377_s26 + $0xb0] sm:$0xff] }
 0x427   : > { %7215 = vst.msk [vmem:[%s16377_s26 + $0xa0] sm:$0xff] %vm3596_vm4, %v7170_v11  ;;  %6373 = vst.msk [vmem:[%s16377_s26 + $0xc0] sm:$0xff] %vm3596_vm4, %v6328_v37  ;;  %v7319_v2 = vld [vmem:[#allocation3 + $0x18] sm:$0xff]  ;;  %v8365_v48 = vsel %vm5008_vm6, %v8360_v41, %v8364_v1 }
 0x428   : > { %v7051_v14 = vpop.f32.mrf.mxu1  ;;  %v6221_v38 = vpop.f32.mrf.mxu0  ;;  %v17595_v11 = vcombine.high %v7319_v2, %v7320_v40 }
 0x429   : > { %v7171_v19 = vadd.f32 %v7051_v14, %v6415_v57  ;;  %v6329_v45 = vadd.f32 %v6221_v38, %v5572_v33  ;;  %v5577_v57 = vld [vmem:[%s16377_s26 + $0xf0] sm:$0xff] }
 0x42a   : > { %v7053_v25 = vpop.f32.mrf.mxu1  ;;  %v6223_v52 = vpop.f32.mrf.mxu0  ;;  %v6417_v59 = vld [vmem:[%s16377_s26 + $0xb8] sm:$0xff] }
 0x42b   : > { %7216 = vst.msk [vmem:[%s16377_s26 + $0xa8] sm:$0xff] %vm3596_vm4, %v7171_v19  ;;  %6374 = vst.msk [vmem:[%s16377_s26 + $0xc8] sm:$0xff] %vm3596_vm4, %v6329_v45  ;;  %v8362_v19 = vrot.slane %v17587_v47, 3  ;;  %v5578_v25 = vld [vmem:[%s16377_s26 + $0xf8] sm:$0xff] }
 0x42c   : > { %v7056_v34 = vpop.f32.mrf.mxu1  ;;  %8661 = vmatmul.mubr.bf16.gmra.mxu1 %v8351_v17  ;;  %v6226_v28 = vpop.f32.mrf.mxu0  ;;  %7831 = vmatmul.mubr.bf16.gmra.mxu0 %v17543_v50 }
 0x42d   : > { %v7172_v46 = vadd.f32 %v7056_v34, %v6416_v16  ;;  %8668 = vmatprep.mubr.bf16.mxu1 %v8357_v54  ;;  %v6330_v0 = vadd.f32 %v6226_v28, %v5573_v49  ;;  %7838 = vmatprep.mubr.bf16.mxu0 %v17551_v58  ;;  %v8368_v16 = vrot.slane %v17595_v11, 3  ;;  %v17609_v34 = vcombine.low %v7319_v2, %v7320_v40 }
 0x42e   : > { %v7058_v35 = vpop.f32.mrf.mxu1  ;;  %v6228_v5 = vpop.f32.mrf.mxu0  ;;  %v6418_v26 = vld [vmem:[%s16377_s26 + $0xc0] sm:$0xff]  ;;  %v8363_v28 = vsel %vm5008_vm6, %v8358_v55, %v8362_v19 }
 0x42f   : > { %7217 = vst.msk [vmem:[%s16377_s26 + $0xb0] sm:$0xff] %vm3596_vm4, %v7172_v46  ;;  %6375 = vst.msk [vmem:[%s16377_s26 + $0xd0] sm:$0xff] %vm3596_vm4, %v6330_v0  ;;  %v17617_v46 = vld [vmem:[#allocation3 + $0x124] ss:$120 sps:$4 sm:$0xff]   ;;  %v8369_v35 = vsel %vm5008_vm6, %v8364_v1, %v8368_v16 }
 0x430   : > { %v7059_v23 = vpop.f32.mrf.mxu1  ;;  %v6229_v4 = vpop.f32.mrf.mxu0 }
 0x431   : > { %v7173_v8 = vadd.f32 %v7059_v23, %v6417_v59  ;;  %v6331_v18 = vadd.f32 %v6229_v4, %v5574_v13  ;;  %v5579_v59 = vld [vmem:[%s16377_s26 + $0x100] sm:$0xff] }
 0x432   : > { %v7061_v30 = vpop.f32.mrf.mxu1  ;;  %v6231_v27 = vpop.f32.mrf.mxu0  ;;  %v6419_v15 = vld [vmem:[%s16377_s26 + $0xc8] sm:$0xff] }
 0x433   : > { %7218 = vst.msk [vmem:[%s16377_s26 + $0xb8] sm:$0xff] %vm3596_vm4, %v7173_v8  ;;  %6376 = vst.msk [vmem:[%s16377_s26 + $0xd8] sm:$0xff] %vm3596_vm4, %v6331_v18  ;;  %v8366_v8 = vrot.slane %v17609_v34, 3  ;;  %v5580_v30 = vld [vmem:[%s16377_s26 + $0x108] sm:$0xff] }
 0x434   : > { %v7064_v60 = vpop.f32.mrf.mxu1  ;;  %8669 = vmatmul.mubr.bf16.gmra.mxu1 %v8355_v43  ;;  %v6234_v62 = vpop.f32.mrf.mxu0  ;;  %7839 = vmatmul.mubr.bf16.gmra.mxu0 %v17565_v3 }
 0x435   : > { %v7174_v6 = vadd.f32 %v7064_v60, %v6418_v26  ;;  %8676 = vmatprep.mubr.bf16.mxu1 %v8361_v61  ;;  %v6332_v24 = vadd.f32 %v6234_v62, %v5575_v29  ;;  %7846 = vmatprep.mubr.bf16.mxu0 %v17573_v31  ;;  %v8372_v26 = vrot.slane %v17617_v46, 3  ;;  %v17631_v60 = vld [vmem:[#allocation3 + $0x120] ss:$120 sps:$4 sm:$0xff]   ;;  %v8367_v62 = vsel %vm5008_vm6, %v8362_v19, %v8366_v8 }
 0x436   : > { %v7066_v51 = vpop.f32.mrf.mxu1  ;;  %v6236_v32 = vpop.f32.mrf.mxu0  ;;  %v6420_v42 = vld [vmem:[%s16377_s26 + $0xd0] sm:$0xff]  ;;  %v8370_v40 = vrot.slane %v17631_v60, 3 }
 0x437   : > { %7219 = vst.msk [vmem:[%s16377_s26 + $0xc0] sm:$0xff] %vm3596_vm4, %v7174_v6  ;;  %6377 = vst.msk [vmem:[%s16377_s26 + $0xe0] sm:$0xff] %vm3596_vm4, %v6332_v24  ;;  %v17639_v6 = vld [vmem:[#allocation3 + $0x6c] ss:$-56 sps:$4 sm:$0xff]   ;;  %v8373_v51 = vsel %vm5008_vm6, %v8368_v16, %v8372_v26 }
 0x438   : > { %v7067_v53 = vpop.f32.mrf.mxu1  ;;  %v6237_v56 = vpop.f32.mrf.mxu0 }
 0x439   : > { %v7175_v63 = vadd.f32 %v7067_v53, %v6419_v15  ;;  %v6333_v22 = vadd.f32 %v6237_v56, %v5576_v36  ;;  %v5581_v15 = vld [vmem:[%s16377_s26 + $0x110] sm:$0xff] }
 0x43a   : > { %v7069_v12 = vpop.f32.mrf.mxu1  ;;  %v6239_v7 = vpop.f32.mrf.mxu0  ;;  %v6421_v38 = vld [vmem:[%s16377_s26 + $0xd8] sm:$0xff] }
 0x43b   : > { %7220 = vst.msk [vmem:[%s16377_s26 + $0xc8] sm:$0xff] %vm3596_vm4, %v7175_v63  ;;  %6378 = vst.msk [vmem:[%s16377_s26 + $0xe8] sm:$0xff] %vm3596_vm4, %v6333_v22  ;;  %v5582_v22 = vld [vmem:[%s16377_s26 + $0x118] sm:$0xff] }
 0x43c   : > { %v7072_v37 = vpop.f32.mrf.mxu1  ;;  %8677 = vmatmul.mubr.bf16.gmra.mxu1 %v8359_v20  ;;  %v6242_v9 = vpop.f32.mrf.mxu0  ;;  %7847 = vmatmul.mubr.bf16.gmra.mxu0 %v17587_v47  ;;  %v8376_v47 = vrot.slane %v17639_v6, 3  ;;  %v17653_v20 = vld [vmem:[#allocation3 + $0x68] ss:$-56 sps:$4 sm:$0xff]  }
 0x43d   : > { %v7176_v21 = vadd.f32 %v7072_v37, %v6420_v42  ;;  %8684 = vmatprep.mubr.bf16.mxu1 %v8365_v48  ;;  %v6334_v14 = vadd.f32 %v6242_v9, %v5577_v57  ;;  %7854 = vmatprep.mubr.bf16.mxu0 %v17595_v11  ;;  %v8371_v48 = vsel %vm5008_vm6, %v8366_v8, %v8370_v40  ;;  %v17661_v57 = vld [vmem:[#allocation3 + $0xcc] ss:$48 sps:$4 sm:$0xff]  }
 0x43e   : > { %v7074_v33 = vpop.f32.mrf.mxu1  ;;  %v6244_v39 = vpop.f32.mrf.mxu0  ;;  %v6422_v54 = vld [vmem:[%s16377_s26 + $0xe0] sm:$0xff] }
 0x43f   : > { %7221 = vst.msk [vmem:[%s16377_s26 + $0xd0] sm:$0xff] %vm3596_vm4, %v7176_v21  ;;  %6379 = vst.msk [vmem:[%s16377_s26 + $0xf0] sm:$0xff] %vm3596_vm4, %v6334_v14  ;;  %v8377_v21 = vsel %vm5008_vm6, %v8372_v26, %v8376_v47  ;;  %v5583_v14 = vld [vmem:[%s16377_s26 + $0x120] sm:$0xff] }
 0x440   : > { %v7075_v45 = vpop.f32.mrf.mxu1  ;;  %v6245_v50 = vpop.f32.mrf.mxu0 }
 0x441   : > { %v7177_v52 = vadd.f32 %v7075_v45, %v6421_v38  ;;  %v6335_v17 = vadd.f32 %v6245_v50, %v5578_v25  ;;  %v8374_v50 = vrot.slane %v17653_v20, 3 }
 0x442   : > { %v7077_v58 = vpop.f32.mrf.mxu1  ;;  %v6247_v49 = vpop.f32.mrf.mxu0  ;;  %v6423_v4 = vld [vmem:[%s16377_s26 + $0xe8] sm:$0xff] }
 0x443   : > { %7222 = vst.msk [vmem:[%s16377_s26 + $0xd8] sm:$0xff] %vm3596_vm4, %v7177_v52  ;;  %6380 = vst.msk [vmem:[%s16377_s26 + $0xf8] sm:$0xff] %vm3596_vm4, %v6335_v17  ;;  %v5584_v52 = vld [vmem:[%s16377_s26 + $0x128] sm:$0xff]  ;;  %v8380_v58 = vrot.slane %v17661_v57, 3 }
 0x444   : > { %v7080_v0 = vpop.f32.mrf.mxu1  ;;  %8685 = vmatmul.mubr.bf16.gmra.mxu1 %v8363_v28  ;;  %v6250_v5 = vpop.f32.mrf.mxu0  ;;  %7855 = vmatmul.mubr.bf16.gmra.mxu0 %v17609_v34  ;;  %v7328_v34 = vld [vmem:[#allocation3 + $0x8] sm:$0xff] }
 0x445   : > { %v7178_v10 = vadd.f32 %v7080_v0, %v6422_v54  ;;  %8692 = vmatprep.mubr.bf16.mxu1 %v8369_v35  ;;  %v6336_v23 = vadd.f32 %v6250_v5, %v5579_v59  ;;  %7862 = vmatprep.mubr.bf16.mxu0 %v17617_v46  ;;  %v17675_v46 = vld [vmem:[#allocation3 + $0xc8] ss:$48 sps:$4 sm:$0xff]   ;;  %v8375_v5 = vsel %vm5008_vm6, %v8370_v40, %v8374_v50 }
 0x446   : > { %v7082_v13 = vpop.f32.mrf.mxu1  ;;  %v6252_v41 = vpop.f32.mrf.mxu0  ;;  %v6424_v61 = vld [vmem:[%s16377_s26 + $0xf0] sm:$0xff]  ;;  %v7327_v59 = vld [vmem:[#allocation3 + $0x28] sm:$0xff] }
 0x447   : > { %7223 = vst.msk [vmem:[%s16377_s26 + $0xe0] sm:$0xff] %vm3596_vm4, %v7178_v10  ;;  %6381 = vst.msk [vmem:[%s16377_s26 + $0x100] sm:$0xff] %vm3596_vm4, %v6336_v23  ;;  %v17683_v10 = vcombine.high %v7327_v59, %v7328_v34  ;;  %v8381_v13 = vsel %vm5008_vm6, %v8376_v47, %v8380_v58 }
 0x448   : > { %v7083_v18 = vpop.f32.mrf.mxu1  ;;  %v6253_v3 = vpop.f32.mrf.mxu0 }
 0x449   : > { %v7179_v27 = vadd.f32 %v7083_v18, %v6423_v4  ;;  %v6337_v43 = vadd.f32 %v6253_v3, %v5580_v30  ;;  %v5585_v4 = vld [vmem:[%s16377_s26 + $0x130] sm:$0xff] }
 0x44a   : > { %v7085_v31 = vpop.f32.mrf.mxu1  ;;  %v6255_v29 = vpop.f32.mrf.mxu0  ;;  %v6425_v56 = vld [vmem:[%s16377_s26 + $0xf8] sm:$0xff] }
 0x44b   : > { %7224 = vst.msk [vmem:[%s16377_s26 + $0xe8] sm:$0xff] %vm3596_vm4, %v7179_v27  ;;  %6382 = vst.msk [vmem:[%s16377_s26 + $0x108] sm:$0xff] %vm3596_vm4, %v6337_v43  ;;  %v8378_v27 = vrot.slane %v17675_v46, 3  ;;  %v5586_v31 = vld [vmem:[%s16377_s26 + $0x138] sm:$0xff] }
 0x44c   : > { %v7088_v24 = vpop.f32.mrf.mxu1  ;;  %8693 = vmatmul.mubr.bf16.gmra.mxu1 %v8367_v62  ;;  %v6258_v32 = vpop.f32.mrf.mxu0  ;;  %7863 = vmatmul.mubr.bf16.gmra.mxu0 %v17631_v60  ;;  %v17697_v29 = vld [vmem:[#allocation3 + $0x40] sm:$0xff] }
 0x44d   : > { %v7180_v55 = vadd.f32 %v7088_v24, %v6424_v61  ;;  %8700 = vmatprep.mubr.bf16.mxu1 %v8373_v51  ;;  %v6338_v53 = vadd.f32 %v6258_v32, %v5581_v15  ;;  %7870 = vmatprep.mubr.bf16.mxu0 %v17639_v6  ;;  %v8384_v61 = vrot.slane %v17683_v10, 3  ;;  %v17699_v24 = vld [vmem:[#allocation3 + $0x80] sm:$0xff]  ;;  %v17701_v51 = vld [vmem:[#allocation3 + $0x98] sm:$0x77] }
 0x44e   : > { %v7090_v36 = vpop.f32.mrf.mxu1  ;;  %v6260_v1 = vpop.f32.mrf.mxu0  ;;  %v6426_v11 = vld [vmem:[%s16377_s26 + $0x100] sm:$0xff]  ;;  %v17703_v15 = vld [vmem:[#allocation3 + $0x178] sm:$0xff]  ;;  %v13440_v47 = vcombine.high %v17699_v24, %v17701_v51 }
 0x44f   : > { %7225 = vst.msk [vmem:[%s16377_s26 + $0xf0] sm:$0xff] %vm3596_vm4, %v7180_v55  ;;  %6383 = vst.msk [vmem:[%s16377_s26 + $0x110] sm:$0xff] %vm3596_vm4, %v6338_v53  ;;  %v17705_v55 = vcombine.low %v7327_v59, %v7328_v34  ;;  %v13346_v1 = vcombine.high %v17699_v24, %v17699_v24 }
 0x450   : > { %v7091_v63 = vpop.f32.mrf.mxu1  ;;  %v6261_v12 = vpop.f32.mrf.mxu0 }
 0x451   : > { %v7181_v42 = vadd.f32 %v7091_v63, %v6425_v56  ;;  %v6339_v7 = vadd.f32 %v6261_v12, %v5582_v22  ;;  %v8379_v56 = vsel %vm5008_vm6, %v8374_v50, %v8378_v27  ;;  %v8385_v63 = vsel %vm5008_vm6, %v8380_v58, %v8384_v61  ;;  %v5587_v22 = vld [vmem:[%s16377_s26 + $0x140] sm:$0xff] }
 0x452   : > { %v7093_v2 = vpop.f32.mrf.mxu1  ;;  %v6263_v37 = vpop.f32.mrf.mxu0  ;;  %v6427_v45 = vld [vmem:[%s16377_s26 + $0x108] sm:$0xff] }
 0x453   : > { %7226 = vst.msk [vmem:[%s16377_s26 + $0xf8] sm:$0xff] %vm3596_vm4, %v7181_v42  ;;  %6384 = vst.msk [vmem:[%s16377_s26 + $0x118] sm:$0xff] %vm3596_vm4, %v6339_v7  ;;  %v13492_v42 = vcombine.high %v17697_v29, %v17703_v15 }
 0x454   : > { %v7096_v9 = vpop.f32.mrf.mxu1  ;;  %8701 = vmatmul.mubr.bf16.gmra.mxu1 %v8371_v48  ;;  %v6266_v33 = vpop.f32.mrf.mxu0  ;;  %7871 = vmatmul.mubr.bf16.gmra.mxu0 %v17653_v20  ;;  %v14408_v48 = vld [vmem:[#allocation3 + $0x164] ss:$-56 sps:$4 sm:$0xfc]  }
 0x455   : > { %v7182_v38 = vadd.f32 %v7096_v9, %v6426_v11  ;;  %8708 = vmatprep.mubr.bf16.mxu1 %v8377_v21  ;;  %v6340_v39 = vadd.f32 %v6266_v33, %v5583_v14  ;;  %7878 = vmatprep.mubr.bf16.mxu0 %v17661_v57  ;;  %v8382_v57 = vrot.slane %v17705_v55, 3  ;;  %v5588_v21 = vld [vmem:[%s16377_s26 + $0x148] sm:$0xff]  ;;  %v17729_v33 = vrot.slane %v13440_v47, 3 }
 0x456   : > { %v7098_v19 = vpop.f32.mrf.mxu1  ;;  %v6268_v25 = vpop.f32.mrf.mxu0  ;;  %v6428_v0 = vld [vmem:[%s16377_s26 + $0x110] sm:$0xff]  ;;  %v9149_v58 = vrot.slane %v14408_v48, 2 }
 0x457   : > { %7227 = vst.msk [vmem:[%s16377_s26 + $0x100] sm:$0xff] %vm3596_vm4, %v7182_v38  ;;  %6385 = vst.msk [vmem:[%s16377_s26 + $0x120] sm:$0xff] %vm3596_vm4, %v6340_v39  ;;  %v9150_v38 = vrot.slane %v13492_v42, 2  ;;  %v17733_v25 = vld [vmem:[#allocation3 + $0x110] sm:$0xff]  ;;  %v8383_v34 = vsel %vm5008_vm6, %v8378_v27, %v8382_v57 }
 0x458   : > { %v7099_v16 = vpop.f32.mrf.mxu1  ;;  %v6269_v17 = vpop.f32.mrf.mxu0 }
 0x459   : > { %v7183_v54 = vadd.f32 %v7099_v16, %v6427_v45  ;;  %v6341_v49 = vadd.f32 %v6269_v17, %v5584_v52  ;;  %v17731_v45 = vld [vmem:[#allocation3 + $0x108] sm:$0xff]  ;;  %v13345_v16 = vcombine.low %v17699_v24, %v17699_v24  ;;  %v9151_v59 = vsel %vm5855_vm7, %v9149_v58, %v9150_v38  ;;  %v17804_v58 = vld [vmem:[#allocation3 + $0x100] sm:$0xff] }
 0x45a   : > { %v7101_v28 = vpop.f32.mrf.mxu1  ;;  %v6271_v35 = vpop.f32.mrf.mxu0  ;;  %v6429_v3 = vld [vmem:[%s16377_s26 + $0x118] sm:$0xff] }
 0x45b   : > { %7228 = vst.msk [vmem:[%s16377_s26 + $0x108] sm:$0xff] %vm3596_vm4, %v7183_v54  ;;  %6386 = vst.msk [vmem:[%s16377_s26 + $0x128] sm:$0xff] %vm3596_vm4, %v6341_v49  ;;  %v13491_v54 = vcombine.low %v17697_v29, %v17703_v15  ;;  %v13439_v49 = vcombine.low %v17699_v24, %v17701_v51 }
 0x45c   : > { %v7104_v23 = vpop.f32.mrf.mxu1  ;;  %8709 = vmatmul.mubr.bf16.gmra.mxu1 %v8375_v5  ;;  %v6274_v41 = vpop.f32.mrf.mxu0  ;;  %7879 = vmatmul.mubr.bf16.gmra.mxu0 %v17675_v46  ;;  %v8389_v46 = vsel %vm5008_vm6, %v8384_v61, %v17729_v33  ;;  %v13494_v5 = vcombine.high %v17731_v45, %v17733_v25 }
 0x45d   : > { %v7184_v8 = vadd.f32 %v7104_v23, %v6428_v0  ;;  %8716 = vmatprep.mubr.bf16.mxu1 %v8381_v13  ;;  %v6342_v18 = vadd.f32 %v6274_v41, %v5585_v4  ;;  %7886 = vmatprep.mubr.bf16.mxu0 %v17683_v10  ;;  %v5589_v0 = vld [vmem:[%s16377_s26 + $0x150] sm:$0xff] }
 0x45e   : > { %v7106_v30 = vpop.f32.mrf.mxu1  ;;  %v6276_v26 = vpop.f32.mrf.mxu0  ;;  %v6430_v53 = vld [vmem:[%s16377_s26 + $0x120] sm:$0xff]  ;;  %v14406_v13 = vld [vmem:[#allocation3 + $0x160] ss:$-56 sps:$4 sm:$0xfc]  }
 0x45f   : > { %7229 = vst.msk [vmem:[%s16377_s26 + $0x110] sm:$0xff] %vm3596_vm4, %v7184_v8  ;;  %6387 = vst.msk [vmem:[%s16377_s26 + $0x130] sm:$0xff] %vm3596_vm4, %v6342_v18  ;;  %v9147_v18 = vrot.slane %v13491_v54, 2  ;;  %v8386_v30 = vrot.slane %v13439_v49, 3  ;;  %v5590_v26 = vld [vmem:[%s16377_s26 + $0x158] sm:$0xff]  ;;  %v13585_v49 = vcombine.low %v17703_v15, %v17731_v45 }
 0x460   : > { %v7107_v43 = vpop.f32.mrf.mxu1  ;;  %v6277_v60 = vpop.f32.mrf.mxu0 }
 0x461   : > { %v7185_v62 = vadd.f32 %v7107_v43, %v6429_v3  ;;  %v6343_v6 = vadd.f32 %v6277_v60, %v5586_v31  ;;  %v17759_v43 = vrot.slane %v13494_v5, 2  ;;  %v9146_v60 = vrot.slane %v14406_v13, 2 }
 0x462   : > { %v7109_v32 = vpop.f32.mrf.mxu1  ;;  %v6279_v36 = vpop.f32.mrf.mxu0  ;;  %v6431_v11 = vld [vmem:[%s16377_s26 + $0x128] sm:$0xff] }
 0x463   : > { %7230 = vst.msk [vmem:[%s16377_s26 + $0x118] sm:$0xff] %vm3596_vm4, %v7185_v62  ;;  %6388 = vst.msk [vmem:[%s16377_s26 + $0x138] sm:$0xff] %vm3596_vm4, %v6343_v6  ;;  %v17761_v62 = vld [vmem:[#allocation3 + $0x90] sm:$0xff]  ;;  %v17763_v6 = vld [vmem:[#allocation3 + $0x118] sm:$0xff]  ;;  %v9148_v36 = vsel %vm5855_vm7, %v9146_v60, %v9147_v18 }
 0x464   : > { %v7112_v40 = vpop.f32.mrf.mxu1  ;;  %8717 = vmatmul.mubr.bf16.gmra.mxu1 %v8379_v56  ;;  %v6282_v12 = vpop.f32.mrf.mxu0  ;;  %7887 = vmatmul.mubr.bf16.gmra.mxu0 %v17705_v55  ;;  %v14413_v55 = vld [vmem:[%s19603_s3 + $0x438] sm:$0xff]   ;;  %v13493_v56 = vcombine.low %v17731_v45, %v17733_v25  ;;  %v13496_v47 = vcombine.high %v17761_v62, %v17763_v6 }
 0x465   : > { %v7186_v7 = vadd.f32 %v7112_v40, %v6430_v53  ;;  %8724 = vmatprep.mubr.bf16.mxu1 %v8385_v63  ;;  %v6344_v2 = vadd.f32 %v6282_v12, %v5587_v22  ;;  %7894 = vmatprep.mubr.bf16.mxu0 %v13346_v1  ;;  %v8387_v53 = vsel %vm5008_vm6, %v8382_v57, %v8386_v30  ;;  %v5591_v40 = vld [vmem:[%s16377_s26 + $0x160] sm:$0xff]  ;;  %v14416_v57 = vld [vmem:[%s19603_s3 + $0x430] sm:$0xff]  }
 0x466   : > { %v7114_v20 = vpop.f32.mrf.mxu1  ;;  %v6284_v37 = vpop.f32.mrf.mxu0  ;;  %v6432_v52 = vld [vmem:[%s16377_s26 + $0x130] sm:$0xff]  ;;  %v9155_v22 = vsel %vm5855_vm7, %v9150_v38, %v17759_v43  ;;  %v13586_v12 = vcombine.high %v17703_v15, %v17731_v45  ;;  %v17799_v38 = vrot.slane %v13496_v47, 2  ;;  %v13588_v45 = vcombine.high %v17733_v25, %v17761_v62 }
 0x467   : > { %7231 = vst.msk [vmem:[%s16377_s26 + $0x120] sm:$0xff] %vm3596_vm4, %v7186_v7  ;;  %6389 = vst.msk [vmem:[%s16377_s26 + $0x140] sm:$0xff] %vm3596_vm4, %v6344_v2  ;;  %v9729_v2 = vld [vmem:[#allocation3 + $0x128] sm:$0xee] }
 0x468   : > { %v7115_v9 = vpop.f32.mrf.mxu1  ;;  %v6285_v14 = vpop.f32.mrf.mxu0  ;;  %v13584_v48 = vcombine.high %v9729_v2, %v17697_v29  ;;  %v13583_v54 = vcombine.low %v9729_v2, %v17697_v29  ;;  %v9159_v15 = vsel %vm5855_vm7, %v17759_v43, %v17799_v38  ;;  %v17843_v43 = vrot.slane %v13588_v45, 1 }
 0x469   : > { %v7187_v39 = vadd.f32 %v7115_v9, %v6431_v11  ;;  %v6345_v19 = vadd.f32 %v6285_v14, %v5588_v21  ;;  %v17794_v9 = vrot.slane %v13493_v56, 2 }
 0x46a   : > { %v7117_v50 = vpop.f32.mrf.mxu1  ;;  %v6287_v17 = vpop.f32.mrf.mxu0  ;;  %v6433_v41 = vld [vmem:[%s16377_s26 + $0x138] sm:$0xff] }
 0x46b   : > { %7232 = vst.msk [vmem:[%s16377_s26 + $0x128] sm:$0xff] %vm3596_vm4, %v7187_v39  ;;  %6390 = vst.msk [vmem:[%s16377_s26 + $0x148] sm:$0xff] %vm3596_vm4, %v6345_v19  ;;  %v17801_v19 = vld [vmem:[#allocation3 + $0x148] sm:$0xff] }
 0x46c   : > { %v7120_v28 = vpop.f32.mrf.mxu1  ;;  %8725 = vmatmul.mubr.bf16.gmra.mxu1 %v8383_v34  ;;  %v6290_v35 = vpop.f32.mrf.mxu0  ;;  %7895 = vmatmul.mubr.bf16.gmra.mxu0 %v13345_v16  ;;  %v14419_v34 = vld [vmem:[%s19603_s3 + $0x428] sm:$0xff]  }
 0x46d   : > { %v7188_v10 = vadd.f32 %v7120_v28, %v6432_v52  ;;  %8732 = vmatprep.mubr.bf16.mxu1 %v8389_v46  ;;  %v6346_v23 = vadd.f32 %v6290_v35, %v5589_v0  ;;  %9410 = vmatprep.mubr.bf16.mxu0 %v9151_v59  ;;  %v9995_v52 = vrot.slane %v13584_v48, 1  ;;  %v9153_v28 = vsel %vm5855_vm7, %v9147_v18, %v17794_v9  ;;  %v7240_v59 = vld [vmem:[%s16377_s26] sm:$0xff]  ;;  %v14418_v48 = vld [vmem:[%s19603_s3 + $0x4b0] sm:$0xff]  }
 0x46e   : > { %v7122_v4 = vpop.f32.mrf.mxu1  ;;  %v6292_v8 = vpop.f32.mrf.mxu0  ;;  %v6434_v51 = vld [vmem:[%s16377_s26 + $0x140] sm:$0xff]  ;;  %v13495_v46 = vcombine.low %v17761_v62, %v17763_v6  ;;  %v17835_v18 = vrot.slane %v13585_v49, 1 }
 0x46f   : > { %7233 = vst.msk [vmem:[%s16377_s26 + $0x130] sm:$0xff] %vm3596_vm4, %v7188_v10  ;;  %6391 = vst.msk [vmem:[%s16377_s26 + $0x150] sm:$0xff] %vm3596_vm4, %v6346_v23  ;;  %v13498_v23 = vcombine.high %v17801_v19, %v17804_v58  ;;  %v14422_v8 = vld [vmem:[%s19603_s3 + $0x420] sm:$0xff]  }
 0x470   : > { %v7123_v3 = vpop.f32.mrf.mxu1  ;;  %v6293_v27 = vpop.f32.mrf.mxu0 }
 0x471   : > { %v7189_v31 = vadd.f32 %v7123_v3, %v6433_v41  ;;  %v6347_v61 = vadd.f32 %v6293_v27, %v5590_v26  ;;  %v7241_v26 = vld [vmem:[%s16377_s26 + $0x8] sm:$0xff] }
 0x472   : > { %v7125_v24 = vpop.f32.mrf.mxu1  ;;  %v6295_v32 = vpop.f32.mrf.mxu0  ;;  %v6435_v11 = vld [vmem:[%s16377_s26 + $0x148] sm:$0xff] }
 0x473   : > { %7234 = vst.msk [vmem:[%s16377_s26 + $0x138] sm:$0xff] %vm3596_vm4, %v7189_v31  ;;  %6392 = vst.msk [vmem:[%s16377_s26 + $0x158] sm:$0xff] %vm3596_vm4, %v6347_v61  ;;  %v9992_v31 = vrot.slane %v13583_v54, 1  ;;  %v14415_v24 = vld [vmem:[%s19603_s3 + $0x4b8] sm:$0xff]   ;;  %v17850_v32 = vld [vmem:[#allocation3 + $0x58] sm:$0xff] }
 0x474   : > { %v7128_v1 = vpop.f32.mrf.mxu1  ;;  %8733 = vmatmul.mubr.bf16.gmra.mxu1 %v8387_v53  ;;  %v6298_v63 = vpop.f32.mrf.mxu0  ;;  %9411 = vmatmul.mubr.bf16.vlgmr.msra.gmra.mxu0 %v9148_v36  ;;  %v17904_v54 = vld [vmem:[#allocation3 + $0x130] sm:$0xff] }
 0x475   : > { %v7190_v42 = vadd.f32 %v7128_v1, %v6434_v51  ;;  %8740 = vmatprep.mubr.bf16.mxu1 %v17729_v33  ;;  %v6348_v7 = vadd.f32 %v6298_v63, %v5591_v40  ;;  %9418 = vmatprep.mubr.bf16.mxu0 %v9155_v22  ;;  %v17797_v33 = vrot.slane %v13586_v12, 1  ;;  %v17848_v51 = vrot.slane %v13498_v23, 2  ;;  %v14424_v12 = vld [vmem:[%s19603_s3 + $0x418] sm:$0xff]  }
 0x476   : > { %v7130_v20 = vpop.f32.mrf.mxu1  ;;  %v6300_v37 = vpop.f32.mrf.mxu0  ;;  %10977 = vmatpush1.bf16.msra.mxu0 %v14413_v55  ;;  %v6436_v16 = vld [vmem:[%s16377_s26 + $0x150] sm:$0xff]  ;;  %v9994_v1 = vsel %vm3369_vm5, %v9992_v31, %v17835_v18  ;;  %v13587_v63 = vcombine.low %v17733_v25, %v17761_v62  ;;  %v13497_v22 = vcombine.low %v17801_v19, %v17804_v58  ;;  %v13590_v25 = vcombine.high %v17763_v6, %v17801_v19 }
 0x477   : > { %7235 = vst.msk [vmem:[%s16377_s26 + $0x140] sm:$0xff] %vm3596_vm4, %v7190_v42  ;;  %6393 = vst.msk [vmem:[%s16377_s26 + $0x160] sm:$0xff] %vm3596_vm4, %v6348_v7  ;;  %10978 = vmatprep.subr.bf16.mxu0 %v19660_v44  ;;  %v9997_v35 = vsel %vm3369_vm5, %v9995_v52, %v17797_v33  ;;  %v17852_v55 = vld [vmem:[#allocation3 + $0xd8] sm:$0xff]  ;;  %v10001_v42 = vsel %vm3369_vm5, %v17797_v33, %v17843_v43  ;;  %v9163_v37 = vsel %vm5855_vm7, %v17799_v38, %v17848_v51 }
 0x478   : > { %v7131_v21 = vpop.f32.mrf.mxu1  ;;  %v6301_v14 = vpop.f32.mrf.mxu0  ;;  %v7242_v7 = vld [vmem:[%s16377_s26 + $0x10] sm:$0xff]  ;;  %v13500_v62 = vcombine.high %v17850_v32, %v17852_v55 }
 0x479   : > { %v7191_v39 = vadd.f32 %v7131_v21, %v6435_v11  ;;  %v17891_v21 = vrot.slane %v13587_v63, 1  ;;  %v17893_v14 = vrot.slane %v13497_v22, 2  ;;  %v14426_v33 = vld [vmem:[%s19603_s3 + $0x410] sm:$0xff]  }
 0x47a   : > { %v7133_v50 = vpop.f32.mrf.mxu1  ;;  %v6302_v17 = vpop.f32.mrf.mxu0  ;;  %10979 = vmatpush1.bf16.msra.mxu0 %v14416_v57  ;;  %v6437_v4 = vld [vmem:[%s16377_s26 + $0x158] sm:$0xff]  ;;  %v17899_v52 = vrot.slane %v13500_v62, 2 }
 0x47b   : > { %7236 = vst.msk [vmem:[%s16377_s26 + $0x148] sm:$0xff] %vm3596_vm4, %v7191_v39  ;;  %10980 = vmatprep.subr.bf16.mxu0 %v19660_v44  ;;  %v7243_v39 = vld [vmem:[%s16377_s26 + $0x18] sm:$0xff] }
 0x47c   : > { %v7136_v0 = vpop.f32.mrf.mxu1  ;;  %8741 = vmatmul.mubr.bf16.gmra.mxu1 %v8386_v30  ;;  %v7720_v29 = vpop.f32.mrf.mxu0  ;;  %9419 = vmatmul.mubr.bf16.gmra.mxu0 %v9153_v28  ;;  %v17839_v30 = vrot.slane %v13495_v46, 2 }
 0x47d   : > { %v7192_v5 = vadd.f32 %v7136_v0, %v6436_v16  ;;  %10256 = vmatprep.mubr.bf16.mxu1 %v9997_v35  ;;  %v7902_v10 = vadd.f32 %v7720_v29, %v7240_v59  ;;  %9426 = vmatprep.mubr.bf16.mxu0 %v9159_v15  ;;  %v10004_v16 = vrot.slane %v13590_v25, 1  ;;  %v13589_v0 = vcombine.low %v17763_v6, %v17801_v19  ;;  %v14421_v59 = vld [vmem:[%s19603_s3 + $0x4a8] sm:$0xff]  }
 0x47e   : > { %v7138_v13 = vpop.f32.mrf.mxu1  ;;  %v7722_v41 = vpop.f32.mrf.mxu0  ;;  %10981 = vmatpush1.bf16.msra.mxu0 %v14419_v34  ;;  %v6438_v36 = vld [vmem:[%s16377_s26 + $0x160] sm:$0xff]  ;;  %v9157_v40 = vsel %vm5855_vm7, %v17794_v9, %v17839_v30  ;;  %v17902_v34 = vld [vmem:[#allocation3 + $0x180] sm:$0xff]  ;;  %v13592_v35 = vcombine.high %v17804_v58, %v17850_v32  ;;  %v9999_v29 = vsel %vm3369_vm5, %v17835_v18, %v17891_v21  ;;  %v9161_v15 = vsel %vm5855_vm7, %v17839_v30, %v17893_v14  ;;  %v14429_v19 = vld [vmem:[%s19603_s3 + $0x408] sm:$0xff]  }
 0x47f   : > { %7237 = vst.msk [vmem:[%s16377_s26 + $0x150] sm:$0xff] %vm3596_vm4, %v7192_v5  ;;  %7947 = vst.msk [vmem:[%s16377_s26] sm:$0xff] %vm3596_vm4, %v7902_v10  ;;  %10982 = vmatprep.subr.bf16.mxu0 %v19660_v44  ;;  %v13499_v6 = vcombine.low %v17850_v32, %v17852_v55  ;;  %v10005_v5 = vsel %vm3369_vm5, %v17843_v43, %v10004_v16  ;;  %v7244_v10 = vld [vmem:[%s16377_s26 + $0x20] sm:$0xff]  ;;  %v9167_v13 = vsel %vm5855_vm7, %v17848_v51, %v17899_v52 }
 0x480   : > { %v7139_v3 = vpop.f32.mrf.mxu1  ;;  %v7723_v27 = vpop.f32.mrf.mxu0  ;;  %v14423_v43 = vld [vmem:[%s19603_s3 + $0x4a0] sm:$0xff]   ;;  %v13591_v25 = vcombine.low %v17804_v58, %v17850_v32  ;;  %v13501_v62 = vcombine.low %v17902_v34, %v17904_v54  ;;  %v13594_v32 = vcombine.high %v17852_v55, %v17902_v34 }
 0x481   : > { %v7193_v60 = vadd.f32 %v7139_v3, %v6437_v4  ;;  %v7903_v61 = vadd.f32 %v7723_v27, %v7241_v26  ;;  %v13502_v4 = vcombine.high %v17902_v34, %v17904_v54  ;;  %v17937_v26 = vrot.slane %v13589_v0, 1 }
 0x482   : > { %v7141_v53 = vpop.f32.mrf.mxu1  ;;  %v7725_v56 = vpop.f32.mrf.mxu0  ;;  %10983 = vmatpush1.bf16.msra.mxu0 %v14422_v8  ;;  %v17939_v27 = vrot.slane %v13592_v35, 1  ;;  %v17949_v31 = vrot.slane %v13499_v6, 2 }
 0x483   : > { %7238 = vst.msk [vmem:[%s16377_s26 + $0x158] sm:$0xff] %vm3596_vm4, %v7193_v60  ;;  %7948 = vst.msk [vmem:[%s16377_s26 + $0x8] sm:$0xff] %vm3596_vm4, %v7903_v61  ;;  %10984 = vmatprep.subr.bf16.mxu0 %v19660_v44  ;;  %v14432_v60 = vld [vmem:[%s19603_s3 + $0x400] sm:$0xff]   ;;  %v17956_v53 = vrot.slane %v13502_v4, 2  ;;  %v14441_v4 = vld [vmem:[%s19603_s3 + $0x468] sm:$0xff]  }
 0x484   : > { %v7144_v47 = vpop.f32.mrf.mxu1  ;;  %10257 = vmatmul.mubr.bf16.vlgmr.msra.gmra.mxu1 %v9994_v1  ;;  %v7728_v2 = vpop.f32.mrf.mxu0  ;;  %9427 = vmatmul.mubr.bf16.gmra.mxu0 %v9157_v40  ;;  %v17959_v1 = vld [vmem:[#allocation3 + $0x138] sm:$0xff] }
 0x485   : > { %v7194_v20 = vadd.f32 %v7144_v47, %v6438_v36  ;;  %10264 = vmatprep.mubr.bf16.mxu1 %v10001_v42  ;;  %11823 = vmatpush1.bf16.msra.mxu1 %v14415_v24  ;;  %v7904_v11 = vadd.f32 %v7728_v2, %v7242_v7  ;;  %v7245_v24 = vld [vmem:[%s16377_s26 + $0x28] sm:$0xff]  ;;  %v10009_v47 = vsel %vm3369_vm5, %v10004_v16, %v17939_v27  ;;  %v14425_v7 = vld [vmem:[%s19603_s3 + $0x498] sm:$0xff]   ;;  %v18006_v16 = vrot.slane %v13501_v62, 2 }
 0x486   : > { %v7146_v57 = vpop.f32.mrf.mxu1  ;;  %9434 = vmatprep.mubr.bf16.mxu0 %v9163_v37  ;;  %v7730_v9 = vpop.f32.mrf.mxu0  ;;  %11824 = vmatprep.subr.bf16.mxu1 %v19660_v44  ;;  %v7992_v28 = vld [vmem:[%s16377_s26] sm:$0xff]  ;;  %v17961_v40 = vld [vmem:[#allocation3 + $0x78] sm:$0xff]  ;;  %v9165_v2 = vsel %vm5855_vm7, %v17893_v14, %v17949_v31  ;;  %v9171_v58 = vsel %vm5855_vm7, %v17899_v52, %v17956_v53 }
 0x487   : > { %7239 = vst.msk [vmem:[%s16377_s26 + $0x160] sm:$0xff] %vm3596_vm4, %v7194_v20  ;;  %7949 = vst.msk [vmem:[%s16377_s26 + $0x10] sm:$0xff] %vm3596_vm4, %v7904_v11  ;;  %10985 = vmatpush1.bf16.msra.mxu0 %v14424_v12  ;;  %v10003_v12 = vsel %vm3369_vm5, %v17891_v21, %v17937_v26  ;;  %v14434_v20 = vld [vmem:[%s19603_s3 + $0x478] sm:$0xff]   ;;  %v7246_v37 = vld [vmem:[%s16377_s26 + $0x30] sm:$0xff]  ;;  %v13504_v57 = vcombine.high %v17959_v1, %v17961_v40 }
 0x488   : > { %v7147_v38 = vpop.f32.mrf.mxu1  ;;  %v7731_v50 = vpop.f32.mrf.mxu0  ;;  %10986 = vmatprep.subr.bf16.mxu0 %v19660_v44  ;;  %v14438_v52 = vld [vmem:[%s19603_s3 + $0x470] sm:$0xff]  }
 0x489   : > { %v7905_v17 = vadd.f32 %v7731_v50, %v7243_v39  ;;  %11825 = vmatpush1.bf16.msra.mxu1 %v14418_v48  ;;  %v14428_v39 = vld [vmem:[%s19603_s3 + $0x490] sm:$0xff]   ;;  %v18004_v50 = vrot.slane %v13591_v25, 1  ;;  %v18013_v0 = vrot.slane %v13504_v57, 2  ;;  %v13595_v57 = vcombine.low %v17904_v54, %v17959_v1 }
 0x48a   : > { %v7148_v49 = vpop.f32.mrf.mxu1  ;;  %v7733_v46 = vpop.f32.mrf.mxu0  ;;  %11826 = vmatprep.subr.bf16.mxu1 %v19660_v44  ;;  %v7993_v30 = vld [vmem:[%s16377_s26 + $0x8] sm:$0xff]  ;;  %v18077_v25 = vld [vmem:[#allocation3 + $0xe0] sm:$0xff] }
 0x48b   : > { %7950 = vst.msk [vmem:[%s16377_s26 + $0x18] sm:$0xff] %vm3596_vm4, %v7905_v17  ;;  %10987 = vmatpush1.bf16.msra.mxu0 %v14426_v33  ;;  %v7247_v49 = vld [vmem:[%s16377_s26 + $0x38] sm:$0xff]  ;;  %v10012_v46 = vrot.slane %v13594_v32, 1 }
 0x48c   : > { %v8566_v45 = vpop.f32.mrf.mxu1  ;;  %10265 = vmatmul.mubr.bf16.gmra.mxu1 %v9999_v29  ;;  %v7736_v23 = vpop.f32.mrf.mxu0  ;;  %9435 = vmatmul.mubr.bf16.gmra.mxu0 %v9161_v15  ;;  %v18016_v29 = vld [vmem:[#allocation3 + $0xa0] sm:$0xff] }
 0x48d   : > { %v8748_v41 = vadd.f32 %v8566_v45, %v7992_v28  ;;  %10272 = vmatprep.mubr.bf16.mxu1 %v10005_v5  ;;  %v7906_v8 = vadd.f32 %v7736_v23, %v7244_v10  ;;  %9442 = vmatprep.mubr.bf16.mxu0 %v9167_v13  ;;  %v18018_v15 = vld [vmem:[#allocation3] sm:$0xff]  ;;  %v13593_v5 = vcombine.low %v17852_v55, %v17902_v34  ;;  %v14431_v23 = vld [vmem:[%s19603_s3 + $0x488] sm:$0xff]  }
 0x48e   : > { %v8568_v18 = vpop.f32.mrf.mxu1  ;;  %v7738_v3 = vpop.f32.mrf.mxu0  ;;  %11827 = vmatpush1.bf16.msra.mxu1 %v14421_v59  ;;  %10988 = vmatprep.subr.bf16.mxu0 %v19660_v44  ;;  %v7994_v22 = vld [vmem:[%s16377_s26 + $0x10] sm:$0xff]  ;;  %v13596_v10 = vcombine.high %v17904_v54, %v17959_v1  ;;  %v10007_v13 = vsel %vm3369_vm5, %v17937_v26, %v18004_v50  ;;  %v9169_v55 = vsel %vm5855_vm7, %v17949_v31, %v18006_v16 }
 0x48f   : > { %8793 = vst.msk [vmem:[%s16377_s26] sm:$0xff] %vm3596_vm4, %v8748_v41  ;;  %7951 = vst.msk [vmem:[%s16377_s26 + $0x20] sm:$0xff] %vm3596_vm4, %v7906_v8  ;;  %11828 = vmatprep.subr.bf16.mxu1 %v19660_v44  ;;  %10989 = vmatpush1.bf16.msra.mxu0 %v14429_v19  ;;  %v13503_v34 = vcombine.low %v17959_v1, %v17961_v40  ;;  %v10013_v8 = vsel %vm3369_vm5, %v17939_v27, %v10012_v46  ;;  %v7248_v18 = vld [vmem:[%s16377_s26 + $0x40] sm:$0xff] }
 0x490   : > { %v8569_v61 = vpop.f32.mrf.mxu1  ;;  %v7739_v51 = vpop.f32.mrf.mxu0  ;;  %10990 = vmatprep.subr.bf16.mxu0 %v19660_v44  ;;  %v9175_v3 = vsel %vm5855_vm7, %v17956_v53, %v18013_v0  ;;  %v13506_v26 = vcombine.high %v18016_v29, %v18018_v15  ;;  %v14433_v53 = vld [vmem:[%s19603_s3 + $0x480] sm:$0xff]   ;;  %v13598_v1 = vcombine.high %v17961_v40, %v18016_v29 }
 0x491   : > { %v8749_v36 = vadd.f32 %v8569_v61, %v7993_v30  ;;  %v7907_v56 = vadd.f32 %v7739_v51, %v7245_v24  ;;  %v18053_v24 = vrot.slane %v13593_v5, 1  ;;  %v18055_v51 = vrot.slane %v13596_v10, 1 }
 0x492   : > { %v8571_v63 = vpop.f32.mrf.mxu1  ;;  %v7741_v42 = vpop.f32.mrf.mxu0  ;;  %11829 = vmatpush1.bf16.msra.mxu1 %v14423_v43  ;;  %v7995_v33 = vld [vmem:[%s16377_s26 + $0x18] sm:$0xff] }
 0x493   : > { %8794 = vst.msk [vmem:[%s16377_s26 + $0x8] sm:$0xff] %vm3596_vm4, %v8749_v36  ;;  %7952 = vst.msk [vmem:[%s16377_s26 + $0x28] sm:$0xff] %vm3596_vm4, %v7907_v56  ;;  %11830 = vmatprep.subr.bf16.mxu1 %v19660_v44  ;;  %10991 = vmatpush1.bf16.msra.mxu0 %v14432_v60  ;;  %v18065_v36 = vrot.slane %v13503_v34, 2  ;;  %v14445_v56 = vld [vmem:[%s19603_s3 + $0x460] sm:$0xff]  }
 0x494   : > { %v8574_v11 = vpop.f32.mrf.mxu1  ;;  %10273 = vmatmul.mubr.bf16.gmra.mxu1 %v10003_v12  ;;  %v7744_v48 = vpop.f32.mrf.mxu0  ;;  %9443 = vmatmul.mubr.bf16.gmra.mxu0 %v9165_v2  ;;  %v18075_v2 = vld [vmem:[#allocation3 + $0x20] sm:$0xff] }
 0x495   : > { %v8750_v9 = vadd.f32 %v8574_v11, %v7994_v22  ;;  %10280 = vmatprep.mubr.bf16.mxu1 %v10009_v47  ;;  %v7908_v21 = vadd.f32 %v7744_v48, %v7246_v37  ;;  %9450 = vmatprep.mubr.bf16.mxu0 %v9171_v58  ;;  %v7249_v22 = vld [vmem:[%s16377_s26 + $0x48] sm:$0xff]  ;;  %v18072_v47 = vrot.slane %v13506_v26, 2  ;;  %v10011_v11 = vsel %vm3369_vm5, %v18004_v50, %v18053_v24  ;;  %v14436_v58 = vld [vmem:[%s19603_s3 + $0x4f8] sm:$0xff]  }
 0x496   : > { %v8576_v14 = vpop.f32.mrf.mxu1  ;;  %v7746_v38 = vpop.f32.mrf.mxu0  ;;  %11831 = vmatpush1.bf16.msra.mxu1 %v14425_v7  ;;  %10992 = vmatprep.subr.bf16.mxu0 %v19660_v44  ;;  %v7996_v19 = vld [vmem:[%s16377_s26 + $0x20] sm:$0xff]  ;;  %v10017_v37 = vsel %vm3369_vm5, %v10012_v46, %v18055_v51  ;;  %v9173_v32 = vsel %vm5855_vm7, %v18006_v16, %v18065_v36  ;;  %v18120_v46 = vrot.slane %v13595_v57, 1  ;;  %v14455_v26 = vld [vmem:[%s19603_s3 + $0x448] sm:$0xff]  }
 0x497   : > { %8795 = vst.msk [vmem:[%s16377_s26 + $0x10] sm:$0xff] %vm3596_vm4, %v8750_v9  ;;  %7953 = vst.msk [vmem:[%s16377_s26 + $0x30] sm:$0xff] %vm3596_vm4, %v7908_v21  ;;  %11832 = vmatprep.subr.bf16.mxu1 %v19660_v44  ;;  %10993 = vmatpush2.bf16.msra.mxu0 %v14434_v20  ;;  %v13505_v9 = vcombine.low %v18016_v29, %v18018_v15  ;;  %v14448_v21 = vld [vmem:[%s19603_s3 + $0x458] sm:$0xff]   ;;  %v9179_v54 = vsel %vm5855_vm7, %v18013_v0, %v18072_v47 }
 0x498   : > { %v8577_v17 = vpop.f32.mrf.mxu1  ;;  %v7747_v28 = vpop.f32.mrf.mxu0  ;;  %10994 = vmatprep.subr.bf16.mxu0 %v19660_v44  ;;  %v18196_v57 = vld [vmem:[#allocation3 + $0x88] sm:$0xff] }
 0x499   : > { %v8751_v35 = vadd.f32 %v8577_v17, %v7995_v33  ;;  %v7909_v59 = vadd.f32 %v7747_v28, %v7247_v49  ;;  %v7250_v33 = vld [vmem:[%s16377_s26 + $0x50] sm:$0xff]  ;;  %v18122_v0 = vrot.slane %v13505_v9, 2 }
 0x49a   : > { %v8579_v6 = vpop.f32.mrf.mxu1  ;;  %v7749_v45 = vpop.f32.mrf.mxu0  ;;  %11833 = vmatpush1.bf16.msra.mxu1 %v14428_v39  ;;  %v7997_v61 = vld [vmem:[%s16377_s26 + $0x28] sm:$0xff]  ;;  %v13508_v39 = vcombine.high %v18075_v2, %v18077_v25  ;;  %v14440_v28 = vld [vmem:[%s19603_s3 + $0x4f0] sm:$0xff]  }
 0x49b   : > { %8796 = vst.msk [vmem:[%s16377_s26 + $0x18] sm:$0xff] %vm3596_vm4, %v8751_v35  ;;  %7954 = vst.msk [vmem:[%s16377_s26 + $0x38] sm:$0xff] %vm3596_vm4, %v7909_v59  ;;  %11834 = vmatprep.subr.bf16.mxu1 %v19660_v44  ;;  %10995 = vmatpush2.bf16.msra.mxu0 %v14438_v52  ;;  %v14451_v35 = vld [vmem:[%s19603_s3 + $0x450] sm:$0xff]   ;;  %v7251_v6 = vld [vmem:[%s16377_s26 + $0x58] sm:$0xff]  ;;  %v18129_v45 = vrot.slane %v13598_v1, 1 }
 0x49c   : > { %v8582_v41 = vpop.f32.mrf.mxu1  ;;  %10281 = vmatmul.mubr.bf16.gmra.mxu1 %v10007_v13  ;;  %v7752_v30 = vpop.f32.mrf.mxu0  ;;  %9451 = vmatmul.mubr.bf16.gmra.mxu0 %v9169_v55  ;;  %v18131_v5 = vrot.slane %v13508_v39, 2  ;;  %v18134_v13 = vld [vmem:[#allocation3 + $0xf0] sm:$0xff]  ;;  %v18136_v55 = vld [vmem:[#allocation3 + $0x188] sm:$0xff] }
 0x49d   : > { %v8752_v43 = vadd.f32 %v8582_v41, %v7996_v19  ;;  %10288 = vmatprep.mubr.bf16.mxu1 %v10013_v8  ;;  %v7910_v31 = vadd.f32 %v7752_v30, %v7248_v18  ;;  %9458 = vmatprep.mubr.bf16.mxu0 %v9175_v3  ;;  %v13597_v8 = vcombine.low %v17961_v40, %v18016_v29  ;;  %v14443_v30 = vld [vmem:[%s19603_s3 + $0x4e8] sm:$0xff]  }
 0x49e   : > { %v8584_v60 = vpop.f32.mrf.mxu1  ;;  %v7754_v27 = vpop.f32.mrf.mxu0  ;;  %11835 = vmatpush1.bf16.msra.mxu1 %v14431_v23  ;;  %10996 = vmatprep.subr.bf16.mxu0 %v19660_v44  ;;  %v7998_v20 = vld [vmem:[%s16377_s26 + $0x30] sm:$0xff]  ;;  %v13600_v18 = vcombine.high %v18018_v15, %v18075_v2  ;;  %v10015_v3 = vsel %vm3369_vm5, %v18053_v24, %v18120_v46  ;;  %v9177_v40 = vsel %vm5855_vm7, %v18065_v36, %v18122_v0 }
 0x49f   : > { %8797 = vst.msk [vmem:[%s16377_s26 + $0x20] sm:$0xff] %vm3596_vm4, %v8752_v43  ;;  %7955 = vst.msk [vmem:[%s16377_s26 + $0x40] sm:$0xff] %vm3596_vm4, %v7910_v31  ;;  %11836 = vmatprep.subr.bf16.mxu1 %v19660_v44  ;;  %10997 = vmatpush2.bf16.msra.mxu0 %v14441_v4  ;;  %v13507_v29 = vcombine.low %v18075_v2, %v18077_v25  ;;  %v10021_v31 = vsel %vm3369_vm5, %v18055_v51, %v18129_v45  ;;  %v7252_v60 = vld [vmem:[%s16377_s26 + $0x60] sm:$0xff] }
 0x4a0   : > { %v8585_v63 = vpop.f32.mrf.mxu1  ;;  %v7755_v12 = vpop.f32.mrf.mxu0  ;;  %10998 = vmatprep.subr.bf16.mxu0 %v19660_v44  ;;  %v9183_v27 = vsel %vm5855_vm7, %v18072_v47, %v18131_v5  ;;  %v13510_v24 = vcombine.high %v18134_v13, %v18136_v55  ;;  %v18182_v47 = vrot.slane %v13600_v18, 1  ;;  %v18244_v18 = vld [vmem:[#allocation3 + $0xb8] sm:$0xff] }
 0x4a1   : > { %v8753_v42 = vadd.f32 %v8585_v63, %v7997_v61  ;;  %v7911_v7 = vadd.f32 %v7755_v12, %v7249_v22  ;;  %v18172_v22 = vrot.slane %v13597_v8, 1  ;;  %v14447_v12 = vld [vmem:[%s19603_s3 + $0x4e0] sm:$0xff]  }
 0x4a2   : > { %v8587_v62 = vpop.f32.mrf.mxu1  ;;  %v7757_v48 = vpop.f32.mrf.mxu0  ;;  %11837 = vmatpush1.bf16.msra.mxu1 %v14433_v53  ;;  %v7999_v17 = vld [vmem:[%s16377_s26 + $0x38] sm:$0xff]  ;;  %v10025_v1 = vsel %vm3369_vm5, %v18129_v45, %v18182_v47 }
 0x4a3   : > { %8798 = vst.msk [vmem:[%s16377_s26 + $0x28] sm:$0xff] %vm3596_vm4, %v8753_v42  ;;  %7956 = vst.msk [vmem:[%s16377_s26 + $0x48] sm:$0xff] %vm3596_vm4, %v7911_v7  ;;  %11838 = vmatprep.subr.bf16.mxu1 %v19660_v44  ;;  %10999 = vmatpush2.bf16.msra.mxu0 %v14445_v56  ;;  %v18184_v42 = vrot.slane %v13507_v29, 2  ;;  %v14459_v7 = vld [vmem:[%s19603_s3 + $0x440] sm:$0xff]  }
 0x4a4   : > { %v8590_v14 = vpop.f32.mrf.mxu1  ;;  %10289 = vmatmul.mubr.bf16.gmra.mxu1 %v10011_v11  ;;  %v7760_v38 = vpop.f32.mrf.mxu0  ;;  %9459 = vmatmul.mubr.bf16.gmra.mxu0 %v9173_v32  ;;  %v18194_v32 = vld [vmem:[#allocation3 + $0xa8] sm:$0xff] }
 0x4a5   : > { %v8754_v50 = vadd.f32 %v8590_v14, %v7998_v20  ;;  %10296 = vmatprep.mubr.bf16.mxu1 %v10017_v37  ;;  %v7912_v16 = vadd.f32 %v7760_v38, %v7250_v33  ;;  %9466 = vmatprep.mubr.bf16.mxu0 %v9179_v54  ;;  %v7253_v20 = vld [vmem:[%s16377_s26 + $0x68] sm:$0xff]  ;;  %v18191_v37 = vrot.slane %v13510_v24, 2  ;;  %v10019_v14 = vsel %vm3369_vm5, %v18120_v46, %v18172_v22  ;;  %v14450_v54 = vld [vmem:[%s19603_s3 + $0x4d8] sm:$0xff]   ;;  %v7256_v24 = vld [vmem:[%s16377_s26 + $0x80] sm:$0xff] }
 0x4a6   : > { %v8592_v52 = vpop.f32.mrf.mxu1  ;;  %v7762_v49 = vpop.f32.mrf.mxu0  ;;  %11839 = vmatpush2.bf16.msra.mxu1 %v14436_v58  ;;  %11000 = vmatprep.subr.bf16.mxu0 %v19660_v44  ;;  %v8000_v4 = vld [vmem:[%s16377_s26 + $0x40] sm:$0xff]  ;;  %v13599_v38 = vcombine.low %v18018_v15, %v18075_v2  ;;  %v9181_v39 = vsel %vm5855_vm7, %v18122_v0, %v18184_v42  ;;  %v13509_v15 = vcombine.low %v18134_v13, %v18136_v55 }
 0x4a7   : > { %8799 = vst.msk [vmem:[%s16377_s26 + $0x30] sm:$0xff] %vm3596_vm4, %v8754_v50  ;;  %7957 = vst.msk [vmem:[%s16377_s26 + $0x50] sm:$0xff] %vm3596_vm4, %v7912_v16  ;;  %11840 = vmatprep.subr.bf16.mxu1 %v19660_v44  ;;  %11001 = vmatpush2.bf16.msra.mxu0 %v14448_v21  ;;  %v7254_v50 = vld [vmem:[%s16377_s26 + $0x70] sm:$0xff]  ;;  %v9187_v52 = vsel %vm5855_vm7, %v18131_v5, %v18191_v37  ;;  %v13512_v49 = vcombine.high %v18194_v32, %v18196_v57 }
 0x4a8   : > { %v8593_v59 = vpop.f32.mrf.mxu1  ;;  %v7763_v19 = vpop.f32.mrf.mxu0  ;;  %11002 = vmatprep.subr.bf16.mxu0 %v19660_v44  ;;  %v18236_v45 = vrot.slane %v13509_v15, 2  ;;  %v13603_v15 = vcombine.low %v18136_v55, %v18194_v32 }
 0x4a9   : > { %v8755_v10 = vadd.f32 %v8593_v59, %v7999_v17  ;;  %v7913_v23 = vadd.f32 %v7763_v19, %v7251_v6  ;;  %v13602_v17 = vcombine.high %v18077_v25, %v18134_v13  ;;  %v14454_v6 = vld [vmem:[%s19603_s3 + $0x4d0] sm:$0xff]   ;;  %v10022_v19 = vrot.slane %v13599_v38, 1 }
 0x4aa   : > { %v8595_v34 = vpop.f32.mrf.mxu1  ;;  %v7765_v41 = vpop.f32.mrf.mxu0  ;;  %11841 = vmatpush2.bf16.msra.mxu1 %v14440_v28  ;;  %v8001_v63 = vld [vmem:[%s16377_s26 + $0x48] sm:$0xff] }
 0x4ab   : > { %8800 = vst.msk [vmem:[%s16377_s26 + $0x38] sm:$0xff] %vm3596_vm4, %v8755_v10  ;;  %7958 = vst.msk [vmem:[%s16377_s26 + $0x58] sm:$0xff] %vm3596_vm4, %v7913_v23  ;;  %11842 = vmatprep.subr.bf16.mxu1 %v19660_v44  ;;  %11003 = vmatpush2.bf16.msra.mxu0 %v14451_v35  ;;  %v7255_v10 = vld [vmem:[%s16377_s26 + $0x78] sm:$0xff]  ;;  %v18240_v34 = vrot.slane %v13602_v17, 1  ;;  %v7258_v17 = vld [vmem:[%s16377_s26 + $0x90] sm:$0xff] }
 0x4ac   : > { %v8598_v43 = vpop.f32.mrf.mxu1  ;;  %10297 = vmatmul.mubr.bf16.gmra.mxu1 %v10015_v3  ;;  %v7768_v61 = vpop.f32.mrf.mxu0  ;;  %9467 = vmatmul.mubr.bf16.gmra.mxu0 %v9177_v40 }
 0x4ad   : > { %v8756_v53 = vadd.f32 %v8598_v43, %v8000_v4  ;;  %10304 = vmatprep.mubr.bf16.mxu1 %v10021_v31  ;;  %v7914_v36 = vadd.f32 %v7768_v61, %v7252_v60  ;;  %9474 = vmatprep.mubr.bf16.mxu0 %v9183_v27  ;;  %v18242_v4 = vrot.slane %v13512_v49, 2  ;;  %v14458_v43 = vld [vmem:[%s19603_s3 + $0x4c8] sm:$0xff]   ;;  %v10023_v31 = vsel %vm3369_vm5, %v18172_v22, %v10022_v19 }
 0x4ae   : > { %v8600_v56 = vpop.f32.mrf.mxu1  ;;  %v7770_v51 = vpop.f32.mrf.mxu0  ;;  %11843 = vmatpush2.bf16.msra.mxu1 %v14443_v30  ;;  %11004 = vmatprep.subr.bf16.mxu0 %v19660_v44  ;;  %v8002_v21 = vld [vmem:[%s16377_s26 + $0x50] sm:$0xff]  ;;  %v18246_v30 = vld [vmem:[#allocation3 + $0x170] sm:$0xff]  ;;  %v9185_v60 = vsel %vm5855_vm7, %v18184_v42, %v18236_v45  ;;  %v13604_v61 = vcombine.high %v18136_v55, %v18194_v32  ;;  %v10029_v27 = vsel %vm3369_vm5, %v18182_v47, %v18240_v34 }
 0x4af   : > { %8801 = vst.msk [vmem:[%s16377_s26 + $0x40] sm:$0xff] %vm3596_vm4, %v8756_v53  ;;  %7959 = vst.msk [vmem:[%s16377_s26 + $0x60] sm:$0xff] %vm3596_vm4, %v7914_v36  ;;  %11844 = vmatprep.subr.bf16.mxu1 %v19660_v44  ;;  %11005 = vmatpush2.bf16.msra.mxu0 %v14455_v26  ;;  %v13601_v26 = vcombine.low %v18077_v25, %v18134_v13  ;;  %v13511_v25 = vcombine.low %v18194_v32, %v18196_v57 }
 0x4b0   : > { %v8601_v62 = vpop.f32.mrf.mxu1  ;;  %v7771_v11 = vpop.f32.mrf.mxu0  ;;  %11006 = vmatprep.subr.bf16.mxu0 %v19660_v44  ;;  %v9191_v36 = vsel %vm5855_vm7, %v18191_v37, %v18242_v4  ;;  %v13514_v56 = vcombine.high %v18244_v18, %v18246_v30 }
 0x4b1   : > { %v8757_v48 = vadd.f32 %v8601_v62, %v8001_v63  ;;  %v7915_v58 = vadd.f32 %v7771_v11, %v7253_v20  ;;  %v10026_v42 = vrot.slane %v13601_v26, 1  ;;  %v9188_v62 = vrot.slane %v13511_v25, 2  ;;  %v7257_v11 = vld [vmem:[%s16377_s26 + $0x88] sm:$0xff] }
 0x4b2   : > { %v8603_v9 = vpop.f32.mrf.mxu1  ;;  %v7773_v33 = vpop.f32.mrf.mxu0  ;;  %11845 = vmatpush2.bf16.msra.mxu1 %v14447_v12  ;;  %v8003_v35 = vld [vmem:[%s16377_s26 + $0x58] sm:$0xff] }
 0x4b3   : > { %8802 = vst.msk [vmem:[%s16377_s26 + $0x48] sm:$0xff] %vm3596_vm4, %v8757_v48  ;;  %7960 = vst.msk [vmem:[%s16377_s26 + $0x68] sm:$0xff] %vm3596_vm4, %v7915_v58  ;;  %11846 = vmatprep.subr.bf16.mxu1 %v19660_v44  ;;  %11007 = vmatpush2.bf16.msra.mxu0 %v14459_v7  ;;  %v14465_v7 = vld [vmem:[%s19603_s3 + $0x4c0] sm:$0xff]   ;;  %v10032_v48 = vrot.slane %v13604_v61, 1  ;;  %v9194_v58 = vrot.slane %v13514_v56, 2  ;;  %v18289_v33 = vld [vmem:[#allocation3 + $0x140] sm:$0xff] }
 0x4b4   : > { %v8606_v2 = vpop.f32.mrf.mxu1  ;;  %10305 = vmatmul.mubr.bf16.gmra.mxu1 %v10019_v14  ;;  %v7776_v16 = vpop.f32.mrf.mxu0  ;;  %9475 = vmatmul.mubr.bf16.gmra.mxu0 %v9181_v39  ;;  %v18287_v14 = vld [vmem:[#allocation3 + $0xc0] sm:$0xff] }
 0x4b5   : > { %v8758_v28 = vadd.f32 %v8606_v2, %v8002_v21  ;;  %10312 = vmatprep.mubr.bf16.mxu1 %v10025_v1  ;;  %v7916_v46 = vadd.f32 %v7776_v16, %v7254_v50  ;;  %9482 = vmatprep.mubr.bf16.mxu0 %v9187_v52  ;;  %v10027_v1 = vsel %vm3369_vm5, %v10022_v19, %v10026_v42 }
 0x4b6   : > { %v8608_v0 = vpop.f32.mrf.mxu1  ;;  %v7778_v59 = vpop.f32.mrf.mxu0  ;;  %11847 = vmatpush2.bf16.msra.mxu1 %v14450_v54  ;;  %v8004_v40 = vld [vmem:[%s16377_s26 + $0x60] sm:$0xff]  ;;  %v13606_v2 = vcombine.high %v18196_v57, %v18244_v18  ;;  %v13513_v50 = vcombine.low %v18244_v18, %v18246_v30  ;;  %v10033_v52 = vsel %vm3369_vm5, %v18240_v34, %v10032_v48  ;;  %v9195_v55 = vsel %vm5855_vm7, %v18242_v4, %v9194_v58 }
 0x4b7   : > { %8803 = vst.msk [vmem:[%s16377_s26 + $0x50] sm:$0xff] %vm3596_vm4, %v8758_v28  ;;  %7961 = vst.msk [vmem:[%s16377_s26 + $0x70] sm:$0xff] %vm3596_vm4, %v7916_v46  ;;  %11848 = vmatprep.subr.bf16.mxu1 %v19660_v44  ;;  %v13516_v32 = vcombine.high %v18287_v14, %v18289_v33  ;;  %v13515_v25 = vcombine.low %v18287_v14, %v18289_v33 }
 0x4b8   : > { %v8609_v5 = vpop.f32.mrf.mxu1  ;;  %v7779_v23 = vpop.f32.mrf.mxu0  ;;  %v10036_v19 = vrot.slane %v13606_v2, 1 }
 0x4b9   : > { %v8759_v41 = vadd.f32 %v8609_v5, %v8003_v35  ;;  %v7917_v8 = vadd.f32 %v7779_v23, %v7255_v10  ;;  %v7259_v10 = vld [vmem:[%s16377_s26 + $0x98] sm:$0xff]  ;;  %v9198_v34 = vrot.slane %v13516_v32, 2 }
 0x4ba   : > { %v8611_v3 = vpop.f32.mrf.mxu1  ;;  %v7781_v29 = vpop.f32.mrf.mxu0  ;;  %11849 = vmatpush2.bf16.msra.mxu1 %v14454_v6  ;;  %v8005_v12 = vld [vmem:[%s16377_s26 + $0x68] sm:$0xff]  ;;  %v10030_v6 = vrot.slane %v13603_v15, 1 }
 0x4bb   : > { %8804 = vst.msk [vmem:[%s16377_s26 + $0x58] sm:$0xff] %vm3596_vm4, %v8759_v41  ;;  %7962 = vst.msk [vmem:[%s16377_s26 + $0x78] sm:$0xff] %vm3596_vm4, %v7917_v8  ;;  %11850 = vmatprep.subr.bf16.mxu1 %v19660_v44  ;;  %v18318_v8 = vld [vmem:[#allocation3 + $0x50] sm:$0xff]  ;;  %v18320_v3 = vld [vmem:[#allocation3 + $0x168] sm:$0xff] }
 0x4bc   : > { %v8614_v13 = vpop.f32.mrf.mxu1  ;;  %10313 = vmatmul.mubr.bf16.gmra.mxu1 %v10023_v31  ;;  %v7784_v53 = vpop.f32.mrf.mxu0  ;;  %9483 = vmatmul.mubr.bf16.gmra.mxu0 %v9185_v60  ;;  %v10031_v31 = vsel %vm3369_vm5, %v10026_v42, %v10030_v6  ;;  %v10037_v60 = vsel %vm3369_vm5, %v10032_v48, %v10036_v19  ;;  %v13610_v15 = vcombine.high %v18289_v33, %v18318_v8 }
 0x4bd   : > { %v8760_v63 = vadd.f32 %v8614_v13, %v8004_v40  ;;  %10320 = vmatprep.mubr.bf16.mxu1 %v10029_v27  ;;  %v7918_v51 = vadd.f32 %v7784_v53, %v7256_v24  ;;  %9490 = vmatprep.mubr.bf16.mxu0 %v9191_v36  ;;  %v7260_v27 = vld [vmem:[%s16377_s26 + $0xa0] sm:$0xff]  ;;  %v13608_v24 = vcombine.high %v18246_v30, %v18287_v14 }
 0x4be   : > { %v8616_v22 = vpop.f32.mrf.mxu1  ;;  %v7786_v47 = vpop.f32.mrf.mxu0  ;;  %11851 = vmatpush2.bf16.msra.mxu1 %v14458_v43  ;;  %v8006_v54 = vld [vmem:[%s16377_s26 + $0x70] sm:$0xff]  ;;  %v13605_v43 = vcombine.low %v18196_v57, %v18244_v18  ;;  %v9199_v18 = vsel %vm5855_vm7, %v9194_v58, %v9198_v34  ;;  %v13518_v53 = vcombine.high %v18318_v8, %v18320_v3  ;;  %v18346_v58 = vld [vmem:[#allocation3 + $0x190] sm:$0xff]  ;;  %v13517_v2 = vcombine.low %v18318_v8, %v18320_v3 }
 0x4bf   : > { %8805 = vst.msk [vmem:[%s16377_s26 + $0x60] sm:$0xff] %vm3596_vm4, %v8760_v63  ;;  %7963 = vst.msk [vmem:[%s16377_s26 + $0x80] sm:$0xff] %vm3596_vm4, %v7918_v51  ;;  %11852 = vmatprep.subr.bf16.mxu1 %v19660_v44  ;;  %v9189_v44 = vsel %vm5855_vm7, %v18236_v45, %v9188_v62  ;;  %v9192_v45 = vrot.slane %v13513_v50, 2  ;;  %v9196_v47 = vrot.slane %v13515_v25, 2 }
 0x4c0   : > { %v8617_v20 = vpop.f32.mrf.mxu1  ;;  %v7787_v37 = vpop.f32.mrf.mxu0 }
 0x4c1   : > { %v8761_v9 = vadd.f32 %v8617_v20, %v8005_v12  ;;  %v7919_v21 = vadd.f32 %v7787_v37, %v7257_v11  ;;  %v9193_v61 = vsel %vm5855_vm7, %v9188_v62, %v9192_v45  ;;  %v10034_v12 = vrot.slane %v13605_v43, 1 }
 0x4c2   : > { %v8619_v38 = vpop.f32.mrf.mxu1  ;;  %v7789_v39 = vpop.f32.mrf.mxu0  ;;  %11853 = vmatpush2.bf16.msra.mxu1 %v14465_v7  ;;  %v8007_v35 = vld [vmem:[%s16377_s26 + $0x78] sm:$0xff]  ;;  %v7261_v7 = vld [vmem:[%s16377_s26 + $0xa8] sm:$0xff]  ;;  %v10040_v20 = vrot.slane %v13608_v24, 1  ;;  %v9202_v11 = vrot.slane %v13518_v53, 2 }
 0x4c3   : > { %8806 = vst.msk [vmem:[%s16377_s26 + $0x68] sm:$0xff] %vm3596_vm4, %v8761_v9  ;;  %7964 = vst.msk [vmem:[%s16377_s26 + $0x88] sm:$0xff] %vm3596_vm4, %v7919_v21  ;;  %v18348_v9 = vld [vmem:[#allocation3 + $0x38] sm:$0xff]  ;;  %v10035_v39 = vsel %vm3369_vm5, %v10030_v6, %v10034_v12 }
 0x4c4   : > { %v8622_v16 = vpop.f32.mrf.mxu1  ;;  %10321 = vmatmul.mubr.bf16.gmra.mxu1 %v10027_v1  ;;  %v7792_v49 = vpop.f32.mrf.mxu0  ;;  %9491 = vmatmul.mubr.bf16.gmra.mxu0 %v9189_v44  ;;  %v13607_v1 = vcombine.low %v18246_v30, %v18287_v14  ;;  %v9197_v44 = vsel %vm5855_vm7, %v9192_v45, %v9196_v47  ;;  %v10041_v30 = vsel %vm3369_vm5, %v10036_v19, %v10040_v20  ;;  %v7262_v14 = vld [vmem:[%s16377_s26 + $0xb0] sm:$0xff]  ;;  %v7263_v19 = vld [vmem:[%s16377_s26 + $0xb8] sm:$0xff] }
 0x4c5   : > { %v8762_v28 = vadd.f32 %v8622_v16, %v8006_v54  ;;  %10328 = vmatprep.mubr.bf16.mxu1 %v10033_v52  ;;  %v7920_v46 = vadd.f32 %v7792_v49, %v7258_v17  ;;  %9498 = vmatprep.mubr.bf16.mxu0 %v9195_v55  ;;  %v9203_v52 = vsel %vm5855_vm7, %v9198_v34, %v9202_v11  ;;  %v18374_v34 = vld [vmem:[#allocation3 + $0x60] sm:$0xff] }
 0x4c6   : > { %v8624_v0 = vpop.f32.mrf.mxu1  ;;  %v7794_v59 = vpop.f32.mrf.mxu0  ;;  %v8008_v29 = vld [vmem:[%s16377_s26 + $0x80] sm:$0xff]  ;;  %v13520_v17 = vcombine.high %v18346_v58, %v18348_v9 }
 0x4c7   : > { %8807 = vst.msk [vmem:[%s16377_s26 + $0x70] sm:$0xff] %vm3596_vm4, %v8762_v28  ;;  %7965 = vst.msk [vmem:[%s16377_s26 + $0x90] sm:$0xff] %vm3596_vm4, %v7920_v46  ;;  %v10038_v0 = vrot.slane %v13607_v1, 1  ;;  %v9200_v59 = vrot.slane %v13517_v2, 2 }
 0x4c8   : > { %v8625_v5 = vpop.f32.mrf.mxu1  ;;  %v7795_v23 = vpop.f32.mrf.mxu0 }
 0x4c9   : > { %v8763_v4 = vadd.f32 %v8625_v5, %v8007_v35  ;;  %v7921_v41 = vadd.f32 %v7795_v23, %v7259_v10  ;;  %v10044_v35 = vrot.slane %v13610_v15, 1  ;;  %v9206_v5 = vrot.slane %v13520_v17, 2 }
 0x4ca   : > { %v8627_v40 = vpop.f32.mrf.mxu1  ;;  %v7797_v26 = vpop.f32.mrf.mxu0  ;;  %v8009_v51 = vld [vmem:[%s16377_s26 + $0x88] sm:$0xff] }
 0x4cb   : > { %8808 = vst.msk [vmem:[%s16377_s26 + $0x78] sm:$0xff] %vm3596_vm4, %v8763_v4  ;;  %7966 = vst.msk [vmem:[%s16377_s26 + $0x98] sm:$0xff] %vm3596_vm4, %v7921_v41  ;;  %v18376_v4 = vld [vmem:[#allocation3 + $0x18] sm:$0xff]  ;;  %v10045_v43 = vsel %vm3369_vm5, %v10040_v20, %v10044_v35 }
 0x4cc   : > { %v8630_v13 = vpop.f32.mrf.mxu1  ;;  %10329 = vmatmul.mubr.bf16.gmra.mxu1 %v10031_v31  ;;  %v7800_v57 = vpop.f32.mrf.mxu0  ;;  %9499 = vmatmul.mubr.bf16.gmra.mxu0 %v9193_v61  ;;  %v9201_v31 = vsel %vm5855_vm7, %v9196_v47, %v9200_v59  ;;  %v13519_v61 = vcombine.low %v18346_v58, %v18348_v9  ;;  %v13522_v24 = vcombine.high %v18374_v34, %v18376_v4 }
 0x4cd   : > { %v8764_v36 = vadd.f32 %v8630_v13, %v8008_v29  ;;  %10336 = vmatprep.mubr.bf16.mxu1 %v10037_v60  ;;  %v7922_v56 = vadd.f32 %v7800_v57, %v7260_v27  ;;  %9506 = vmatprep.mubr.bf16.mxu0 %v9199_v18  ;;  %v10039_v29 = vsel %vm3369_vm5, %v10034_v12, %v10038_v0  ;;  %v7264_v13 = vld [vmem:[%s16377_s26 + $0xc0] sm:$0xff]  ;;  %v7265_v12 = vld [vmem:[%s16377_s26 + $0xc8] sm:$0xff] }
 0x4ce   : > { %v8632_v63 = vpop.f32.mrf.mxu1  ;;  %v7802_v22 = vpop.f32.mrf.mxu0  ;;  %v8010_v38 = vld [vmem:[%s16377_s26 + $0x90] sm:$0xff]  ;;  %v13609_v60 = vcombine.low %v18289_v33, %v18318_v8  ;;  %v9207_v57 = vsel %vm5855_vm7, %v9202_v11, %v9206_v5  ;;  %v13612_v18 = vcombine.high %v18320_v3, %v18346_v58  ;;  %v13521_v15 = vcombine.low %v18374_v34, %v18376_v4 }
 0x4cf   : > { %8809 = vst.msk [vmem:[%s16377_s26 + $0x80] sm:$0xff] %vm3596_vm4, %v8764_v36  ;;  %7967 = vst.msk [vmem:[%s16377_s26 + $0xa0] sm:$0xff] %vm3596_vm4, %v7922_v56  ;;  %v18402_v11 = vld [vmem:[#allocation3 + $0x158] sm:$0xff] }
 0x4d0   : > { %v8633_v42 = vpop.f32.mrf.mxu1  ;;  %v7803_v62 = vpop.f32.mrf.mxu0  ;;  %v10042_v63 = vrot.slane %v13609_v60, 1 }
 0x4d1   : > { %v8765_v37 = vadd.f32 %v8633_v42, %v8009_v51  ;;  %v7923_v48 = vadd.f32 %v7803_v62, %v7261_v7  ;;  %v9204_v51 = vrot.slane %v13519_v61, 2  ;;  %v10048_v42 = vrot.slane %v13612_v18, 1 }
 0x4d2   : > { %v8635_v21 = vpop.f32.mrf.mxu1  ;;  %v7805_v54 = vpop.f32.mrf.mxu0  ;;  %v8011_v28 = vld [vmem:[%s16377_s26 + $0x98] sm:$0xff]  ;;  %v9210_v7 = vrot.slane %v13522_v24, 2  ;;  %v10043_v1 = vsel %vm3369_vm5, %v10038_v0, %v10042_v63 }
 0x4d3   : > { %8810 = vst.msk [vmem:[%s16377_s26 + $0x88] sm:$0xff] %vm3596_vm4, %v8765_v37  ;;  %7968 = vst.msk [vmem:[%s16377_s26 + $0xa8] sm:$0xff] %vm3596_vm4, %v7923_v48  ;;  %v18404_v37 = vld [vmem:[#allocation3 + $0x120] sm:$0xff]  ;;  %v13611_v54 = vcombine.low %v18320_v3, %v18346_v58  ;;  %v10049_v3 = vsel %vm3369_vm5, %v10044_v35, %v10048_v42 }
 0x4d4   : > { %v8638_v50 = vpop.f32.mrf.mxu1  ;;  %10337 = vmatmul.mubr.bf16.gmra.mxu1 %v10035_v39  ;;  %v7808_v16 = vpop.f32.mrf.mxu0  ;;  %9507 = vmatmul.mubr.bf16.gmra.mxu0 %v9197_v44  ;;  %v9205_v39 = vsel %vm5855_vm7, %v9200_v59, %v9204_v51  ;;  %v13614_v44 = vcombine.high %v18348_v9, %v18374_v34  ;;  %v7266_v58 = vld [vmem:[%s16377_s26 + $0xd0] sm:$0xff]  ;;  %v7267_v35 = vld [vmem:[%s16377_s26 + $0xd8] sm:$0xff]  ;;  %v13523_v60 = vcombine.low %v18402_v11, %v18404_v37 }
 0x4d5   : > { %v8766_v49 = vadd.f32 %v8638_v50, %v8010_v38  ;;  %10344 = vmatprep.mubr.bf16.mxu1 %v10041_v30  ;;  %v7924_v55 = vadd.f32 %v7808_v16, %v7262_v14  ;;  %9514 = vmatprep.mubr.bf16.mxu0 %v9203_v52  ;;  %v9211_v30 = vsel %vm5855_vm7, %v9206_v5, %v9210_v7  ;;  %v18430_v5 = vld [vmem:[#allocation3 + $0x198] sm:$0xff] }
 0x4d6   : > { %v8640_v32 = vpop.f32.mrf.mxu1  ;;  %v7810_v46 = vpop.f32.mrf.mxu0  ;;  %v8012_v40 = vld [vmem:[%s16377_s26 + $0xa0] sm:$0xff]  ;;  %v13524_v14 = vcombine.high %v18402_v11, %v18404_v37 }
 0x4d7   : > { %8811 = vst.msk [vmem:[%s16377_s26 + $0x90] sm:$0xff] %vm3596_vm4, %v8766_v49  ;;  %7969 = vst.msk [vmem:[%s16377_s26 + $0xb0] sm:$0xff] %vm3596_vm4, %v7924_v55  ;;  %v10046_v32 = vrot.slane %v13611_v54, 1  ;;  %v9208_v46 = vrot.slane %v13521_v15, 2 }
 0x4d8   : > { %v8641_v6 = vpop.f32.mrf.mxu1  ;;  %v7811_v45 = vpop.f32.mrf.mxu0 }
 0x4d9   : > { %v8767_v10 = vadd.f32 %v8641_v6, %v8011_v28  ;;  %v7925_v23 = vadd.f32 %v7811_v45, %v7263_v19  ;;  %v10052_v28 = vrot.slane %v13614_v44, 1  ;;  %v9214_v6 = vrot.slane %v13524_v14, 2 }
 0x4da   : > { %v8643_v41 = vpop.f32.mrf.mxu1  ;;  %v7813_v26 = vpop.f32.mrf.mxu0  ;;  %v8013_v36 = vld [vmem:[%s16377_s26 + $0xa8] sm:$0xff] }
 0x4db   : > { %8812 = vst.msk [vmem:[%s16377_s26 + $0x98] sm:$0xff] %vm3596_vm4, %v8767_v10  ;;  %7970 = vst.msk [vmem:[%s16377_s26 + $0xb8] sm:$0xff] %vm3596_vm4, %v7925_v23  ;;  %v18432_v10 = vld [vmem:[#allocation3 + $0x68] sm:$0xff]  ;;  %v10053_v26 = vsel %vm3369_vm5, %v10048_v42, %v10052_v28 }
 0x4dc   : > { %v8646_v25 = vpop.f32.mrf.mxu1  ;;  %10345 = vmatmul.mubr.bf16.gmra.mxu1 %v10039_v29  ;;  %v7816_v27 = vpop.f32.mrf.mxu0  ;;  %9515 = vmatmul.mubr.bf16.gmra.mxu0 %v9201_v31  ;;  %v13613_v31 = vcombine.low %v18348_v9, %v18374_v34  ;;  %v13526_v18 = vcombine.high %v18430_v5, %v18432_v10  ;;  %v13525_v44 = vcombine.low %v18430_v5, %v18432_v10 }
 0x4dd   : > { %v8768_v33 = vadd.f32 %v8646_v25, %v8012_v40  ;;  %10352 = vmatprep.mubr.bf16.mxu1 %v10045_v43  ;;  %v7926_v8 = vadd.f32 %v7816_v27, %v7264_v13  ;;  %9522 = vmatprep.mubr.bf16.mxu0 %v9207_v57  ;;  %v10047_v40 = vsel %vm3369_vm5, %v10042_v63, %v10046_v32  ;;  %v7268_v25 = vld [vmem:[%s16377_s26 + $0xe0] sm:$0xff]  ;;  %v7269_v63 = vld [vmem:[%s16377_s26 + $0xe8] sm:$0xff] }
 0x4de   : > { %v8648_v53 = vpop.f32.mrf.mxu1  ;;  %v7818_v56 = vpop.f32.mrf.mxu0  ;;  %v8014_v21 = vld [vmem:[%s16377_s26 + $0xb0] sm:$0xff]  ;;  %v9209_v43 = vsel %vm5855_vm7, %v9204_v51, %v9208_v46  ;;  %v9215_v27 = vsel %vm5855_vm7, %v9210_v7, %v9214_v6  ;;  %v13616_v57 = vcombine.high %v18376_v4, %v18402_v11  ;;  %v18458_v7 = vld [vmem:[#allocation3 + $0x30] sm:$0xff] }
 0x4df   : > { %8813 = vst.msk [vmem:[%s16377_s26 + $0xa0] sm:$0xff] %vm3596_vm4, %v8768_v33  ;;  %7971 = vst.msk [vmem:[%s16377_s26 + $0xc0] sm:$0xff] %vm3596_vm4, %v7926_v8  ;;  %v10050_v53 = vrot.slane %v13613_v31, 1 }
 0x4e0   : > { %v8649_v22 = vpop.f32.mrf.mxu1  ;;  %v7819_v47 = vpop.f32.mrf.mxu0 }
 0x4e1   : > { %v8769_v62 = vadd.f32 %v8649_v22, %v8013_v36  ;;  %v7927_v20 = vadd.f32 %v7819_v47, %v7265_v12  ;;  %v9212_v36 = vrot.slane %v13523_v60, 2  ;;  %v10056_v22 = vrot.slane %v13616_v57, 1 }
 0x4e2   : > { %v8651_v48 = vpop.f32.mrf.mxu1  ;;  %v7821_v38 = vpop.f32.mrf.mxu0  ;;  %v8015_v49 = vld [vmem:[%s16377_s26 + $0xb8] sm:$0xff]  ;;  %v9218_v12 = vrot.slane %v13526_v18, 2  ;;  %v10051_v54 = vsel %vm3369_vm5, %v10046_v32, %v10050_v53 }
 0x4e3   : > { %8814 = vst.msk [vmem:[%s16377_s26 + $0xa8] sm:$0xff] %vm3596_vm4, %v8769_v62  ;;  %7972 = vst.msk [vmem:[%s16377_s26 + $0xc8] sm:$0xff] %vm3596_vm4, %v7927_v20  ;;  %v18460_v62 = vld [vmem:[#allocation3 + $0xc8] sm:$0xff]  ;;  %v13615_v38 = vcombine.low %v18376_v4, %v18402_v11  ;;  %v10057_v4 = vsel %vm3369_vm5, %v10052_v28, %v10056_v22  ;;  %v7270_v11 = vld [vmem:[%s16377_s26 + $0xf0] sm:$0xff] }
 0x4e4   : > { %v8654_v2 = vpop.f32.mrf.mxu1  ;;  %10353 = vmatmul.mubr.bf16.gmra.mxu1 %v10043_v1  ;;  %v7824_v50 = vpop.f32.mrf.mxu0  ;;  %9523 = vmatmul.mubr.bf16.gmra.mxu0 %v9205_v39  ;;  %v9213_v1 = vsel %vm5855_vm7, %v9208_v46, %v9212_v36  ;;  %v13618_v39 = vcombine.high %v18404_v37, %v18430_v5  ;;  %v7271_v28 = vld [vmem:[%s16377_s26 + $0xf8] sm:$0xff]  ;;  %v13527_v31 = vcombine.low %v18458_v7, %v18460_v62 }
 0x4e5   : > { %v8770_v16 = vadd.f32 %v8654_v2, %v8014_v21  ;;  %10360 = vmatprep.mubr.bf16.mxu1 %v10049_v3  ;;  %v7928_v52 = vadd.f32 %v7824_v50, %v7266_v58  ;;  %9530 = vmatprep.mubr.bf16.mxu0 %v9211_v30  ;;  %v9219_v3 = vsel %vm5855_vm7, %v9214_v6, %v9218_v12  ;;  %v18486_v6 = vld [vmem:[#allocation3 + $0xf8] sm:$0xff] }
 0x4e6   : > { %v8656_v17 = vpop.f32.mrf.mxu1  ;;  %v7826_v55 = vpop.f32.mrf.mxu0  ;;  %v8016_v41 = vld [vmem:[%s16377_s26 + $0xc0] sm:$0xff]  ;;  %v13528_v58 = vcombine.high %v18458_v7, %v18460_v62 }
 0x4e7   : > { %8815 = vst.msk [vmem:[%s16377_s26 + $0xb0] sm:$0xff] %vm3596_vm4, %v8770_v16  ;;  %7973 = vst.msk [vmem:[%s16377_s26 + $0xd0] sm:$0xff] %vm3596_vm4, %v7928_v52  ;;  %v10054_v17 = vrot.slane %v13615_v38, 1  ;;  %v9216_v55 = vrot.slane %v13525_v44, 2 }
 0x4e8   : > { %v8657_v0 = vpop.f32.mrf.mxu1  ;;  %v7827_v59 = vpop.f32.mrf.mxu0 }
 0x4e9   : > { %v8771_v19 = vadd.f32 %v8657_v0, %v8015_v49  ;;  %v7929_v45 = vadd.f32 %v7827_v59, %v7267_v35  ;;  %v10060_v49 = vrot.slane %v13618_v39, 1  ;;  %v9222_v0 = vrot.slane %v13528_v58, 2 }
 0x4ea   : > { %v8659_v23 = vpop.f32.mrf.mxu1  ;;  %v7829_v29 = vpop.f32.mrf.mxu0  ;;  %v8017_v33 = vld [vmem:[%s16377_s26 + $0xc8] sm:$0xff] }
 0x4eb   : > { %8816 = vst.msk [vmem:[%s16377_s26 + $0xb8] sm:$0xff] %vm3596_vm4, %v8771_v19  ;;  %7974 = vst.msk [vmem:[%s16377_s26 + $0xd8] sm:$0xff] %vm3596_vm4, %v7929_v45  ;;  %v18488_v19 = vld [vmem:[#allocation3 + $0x28] sm:$0xff]  ;;  %v10061_v29 = vsel %vm3369_vm5, %v10056_v22, %v10060_v49 }
 0x4ec   : > { %v8662_v61 = vpop.f32.mrf.mxu1  ;;  %10361 = vmatmul.mubr.bf16.gmra.mxu1 %v10047_v40  ;;  %v7832_v13 = vpop.f32.mrf.mxu0  ;;  %9531 = vmatmul.mubr.bf16.gmra.mxu0 %v9209_v43  ;;  %v13617_v43 = vcombine.low %v18404_v37, %v18430_v5  ;;  %v13530_v57 = vcombine.high %v18486_v6, %v18488_v19  ;;  %v13529_v39 = vcombine.low %v18486_v6, %v18488_v19 }
 0x4ed   : > { %v8772_v9 = vadd.f32 %v8662_v61, %v8016_v41  ;;  %10368 = vmatprep.mubr.bf16.mxu1 %v10053_v26  ;;  %v7930_v34 = vadd.f32 %v7832_v13, %v7268_v25  ;;  %9538 = vmatprep.mubr.bf16.mxu0 %v9215_v27  ;;  %v10055_v41 = vsel %vm3369_vm5, %v10050_v53, %v10054_v17  ;;  %v7272_v61 = vld [vmem:[%s16377_s26 + $0x100] sm:$0xff]  ;;  %v7273_v53 = vld [vmem:[%s16377_s26 + $0x108] sm:$0xff] }
 0x4ee   : > { %v8664_v24 = vpop.f32.mrf.mxu1  ;;  %v7834_v8 = vpop.f32.mrf.mxu0  ;;  %v8018_v48 = vld [vmem:[%s16377_s26 + $0xd0] sm:$0xff]  ;;  %v9217_v26 = vsel %vm5855_vm7, %v9212_v36, %v9216_v55  ;;  %v9223_v13 = vsel %vm5855_vm7, %v9218_v12, %v9222_v0  ;;  %v13620_v27 = vcombine.high %v18432_v10, %v18458_v7  ;;  %v18514_v12 = vld [vmem:[#allocation3 + $0x8] sm:$0xff] }
 0x4ef   : > { %8817 = vst.msk [vmem:[%s16377_s26 + $0xc0] sm:$0xff] %vm3596_vm4, %v8772_v9  ;;  %7975 = vst.msk [vmem:[%s16377_s26 + $0xe0] sm:$0xff] %vm3596_vm4, %v7930_v34  ;;  %v10058_v24 = vrot.slane %v13617_v43, 1  ;;  %v18557_v43 = vld [vmem:[#allocation3 + $0x98] sm:$0xff] }
 0x4f0   : > { %v8665_v56 = vpop.f32.mrf.mxu1  ;;  %v7835_v51 = vpop.f32.mrf.mxu0 }
 0x4f1   : > { %v8773_v47 = vadd.f32 %v8665_v56, %v8017_v33  ;;  %v7931_v42 = vadd.f32 %v7835_v51, %v7269_v63  ;;  %v9220_v33 = vrot.slane %v13527_v31, 2  ;;  %v10064_v56 = vrot.slane %v13620_v27, 1 }
 0x4f2   : > { %v8667_v20 = vpop.f32.mrf.mxu1  ;;  %v7837_v21 = vpop.f32.mrf.mxu0  ;;  %v8019_v16 = vld [vmem:[%s16377_s26 + $0xd8] sm:$0xff]  ;;  %v9226_v63 = vrot.slane %v13530_v57, 2  ;;  %v10059_v38 = vsel %vm3369_vm5, %v10054_v17, %v10058_v24 }
 0x4f3   : > { %8818 = vst.msk [vmem:[%s16377_s26 + $0xc8] sm:$0xff] %vm3596_vm4, %v8773_v47  ;;  %7976 = vst.msk [vmem:[%s16377_s26 + $0xe8] sm:$0xff] %vm3596_vm4, %v7931_v42  ;;  %v18516_v47 = vld [vmem:[#allocation3 + $0x80] sm:$0xff]  ;;  %v13619_v21 = vcombine.low %v18432_v10, %v18458_v7  ;;  %v10065_v10 = vsel %vm3369_vm5, %v10060_v49, %v10064_v56 }
 0x4f4   : > { %v8670_v15 = vpop.f32.mrf.mxu1  ;;  %10369 = vmatmul.mubr.bf16.gmra.mxu1 %v10051_v54  ;;  %v7840_v2 = vpop.f32.mrf.mxu0  ;;  %9539 = vmatmul.mubr.bf16.gmra.mxu0 %v9213_v1  ;;  %v9221_v54 = vsel %vm5855_vm7, %v9216_v55, %v9220_v33  ;;  %v13622_v1 = vcombine.high %v18460_v62, %v18486_v6  ;;  %v7274_v7 = vld [vmem:[%s16377_s26 + $0x110] sm:$0xff]  ;;  %v7275_v17 = vld [vmem:[%s16377_s26 + $0x118] sm:$0xff] }
 0x4f5   : > { %v8774_v50 = vadd.f32 %v8670_v15, %v8018_v48  ;;  %10376 = vmatprep.mubr.bf16.mxu1 %v10057_v4  ;;  %v7932_v30 = vadd.f32 %v7840_v2, %v7270_v11  ;;  %9546 = vmatprep.mubr.bf16.mxu0 %v9219_v3  ;;  %v9227_v4 = vsel %vm5855_vm7, %v9222_v0, %v9226_v63  ;;  %v18542_v0 = vld [vmem:[#allocation3 + $0x150] sm:$0x33] }
 0x4f6   : > { %v8672_v14 = vpop.f32.mrf.mxu1  ;;  %v7842_v52 = vpop.f32.mrf.mxu0  ;;  %v8020_v23 = vld [vmem:[%s16377_s26 + $0xe0] sm:$0xff]  ;;  %v13532_v11 = vcombine.high %v18514_v12, %v18516_v47  ;;  %v10068_v55 = vrot.slane %v13622_v1, 1  ;;  %v7278_v1 = vld [vmem:[%s16377_s26 + $0x130] sm:$0xff] }
 0x4f7   : > { %8819 = vst.msk [vmem:[%s16377_s26 + $0xd0] sm:$0xff] %vm3596_vm4, %v8774_v50  ;;  %7977 = vst.msk [vmem:[%s16377_s26 + $0xf0] sm:$0xff] %vm3596_vm4, %v7932_v30  ;;  %v10062_v14 = vrot.slane %v13619_v21, 1  ;;  %v13533_v21 = vcombine.low %v18557_v43, %v18542_v0 }
 0x4f8   : > { %v8673_v32 = vpop.f32.mrf.mxu1  ;;  %v7843_v46 = vpop.f32.mrf.mxu0 }
 0x4f9   : > { %v8775_v35 = vadd.f32 %v8673_v32, %v8019_v16  ;;  %v7933_v59 = vadd.f32 %v7843_v46, %v7271_v28  ;;  %v9224_v16 = vrot.slane %v13529_v39, 2  ;;  %v9230_v32 = vrot.slane %v13532_v11, 2 }
 0x4fa   : > { %v8675_v45 = vpop.f32.mrf.mxu1  ;;  %v7845_v40 = vpop.f32.mrf.mxu0  ;;  %v8021_v9 = vld [vmem:[%s16377_s26 + $0xe8] sm:$0xff] }
 0x4fb   : > { %8820 = vst.msk [vmem:[%s16377_s26 + $0xd8] sm:$0xff] %vm3596_vm4, %v8775_v35  ;;  %7978 = vst.msk [vmem:[%s16377_s26 + $0xf8] sm:$0xff] %vm3596_vm4, %v7933_v59  ;;  %v10063_v45 = vsel %vm3369_vm5, %v10058_v24, %v10062_v14  ;;  %v13621_v40 = vcombine.low %v18460_v62, %v18486_v6  ;;  %v9231_v62 = vsel %vm5855_vm7, %v9226_v63, %v9230_v32  ;;  %v7277_v24 = vld [vmem:[%s16377_s26 + $0x128] sm:$0xff] }
 0x4fc   : > { %v8678_v60 = vpop.f32.mrf.mxu1  ;;  %10377 = vmatmul.mubr.bf16.gmra.mxu1 %v10055_v41  ;;  %v7848_v25 = vpop.f32.mrf.mxu0  ;;  %9547 = vmatmul.mubr.bf16.gmra.mxu0 %v9217_v26  ;;  %v9225_v41 = vsel %vm5855_vm7, %v9220_v33, %v9224_v16  ;;  %v13531_v26 = vcombine.low %v18514_v12, %v18516_v47  ;;  %v13534_v6 = vcombine.high %v18557_v43, %v18542_v0 }
 0x4fd   : > { %v8776_v37 = vadd.f32 %v8678_v60, %v8020_v23  ;;  %10384 = vmatprep.mubr.bf16.mxu1 %v10061_v29  ;;  %v7934_v5 = vadd.f32 %v7848_v25, %v7272_v61  ;;  %9554 = vmatprep.mubr.bf16.mxu0 %v9223_v13  ;;  %v13624_v29 = vcombine.high %v18488_v19, %v18514_v12  ;;  %v7276_v61 = vld [vmem:[%s16377_s26 + $0x120] sm:$0xff] }
 0x4fe   : > { %v8680_v18 = vpop.f32.mrf.mxu1  ;;  %v7850_v34 = vpop.f32.mrf.mxu0  ;;  %v8022_v20 = vld [vmem:[%s16377_s26 + $0xf0] sm:$0xff]  ;;  %v10069_v60 = vsel %vm3369_vm5, %v10064_v56, %v10068_v55 }
 0x4ff   : > { %8821 = vst.msk [vmem:[%s16377_s26 + $0xe0] sm:$0xff] %vm3596_vm4, %v8776_v37  ;;  %7979 = vst.msk [vmem:[%s16377_s26 + $0x100] sm:$0xff] %vm3596_vm4, %v7934_v5  ;;  %v10066_v18 = vrot.slane %v13621_v40, 1 }
 0x500   : > { %v8681_v8 = vpop.f32.mrf.mxu1  ;;  %v7851_v36 = vpop.f32.mrf.mxu0 }
 0x501   : > { %v8777_v51 = vadd.f32 %v8681_v8, %v8021_v9  ;;  %v7935_v22 = vadd.f32 %v7851_v36, %v7273_v53  ;;  %v9228_v9 = vrot.slane %v13531_v26, 2  ;;  %v10072_v8 = vrot.slane %v13624_v29, 1 }
 0x502   : > { %v8683_v42 = vpop.f32.mrf.mxu1  ;;  %v7853_v48 = vpop.f32.mrf.mxu0  ;;  %v8023_v50 = vld [vmem:[%s16377_s26 + $0xf8] sm:$0xff]  ;;  %v9234_v53 = vrot.slane %v13534_v6, 2 }
 0x503   : > { %8822 = vst.msk [vmem:[%s16377_s26 + $0xe8] sm:$0xff] %vm3596_vm4, %v8777_v51  ;;  %7980 = vst.msk [vmem:[%s16377_s26 + $0x108] sm:$0xff] %vm3596_vm4, %v7935_v22  ;;  %v10067_v42 = vsel %vm3369_vm5, %v10062_v14, %v10066_v18  ;;  %v13623_v48 = vcombine.low %v18488_v19, %v18514_v12  ;;  %v9774_v6 = vld [vmem:[#allocation3 + $0xe8] sm:$0x11] }
 0x504   : > { %v8686_v44 = vpop.f32.mrf.mxu1  ;;  %10385 = vmatmul.mubr.bf16.gmra.mxu1 %v10059_v38  ;;  %v7856_v15 = vpop.f32.mrf.mxu0  ;;  %9555 = vmatmul.mubr.bf16.gmra.mxu0 %v9221_v54  ;;  %v10073_v54 = vsel %vm3369_vm5, %v10068_v55, %v10072_v8 }
 0x505   : > { %v8778_v2 = vadd.f32 %v8686_v44, %v8022_v20  ;;  %10392 = vmatprep.mubr.bf16.mxu1 %v10065_v10  ;;  %v7936_v3 = vadd.f32 %v7856_v15, %v7274_v7  ;;  %9562 = vmatprep.mubr.bf16.mxu0 %v9227_v4  ;;  %v9229_v20 = vsel %vm5855_vm7, %v9224_v16, %v9228_v9  ;;  %v10070_v11 = vrot.slane %v13623_v48, 1 }
 0x506   : > { %v8688_v58 = vpop.f32.mrf.mxu1  ;;  %v7858_v30 = vpop.f32.mrf.mxu0  ;;  %v8024_v59 = vld [vmem:[%s16377_s26 + $0x100] sm:$0xff]  ;;  %v9235_v44 = vsel %vm5855_vm7, %v9230_v32, %v9234_v53  ;;  %v13626_v10 = vcombine.high %v18516_v47, %v18557_v43 }
 0x507   : > { %8823 = vst.msk [vmem:[%s16377_s26 + $0xf0] sm:$0xff] %vm3596_vm4, %v8778_v2  ;;  %7981 = vst.msk [vmem:[%s16377_s26 + $0x110] sm:$0xff] %vm3596_vm4, %v7936_v3  ;;  %v9232_v2 = vrot.slane %v13533_v21, 2  ;;  %v7279_v58 = vld [vmem:[%s16377_s26 + $0x138] sm:$0xff]  ;;  %v10071_v55 = vsel %vm3369_vm5, %v10066_v18, %v10070_v11 }
 0x508   : > { %v8689_v52 = vpop.f32.mrf.mxu1  ;;  %v7859_v49 = vpop.f32.mrf.mxu0  ;;  %v10076_v30 = vrot.slane %v13626_v10, 1  ;;  %v7283_v21 = vld [vmem:[%s16377_s26 + $0x158] sm:$0xff] }
 0x509   : > { %v8779_v28 = vadd.f32 %v8689_v52, %v8023_v50  ;;  %v7937_v46 = vadd.f32 %v7859_v49, %v7275_v17  ;;  %v9233_v32 = vsel %vm5855_vm7, %v9228_v9, %v9232_v2 }
 0x50a   : > { %v8691_v35 = vpop.f32.mrf.mxu1  ;;  %v7861_v23 = vpop.f32.mrf.mxu0  ;;  %v8025_v37 = vld [vmem:[%s16377_s26 + $0x108] sm:$0xff]  ;;  %v10077_v0 = vsel %vm3369_vm5, %v10072_v8, %v10076_v30 }
 0x50b   : > { %8824 = vst.msk [vmem:[%s16377_s26 + $0xf8] sm:$0xff] %vm3596_vm4, %v8779_v28  ;;  %7982 = vst.msk [vmem:[%s16377_s26 + $0x118] sm:$0xff] %vm3596_vm4, %v7937_v46  ;;  %v13625_v28 = vcombine.low %v18516_v47, %v18557_v43  ;;  %v7280_v35 = vld [vmem:[%s16377_s26 + $0x140] sm:$0xff]  ;;  %v10575_v43 = vld [vmem:[#allocation3 + $0x40] sm:$0xff] }
 0x50c   : > { %v8694_v31 = vpop.f32.mrf.mxu1  ;;  %10393 = vmatmul.mubr.bf16.gmra.mxu1 %v10063_v45  ;;  %v7864_v25 = vpop.f32.mrf.mxu0  ;;  %9563 = vmatmul.mubr.bf16.gmra.mxu0 %v9225_v41  ;;  %v18603_v45 = vld [vmem:[#allocation3 + $0x154] ss:$-104 sps:$4 sm:$0x1f]  }
 0x50d   : > { %v8780_v13 = vadd.f32 %v8694_v31, %v8024_v59  ;;  %10400 = vmatprep.mubr.bf16.mxu1 %v10069_v60  ;;  %v7938_v27 = vadd.f32 %v7864_v25, %v7276_v61  ;;  %9570 = vmatprep.mubr.bf16.mxu0 %v9231_v62  ;;  %v10074_v47 = vrot.slane %v13625_v28, 1  ;;  %v18610_v31 = vld [vmem:[#allocation3 + $0x178] sm:$0xff]  ;;  %v9773_v62 = vld [vmem:[#allocation3 + $0x150] sm:$0xff] }
 0x50e   : > { %v8696_v57 = vpop.f32.mrf.mxu1  ;;  %v7866_v5 = vpop.f32.mrf.mxu0  ;;  %v8026_v51 = vld [vmem:[%s16377_s26 + $0x110] sm:$0xff]  ;;  %v7281_v61 = vld [vmem:[%s16377_s26 + $0x148] sm:$0xff]  ;;  %v18647_v28 = vld [vmem:[#allocation3 + $0x108] ss:$8 sps:$4 sm:$0xff]  }
 0x50f   : > { %8825 = vst.msk [vmem:[%s16377_s26 + $0x100] sm:$0xff] %vm3596_vm4, %v8780_v13  ;;  %7983 = vst.msk [vmem:[%s16377_s26 + $0x120] sm:$0xff] %vm3596_vm4, %v7938_v27  ;;  %v10080_v13 = vrot.slane %v18603_v45, 1  ;;  %v10075_v9 = vsel %vm3369_vm5, %v10070_v11, %v10074_v47  ;;  %v7284_v11 = vld [vmem:[%s16377_s26 + $0x160] sm:$0xff] }
 0x510   : > { %v8697_v34 = vpop.f32.mrf.mxu1  ;;  %v7867_v33 = vpop.f32.mrf.mxu0 }
 0x511   : > { %v8781_v36 = vadd.f32 %v8697_v34, %v8025_v37  ;;  %v7939_v56 = vadd.f32 %v7867_v33, %v7277_v24  ;;  %v13678_v34 = vcombine.high %v10575_v43, %v18610_v31  ;;  %v13627_v24 = vcombine.low %v9773_v62, %v9774_v6  ;;  %v8839_v6 = vld [vmem:[%s16377_s26 + $0x8] sm:$0xff] }
 0x512   : > { %v8699_v63 = vpop.f32.mrf.mxu1  ;;  %v7869_v22 = vpop.f32.mrf.mxu0  ;;  %v8027_v15 = vld [vmem:[%s16377_s26 + $0x118] sm:$0xff]  ;;  %v10081_v8 = vsel %vm3369_vm5, %v10076_v30, %v10080_v13 }
 0x513   : > { %8826 = vst.msk [vmem:[%s16377_s26 + $0x108] sm:$0xff] %vm3596_vm4, %v8781_v36  ;;  %7984 = vst.msk [vmem:[%s16377_s26 + $0x128] sm:$0xff] %vm3596_vm4, %v7939_v56 }
 0x514   : > { %v8702_v38 = vpop.f32.mrf.mxu1  ;;  %10401 = vmatmul.mubr.bf16.gmra.mxu1 %v10067_v42  ;;  %v7872_v39 = vpop.f32.mrf.mxu0  ;;  %9571 = vmatmul.mubr.bf16.gmra.mxu0 %v9229_v20  ;;  %v10078_v20 = vrot.slane %v13627_v24, 1 }
 0x515   : > { %v8782_v7 = vadd.f32 %v8702_v38, %v8026_v51  ;;  %10408 = vmatprep.mubr.bf16.mxu1 %v10073_v54  ;;  %v7940_v19 = vadd.f32 %v7872_v39, %v7278_v1  ;;  %9578 = vmatprep.mubr.bf16.mxu0 %v9235_v44  ;;  %v13677_v44 = vcombine.low %v10575_v43, %v18610_v31 }
 0x516   : > { %v8704_v12 = vpop.f32.mrf.mxu1  ;;  %v7874_v4 = vpop.f32.mrf.mxu0  ;;  %v8028_v17 = vld [vmem:[%s16377_s26 + $0x120] sm:$0xff] }
 0x517   : > { %8827 = vst.msk [vmem:[%s16377_s26 + $0x110] sm:$0xff] %vm3596_vm4, %v8782_v7  ;;  %7985 = vst.msk [vmem:[%s16377_s26 + $0x130] sm:$0xff] %vm3596_vm4, %v7940_v19  ;;  %v10079_v19 = vsel %vm3369_vm5, %v10074_v47, %v10078_v20  ;;  %v18636_v12 = vld [vmem:[#allocation3 + $0x10c] ss:$8 sps:$4 sm:$0xff]  }
 0x518   : > { %v8705_v3 = vpop.f32.mrf.mxu1  ;;  %v7875_v50 = vpop.f32.mrf.mxu0 }
 0x519   : > { %v8783_v14 = vadd.f32 %v8705_v3, %v8027_v15  ;;  %v7941_v16 = vadd.f32 %v7875_v50, %v7279_v58  ;;  %v11327_v15 = vld [vmem:[#allocation3 + $0x40] sm:$0x88] }
 0x51a   : > { %v8707_v52 = vpop.f32.mrf.mxu1  ;;  %v7877_v49 = vpop.f32.mrf.mxu0  ;;  %v8029_v29 = vld [vmem:[%s16377_s26 + $0x128] sm:$0xff] }
 0x51b   : > { %8828 = vst.msk [vmem:[%s16377_s26 + $0x118] sm:$0xff] %vm3596_vm4, %v8783_v14  ;;  %7986 = vst.msk [vmem:[%s16377_s26 + $0x138] sm:$0xff] %vm3596_vm4, %v7941_v16  ;;  %v13772_v16 = vcombine.high %v11327_v15, %v18610_v31  ;;  %v11594_v49 = vrot.slane %v18636_v12, 3 }
 0x51c   : > { %v8710_v46 = vpop.f32.mrf.mxu1  ;;  %10409 = vmatmul.mubr.bf16.gmra.mxu1 %v10071_v55  ;;  %v7880_v59 = vpop.f32.mrf.mxu0  ;;  %9579 = vmatmul.mubr.bf16.gmra.mxu0 %v9233_v32 }
 0x51d   : > { %v8784_v23 = vadd.f32 %v8710_v46, %v8028_v17  ;;  %10416 = vmatprep.mubr.bf16.mxu1 %v10077_v0  ;;  %v7942_v41 = vadd.f32 %v7880_v59, %v7280_v35  ;;  %9586 = vmatprep.mubr.bf16.mxu0 %v9234_v53  ;;  %v7282_v53 = vld [vmem:[%s16377_s26 + $0x150] sm:$0xff]  ;;  %v11593_v0 = vrot.slane %v13772_v16, 3 }
 0x51e   : > { %v8712_v40 = vpop.f32.mrf.mxu1  ;;  %v7882_v26 = vpop.f32.mrf.mxu0  ;;  %v8030_v5 = vld [vmem:[%s16377_s26 + $0x130] sm:$0xff] }
 0x51f   : > { %8829 = vst.msk [vmem:[%s16377_s26 + $0x120] sm:$0xff] %vm3596_vm4, %v8784_v23  ;;  %7987 = vst.msk [vmem:[%s16377_s26 + $0x140] sm:$0xff] %vm3596_vm4, %v7942_v41  ;;  %v18652_v59 = vld [vmem:[#allocation3 + $0x94] ss:$136 sps:$4 sm:$0xff]   ;;  %v11595_v23 = vsel %vm5008_vm6, %v11593_v0, %v11594_v49  ;;  %v8838_v41 = vld [vmem:[%s16377_s26] sm:$0xff]  ;;  %v13771_v26 = vcombine.low %v11327_v15, %v18610_v31 }
 0x520   : > { %v8713_v60 = vpop.f32.mrf.mxu1  ;;  %v7883_v25 = vpop.f32.mrf.mxu0  ;;  %v11598_v31 = vrot.slane %v18652_v59, 3 }
 0x521   : > { %v8785_v27 = vadd.f32 %v8713_v60, %v8029_v29  ;;  %v7943_v57 = vadd.f32 %v7883_v25, %v7281_v61  ;;  %v11591_v25 = vrot.slane %v18647_v28, 3 }
 0x522   : > { %v8715_v37 = vpop.f32.mrf.mxu1  ;;  %v7885_v18 = vpop.f32.mrf.mxu0  ;;  %v8031_v22 = vld [vmem:[%s16377_s26 + $0x138] sm:$0xff] }
 0x523   : > { %8830 = vst.msk [vmem:[%s16377_s26 + $0x128] sm:$0xff] %vm3596_vm4, %v8785_v27  ;;  %7988 = vst.msk [vmem:[%s16377_s26 + $0x148] sm:$0xff] %vm3596_vm4, %v7943_v57  ;;  %v11590_v27 = vrot.slane %v13771_v26, 3  ;;  %v18667_v18 = vld [vmem:[#allocation3 + $0x90] ss:$136 sps:$4 sm:$0xff]  }
 0x524   : > { %v8718_v33 = vpop.f32.mrf.mxu1  ;;  %10417 = vmatmul.mubr.bf16.gmra.mxu1 %v10075_v9  ;;  %v7888_v36 = vpop.f32.mrf.mxu0  ;;  %9587 = vmatmul.mubr.bf16.gmra.mxu0 %v9232_v2 }
 0x525   : > { %v8786_v56 = vadd.f32 %v8718_v33, %v8030_v5  ;;  %10424 = vmatprep.mubr.bf16.mxu1 %v10081_v8  ;;  %v7944_v63 = vadd.f32 %v7888_v36, %v7282_v53  ;;  %11008 = vmatprep.mubr.bf16.mxu0 %v13678_v34  ;;  %v11592_v24 = vsel %vm5008_vm6, %v11590_v27, %v11591_v25  ;;  %v18675_v33 = vld [vmem:[#allocation3 + $0x14c] ss:$-72 sps:$4 sm:$0xff]   ;;  %v8840_v36 = vld [vmem:[%s16377_s26 + $0x10] sm:$0xff] }
 0x526   : > { %v8720_v51 = vpop.f32.mrf.mxu1  ;;  %v7890_v42 = vpop.f32.mrf.mxu0  ;;  %v8032_v10 = vld [vmem:[%s16377_s26 + $0x140] sm:$0xff]  ;;  %v11599_v53 = vsel %vm5008_vm6, %v11594_v49, %v11598_v31  ;;  %v8845_v27 = vld [vmem:[%s16377_s26 + $0x38] sm:$0xff] }
 0x527   : > { %8831 = vst.msk [vmem:[%s16377_s26 + $0x130] sm:$0xff] %vm3596_vm4, %v8786_v56  ;;  %7989 = vst.msk [vmem:[%s16377_s26 + $0x150] sm:$0xff] %vm3596_vm4, %v7944_v63 }
 0x528   : > { %v8721_v48 = vpop.f32.mrf.mxu1  ;;  %v7891_v38 = vpop.f32.mrf.mxu0 }
 0x529   : > { %v8787_v54 = vadd.f32 %v8721_v48, %v8031_v22  ;;  %v7945_v1 = vadd.f32 %v7891_v38, %v7283_v21  ;;  %v8841_v21 = vld [vmem:[%s16377_s26 + $0x18] sm:$0xff] }
 0x52a   : > { %v8723_v39 = vpop.f32.mrf.mxu1  ;;  %v7893_v7 = vpop.f32.mrf.mxu0  ;;  %v8033_v30 = vld [vmem:[%s16377_s26 + $0x148] sm:$0xff] }
 0x52b   : > { %8832 = vst.msk [vmem:[%s16377_s26 + $0x138] sm:$0xff] %vm3596_vm4, %v8787_v54  ;;  %7990 = vst.msk [vmem:[%s16377_s26 + $0x158] sm:$0xff] %vm3596_vm4, %v7945_v1  ;;  %v11602_v54 = vrot.slane %v18675_v33, 3  ;;  %v10583_v1 = vld [vmem:[#allocation3 + $0x58] sm:$0xff]  ;;  %v18688_v7 = vld [vmem:[#allocation3 + $0x148] ss:$-72 sps:$4 sm:$0xff]  }
 0x52c   : > { %v8726_v4 = vpop.f32.mrf.mxu1  ;;  %10425 = vmatmul.mubr.bf16.gmra.mxu1 %v10079_v19  ;;  %v7896_v2 = vpop.f32.mrf.mxu0  ;;  %11009 = vmatmul.mubr.bf16.vlgmr.msra.gmra.mxu0 %v13677_v44  ;;  %v10584_v39 = vld [vmem:[#allocation3 + $0xd8] sm:$0xff] }
 0x52d   : > { %v8788_v3 = vadd.f32 %v8726_v4, %v8032_v10  ;;  %10432 = vmatprep.mubr.bf16.mxu1 %v10080_v13  ;;  %v7946_v58 = vadd.f32 %v7896_v2, %v7284_v11  ;;  %11016 = vmatprep.mubr.bf16.mxu0 %v18636_v12  ;;  %v18694_v4 = vcombine.high %v10583_v1, %v10584_v39 }
 0x52e   : > { %v8728_v50 = vpop.f32.mrf.mxu1  ;;  %v7898_v14 = vpop.f32.mrf.mxu0  ;;  %v8034_v46 = vld [vmem:[%s16377_s26 + $0x150] sm:$0xff]  ;;  %v11603_v2 = vsel %vm5008_vm6, %v11598_v31, %v11602_v54 }
 0x52f   : > { %8833 = vst.msk [vmem:[%s16377_s26 + $0x140] sm:$0xff] %vm3596_vm4, %v8788_v3  ;;  %7991 = vst.msk [vmem:[%s16377_s26 + $0x160] sm:$0xff] %vm3596_vm4, %v7946_v58  ;;  %v8842_v3 = vld [vmem:[%s16377_s26 + $0x20] sm:$0xff] }
 0x530   : > { %v8729_v52 = vpop.f32.mrf.mxu1  ;;  %v7899_v17 = vpop.f32.mrf.mxu0 }
 0x531   : > { %v8789_v55 = vadd.f32 %v8729_v52, %v8033_v30  ;;  %v11600_v17 = vrot.slane %v18688_v7, 3 }
 0x532   : > { %v8731_v32 = vpop.f32.mrf.mxu1  ;;  %v7900_v35 = vpop.f32.mrf.mxu0  ;;  %v8035_v60 = vld [vmem:[%s16377_s26 + $0x158] sm:$0xff] }
 0x533   : > { %8834 = vst.msk [vmem:[%s16377_s26 + $0x148] sm:$0xff] %vm3596_vm4, %v8789_v55  ;;  %v8843_v55 = vld [vmem:[%s16377_s26 + $0x28] sm:$0xff] }
 0x534   : > { %v8734_v45 = vpop.f32.mrf.mxu1  ;;  %10433 = vmatmul.mubr.bf16.gmra.mxu1 %v10078_v20  ;;  %v9412_v40 = vpop.f32.mrf.mxu0  ;;  %11017 = vmatmul.mubr.bf16.gmra.mxu0 %v18647_v28  ;;  %v11596_v20 = vrot.slane %v18667_v18, 3  ;;  %v11606_v28 = vrot.slane %v18694_v4, 3 }
 0x535   : > { %v8790_v29 = vadd.f32 %v8734_v45, %v8034_v46  ;;  %11854 = vmatprep.mubr.bf16.mxu1 %v11595_v23  ;;  %v9594_v47 = vadd.f32 %v9412_v40, %v8838_v41  ;;  %11024 = vmatprep.mubr.bf16.mxu0 %v18652_v59  ;;  %v18708_v59 = vcombine.low %v10583_v1, %v10584_v39  ;;  %v18716_v40 = vld [vmem:[#allocation3 + $0x184] ss:$-80 sps:$4 sm:$0xff]  }
 0x536   : > { %v8736_v43 = vpop.f32.mrf.mxu1  ;;  %v9414_v61 = vpop.f32.mrf.mxu0  ;;  %v8036_v9 = vld [vmem:[%s16377_s26 + $0x160] sm:$0xff]  ;;  %v11597_v15 = vsel %vm5008_vm6, %v11591_v25, %v11596_v20  ;;  %v11601_v41 = vsel %vm5008_vm6, %v11596_v20, %v11600_v17  ;;  %v11607_v26 = vsel %vm5008_vm6, %v11602_v54, %v11606_v28 }
 0x537   : > { %8835 = vst.msk [vmem:[%s16377_s26 + $0x150] sm:$0xff] %vm3596_vm4, %v8790_v29  ;;  %9639 = vst.msk [vmem:[%s16377_s26] sm:$0xff] %vm3596_vm4, %v9594_v47  ;;  %v8844_v47 = vld [vmem:[%s16377_s26 + $0x30] sm:$0xff] }
 0x538   : > { %v8737_v62 = vpop.f32.mrf.mxu1  ;;  %v9415_v13 = vpop.f32.mrf.mxu0 }
 0x539   : > { %v8791_v57 = vadd.f32 %v8737_v62, %v8035_v60  ;;  %v9595_v37 = vadd.f32 %v9415_v13, %v8839_v6  ;;  %v11604_v13 = vrot.slane %v18708_v59, 3 }
 0x53a   : > { %v8739_v5 = vpop.f32.mrf.mxu1  ;;  %v9417_v34 = vpop.f32.mrf.mxu0 }
 0x53b   : > { %8836 = vst.msk [vmem:[%s16377_s26 + $0x158] sm:$0xff] %vm3596_vm4, %v8791_v57  ;;  %9640 = vst.msk [vmem:[%s16377_s26 + $0x8] sm:$0xff] %vm3596_vm4, %v9595_v37  ;;  %v11610_v37 = vrot.slane %v18716_v40, 3  ;;  %v10587_v5 = vld [vmem:[#allocation3 + $0x138] sm:$0xff] }
 0x53c   : > { %v8742_v8 = vpop.f32.mrf.mxu1  ;;  %11855 = vmatmul.mubr.bf16.vlgmr.msra.gmra.mxu1 %v11592_v24  ;;  %v9420_v56 = vpop.f32.mrf.mxu0  ;;  %11025 = vmatmul.mubr.bf16.gmra.mxu0 %v18667_v18  ;;  %v10588_v18 = vld [vmem:[#allocation3 + $0x78] sm:$0xff] }
 0x53d   : > { %v8792_v63 = vadd.f32 %v8742_v8, %v8036_v9  ;;  %11862 = vmatprep.mubr.bf16.mxu1 %v11599_v53  ;;  %v9596_v51 = vadd.f32 %v9420_v56, %v8840_v36  ;;  %11032 = vmatprep.mubr.bf16.mxu0 %v18675_v33  ;;  %v18730_v33 = vld [vmem:[#allocation3 + $0x180] ss:$-80 sps:$4 sm:$0xff]   ;;  %v11605_v36 = vsel %vm5008_vm6, %v11600_v17, %v11604_v13 }
 0x53e   : > { %v8744_v22 = vpop.f32.mrf.mxu1  ;;  %v9422_v42 = vpop.f32.mrf.mxu0  ;;  %v9684_v19 = vld [vmem:[%s16377_s26] sm:$0xff]  ;;  %v18738_v56 = vcombine.high %v10587_v5, %v10588_v18  ;;  %v11608_v1 = vrot.slane %v18730_v33, 3 }
 0x53f   : > { %8837 = vst.msk [vmem:[%s16377_s26 + $0x160] sm:$0xff] %vm3596_vm4, %v8792_v63  ;;  %9641 = vst.msk [vmem:[%s16377_s26 + $0x10] sm:$0xff] %vm3596_vm4, %v9596_v51  ;;  %v11611_v51 = vsel %vm5008_vm6, %v11606_v28, %v11610_v37  ;;  %v8846_v22 = vld [vmem:[%s16377_s26 + $0x40] sm:$0xff] }
 0x540   : > { %v8745_v48 = vpop.f32.mrf.mxu1  ;;  %v9423_v38 = vpop.f32.mrf.mxu0 }
 0x541   : > { %v9597_v44 = vadd.f32 %v9423_v38, %v8841_v21 }
 0x542   : > { %v8746_v10 = vpop.f32.mrf.mxu1  ;;  %v9425_v12 = vpop.f32.mrf.mxu0  ;;  %v9685_v16 = vld [vmem:[%s16377_s26 + $0x8] sm:$0xff] }
 0x543   : > { %9642 = vst.msk [vmem:[%s16377_s26 + $0x18] sm:$0xff] %vm3596_vm4, %v9597_v44  ;;  %v8847_v44 = vld [vmem:[%s16377_s26 + $0x48] sm:$0xff]  ;;  %v10590_v12 = vld [vmem:[#allocation3] sm:$0xff] }
 0x544   : > { %v10258_v11 = vpop.f32.mrf.mxu1  ;;  %11863 = vmatmul.mubr.bf16.gmra.mxu1 %v11597_v15  ;;  %v9428_v58 = vpop.f32.mrf.mxu0  ;;  %11033 = vmatmul.mubr.bf16.gmra.mxu0 %v18688_v7  ;;  %v11614_v7 = vrot.slane %v18738_v56, 3 }
 0x545   : > { %v10440_v50 = vadd.f32 %v10258_v11, %v9684_v19  ;;  %11870 = vmatprep.mubr.bf16.mxu1 %v11603_v2  ;;  %v9598_v30 = vadd.f32 %v9428_v58, %v8842_v3  ;;  %11040 = vmatprep.mubr.bf16.mxu0 %v18694_v4  ;;  %v10589_v19 = vld [vmem:[#allocation3 + $0xa0] sm:$0xff]  ;;  %v18752_v2 = vcombine.low %v10587_v5, %v10588_v18 }
 0x546   : > { %v10260_v14 = vpop.f32.mrf.mxu1  ;;  %v9430_v52 = vpop.f32.mrf.mxu0  ;;  %v9686_v45 = vld [vmem:[%s16377_s26 + $0x10] sm:$0xff] }
 0x547   : > { %10485 = vst.msk [vmem:[%s16377_s26] sm:$0xff] %vm3596_vm4, %v10440_v50  ;;  %9643 = vst.msk [vmem:[%s16377_s26 + $0x20] sm:$0xff] %vm3596_vm4, %v9598_v30  ;;  %v11609_v50 = vsel %vm5008_vm6, %v11604_v13, %v11608_v1  ;;  %v18760_v30 = vcombine.high %v10589_v19, %v10590_v12  ;;  %v8848_v52 = vld [vmem:[%s16377_s26 + $0x50] sm:$0xff] }
 0x548   : > { %v10261_v49 = vpop.f32.mrf.mxu1  ;;  %v9431_v32 = vpop.f32.mrf.mxu0 }
 0x549   : > { %v10441_v46 = vadd.f32 %v10261_v49, %v9685_v16  ;;  %v9599_v0 = vadd.f32 %v9431_v32, %v8843_v55  ;;  %v11615_v16 = vsel %vm5008_vm6, %v11610_v37, %v11614_v7 }
 0x54a   : > { %v10263_v35 = vpop.f32.mrf.mxu1  ;;  %v9433_v23 = vpop.f32.mrf.mxu0  ;;  %v9687_v62 = vld [vmem:[%s16377_s26 + $0x18] sm:$0xff] }
 0x54b   : > { %10486 = vst.msk [vmem:[%s16377_s26 + $0x8] sm:$0xff] %vm3596_vm4, %v10441_v46  ;;  %9644 = vst.msk [vmem:[%s16377_s26 + $0x28] sm:$0xff] %vm3596_vm4, %v9599_v0  ;;  %v11612_v0 = vrot.slane %v18752_v2, 3  ;;  %v11618_v23 = vrot.slane %v18760_v30, 3 }
 0x54c   : > { %v10266_v29 = vpop.f32.mrf.mxu1  ;;  %11871 = vmatmul.mubr.bf16.gmra.mxu1 %v11601_v41  ;;  %v9436_v43 = vpop.f32.mrf.mxu0  ;;  %11041 = vmatmul.mubr.bf16.gmra.mxu0 %v18708_v59  ;;  %v8849_v59 = vld [vmem:[%s16377_s26 + $0x58] sm:$0xff] }
 0x54d   : > { %v10442_v60 = vadd.f32 %v10266_v29, %v9686_v45  ;;  %11878 = vmatprep.mubr.bf16.mxu1 %v11607_v26  ;;  %v9600_v61 = vadd.f32 %v9436_v43, %v8844_v47  ;;  %11048 = vmatprep.mubr.bf16.mxu0 %v18716_v40  ;;  %v10591_v41 = vld [vmem:[#allocation3 + $0x20] sm:$0xff]  ;;  %v18774_v43 = vcombine.low %v10589_v19, %v10590_v12 }
 0x54e   : > { %v10268_v25 = vpop.f32.mrf.mxu1  ;;  %v9438_v6 = vpop.f32.mrf.mxu0  ;;  %v9688_v8 = vld [vmem:[%s16377_s26 + $0x20] sm:$0xff]  ;;  %v10592_v40 = vld [vmem:[#allocation3 + $0xe0] sm:$0xff]  ;;  %v11619_v13 = vsel %vm5008_vm6, %v11614_v7, %v11618_v23 }
 0x54f   : > { %10487 = vst.msk [vmem:[%s16377_s26 + $0x10] sm:$0xff] %vm3596_vm4, %v10442_v60  ;;  %9645 = vst.msk [vmem:[%s16377_s26 + $0x30] sm:$0xff] %vm3596_vm4, %v9600_v61  ;;  %v11613_v25 = vsel %vm5008_vm6, %v11608_v1, %v11612_v0 }
 0x550   : > { %v10269_v31 = vpop.f32.mrf.mxu1  ;;  %v9439_v57 = vpop.f32.mrf.mxu0 }
 0x551   : > { %v10443_v9 = vadd.f32 %v10269_v31, %v9687_v62  ;;  %v9601_v34 = vadd.f32 %v9439_v57, %v8845_v27  ;;  %v18782_v62 = vcombine.high %v10591_v41, %v10592_v40  ;;  %v8850_v31 = vld [vmem:[%s16377_s26 + $0x60] sm:$0xff] }
 0x552   : > { %v10271_v24 = vpop.f32.mrf.mxu1  ;;  %v9441_v53 = vpop.f32.mrf.mxu0  ;;  %v9689_v38 = vld [vmem:[%s16377_s26 + $0x28] sm:$0xff] }
 0x553   : > { %10488 = vst.msk [vmem:[%s16377_s26 + $0x18] sm:$0xff] %vm3596_vm4, %v10443_v9  ;;  %9646 = vst.msk [vmem:[%s16377_s26 + $0x38] sm:$0xff] %vm3596_vm4, %v9601_v34  ;;  %v11616_v34 = vrot.slane %v18774_v43, 3  ;;  %v11622_v53 = vrot.slane %v18782_v62, 3 }
 0x554   : > { %v10274_v63 = vpop.f32.mrf.mxu1  ;;  %11879 = vmatmul.mubr.bf16.gmra.mxu1 %v11605_v36  ;;  %v9444_v42 = vpop.f32.mrf.mxu0  ;;  %11049 = vmatmul.mubr.bf16.gmra.mxu0 %v18730_v33  ;;  %v8851_v33 = vld [vmem:[%s16377_s26 + $0x68] sm:$0xff] }
 0x555   : > { %v10444_v20 = vadd.f32 %v10274_v63, %v9688_v8  ;;  %11886 = vmatprep.mubr.bf16.mxu1 %v11611_v51  ;;  %v9602_v48 = vadd.f32 %v9444_v42, %v8846_v22  ;;  %11056 = vmatprep.mubr.bf16.mxu0 %v18738_v56  ;;  %v18796_v51 = vcombine.low %v10591_v41, %v10592_v40 }
 0x556   : > { %v10276_v21 = vpop.f32.mrf.mxu1  ;;  %v9446_v54 = vpop.f32.mrf.mxu0  ;;  %v9690_v3 = vld [vmem:[%s16377_s26 + $0x30] sm:$0xff] }
 0x557   : > { %10489 = vst.msk [vmem:[%s16377_s26 + $0x20] sm:$0xff] %vm3596_vm4, %v10444_v20  ;;  %9647 = vst.msk [vmem:[%s16377_s26 + $0x40] sm:$0xff] %vm3596_vm4, %v9602_v48  ;;  %v11617_v20 = vsel %vm5008_vm6, %v11612_v0, %v11616_v34  ;;  %v18804_v48 = vld [vmem:[#allocation3 + $0xf4] ss:$152 sps:$4 sm:$0xff]   ;;  %v8852_v54 = vld [vmem:[%s16377_s26 + $0x70] sm:$0xff]  ;;  %v11620_v12 = vrot.slane %v18796_v51, 3 }
 0x558   : > { %v10277_v39 = vpop.f32.mrf.mxu1  ;;  %v9447_v10 = vpop.f32.mrf.mxu0 }
 0x559   : > { %v10445_v15 = vadd.f32 %v10277_v39, %v9689_v38  ;;  %v9603_v4 = vadd.f32 %v9447_v10, %v8847_v44  ;;  %v11623_v38 = vsel %vm5008_vm6, %v11618_v23, %v11622_v53 }
 0x55a   : > { %v10279_v11 = vpop.f32.mrf.mxu1  ;;  %v9449_v58 = vpop.f32.mrf.mxu0  ;;  %v9691_v28 = vld [vmem:[%s16377_s26 + $0x38] sm:$0xff] }
 0x55b   : > { %10490 = vst.msk [vmem:[%s16377_s26 + $0x28] sm:$0xff] %vm3596_vm4, %v10445_v15  ;;  %9648 = vst.msk [vmem:[%s16377_s26 + $0x48] sm:$0xff] %vm3596_vm4, %v9603_v4  ;;  %v8853_v4 = vld [vmem:[%s16377_s26 + $0x78] sm:$0xff] }
 0x55c   : > { %v10282_v14 = vpop.f32.mrf.mxu1  ;;  %11887 = vmatmul.mubr.bf16.gmra.mxu1 %v11609_v50  ;;  %v9452_v17 = vpop.f32.mrf.mxu0  ;;  %11057 = vmatmul.mubr.bf16.gmra.mxu0 %v18752_v2  ;;  %v11626_v2 = vrot.slane %v18804_v48, 3  ;;  %v10596_v58 = vld [vmem:[#allocation3 + $0x88] sm:$0xff] }
 0x55d   : > { %v10446_v49 = vadd.f32 %v10282_v14, %v9690_v3  ;;  %11894 = vmatprep.mubr.bf16.mxu1 %v11615_v16  ;;  %v9604_v55 = vadd.f32 %v9452_v17, %v8848_v52  ;;  %11064 = vmatprep.mubr.bf16.mxu0 %v18760_v30  ;;  %v10595_v3 = vld [vmem:[#allocation3 + $0xa8] sm:$0xff] }
 0x55e   : > { %v10284_v32 = vpop.f32.mrf.mxu1  ;;  %v9454_v46 = vpop.f32.mrf.mxu0  ;;  %v9692_v60 = vld [vmem:[%s16377_s26 + $0x40] sm:$0xff] }
 0x55f   : > { %10491 = vst.msk [vmem:[%s16377_s26 + $0x30] sm:$0xff] %vm3596_vm4, %v10446_v49  ;;  %9649 = vst.msk [vmem:[%s16377_s26 + $0x50] sm:$0xff] %vm3596_vm4, %v9604_v55  ;;  %v18818_v16 = vld [vmem:[#allocation3 + $0xf0] ss:$152 sps:$4 sm:$0xff]   ;;  %v11621_v49 = vsel %vm5008_vm6, %v11616_v34, %v11620_v12  ;;  %v18826_v55 = vcombine.high %v10595_v3, %v10596_v58 }
 0x560   : > { %v10285_v35 = vpop.f32.mrf.mxu1  ;;  %v9455_v45 = vpop.f32.mrf.mxu0  ;;  %v8854_v46 = vld [vmem:[%s16377_s26 + $0x80] sm:$0xff]  ;;  %v11624_v40 = vrot.slane %v18818_v16, 3 }
 0x561   : > { %v10447_v29 = vadd.f32 %v10285_v35, %v9691_v28  ;;  %v9605_v26 = vadd.f32 %v9455_v45, %v8849_v59  ;;  %v11627_v28 = vsel %vm5008_vm6, %v11622_v53, %v11626_v2 }
 0x562   : > { %v10287_v47 = vpop.f32.mrf.mxu1  ;;  %v9457_v61 = vpop.f32.mrf.mxu0  ;;  %v9693_v18 = vld [vmem:[%s16377_s26 + $0x48] sm:$0xff] }
 0x563   : > { %10492 = vst.msk [vmem:[%s16377_s26 + $0x38] sm:$0xff] %vm3596_vm4, %v10447_v29  ;;  %9650 = vst.msk [vmem:[%s16377_s26 + $0x58] sm:$0xff] %vm3596_vm4, %v9605_v26  ;;  %v8855_v26 = vld [vmem:[%s16377_s26 + $0x88] sm:$0xff] }
 0x564   : > { %v10290_v6 = vpop.f32.mrf.mxu1  ;;  %11895 = vmatmul.mubr.bf16.gmra.mxu1 %v11613_v25  ;;  %v9460_v27 = vpop.f32.mrf.mxu0  ;;  %11065 = vmatmul.mubr.bf16.gmra.mxu0 %v18774_v43  ;;  %v11630_v43 = vrot.slane %v18826_v55, 3 }
 0x565   : > { %v10448_v57 = vadd.f32 %v10290_v6, %v9692_v60  ;;  %11902 = vmatprep.mubr.bf16.mxu1 %v11619_v13  ;;  %v9606_v37 = vadd.f32 %v9460_v27, %v8850_v31  ;;  %11072 = vmatprep.mubr.bf16.mxu0 %v18782_v62  ;;  %v18840_v62 = vcombine.low %v10595_v3, %v10596_v58  ;;  %v18848_v27 = vld [vmem:[#allocation3 + $0xbc] ss:$184 sps:$4 sm:$0xff]  }
 0x566   : > { %v10292_v5 = vpop.f32.mrf.mxu1  ;;  %v9462_v9 = vpop.f32.mrf.mxu0  ;;  %v9694_v22 = vld [vmem:[%s16377_s26 + $0x50] sm:$0xff]  ;;  %v11625_v31 = vsel %vm5008_vm6, %v11620_v12, %v11624_v40 }
 0x567   : > { %10493 = vst.msk [vmem:[%s16377_s26 + $0x40] sm:$0xff] %vm3596_vm4, %v10448_v57  ;;  %9651 = vst.msk [vmem:[%s16377_s26 + $0x60] sm:$0xff] %vm3596_vm4, %v9606_v37  ;;  %v11631_v37 = vsel %vm5008_vm6, %v11626_v2, %v11630_v43  ;;  %v8856_v5 = vld [vmem:[%s16377_s26 + $0x90] sm:$0xff]  ;;  %v11628_v53 = vrot.slane %v18840_v62, 3 }
 0x568   : > { %v10293_v24 = vpop.f32.mrf.mxu1  ;;  %v9463_v8 = vpop.f32.mrf.mxu0 }
 0x569   : > { %v10449_v36 = vadd.f32 %v10293_v24, %v9693_v18  ;;  %v9607_v56 = vadd.f32 %v9463_v8, %v8851_v33 }
 0x56a   : > { %v10295_v63 = vpop.f32.mrf.mxu1  ;;  %v9465_v42 = vpop.f32.mrf.mxu0  ;;  %v9695_v7 = vld [vmem:[%s16377_s26 + $0x58] sm:$0xff] }
 0x56b   : > { %10494 = vst.msk [vmem:[%s16377_s26 + $0x48] sm:$0xff] %vm3596_vm4, %v10449_v36  ;;  %9652 = vst.msk [vmem:[%s16377_s26 + $0x68] sm:$0xff] %vm3596_vm4, %v9607_v56  ;;  %v8857_v56 = vld [vmem:[%s16377_s26 + $0x98] sm:$0xff] }
 0x56c   : > { %v10298_v21 = vpop.f32.mrf.mxu1  ;;  %11903 = vmatmul.mubr.bf16.gmra.mxu1 %v11617_v20  ;;  %v9468_v1 = vpop.f32.mrf.mxu0  ;;  %11073 = vmatmul.mubr.bf16.gmra.mxu0 %v18796_v51  ;;  %v11634_v51 = vrot.slane %v18848_v27, 3  ;;  %v10600_v42 = vld [vmem:[#allocation3 + $0x140] sm:$0xff] }
 0x56d   : > { %v10450_v39 = vadd.f32 %v10298_v21, %v9694_v22  ;;  %11910 = vmatprep.mubr.bf16.mxu1 %v11623_v38  ;;  %v9608_v44 = vadd.f32 %v9468_v1, %v8852_v54  ;;  %11080 = vmatprep.mubr.bf16.mxu0 %v18804_v48  ;;  %v10599_v22 = vld [vmem:[#allocation3 + $0xc0] sm:$0xff]  ;;  %v18862_v38 = vld [vmem:[#allocation3 + $0xb8] ss:$184 sps:$4 sm:$0xff]  }
 0x56e   : > { %v10300_v10 = vpop.f32.mrf.mxu1  ;;  %v9470_v19 = vpop.f32.mrf.mxu0  ;;  %v9696_v52 = vld [vmem:[%s16377_s26 + $0x60] sm:$0xff]  ;;  %v11632_v58 = vrot.slane %v18862_v38, 3 }
 0x56f   : > { %10495 = vst.msk [vmem:[%s16377_s26 + $0x50] sm:$0xff] %vm3596_vm4, %v10450_v39  ;;  %9653 = vst.msk [vmem:[%s16377_s26 + $0x70] sm:$0xff] %vm3596_vm4, %v9608_v44  ;;  %v11629_v39 = vsel %vm5008_vm6, %v11624_v40, %v11628_v53  ;;  %v18870_v44 = vcombine.high %v10599_v22, %v10600_v42  ;;  %v8858_v19 = vld [vmem:[%s16377_s26 + $0xa0] sm:$0xff] }
 0x570   : > { %v10301_v15 = vpop.f32.mrf.mxu1  ;;  %v9471_v11 = vpop.f32.mrf.mxu0 }
 0x571   : > { %v10451_v50 = vadd.f32 %v10301_v15, %v9695_v7  ;;  %v9609_v30 = vadd.f32 %v9471_v11, %v8853_v4  ;;  %v11635_v7 = vsel %vm5008_vm6, %v11630_v43, %v11634_v51 }
 0x572   : > { %v10303_v14 = vpop.f32.mrf.mxu1  ;;  %v9473_v17 = vpop.f32.mrf.mxu0  ;;  %v9697_v23 = vld [vmem:[%s16377_s26 + $0x68] sm:$0xff] }
 0x573   : > { %10496 = vst.msk [vmem:[%s16377_s26 + $0x58] sm:$0xff] %vm3596_vm4, %v10451_v50  ;;  %9654 = vst.msk [vmem:[%s16377_s26 + $0x78] sm:$0xff] %vm3596_vm4, %v9609_v30  ;;  %v8859_v30 = vld [vmem:[%s16377_s26 + $0xa8] sm:$0xff] }
 0x574   : > { %v10306_v32 = vpop.f32.mrf.mxu1  ;;  %11911 = vmatmul.mubr.bf16.gmra.mxu1 %v11621_v49  ;;  %v9476_v0 = vpop.f32.mrf.mxu0  ;;  %11081 = vmatmul.mubr.bf16.gmra.mxu0 %v18818_v16  ;;  %v11638_v16 = vrot.slane %v18870_v44, 3 }
 0x575   : > { %v10452_v35 = vadd.f32 %v10306_v32, %v9696_v52  ;;  %11918 = vmatprep.mubr.bf16.mxu1 %v11627_v28  ;;  %v9610_v59 = vadd.f32 %v9476_v0, %v8854_v46  ;;  %11088 = vmatprep.mubr.bf16.mxu0 %v18826_v55  ;;  %v18884_v55 = vcombine.low %v10599_v22, %v10600_v42  ;;  %v18892_v0 = vld [vmem:[#allocation3 + $0x54] ss:$280 sps:$4 sm:$0xff]  }
 0x576   : > { %v10308_v45 = vpop.f32.mrf.mxu1  ;;  %v9478_v41 = vpop.f32.mrf.mxu0  ;;  %v9698_v6 = vld [vmem:[%s16377_s26 + $0x70] sm:$0xff]  ;;  %v11633_v46 = vsel %vm5008_vm6, %v11628_v53, %v11632_v58  ;;  %v8863_v42 = vld [vmem:[%s16377_s26 + $0xc8] sm:$0xff] }
 0x577   : > { %10497 = vst.msk [vmem:[%s16377_s26 + $0x60] sm:$0xff] %vm3596_vm4, %v10452_v35  ;;  %9655 = vst.msk [vmem:[%s16377_s26 + $0x80] sm:$0xff] %vm3596_vm4, %v9610_v59  ;;  %v11639_v59 = vsel %vm5008_vm6, %v11634_v51, %v11638_v16  ;;  %v8860_v45 = vld [vmem:[%s16377_s26 + $0xb0] sm:$0xff]  ;;  %v11636_v43 = vrot.slane %v18884_v55, 3 }
 0x578   : > { %v10309_v29 = vpop.f32.mrf.mxu1  ;;  %v9479_v47 = vpop.f32.mrf.mxu0 }
 0x579   : > { %v10453_v60 = vadd.f32 %v10309_v29, %v9697_v23  ;;  %v9611_v61 = vadd.f32 %v9479_v47, %v8855_v26 }
 0x57a   : > { %v10311_v25 = vpop.f32.mrf.mxu1  ;;  %v9481_v13 = vpop.f32.mrf.mxu0  ;;  %v9699_v33 = vld [vmem:[%s16377_s26 + $0x78] sm:$0xff] }
 0x57b   : > { %10498 = vst.msk [vmem:[%s16377_s26 + $0x68] sm:$0xff] %vm3596_vm4, %v10453_v60  ;;  %9656 = vst.msk [vmem:[%s16377_s26 + $0x88] sm:$0xff] %vm3596_vm4, %v9611_v61  ;;  %v8861_v61 = vld [vmem:[%s16377_s26 + $0xb8] sm:$0xff] }
 0x57c   : > { %v10314_v57 = vpop.f32.mrf.mxu1  ;;  %11919 = vmatmul.mubr.bf16.gmra.mxu1 %v11625_v31  ;;  %v9484_v18 = vpop.f32.mrf.mxu0  ;;  %11089 = vmatmul.mubr.bf16.gmra.mxu0 %v18840_v62  ;;  %v11642_v62 = vrot.slane %v18892_v0, 3 }
 0x57d   : > { %v10454_v9 = vadd.f32 %v10314_v57, %v9698_v6  ;;  %11926 = vmatprep.mubr.bf16.mxu1 %v11631_v37  ;;  %v9612_v34 = vadd.f32 %v9484_v18, %v8856_v5  ;;  %11096 = vmatprep.mubr.bf16.mxu0 %v18848_v27  ;;  %v18906_v27 = vld [vmem:[#allocation3 + $0x50] ss:$280 sps:$4 sm:$0xff]   ;;  %v11637_v5 = vsel %vm5008_vm6, %v11632_v58, %v11636_v43  ;;  %v18914_v18 = vld [vmem:[#allocation3 + $0x194] ss:$-344 sps:$4 sm:$0xff]  }
 0x57e   : > { %v10316_v24 = vpop.f32.mrf.mxu1  ;;  %v9486_v8 = vpop.f32.mrf.mxu0  ;;  %v9700_v54 = vld [vmem:[%s16377_s26 + $0x80] sm:$0xff]  ;;  %v11640_v51 = vrot.slane %v18906_v27, 3 }
 0x57f   : > { %10499 = vst.msk [vmem:[%s16377_s26 + $0x70] sm:$0xff] %vm3596_vm4, %v10454_v9  ;;  %9657 = vst.msk [vmem:[%s16377_s26 + $0x90] sm:$0xff] %vm3596_vm4, %v9612_v34  ;;  %v11643_v34 = vsel %vm5008_vm6, %v11638_v16, %v11642_v62  ;;  %v8862_v24 = vld [vmem:[%s16377_s26 + $0xc0] sm:$0xff]  ;;  %v8865_v16 = vld [vmem:[%s16377_s26 + $0xd8] sm:$0xff] }
 0x580   : > { %v10317_v36 = vpop.f32.mrf.mxu1  ;;  %v9487_v63 = vpop.f32.mrf.mxu0 }
 0x581   : > { %v10455_v20 = vadd.f32 %v10317_v36, %v9699_v33  ;;  %v9613_v48 = vadd.f32 %v9487_v63, %v8857_v56 }
 0x582   : > { %v10319_v21 = vpop.f32.mrf.mxu1  ;;  %v9489_v1 = vpop.f32.mrf.mxu0  ;;  %v9701_v2 = vld [vmem:[%s16377_s26 + $0x88] sm:$0xff] }
 0x583   : > { %10500 = vst.msk [vmem:[%s16377_s26 + $0x78] sm:$0xff] %vm3596_vm4, %v10455_v20  ;;  %9658 = vst.msk [vmem:[%s16377_s26 + $0x98] sm:$0xff] %vm3596_vm4, %v9613_v48  ;;  %v11646_v48 = vrot.slane %v18914_v18, 3  ;;  %v18928_v1 = vld [vmem:[#allocation3 + $0x190] ss:$-344 sps:$4 sm:$0xff]  }
 0x584   : > { %v10322_v10 = vpop.f32.mrf.mxu1  ;;  %11927 = vmatmul.mubr.bf16.gmra.mxu1 %v11629_v39  ;;  %v9492_v12 = vpop.f32.mrf.mxu0  ;;  %11097 = vmatmul.mubr.bf16.gmra.mxu0 %v18862_v38 }
 0x585   : > { %v10456_v15 = vadd.f32 %v10322_v10, %v9700_v54  ;;  %11934 = vmatprep.mubr.bf16.mxu1 %v11635_v7  ;;  %v9614_v4 = vadd.f32 %v9492_v12, %v8858_v19  ;;  %11104 = vmatprep.mubr.bf16.mxu0 %v18870_v44  ;;  %v11641_v10 = vsel %vm5008_vm6, %v11636_v43, %v11640_v51  ;;  %v18936_v7 = vld [vmem:[#allocation3 + $0x64] ss:$-72 sps:$4 sm:$0xff]  }
 0x586   : > { %v10324_v11 = vpop.f32.mrf.mxu1  ;;  %v9494_v3 = vpop.f32.mrf.mxu0  ;;  %v9702_v32 = vld [vmem:[%s16377_s26 + $0x90] sm:$0xff]  ;;  %v11647_v12 = vsel %vm5008_vm6, %v11642_v62, %v11646_v48  ;;  %v8867_v62 = vld [vmem:[%s16377_s26 + $0xe8] sm:$0xff] }
 0x587   : > { %10501 = vst.msk [vmem:[%s16377_s26 + $0x80] sm:$0xff] %vm3596_vm4, %v10456_v15  ;;  %9659 = vst.msk [vmem:[%s16377_s26 + $0xa0] sm:$0xff] %vm3596_vm4, %v9614_v4  ;;  %v8864_v15 = vld [vmem:[%s16377_s26 + $0xd0] sm:$0xff] }
 0x588   : > { %v10325_v50 = vpop.f32.mrf.mxu1  ;;  %v9495_v14 = vpop.f32.mrf.mxu0 }
 0x589   : > { %v10457_v52 = vadd.f32 %v10325_v50, %v9701_v2  ;;  %v9615_v17 = vadd.f32 %v9495_v14, %v8859_v30  ;;  %v11644_v30 = vrot.slane %v18928_v1, 3 }
 0x58a   : > { %v10327_v49 = vpop.f32.mrf.mxu1  ;;  %v9497_v28 = vpop.f32.mrf.mxu0  ;;  %v9703_v26 = vld [vmem:[%s16377_s26 + $0x98] sm:$0xff] }
 0x58b   : > { %10502 = vst.msk [vmem:[%s16377_s26 + $0x88] sm:$0xff] %vm3596_vm4, %v10457_v52  ;;  %9660 = vst.msk [vmem:[%s16377_s26 + $0xa8] sm:$0xff] %vm3596_vm4, %v9615_v17  ;;  %v11650_v17 = vrot.slane %v18936_v7, 3  ;;  %v18950_v28 = vld [vmem:[#allocation3 + $0x60] ss:$-72 sps:$4 sm:$0xff]  }
 0x58c   : > { %v10330_v35 = vpop.f32.mrf.mxu1  ;;  %11935 = vmatmul.mubr.bf16.gmra.mxu1 %v11633_v46  ;;  %v9500_v23 = vpop.f32.mrf.mxu0  ;;  %11105 = vmatmul.mubr.bf16.gmra.mxu0 %v18884_v55 }
 0x58d   : > { %v10458_v41 = vadd.f32 %v10330_v35, %v9702_v32  ;;  %11942 = vmatprep.mubr.bf16.mxu1 %v11639_v59  ;;  %v9616_v40 = vadd.f32 %v9500_v23, %v8860_v45  ;;  %11112 = vmatprep.mubr.bf16.mxu0 %v18892_v0  ;;  %v11645_v35 = vsel %vm5008_vm6, %v11640_v51, %v11644_v30  ;;  %v18958_v59 = vld [vmem:[#allocation3 + $0x15c] ss:$-56 sps:$4 sm:$0xff]  }
 0x58e   : > { %v10332_v29 = vpop.f32.mrf.mxu1  ;;  %v9502_v47 = vpop.f32.mrf.mxu0  ;;  %v9704_v57 = vld [vmem:[%s16377_s26 + $0xa0] sm:$0xff]  ;;  %v11651_v23 = vsel %vm5008_vm6, %v11646_v48, %v11650_v17  ;;  %v8869_v48 = vld [vmem:[%s16377_s26 + $0xf8] sm:$0xff] }
 0x58f   : > { %10503 = vst.msk [vmem:[%s16377_s26 + $0x90] sm:$0xff] %vm3596_vm4, %v10458_v41  ;;  %9661 = vst.msk [vmem:[%s16377_s26 + $0xb0] sm:$0xff] %vm3596_vm4, %v9616_v40  ;;  %v8866_v41 = vld [vmem:[%s16377_s26 + $0xe0] sm:$0xff] }
 0x590   : > { %v10333_v60 = vpop.f32.mrf.mxu1  ;;  %v9503_v25 = vpop.f32.mrf.mxu0 }
 0x591   : > { %v10459_v6 = vadd.f32 %v10333_v60, %v9703_v26  ;;  %v9617_v13 = vadd.f32 %v9503_v25, %v8861_v61  ;;  %v11648_v61 = vrot.slane %v18950_v28, 3 }
 0x592   : > { %v10335_v31 = vpop.f32.mrf.mxu1  ;;  %v9505_v37 = vpop.f32.mrf.mxu0  ;;  %v9705_v56 = vld [vmem:[%s16377_s26 + $0xa8] sm:$0xff] }
 0x593   : > { %10504 = vst.msk [vmem:[%s16377_s26 + $0x98] sm:$0xff] %vm3596_vm4, %v10459_v6  ;;  %9662 = vst.msk [vmem:[%s16377_s26 + $0xb8] sm:$0xff] %vm3596_vm4, %v9617_v13  ;;  %v11654_v13 = vrot.slane %v18958_v59, 3  ;;  %v18972_v37 = vld [vmem:[#allocation3 + $0x158] ss:$-56 sps:$4 sm:$0xff]  }
 0x594   : > { %v10338_v9 = vpop.f32.mrf.mxu1  ;;  %11943 = vmatmul.mubr.bf16.gmra.mxu1 %v11637_v5  ;;  %v9508_v33 = vpop.f32.mrf.mxu0  ;;  %11113 = vmatmul.mubr.bf16.gmra.mxu0 %v18906_v27 }
 0x595   : > { %v10460_v8 = vadd.f32 %v10338_v9, %v9704_v57  ;;  %11950 = vmatprep.mubr.bf16.mxu1 %v11643_v34  ;;  %v9618_v53 = vadd.f32 %v9508_v33, %v8862_v24  ;;  %11120 = vmatprep.mubr.bf16.mxu0 %v18914_v18  ;;  %v11649_v9 = vsel %vm5008_vm6, %v11644_v30, %v11648_v61  ;;  %v18980_v34 = vld [vmem:[#allocation3 + $0x19c] ss:$-304 sps:$4 sm:$0xff]  }
 0x596   : > { %v10340_v36 = vpop.f32.mrf.mxu1  ;;  %v9510_v63 = vpop.f32.mrf.mxu0  ;;  %v9706_v39 = vld [vmem:[%s16377_s26 + $0xb0] sm:$0xff]  ;;  %v11655_v33 = vsel %vm5008_vm6, %v11650_v17, %v11654_v13  ;;  %v8871_v17 = vld [vmem:[%s16377_s26 + $0x108] sm:$0xff] }
 0x597   : > { %10505 = vst.msk [vmem:[%s16377_s26 + $0xa0] sm:$0xff] %vm3596_vm4, %v10460_v8  ;;  %9663 = vst.msk [vmem:[%s16377_s26 + $0xc0] sm:$0xff] %vm3596_vm4, %v9618_v53  ;;  %v8868_v8 = vld [vmem:[%s16377_s26 + $0xf0] sm:$0xff] }
 0x598   : > { %v10341_v22 = vpop.f32.mrf.mxu1  ;;  %v9511_v20 = vpop.f32.mrf.mxu0 }
 0x599   : > { %v10461_v21 = vadd.f32 %v10341_v22, %v9705_v56  ;;  %v9619_v38 = vadd.f32 %v9511_v20, %v8863_v42  ;;  %v11652_v42 = vrot.slane %v18972_v37, 3 }
 0x59a   : > { %v10343_v54 = vpop.f32.mrf.mxu1  ;;  %v9513_v44 = vpop.f32.mrf.mxu0  ;;  %v9707_v58 = vld [vmem:[%s16377_s26 + $0xb8] sm:$0xff] }
 0x59b   : > { %10506 = vst.msk [vmem:[%s16377_s26 + $0xa8] sm:$0xff] %vm3596_vm4, %v10461_v21  ;;  %9664 = vst.msk [vmem:[%s16377_s26 + $0xc8] sm:$0xff] %vm3596_vm4, %v9619_v38  ;;  %v11658_v38 = vrot.slane %v18980_v34, 3  ;;  %v18994_v44 = vld [vmem:[#allocation3 + $0x198] ss:$-304 sps:$4 sm:$0xff]  }
 0x59c   : > { %v10346_v19 = vpop.f32.mrf.mxu1  ;;  %11951 = vmatmul.mubr.bf16.gmra.mxu1 %v11641_v10  ;;  %v9516_v4 = vpop.f32.mrf.mxu0  ;;  %11121 = vmatmul.mubr.bf16.gmra.mxu0 %v18928_v1 }
 0x59d   : > { %v10462_v11 = vadd.f32 %v10346_v19, %v9706_v39  ;;  %11958 = vmatprep.mubr.bf16.mxu1 %v11647_v12  ;;  %v9620_v2 = vadd.f32 %v9516_v4, %v8864_v15  ;;  %11128 = vmatprep.mubr.bf16.mxu0 %v18936_v7  ;;  %v11653_v19 = vsel %vm5008_vm6, %v11648_v61, %v11652_v42  ;;  %v19002_v12 = vld [vmem:[#allocation3 + $0x34] ss:$152 sps:$4 sm:$0xff]  }
 0x59e   : > { %v10348_v3 = vpop.f32.mrf.mxu1  ;;  %v9518_v50 = vpop.f32.mrf.mxu0  ;;  %v9708_v46 = vld [vmem:[%s16377_s26 + $0xc0] sm:$0xff]  ;;  %v11659_v4 = vsel %vm5008_vm6, %v11654_v13, %v11658_v38  ;;  %v8873_v13 = vld [vmem:[%s16377_s26 + $0x118] sm:$0xff] }
 0x59f   : > { %10507 = vst.msk [vmem:[%s16377_s26 + $0xb0] sm:$0xff] %vm3596_vm4, %v10462_v11  ;;  %9665 = vst.msk [vmem:[%s16377_s26 + $0xd0] sm:$0xff] %vm3596_vm4, %v9620_v2  ;;  %v8870_v11 = vld [vmem:[%s16377_s26 + $0x100] sm:$0xff] }
 0x5a0   : > { %v10349_v14 = vpop.f32.mrf.mxu1  ;;  %v9519_v52 = vpop.f32.mrf.mxu0 }
 0x5a1   : > { %v10463_v49 = vadd.f32 %v10349_v14, %v9707_v58  ;;  %v9621_v55 = vadd.f32 %v9519_v52, %v8865_v16  ;;  %v11656_v16 = vrot.slane %v18994_v44, 3 }
 0x5a2   : > { %v10351_v32 = vpop.f32.mrf.mxu1  ;;  %v9521_v0 = vpop.f32.mrf.mxu0  ;;  %v9709_v43 = vld [vmem:[%s16377_s26 + $0xc8] sm:$0xff] }
 0x5a3   : > { %10508 = vst.msk [vmem:[%s16377_s26 + $0xb8] sm:$0xff] %vm3596_vm4, %v10463_v49  ;;  %9666 = vst.msk [vmem:[%s16377_s26 + $0xd8] sm:$0xff] %vm3596_vm4, %v9621_v55  ;;  %v11662_v55 = vrot.slane %v19002_v12, 3  ;;  %v19016_v0 = vld [vmem:[#allocation3 + $0x30] ss:$152 sps:$4 sm:$0xff]  }
 0x5a4   : > { %v10354_v45 = vpop.f32.mrf.mxu1  ;;  %11959 = vmatmul.mubr.bf16.gmra.mxu1 %v11645_v35  ;;  %v9524_v40 = vpop.f32.mrf.mxu0  ;;  %11129 = vmatmul.mubr.bf16.gmra.mxu0 %v18950_v28 }
 0x5a5   : > { %v10464_v29 = vadd.f32 %v10354_v45, %v9708_v46  ;;  %11966 = vmatprep.mubr.bf16.mxu1 %v11651_v23  ;;  %v9622_v26 = vadd.f32 %v9524_v40, %v8866_v41  ;;  %11136 = vmatprep.mubr.bf16.mxu0 %v18958_v59  ;;  %v11657_v45 = vsel %vm5008_vm6, %v11652_v42, %v11656_v16  ;;  %v19024_v23 = vld [vmem:[#allocation3 + $0xfc] ss:$-208 sps:$4 sm:$0xff]  }
 0x5a6   : > { %v10356_v47 = vpop.f32.mrf.mxu1  ;;  %v9526_v60 = vpop.f32.mrf.mxu0  ;;  %v9710_v5 = vld [vmem:[%s16377_s26 + $0xd0] sm:$0xff]  ;;  %v11663_v40 = vsel %vm5008_vm6, %v11658_v38, %v11662_v55  ;;  %v8875_v38 = vld [vmem:[%s16377_s26 + $0x128] sm:$0xff] }
 0x5a7   : > { %10509 = vst.msk [vmem:[%s16377_s26 + $0xc0] sm:$0xff] %vm3596_vm4, %v10464_v29  ;;  %9667 = vst.msk [vmem:[%s16377_s26 + $0xe0] sm:$0xff] %vm3596_vm4, %v9622_v26  ;;  %v8872_v29 = vld [vmem:[%s16377_s26 + $0x110] sm:$0xff] }
 0x5a8   : > { %v10357_v25 = vpop.f32.mrf.mxu1  ;;  %v9527_v6 = vpop.f32.mrf.mxu0 }
 0x5a9   : > { %v10465_v31 = vadd.f32 %v10357_v25, %v9709_v43  ;;  %v9623_v27 = vadd.f32 %v9527_v6, %v8867_v62  ;;  %v11660_v62 = vrot.slane %v19016_v0, 3 }
 0x5aa   : > { %v10359_v57 = vpop.f32.mrf.mxu1  ;;  %v9529_v18 = vpop.f32.mrf.mxu0  ;;  %v9711_v51 = vld [vmem:[%s16377_s26 + $0xd8] sm:$0xff] }
 0x5ab   : > { %10510 = vst.msk [vmem:[%s16377_s26 + $0xc8] sm:$0xff] %vm3596_vm4, %v10465_v31  ;;  %9668 = vst.msk [vmem:[%s16377_s26 + $0xe8] sm:$0xff] %vm3596_vm4, %v9623_v27  ;;  %v11666_v27 = vrot.slane %v19024_v23, 3  ;;  %v19038_v18 = vld [vmem:[#allocation3 + $0xf8] ss:$-208 sps:$4 sm:$0xff]  }
 0x5ac   : > { %v10362_v24 = vpop.f32.mrf.mxu1  ;;  %11967 = vmatmul.mubr.bf16.gmra.mxu1 %v11649_v9  ;;  %v9532_v53 = vpop.f32.mrf.mxu0  ;;  %11137 = vmatmul.mubr.bf16.gmra.mxu0 %v18972_v37 }
 0x5ad   : > { %v10466_v36 = vadd.f32 %v10362_v24, %v9710_v5  ;;  %11974 = vmatprep.mubr.bf16.mxu1 %v11655_v33  ;;  %v9624_v56 = vadd.f32 %v9532_v53, %v8868_v8  ;;  %11144 = vmatprep.mubr.bf16.mxu0 %v18980_v34  ;;  %v11661_v24 = vsel %vm5008_vm6, %v11656_v16, %v11660_v62  ;;  %v19046_v33 = vld [vmem:[#allocation3 + $0xc] ss:$120 sps:$4 sm:$0xff]  }
 0x5ae   : > { %v10364_v63 = vpop.f32.mrf.mxu1  ;;  %v9534_v22 = vpop.f32.mrf.mxu0  ;;  %v9712_v10 = vld [vmem:[%s16377_s26 + $0xe0] sm:$0xff]  ;;  %v11667_v53 = vsel %vm5008_vm6, %v11662_v55, %v11666_v27  ;;  %v8877_v55 = vld [vmem:[%s16377_s26 + $0x138] sm:$0xff] }
 0x5af   : > { %10511 = vst.msk [vmem:[%s16377_s26 + $0xd0] sm:$0xff] %vm3596_vm4, %v10466_v36  ;;  %9669 = vst.msk [vmem:[%s16377_s26 + $0xf0] sm:$0xff] %vm3596_vm4, %v9624_v56  ;;  %v8874_v36 = vld [vmem:[%s16377_s26 + $0x120] sm:$0xff] }
 0x5b0   : > { %v10365_v20 = vpop.f32.mrf.mxu1  ;;  %v9535_v21 = vpop.f32.mrf.mxu0 }
 0x5b1   : > { %v10467_v54 = vadd.f32 %v10365_v20, %v9711_v51  ;;  %v9625_v1 = vadd.f32 %v9535_v21, %v8869_v48  ;;  %v11664_v48 = vrot.slane %v19038_v18, 3 }
 0x5b2   : > { %v10367_v39 = vpop.f32.mrf.mxu1  ;;  %v9537_v7 = vpop.f32.mrf.mxu0  ;;  %v9713_v30 = vld [vmem:[%s16377_s26 + $0xe8] sm:$0xff] }
 0x5b3   : > { %10512 = vst.msk [vmem:[%s16377_s26 + $0xd8] sm:$0xff] %vm3596_vm4, %v10467_v54  ;;  %9670 = vst.msk [vmem:[%s16377_s26 + $0xf8] sm:$0xff] %vm3596_vm4, %v9625_v1  ;;  %v11670_v1 = vrot.slane %v19046_v33, 3  ;;  %v19060_v7 = vld [vmem:[#allocation3 + $0x8] ss:$120 sps:$4 sm:$0xff]  }
 0x5b4   : > { %v10370_v15 = vpop.f32.mrf.mxu1  ;;  %11975 = vmatmul.mubr.bf16.gmra.mxu1 %v11653_v19  ;;  %v9540_v2 = vpop.f32.mrf.mxu0  ;;  %11145 = vmatmul.mubr.bf16.gmra.mxu0 %v18994_v44 }
 0x5b5   : > { %v10468_v3 = vadd.f32 %v10370_v15, %v9712_v10  ;;  %11982 = vmatprep.mubr.bf16.mxu1 %v11659_v4  ;;  %v9626_v58 = vadd.f32 %v9540_v2, %v8870_v11  ;;  %11152 = vmatprep.mubr.bf16.mxu0 %v19002_v12  ;;  %v11665_v15 = vsel %vm5008_vm6, %v11660_v62, %v11664_v48  ;;  %v19068_v4 = vld [vmem:[#allocation3 + $0x9c] ss:$184 sps:$4 sm:$0xff]  }
 0x5b6   : > { %v10372_v50 = vpop.f32.mrf.mxu1  ;;  %v9542_v14 = vpop.f32.mrf.mxu0  ;;  %v9714_v35 = vld [vmem:[%s16377_s26 + $0xf0] sm:$0xff]  ;;  %v11671_v2 = vsel %vm5008_vm6, %v11666_v27, %v11670_v1 }
 0x5b7   : > { %10513 = vst.msk [vmem:[%s16377_s26 + $0xe0] sm:$0xff] %vm3596_vm4, %v10468_v3  ;;  %9671 = vst.msk [vmem:[%s16377_s26 + $0x100] sm:$0xff] %vm3596_vm4, %v9626_v58  ;;  %v8876_v3 = vld [vmem:[%s16377_s26 + $0x130] sm:$0xff] }
 0x5b8   : > { %v10373_v52 = vpop.f32.mrf.mxu1  ;;  %v9543_v49 = vpop.f32.mrf.mxu0 }
 0x5b9   : > { %v10469_v32 = vadd.f32 %v10373_v52, %v9713_v30  ;;  %v9627_v28 = vadd.f32 %v9543_v49, %v8871_v17  ;;  %v11668_v17 = vrot.slane %v19060_v7, 3 }
 0x5ba   : > { %v10375_v46 = vpop.f32.mrf.mxu1  ;;  %v9545_v59 = vpop.f32.mrf.mxu0  ;;  %v9715_v61 = vld [vmem:[%s16377_s26 + $0xf8] sm:$0xff] }
 0x5bb   : > { %10514 = vst.msk [vmem:[%s16377_s26 + $0xe8] sm:$0xff] %vm3596_vm4, %v10469_v32  ;;  %9672 = vst.msk [vmem:[%s16377_s26 + $0x108] sm:$0xff] %vm3596_vm4, %v9627_v28  ;;  %v11674_v28 = vrot.slane %v19068_v4, 3  ;;  %v11372_v59 = vld [vmem:[#allocation3 + $0x70] sm:$0x77] }
 0x5bc   : > { %v10378_v41 = vpop.f32.mrf.mxu1  ;;  %11983 = vmatmul.mubr.bf16.gmra.mxu1 %v11657_v45  ;;  %v9548_v26 = vpop.f32.mrf.mxu0  ;;  %11153 = vmatmul.mubr.bf16.gmra.mxu0 %v19016_v0 }
 0x5bd   : > { %v10470_v47 = vadd.f32 %v10378_v41, %v9714_v35  ;;  %11990 = vmatprep.mubr.bf16.mxu1 %v11663_v40  ;;  %v9628_v43 = vadd.f32 %v9548_v26, %v8872_v29  ;;  %11160 = vmatprep.mubr.bf16.mxu0 %v19024_v23  ;;  %v10619_v35 = vld [vmem:[#allocation3 + $0xe8] sm:$0xff]  ;;  %v19082_v23 = vld [vmem:[#allocation3 + $0x98] ss:$184 sps:$4 sm:$0xff]   ;;  %v11669_v29 = vsel %vm5008_vm6, %v11664_v48, %v11668_v17 }
 0x5be   : > { %v10380_v60 = vpop.f32.mrf.mxu1  ;;  %v9550_v25 = vpop.f32.mrf.mxu0  ;;  %v9716_v9 = vld [vmem:[%s16377_s26 + $0x100] sm:$0xff]  ;;  %v13722_v26 = vcombine.high %v10619_v35, %v10619_v35 }
 0x5bf   : > { %10515 = vst.msk [vmem:[%s16377_s26 + $0xf0] sm:$0xff] %vm3596_vm4, %v10470_v47  ;;  %9673 = vst.msk [vmem:[%s16377_s26 + $0x110] sm:$0xff] %vm3596_vm4, %v9628_v43  ;;  %v11675_v43 = vsel %vm5008_vm6, %v11670_v1, %v11674_v28  ;;  %v8878_v60 = vld [vmem:[%s16377_s26 + $0x140] sm:$0xff]  ;;  %v13816_v25 = vcombine.high %v10619_v35, %v11372_v59 }
 0x5c0   : > { %v10381_v6 = vpop.f32.mrf.mxu1  ;;  %v9551_v31 = vpop.f32.mrf.mxu0 }
 0x5c1   : > { %v10471_v57 = vadd.f32 %v10381_v6, %v9715_v61  ;;  %v9629_v37 = vadd.f32 %v9551_v31, %v8873_v13 }
 0x5c2   : > { %v10383_v5 = vpop.f32.mrf.mxu1  ;;  %v9553_v34 = vpop.f32.mrf.mxu0  ;;  %v9717_v42 = vld [vmem:[%s16377_s26 + $0x108] sm:$0xff] }
 0x5c3   : > { %10516 = vst.msk [vmem:[%s16377_s26 + $0xf8] sm:$0xff] %vm3596_vm4, %v10471_v57  ;;  %9674 = vst.msk [vmem:[%s16377_s26 + $0x118] sm:$0xff] %vm3596_vm4, %v9629_v37  ;;  %v11672_v57 = vrot.slane %v19082_v23, 3  ;;  %v8879_v5 = vld [vmem:[%s16377_s26 + $0x148] sm:$0xff] }
 0x5c4   : > { %v10386_v8 = vpop.f32.mrf.mxu1  ;;  %11991 = vmatmul.mubr.bf16.gmra.mxu1 %v11661_v24  ;;  %v9556_v56 = vpop.f32.mrf.mxu0  ;;  %11161 = vmatmul.mubr.bf16.gmra.mxu0 %v19038_v18 }
 0x5c5   : > { %v10472_v63 = vadd.f32 %v10386_v8, %v9716_v9  ;;  %11998 = vmatprep.mubr.bf16.mxu1 %v11667_v53  ;;  %v9630_v51 = vadd.f32 %v9556_v56, %v8874_v36  ;;  %11168 = vmatprep.mubr.bf16.mxu0 %v19046_v33  ;;  %v11678_v9 = vrot.slane %v13816_v25, 3  ;;  %v13721_v8 = vcombine.low %v10619_v35, %v10619_v35 }
 0x5c6   : > { %v10388_v22 = vpop.f32.mrf.mxu1  ;;  %v9558_v20 = vpop.f32.mrf.mxu0  ;;  %v9718_v19 = vld [vmem:[%s16377_s26 + $0x110] sm:$0xff]  ;;  %v11673_v56 = vsel %vm5008_vm6, %v11668_v17, %v11672_v57 }
 0x5c7   : > { %10517 = vst.msk [vmem:[%s16377_s26 + $0x100] sm:$0xff] %vm3596_vm4, %v10472_v63  ;;  %9675 = vst.msk [vmem:[%s16377_s26 + $0x120] sm:$0xff] %vm3596_vm4, %v9630_v51  ;;  %v13815_v63 = vcombine.low %v10619_v35, %v11372_v59  ;;  %v11679_v22 = vsel %vm5008_vm6, %v11674_v28, %v11678_v9  ;;  %v10530_v59 = vld [vmem:[%s16377_s26] sm:$0xff] }
 0x5c8   : > { %v10389_v21 = vpop.f32.mrf.mxu1  ;;  %v9559_v54 = vpop.f32.mrf.mxu0 }
 0x5c9   : > { %v10473_v39 = vadd.f32 %v10389_v21, %v9717_v42  ;;  %v9631_v44 = vadd.f32 %v9559_v54, %v8875_v38  ;;  %v8880_v42 = vld [vmem:[%s16377_s26 + $0x150] sm:$0xff] }
 0x5ca   : > { %v10391_v10 = vpop.f32.mrf.mxu1  ;;  %v9561_v12 = vpop.f32.mrf.mxu0  ;;  %v9719_v16 = vld [vmem:[%s16377_s26 + $0x118] sm:$0xff] }
 0x5cb   : > { %10518 = vst.msk [vmem:[%s16377_s26 + $0x108] sm:$0xff] %vm3596_vm4, %v10473_v39  ;;  %9676 = vst.msk [vmem:[%s16377_s26 + $0x128] sm:$0xff] %vm3596_vm4, %v9631_v44  ;;  %v11676_v39 = vrot.slane %v13815_v63, 3  ;;  %v8881_v10 = vld [vmem:[%s16377_s26 + $0x158] sm:$0xff] }
 0x5cc   : > { %v10394_v11 = vpop.f32.mrf.mxu1  ;;  %11999 = vmatmul.mubr.bf16.gmra.mxu1 %v11665_v15  ;;  %v9564_v58 = vpop.f32.mrf.mxu0  ;;  %11169 = vmatmul.mubr.bf16.gmra.mxu0 %v19060_v7 }
 0x5cd   : > { %v10474_v50 = vadd.f32 %v10394_v11, %v9718_v19  ;;  %12006 = vmatprep.mubr.bf16.mxu1 %v11671_v2  ;;  %v9632_v30 = vadd.f32 %v9564_v58, %v8876_v3  ;;  %11176 = vmatprep.mubr.bf16.mxu0 %v19068_v4  ;;  %v11677_v2 = vsel %vm5008_vm6, %v11672_v57, %v11676_v39  ;;  %v8882_v58 = vld [vmem:[%s16377_s26 + $0x160] sm:$0xff] }
 0x5ce   : > { %v10396_v14 = vpop.f32.mrf.mxu1  ;;  %v9566_v52 = vpop.f32.mrf.mxu0  ;;  %v9720_v41 = vld [vmem:[%s16377_s26 + $0x120] sm:$0xff] }
 0x5cf   : > { %10519 = vst.msk [vmem:[%s16377_s26 + $0x110] sm:$0xff] %vm3596_vm4, %v10474_v50  ;;  %9677 = vst.msk [vmem:[%s16377_s26 + $0x130] sm:$0xff] %vm3596_vm4, %v9632_v30 }
 0x5d0   : > { %v10397_v49 = vpop.f32.mrf.mxu1  ;;  %v9567_v32 = vpop.f32.mrf.mxu0 }
 0x5d1   : > { %v10475_v46 = vadd.f32 %v10397_v49, %v9719_v16  ;;  %v9633_v0 = vadd.f32 %v9567_v32, %v8877_v55 }
 0x5d2   : > { %v10399_v45 = vpop.f32.mrf.mxu1  ;;  %v9569_v40 = vpop.f32.mrf.mxu0  ;;  %v9721_v31 = vld [vmem:[%s16377_s26 + $0x128] sm:$0xff] }
 0x5d3   : > { %10520 = vst.msk [vmem:[%s16377_s26 + $0x118] sm:$0xff] %vm3596_vm4, %v10475_v46  ;;  %9678 = vst.msk [vmem:[%s16377_s26 + $0x138] sm:$0xff] %vm3596_vm4, %v9633_v0 }
 0x5d4   : > { %v10402_v47 = vpop.f32.mrf.mxu1  ;;  %12007 = vmatmul.mubr.bf16.gmra.mxu1 %v11669_v29  ;;  %v9572_v61 = vpop.f32.mrf.mxu0  ;;  %11177 = vmatmul.mubr.bf16.gmra.mxu0 %v19082_v23 }
 0x5d5   : > { %v10476_v62 = vadd.f32 %v10402_v47, %v9720_v41  ;;  %12014 = vmatprep.mubr.bf16.mxu1 %v11675_v43  ;;  %v9634_v6 = vadd.f32 %v9572_v61, %v8878_v60  ;;  %11184 = vmatprep.mubr.bf16.mxu0 %v13722_v26  ;;  %v10531_v43 = vld [vmem:[%s16377_s26 + $0x8] sm:$0xff] }
 0x5d6   : > { %v10404_v13 = vpop.f32.mrf.mxu1  ;;  %v9574_v27 = vpop.f32.mrf.mxu0  ;;  %v9722_v53 = vld [vmem:[%s16377_s26 + $0x130] sm:$0xff] }
 0x5d7   : > { %10521 = vst.msk [vmem:[%s16377_s26 + $0x120] sm:$0xff] %vm3596_vm4, %v10476_v62  ;;  %9679 = vst.msk [vmem:[%s16377_s26 + $0x140] sm:$0xff] %vm3596_vm4, %v9634_v6  ;;  %v10532_v27 = vld [vmem:[%s16377_s26 + $0x10] sm:$0xff] }
 0x5d8   : > { %v10405_v37 = vpop.f32.mrf.mxu1  ;;  %v9575_v18 = vpop.f32.mrf.mxu0 }
 0x5d9   : > { %v10477_v34 = vadd.f32 %v10405_v37, %v9721_v31  ;;  %v9635_v24 = vadd.f32 %v9575_v18, %v8879_v5 }
 0x5da   : > { %v10407_v33 = vpop.f32.mrf.mxu1  ;;  %v9577_v36 = vpop.f32.mrf.mxu0  ;;  %v9723_v54 = vld [vmem:[%s16377_s26 + $0x138] sm:$0xff] }
 0x5db   : > { %10522 = vst.msk [vmem:[%s16377_s26 + $0x128] sm:$0xff] %vm3596_vm4, %v10477_v34  ;;  %9680 = vst.msk [vmem:[%s16377_s26 + $0x148] sm:$0xff] %vm3596_vm4, %v9635_v24  ;;  %v10533_v24 = vld [vmem:[%s16377_s26 + $0x18] sm:$0xff] }
 0x5dc   : > { %v10410_v51 = vpop.f32.mrf.mxu1  ;;  %12015 = vmatmul.mubr.bf16.gmra.mxu1 %v11673_v56  ;;  %v9580_v20 = vpop.f32.mrf.mxu0  ;;  %11185 = vmatmul.mubr.bf16.gmra.mxu0 %v13721_v8 }
 0x5dd   : > { %v10478_v48 = vadd.f32 %v10410_v51, %v9722_v53  ;;  %12022 = vmatprep.mubr.bf16.mxu1 %v11679_v22  ;;  %v9636_v21 = vadd.f32 %v9580_v20, %v8880_v42  ;;  %v10534_v51 = vld [vmem:[%s16377_s26 + $0x20] sm:$0xff] }
 0x5de   : > { %v10412_v38 = vpop.f32.mrf.mxu1  ;;  %v9582_v1 = vpop.f32.mrf.mxu0  ;;  %v9724_v4 = vld [vmem:[%s16377_s26 + $0x140] sm:$0xff] }
 0x5df   : > { %10523 = vst.msk [vmem:[%s16377_s26 + $0x130] sm:$0xff] %vm3596_vm4, %v10478_v48  ;;  %9681 = vst.msk [vmem:[%s16377_s26 + $0x150] sm:$0xff] %vm3596_vm4, %v9636_v21  ;;  %v10535_v1 = vld [vmem:[%s16377_s26 + $0x28] sm:$0xff] }
 0x5e0   : > { %v10413_v44 = vpop.f32.mrf.mxu1  ;;  %v9583_v7 = vpop.f32.mrf.mxu0 }
 0x5e1   : > { %v10479_v19 = vadd.f32 %v10413_v44, %v9723_v54  ;;  %v9637_v12 = vadd.f32 %v9583_v7, %v8881_v10 }
 0x5e2   : > { %v10415_v15 = vpop.f32.mrf.mxu1  ;;  %v9585_v11 = vpop.f32.mrf.mxu0  ;;  %v9725_v52 = vld [vmem:[%s16377_s26 + $0x148] sm:$0xff] }
 0x5e3   : > { %10524 = vst.msk [vmem:[%s16377_s26 + $0x138] sm:$0xff] %vm3596_vm4, %v10479_v19  ;;  %9682 = vst.msk [vmem:[%s16377_s26 + $0x158] sm:$0xff] %vm3596_vm4, %v9637_v12  ;;  %v19165_v15 = vld [vmem:[%s19604_s4] ss:$0 sm:$0xff]  ;;  %v10536_v11 = vld [vmem:[%s16377_s26 + $0x30] sm:$0xff] }
 0x5e4   : > { %v10418_v3 = vpop.f32.mrf.mxu1  ;;  %12023 = vmatmul.mubr.bf16.gmra.mxu1 %v11677_v2  ;;  %v9588_v50 = vpop.f32.mrf.mxu0 }
 0x5e5   : > { %v10480_v30 = vadd.f32 %v10418_v3, %v9724_v4  ;;  %12030 = vmatprep.mubr.bf16.mxu1 %v11678_v9  ;;  %v9638_v14 = vadd.f32 %v9588_v50, %v8882_v58 }
 0x5e6   : > { %v10420_v16 = vpop.f32.mrf.mxu1  ;;  %v9590_v17 = vpop.f32.mrf.mxu0  ;;  %v9726_v46 = vld [vmem:[%s16377_s26 + $0x150] sm:$0xff] }
 0x5e7   : > { %10525 = vst.msk [vmem:[%s16377_s26 + $0x140] sm:$0xff] %vm3596_vm4, %v10480_v30  ;;  %9683 = vst.msk [vmem:[%s16377_s26 + $0x160] sm:$0xff] %vm3596_vm4, %v9638_v14 }
 0x5e8   : > { %v10421_v49 = vpop.f32.mrf.mxu1  ;;  %v9591_v55 = vpop.f32.mrf.mxu0 }
 0x5e9   : > { %v10481_v32 = vadd.f32 %v10421_v49, %v9725_v52  ;;  %v10537_v49 = vld [vmem:[%s16377_s26 + $0x38] sm:$0xff] }
 0x5ea   : > { %v10423_v28 = vpop.f32.mrf.mxu1  ;;  %v9592_v0 = vpop.f32.mrf.mxu0  ;;  %v9727_v29 = vld [vmem:[%s16377_s26 + $0x158] sm:$0xff] }
 0x5eb   : > { %10526 = vst.msk [vmem:[%s16377_s26 + $0x148] sm:$0xff] %vm3596_vm4, %v10481_v32 }
 0x5ec   : > { %v10426_v35 = vpop.f32.mrf.mxu1  ;;  %12031 = vmatmul.mubr.bf16.gmra.mxu1 %v11676_v39  ;;  %v11010_v45 = vpop.f32.mrf.mxu0 }
 0x5ed   : > { %v10482_v23 = vadd.f32 %v10426_v35, %v9726_v46  ;;  %v11192_v41 = vadd.f32 %v11010_v45, %v10530_v59 }
 0x5ee   : > { %v10428_v40 = vpop.f32.mrf.mxu1  ;;  %v11012_v26 = vpop.f32.mrf.mxu0  ;;  %v9728_v6 = vld [vmem:[%s16377_s26 + $0x160] sm:$0xff] }
 0x5ef   : > { %10527 = vst.msk [vmem:[%s16377_s26 + $0x150] sm:$0xff] %vm3596_vm4, %v10482_v23  ;;  %11237 = vst.msk [vmem:[%s16377_s26] sm:$0xff] %vm3596_vm4, %v11192_v41  ;;  %v10538_v40 = vld [vmem:[%s16377_s26 + $0x40] sm:$0xff] }
 0x5f0   : > { %v10429_v47 = vpop.f32.mrf.mxu1  ;;  %v11013_v60 = vpop.f32.mrf.mxu0 }
 0x5f1   : > { %v10483_v61 = vadd.f32 %v10429_v47, %v9727_v29  ;;  %v11193_v25 = vadd.f32 %v11013_v60, %v10531_v43 }
 0x5f2   : > { %v10431_v62 = vpop.f32.mrf.mxu1  ;;  %v11015_v13 = vpop.f32.mrf.mxu0 }
 0x5f3   : > { %10528 = vst.msk [vmem:[%s16377_s26 + $0x158] sm:$0xff] %vm3596_vm4, %v10483_v61  ;;  %11238 = vst.msk [vmem:[%s16377_s26 + $0x8] sm:$0xff] %vm3596_vm4, %v11193_v25 }
 0x5f4   : > { %v10434_v31 = vpop.f32.mrf.mxu1  ;;  %v11018_v57 = vpop.f32.mrf.mxu0 }
 0x5f5   : > { %v10484_v37 = vadd.f32 %v10434_v31, %v9728_v6  ;;  %v11194_v5 = vadd.f32 %v11018_v57, %v10532_v27  ;;  %v10539_v31 = vld [vmem:[%s16377_s26 + $0x48] sm:$0xff] }
 0x5f6   : > { %v10436_v18 = vpop.f32.mrf.mxu1  ;;  %v11020_v9 = vpop.f32.mrf.mxu0  ;;  %v11282_v36 = vld [vmem:[%s16377_s26] sm:$0xff] }
 0x5f7   : > { %10529 = vst.msk [vmem:[%s16377_s26 + $0x160] sm:$0xff] %vm3596_vm4, %v10484_v37  ;;  %11239 = vst.msk [vmem:[%s16377_s26 + $0x10] sm:$0xff] %vm3596_vm4, %v11194_v5 }
 0x5f8   : > { %v10437_v34 = vpop.f32.mrf.mxu1  ;;  %v11021_v33 = vpop.f32.mrf.mxu0 }
 0x5f9   : > { %v11195_v8 = vadd.f32 %v11021_v33, %v10533_v24 }
 0x5fa   : > { %v10438_v53 = vpop.f32.mrf.mxu1  ;;  %v11023_v56 = vpop.f32.mrf.mxu0  ;;  %v11283_v21 = vld [vmem:[%s16377_s26 + $0x8] sm:$0xff] }
 0x5fb   : > { %11240 = vst.msk [vmem:[%s16377_s26 + $0x18] sm:$0xff] %vm3596_vm4, %v11195_v8  ;;  %v10540_v53 = vld [vmem:[%s16377_s26 + $0x50] sm:$0xff] }
 0x5fc   : > { %v11856_v63 = vpop.f32.mrf.mxu1  ;;  %v11026_v22 = vpop.f32.mrf.mxu0 }
 0x5fd   : > { %v12038_v42 = vadd.f32 %v11856_v63, %v11282_v36  ;;  %v11196_v20 = vadd.f32 %v11026_v22, %v10534_v51 }
 0x5fe   : > { %v11858_v48 = vpop.f32.mrf.mxu1  ;;  %v11028_v38 = vpop.f32.mrf.mxu0  ;;  %v11284_v19 = vld [vmem:[%s16377_s26 + $0x10] sm:$0xff] }
 0x5ff   : > { %12083 = vst.msk [vmem:[%s16377_s26] sm:$0xff] %vm3596_vm4, %v12038_v42  ;;  %11241 = vst.msk [vmem:[%s16377_s26 + $0x20] sm:$0xff] %vm3596_vm4, %v11196_v20 }
 0x600   : > { %v11859_v54 = vpop.f32.mrf.mxu1  ;;  %v11029_v39 = vpop.f32.mrf.mxu0 }
 0x601   : > { %v12039_v44 = vadd.f32 %v11859_v54, %v11283_v21  ;;  %v11197_v10 = vadd.f32 %v11029_v39, %v10535_v1  ;;  %v10541_v54 = vld [vmem:[%s16377_s26 + $0x58] sm:$0xff] }
 0x602   : > { %v11861_v7 = vpop.f32.mrf.mxu1  ;;  %v11031_v12 = vpop.f32.mrf.mxu0  ;;  %v11285_v14 = vld [vmem:[%s16377_s26 + $0x18] sm:$0xff] }
 0x603   : > { %12084 = vst.msk [vmem:[%s16377_s26 + $0x8] sm:$0xff] %vm3596_vm4, %v12039_v44  ;;  %11242 = vst.msk [vmem:[%s16377_s26 + $0x28] sm:$0xff] %vm3596_vm4, %v11197_v10 }
 0x604   : > { %v11864_v4 = vpop.f32.mrf.mxu1  ;;  %v11034_v2 = vpop.f32.mrf.mxu0 }
 0x605   : > { %v12040_v3 = vadd.f32 %v11864_v4, %v11284_v19  ;;  %v11198_v58 = vadd.f32 %v11034_v2, %v10536_v11 }
 0x606   : > { %v12128_v50 = vld [vmem:[%s16377_s26] sm:$0xff]  ;;  %v11866_v30 = vpop.f32.mrf.mxu1  ;;  %v11036_v16 = vpop.f32.mrf.mxu0 }
 0x607   : > { %v12180_v52 = vadd.f32 %v19165_v15, %v12128_v50  ;;  %12085 = vst.msk [vmem:[%s16377_s26 + $0x10] sm:$0xff] %vm3596_vm4, %v12040_v3  ;;  %11243 = vst.msk [vmem:[%s16377_s26 + $0x30] sm:$0xff] %vm3596_vm4, %v11198_v58  ;;  %v11286_v59 = vld [vmem:[%s16377_s26 + $0x20] sm:$0xff] }
 0x608   : > { %v11867_v17 = vpop.f32.mrf.mxu1  ;;  %v11037_v55 = vpop.f32.mrf.mxu0  ;;  %v10542_v3 = vld [vmem:[%s16377_s26 + $0x60] sm:$0xff] }
 0x609   : > { %v12225_v32 = vmax.f32 %v12180_v52, 0.0  ;;  %v12041_v28 = vadd.f32 %v11867_v17, %v11285_v14  ;;  %v11199_v46 = vadd.f32 %v11037_v55, %v10537_v49 }
 0x60a   : > { %v12129_v0 = vld [vmem:[%s16377_s26 + $0x8] sm:$0xff]  ;;  %v11869_v35 = vpop.f32.mrf.mxu1  ;;  %v11039_v45 = vpop.f32.mrf.mxu0 }
 0x60b   : > { %12270 = vst.msk [vmem:[%s16377_s26] sm:$0xff] %vm3596_vm4, %v12225_v32  ;;  %v12181_v23 = vadd.f32 %v19165_v15, %v12129_v0  ;;  %12086 = vst.msk [vmem:[%s16377_s26 + $0x18] sm:$0xff] %vm3596_vm4, %v12041_v28  ;;  %v11287_v25 = vld [vmem:[%s16377_s26 + $0x28] sm:$0xff] }
 0x60c   : > { %11244 = vst.msk [vmem:[%s16377_s26 + $0x38] sm:$0xff] %vm3596_vm4, %v11199_v46  ;;  %v11872_v41 = vpop.f32.mrf.mxu1  ;;  %v11042_v29 = vpop.f32.mrf.mxu0  ;;  %v10543_v28 = vld [vmem:[%s16377_s26 + $0x68] sm:$0xff] }
 0x60d   : > { %v12226_v26 = vmax.f32 %v12181_v23, 0.0  ;;  %v12042_v47 = vadd.f32 %v11872_v41, %v11286_v59  ;;  %v11200_v43 = vadd.f32 %v11042_v29, %v10538_v40 }
 0x60e   : > { %v12130_v60 = vld [vmem:[%s16377_s26 + $0x10] sm:$0xff]  ;;  %v11874_v61 = vpop.f32.mrf.mxu1  ;;  %v11044_v62 = vpop.f32.mrf.mxu0 }
 0x60f   : > { %12271 = vst.msk [vmem:[%s16377_s26 + $0x8] sm:$0xff] %vm3596_vm4, %v12226_v26  ;;  %v12182_v6 = vadd.f32 %v19165_v15, %v12130_v60  ;;  %12087 = vst.msk [vmem:[%s16377_s26 + $0x20] sm:$0xff] %vm3596_vm4, %v12042_v47  ;;  %v11288_v34 = vld [vmem:[%s16377_s26 + $0x30] sm:$0xff] }
 0x610   : > { %11245 = vst.msk [vmem:[%s16377_s26 + $0x40] sm:$0xff] %vm3596_vm4, %v11200_v43  ;;  %v11875_v13 = vpop.f32.mrf.mxu1  ;;  %v11045_v27 = vpop.f32.mrf.mxu0  ;;  %v10544_v47 = vld [vmem:[%s16377_s26 + $0x70] sm:$0xff] }
 0x611   : > { %v12227_v57 = vmax.f32 %v12182_v6, 0.0  ;;  %v12043_v37 = vadd.f32 %v11875_v13, %v11287_v25  ;;  %v11201_v5 = vadd.f32 %v11045_v27, %v10539_v31 }
 0x612   : > { %v12131_v18 = vld [vmem:[%s16377_s26 + $0x18] sm:$0xff]  ;;  %v11877_v9 = vpop.f32.mrf.mxu1  ;;  %v11047_v24 = vpop.f32.mrf.mxu0 }
 0x613   : > { %12272 = vst.msk [vmem:[%s16377_s26 + $0x10] sm:$0xff] %vm3596_vm4, %v12227_v57  ;;  %v12183_v33 = vadd.f32 %v19165_v15, %v12131_v18  ;;  %12088 = vst.msk [vmem:[%s16377_s26 + $0x28] sm:$0xff] %vm3596_vm4, %v12043_v37  ;;  %v11289_v20 = vld [vmem:[%s16377_s26 + $0x38] sm:$0xff] }
 0x614   : > { %11246 = vst.msk [vmem:[%s16377_s26 + $0x48] sm:$0xff] %vm3596_vm4, %v11201_v5  ;;  %v11880_v8 = vpop.f32.mrf.mxu1  ;;  %v11050_v36 = vpop.f32.mrf.mxu0  ;;  %v10545_v37 = vld [vmem:[%s16377_s26 + $0x78] sm:$0xff] }
 0x615   : > { %v12228_v56 = vmax.f32 %v12183_v33, 0.0  ;;  %v12044_v63 = vadd.f32 %v11880_v8, %v11288_v34  ;;  %v11202_v51 = vadd.f32 %v11050_v36, %v10540_v53 }
 0x616   : > { %v12132_v22 = vld [vmem:[%s16377_s26 + $0x20] sm:$0xff]  ;;  %v11882_v42 = vpop.f32.mrf.mxu1  ;;  %v11052_v48 = vpop.f32.mrf.mxu0 }
 0x617   : > { %12273 = vst.msk [vmem:[%s16377_s26 + $0x18] sm:$0xff] %vm3596_vm4, %v12228_v56  ;;  %v12184_v21 = vadd.f32 %v19165_v15, %v12132_v22  ;;  %12089 = vst.msk [vmem:[%s16377_s26 + $0x30] sm:$0xff] %vm3596_vm4, %v12044_v63  ;;  %v11290_v12 = vld [vmem:[%s16377_s26 + $0x40] sm:$0xff] }
 0x618   : > { %11247 = vst.msk [vmem:[%s16377_s26 + $0x50] sm:$0xff] %vm3596_vm4, %v11202_v51  ;;  %v11883_v38 = vpop.f32.mrf.mxu1  ;;  %v11053_v1 = vpop.f32.mrf.mxu0  ;;  %v10546_v63 = vld [vmem:[%s16377_s26 + $0x80] sm:$0xff] }
 0x619   : > { %v12229_v39 = vmax.f32 %v12184_v21, 0.0  ;;  %v12045_v44 = vadd.f32 %v11883_v38, %v11289_v20  ;;  %v11203_v10 = vadd.f32 %v11053_v1, %v10541_v54 }
 0x61a   : > { %v12133_v7 = vld [vmem:[%s16377_s26 + $0x28] sm:$0xff]  ;;  %v11885_v19 = vpop.f32.mrf.mxu1  ;;  %v11055_v4 = vpop.f32.mrf.mxu0 }
 0x61b   : > { %12274 = vst.msk [vmem:[%s16377_s26 + $0x20] sm:$0xff] %vm3596_vm4, %v12229_v39  ;;  %v12185_v11 = vadd.f32 %v19165_v15, %v12133_v7  ;;  %12090 = vst.msk [vmem:[%s16377_s26 + $0x38] sm:$0xff] %vm3596_vm4, %v12045_v44  ;;  %v11291_v17 = vld [vmem:[%s16377_s26 + $0x48] sm:$0xff] }
 0x61c   : > { %11248 = vst.msk [vmem:[%s16377_s26 + $0x58] sm:$0xff] %vm3596_vm4, %v11203_v10  ;;  %v11888_v2 = vpop.f32.mrf.mxu1  ;;  %v11058_v58 = vpop.f32.mrf.mxu0  ;;  %v10547_v44 = vld [vmem:[%s16377_s26 + $0x88] sm:$0xff] }
 0x61d   : > { %v12230_v50 = vmax.f32 %v12185_v11, 0.0  ;;  %v12046_v30 = vadd.f32 %v11888_v2, %v11290_v12  ;;  %v11204_v14 = vadd.f32 %v11058_v58, %v10542_v3 }
 0x61e   : > { %v12134_v16 = vld [vmem:[%s16377_s26 + $0x30] sm:$0xff]  ;;  %v11890_v52 = vpop.f32.mrf.mxu1  ;;  %v11060_v49 = vpop.f32.mrf.mxu0 }
 0x61f   : > { %12275 = vst.msk [vmem:[%s16377_s26 + $0x28] sm:$0xff] %vm3596_vm4, %v12230_v50  ;;  %v12186_v55 = vadd.f32 %v19165_v15, %v12134_v16  ;;  %12091 = vst.msk [vmem:[%s16377_s26 + $0x40] sm:$0xff] %vm3596_vm4, %v12046_v30  ;;  %v11292_v41 = vld [vmem:[%s16377_s26 + $0x50] sm:$0xff] }
 0x620   : > { %11249 = vst.msk [vmem:[%s16377_s26 + $0x60] sm:$0xff] %vm3596_vm4, %v11204_v14  ;;  %v11891_v32 = vpop.f32.mrf.mxu1  ;;  %v11061_v46 = vpop.f32.mrf.mxu0  ;;  %v10548_v30 = vld [vmem:[%s16377_s26 + $0x90] sm:$0xff] }
 0x621   : > { %v12231_v0 = vmax.f32 %v12186_v55, 0.0  ;;  %v12047_v35 = vadd.f32 %v11891_v32, %v11291_v17  ;;  %v11205_v59 = vadd.f32 %v11061_v46, %v10543_v28 }
 0x622   : > { %v12135_v45 = vld [vmem:[%s16377_s26 + $0x38] sm:$0xff]  ;;  %v11893_v23 = vpop.f32.mrf.mxu1  ;;  %v11063_v40 = vpop.f32.mrf.mxu0 }
 0x623   : > { %12276 = vst.msk [vmem:[%s16377_s26 + $0x30] sm:$0xff] %vm3596_vm4, %v12231_v0  ;;  %v12187_v29 = vadd.f32 %v19165_v15, %v12135_v45  ;;  %12092 = vst.msk [vmem:[%s16377_s26 + $0x48] sm:$0xff] %vm3596_vm4, %v12047_v35  ;;  %v11293_v13 = vld [vmem:[%s16377_s26 + $0x58] sm:$0xff] }
 0x624   : > { %11250 = vst.msk [vmem:[%s16377_s26 + $0x68] sm:$0xff] %vm3596_vm4, %v11205_v59  ;;  %v11896_v26 = vpop.f32.mrf.mxu1  ;;  %v11066_v43 = vpop.f32.mrf.mxu0  ;;  %v10549_v35 = vld [vmem:[%s16377_s26 + $0x98] sm:$0xff] }
 0x625   : > { %v12232_v60 = vmax.f32 %v12187_v29, 0.0  ;;  %v12048_v61 = vadd.f32 %v11896_v26, %v11292_v41  ;;  %v11206_v25 = vadd.f32 %v11066_v43, %v10544_v47 }
 0x626   : > { %v12136_v62 = vld [vmem:[%s16377_s26 + $0x40] sm:$0xff]  ;;  %v11898_v6 = vpop.f32.mrf.mxu1  ;;  %v11068_v31 = vpop.f32.mrf.mxu0 }
 0x627   : > { %12277 = vst.msk [vmem:[%s16377_s26 + $0x38] sm:$0xff] %vm3596_vm4, %v12232_v60  ;;  %v12188_v27 = vadd.f32 %v19165_v15, %v12136_v62  ;;  %12093 = vst.msk [vmem:[%s16377_s26 + $0x50] sm:$0xff] %vm3596_vm4, %v12048_v61  ;;  %v11294_v8 = vld [vmem:[%s16377_s26 + $0x60] sm:$0xff] }
 0x628   : > { %11251 = vst.msk [vmem:[%s16377_s26 + $0x70] sm:$0xff] %vm3596_vm4, %v11206_v25  ;;  %v11899_v57 = vpop.f32.mrf.mxu1  ;;  %v11069_v5 = vpop.f32.mrf.mxu0  ;;  %v10550_v61 = vld [vmem:[%s16377_s26 + $0xa0] sm:$0xff] }
 0x629   : > { %v12233_v18 = vmax.f32 %v12188_v27, 0.0  ;;  %v12049_v9 = vadd.f32 %v11899_v57, %v11293_v13  ;;  %v11207_v34 = vadd.f32 %v11069_v5, %v10545_v37 }
 0x62a   : > { %v12137_v24 = vld [vmem:[%s16377_s26 + $0x48] sm:$0xff]  ;;  %v11901_v33 = vpop.f32.mrf.mxu1  ;;  %v11071_v53 = vpop.f32.mrf.mxu0 }
 0x62b   : > { %12278 = vst.msk [vmem:[%s16377_s26 + $0x40] sm:$0xff] %vm3596_vm4, %v12233_v18  ;;  %v12189_v36 = vadd.f32 %v19165_v15, %v12137_v24  ;;  %12094 = vst.msk [vmem:[%s16377_s26 + $0x58] sm:$0xff] %vm3596_vm4, %v12049_v9  ;;  %v11295_v38 = vld [vmem:[%s16377_s26 + $0x68] sm:$0xff] }
 0x62c   : > { %11252 = vst.msk [vmem:[%s16377_s26 + $0x78] sm:$0xff] %vm3596_vm4, %v11207_v34  ;;  %v11904_v56 = vpop.f32.mrf.mxu1  ;;  %v11074_v51 = vpop.f32.mrf.mxu0  ;;  %v10551_v9 = vld [vmem:[%s16377_s26 + $0xa8] sm:$0xff] }
 0x62d   : > { %v12234_v22 = vmax.f32 %v12189_v36, 0.0  ;;  %v12050_v42 = vadd.f32 %v11904_v56, %v11294_v8  ;;  %v11208_v20 = vadd.f32 %v11074_v51, %v10546_v63 }
 0x62e   : > { %v12138_v48 = vld [vmem:[%s16377_s26 + $0x50] sm:$0xff]  ;;  %v11906_v21 = vpop.f32.mrf.mxu1  ;;  %v11076_v54 = vpop.f32.mrf.mxu0 }
 0x62f   : > { %12279 = vst.msk [vmem:[%s16377_s26 + $0x48] sm:$0xff] %vm3596_vm4, %v12234_v22  ;;  %v12190_v1 = vadd.f32 %v19165_v15, %v12138_v48  ;;  %12095 = vst.msk [vmem:[%s16377_s26 + $0x60] sm:$0xff] %vm3596_vm4, %v12050_v42  ;;  %v11296_v2 = vld [vmem:[%s16377_s26 + $0x70] sm:$0xff] }
 0x630   : > { %11253 = vst.msk [vmem:[%s16377_s26 + $0x80] sm:$0xff] %vm3596_vm4, %v11208_v20  ;;  %v11907_v39 = vpop.f32.mrf.mxu1  ;;  %v11077_v10 = vpop.f32.mrf.mxu0  ;;  %v10552_v42 = vld [vmem:[%s16377_s26 + $0xb0] sm:$0xff] }
 0x631   : > { %v12235_v7 = vmax.f32 %v12190_v1, 0.0  ;;  %v12051_v19 = vadd.f32 %v11907_v39, %v11295_v38  ;;  %v11209_v12 = vadd.f32 %v11077_v10, %v10547_v44 }
 0x632   : > { %v12139_v4 = vld [vmem:[%s16377_s26 + $0x58] sm:$0xff]  ;;  %v11909_v11 = vpop.f32.mrf.mxu1  ;;  %v11079_v3 = vpop.f32.mrf.mxu0 }
 0x633   : > { %12280 = vst.msk [vmem:[%s16377_s26 + $0x50] sm:$0xff] %vm3596_vm4, %v12235_v7  ;;  %v12191_v58 = vadd.f32 %v19165_v15, %v12139_v4  ;;  %12096 = vst.msk [vmem:[%s16377_s26 + $0x68] sm:$0xff] %vm3596_vm4, %v12051_v19  ;;  %v11297_v32 = vld [vmem:[%s16377_s26 + $0x78] sm:$0xff] }
 0x634   : > { %11254 = vst.msk [vmem:[%s16377_s26 + $0x88] sm:$0xff] %vm3596_vm4, %v11209_v12  ;;  %v11912_v50 = vpop.f32.mrf.mxu1  ;;  %v11082_v14 = vpop.f32.mrf.mxu0  ;;  %v10553_v19 = vld [vmem:[%s16377_s26 + $0xb8] sm:$0xff] }
 0x635   : > { %v12236_v16 = vmax.f32 %v12191_v58, 0.0  ;;  %v12052_v52 = vadd.f32 %v11912_v50, %v11296_v2  ;;  %v11210_v17 = vadd.f32 %v11082_v14, %v10548_v30 }
 0x636   : > { %v12140_v49 = vld [vmem:[%s16377_s26 + $0x60] sm:$0xff]  ;;  %v11914_v55 = vpop.f32.mrf.mxu1  ;;  %v11084_v28 = vpop.f32.mrf.mxu0 }
 0x637   : > { %12281 = vst.msk [vmem:[%s16377_s26 + $0x58] sm:$0xff] %vm3596_vm4, %v12236_v16  ;;  %v12192_v46 = vadd.f32 %v19165_v15, %v12140_v49  ;;  %12097 = vst.msk [vmem:[%s16377_s26 + $0x70] sm:$0xff] %vm3596_vm4, %v12052_v52  ;;  %v11298_v26 = vld [vmem:[%s16377_s26 + $0x80] sm:$0xff] }
 0x638   : > { %11255 = vst.msk [vmem:[%s16377_s26 + $0x90] sm:$0xff] %vm3596_vm4, %v11210_v17  ;;  %v11915_v0 = vpop.f32.mrf.mxu1  ;;  %v11085_v59 = vpop.f32.mrf.mxu0  ;;  %v10554_v52 = vld [vmem:[%s16377_s26 + $0xc0] sm:$0xff] }
 0x639   : > { %v12237_v45 = vmax.f32 %v12192_v46, 0.0  ;;  %v12053_v23 = vadd.f32 %v11915_v0, %v11297_v32  ;;  %v11211_v41 = vadd.f32 %v11085_v59, %v10549_v35 }
 0x63a   : > { %v12141_v40 = vld [vmem:[%s16377_s26 + $0x68] sm:$0xff]  ;;  %v11917_v29 = vpop.f32.mrf.mxu1  ;;  %v11087_v47 = vpop.f32.mrf.mxu0 }
 0x63b   : > { %12282 = vst.msk [vmem:[%s16377_s26 + $0x60] sm:$0xff] %vm3596_vm4, %v12237_v45  ;;  %v12193_v43 = vadd.f32 %v19165_v15, %v12141_v40  ;;  %12098 = vst.msk [vmem:[%s16377_s26 + $0x78] sm:$0xff] %vm3596_vm4, %v12053_v23  ;;  %v11299_v57 = vld [vmem:[%s16377_s26 + $0x88] sm:$0xff] }
 0x63c   : > { %11256 = vst.msk [vmem:[%s16377_s26 + $0x98] sm:$0xff] %vm3596_vm4, %v11211_v41  ;;  %v11920_v60 = vpop.f32.mrf.mxu1  ;;  %v11090_v25 = vpop.f32.mrf.mxu0  ;;  %v10555_v23 = vld [vmem:[%s16377_s26 + $0xc8] sm:$0xff] }
 0x63d   : > { %v12238_v62 = vmax.f32 %v12193_v43, 0.0  ;;  %v12054_v6 = vadd.f32 %v11920_v60, %v11298_v26  ;;  %v11212_v13 = vadd.f32 %v11090_v25, %v10550_v61 }
 0x63e   : > { %v12142_v31 = vld [vmem:[%s16377_s26 + $0x70] sm:$0xff]  ;;  %v11922_v27 = vpop.f32.mrf.mxu1  ;;  %v11092_v37 = vpop.f32.mrf.mxu0 }
 0x63f   : > { %12283 = vst.msk [vmem:[%s16377_s26 + $0x68] sm:$0xff] %vm3596_vm4, %v12238_v62  ;;  %v12194_v5 = vadd.f32 %v19165_v15, %v12142_v31  ;;  %12099 = vst.msk [vmem:[%s16377_s26 + $0x80] sm:$0xff] %vm3596_vm4, %v12054_v6  ;;  %v11300_v56 = vld [vmem:[%s16377_s26 + $0x90] sm:$0xff] }
 0x640   : > { %11257 = vst.msk [vmem:[%s16377_s26 + $0xa0] sm:$0xff] %vm3596_vm4, %v11212_v13  ;;  %v11923_v18 = vpop.f32.mrf.mxu1  ;;  %v11093_v34 = vpop.f32.mrf.mxu0  ;;  %v10556_v6 = vld [vmem:[%s16377_s26 + $0xd0] sm:$0xff] }
 0x641   : > { %v12239_v24 = vmax.f32 %v12194_v5, 0.0  ;;  %v12055_v33 = vadd.f32 %v11923_v18, %v11299_v57  ;;  %v11213_v8 = vadd.f32 %v11093_v34, %v10551_v9 }
 0x642   : > { %v12143_v53 = vld [vmem:[%s16377_s26 + $0x78] sm:$0xff]  ;;  %v11925_v36 = vpop.f32.mrf.mxu1  ;;  %v11095_v63 = vpop.f32.mrf.mxu0 }
 0x643   : > { %12284 = vst.msk [vmem:[%s16377_s26 + $0x70] sm:$0xff] %vm3596_vm4, %v12239_v24  ;;  %v12195_v51 = vadd.f32 %v19165_v15, %v12143_v53  ;;  %12100 = vst.msk [vmem:[%s16377_s26 + $0x88] sm:$0xff] %vm3596_vm4, %v12055_v33  ;;  %v11301_v39 = vld [vmem:[%s16377_s26 + $0x98] sm:$0xff] }
 0x644   : > { %11258 = vst.msk [vmem:[%s16377_s26 + $0xa8] sm:$0xff] %vm3596_vm4, %v11213_v8  ;;  %v11928_v22 = vpop.f32.mrf.mxu1  ;;  %v11098_v20 = vpop.f32.mrf.mxu0  ;;  %v10557_v33 = vld [vmem:[%s16377_s26 + $0xd8] sm:$0xff] }
 0x645   : > { %v12240_v48 = vmax.f32 %v12195_v51, 0.0  ;;  %v12056_v21 = vadd.f32 %v11928_v22, %v11300_v56  ;;  %v11214_v38 = vadd.f32 %v11098_v20, %v10552_v42 }
 0x646   : > { %v12144_v54 = vld [vmem:[%s16377_s26 + $0x80] sm:$0xff]  ;;  %v11930_v1 = vpop.f32.mrf.mxu1  ;;  %v11100_v44 = vpop.f32.mrf.mxu0 }
 0x647   : > { %12285 = vst.msk [vmem:[%s16377_s26 + $0x78] sm:$0xff] %vm3596_vm4, %v12240_v48  ;;  %v12196_v10 = vadd.f32 %v19165_v15, %v12144_v54  ;;  %12101 = vst.msk [vmem:[%s16377_s26 + $0x90] sm:$0xff] %vm3596_vm4, %v12056_v21  ;;  %v11302_v50 = vld [vmem:[%s16377_s26 + $0xa0] sm:$0xff] }
 0x648   : > { %11259 = vst.msk [vmem:[%s16377_s26 + $0xb0] sm:$0xff] %vm3596_vm4, %v11214_v38  ;;  %v11931_v7 = vpop.f32.mrf.mxu1  ;;  %v11101_v12 = vpop.f32.mrf.mxu0  ;;  %v10558_v21 = vld [vmem:[%s16377_s26 + $0xe0] sm:$0xff] }
 0x649   : > { %v12241_v4 = vmax.f32 %v12196_v10, 0.0  ;;  %v12057_v11 = vadd.f32 %v11931_v7, %v11301_v39  ;;  %v11215_v2 = vadd.f32 %v11101_v12, %v10553_v19 }
 0x64a   : > { %v12145_v3 = vld [vmem:[%s16377_s26 + $0x88] sm:$0xff]  ;;  %v11933_v58 = vpop.f32.mrf.mxu1  ;;  %v11103_v30 = vpop.f32.mrf.mxu0 }
 0x64b   : > { %12286 = vst.msk [vmem:[%s16377_s26 + $0x80] sm:$0xff] %vm3596_vm4, %v12241_v4  ;;  %v12197_v14 = vadd.f32 %v19165_v15, %v12145_v3  ;;  %12102 = vst.msk [vmem:[%s16377_s26 + $0x98] sm:$0xff] %vm3596_vm4, %v12057_v11  ;;  %v11303_v0 = vld [vmem:[%s16377_s26 + $0xa8] sm:$0xff] }
 0x64c   : > { %11260 = vst.msk [vmem:[%s16377_s26 + $0xb8] sm:$0xff] %vm3596_vm4, %v11215_v2  ;;  %v11936_v16 = vpop.f32.mrf.mxu1  ;;  %v11106_v17 = vpop.f32.mrf.mxu0  ;;  %v10559_v11 = vld [vmem:[%s16377_s26 + $0xe8] sm:$0xff] }
 0x64d   : > { %v12242_v49 = vmax.f32 %v12197_v14, 0.0  ;;  %v12058_v55 = vadd.f32 %v11936_v16, %v11302_v50  ;;  %v11216_v32 = vadd.f32 %v11106_v17, %v10554_v52 }
 0x64e   : > { %v12146_v28 = vld [vmem:[%s16377_s26 + $0x90] sm:$0xff]  ;;  %v11938_v46 = vpop.f32.mrf.mxu1  ;;  %v11108_v35 = vpop.f32.mrf.mxu0 }
 0x64f   : > { %12287 = vst.msk [vmem:[%s16377_s26 + $0x88] sm:$0xff] %vm3596_vm4, %v12242_v49  ;;  %v12198_v59 = vadd.f32 %v19165_v15, %v12146_v28  ;;  %12103 = vst.msk [vmem:[%s16377_s26 + $0xa0] sm:$0xff] %vm3596_vm4, %v12058_v55  ;;  %v11304_v60 = vld [vmem:[%s16377_s26 + $0xb0] sm:$0xff] }
 0x650   : > { %11261 = vst.msk [vmem:[%s16377_s26 + $0xc0] sm:$0xff] %vm3596_vm4, %v11216_v32  ;;  %v11939_v45 = vpop.f32.mrf.mxu1  ;;  %v11109_v41 = vpop.f32.mrf.mxu0  ;;  %v10560_v55 = vld [vmem:[%s16377_s26 + $0xf0] sm:$0xff] }
 0x651   : > { %v12243_v40 = vmax.f32 %v12198_v59, 0.0  ;;  %v12059_v29 = vadd.f32 %v11939_v45, %v11303_v0  ;;  %v11217_v26 = vadd.f32 %v11109_v41, %v10555_v23 }
 0x652   : > { %v12147_v47 = vld [vmem:[%s16377_s26 + $0x98] sm:$0xff]  ;;  %v11941_v43 = vpop.f32.mrf.mxu1  ;;  %v11111_v61 = vpop.f32.mrf.mxu0 }
 0x653   : > { %12288 = vst.msk [vmem:[%s16377_s26 + $0x90] sm:$0xff] %vm3596_vm4, %v12243_v40  ;;  %v12199_v25 = vadd.f32 %v19165_v15, %v12147_v47  ;;  %12104 = vst.msk [vmem:[%s16377_s26 + $0xa8] sm:$0xff] %vm3596_vm4, %v12059_v29  ;;  %v11305_v18 = vld [vmem:[%s16377_s26 + $0xb8] sm:$0xff] }
 0x654   : > { %11262 = vst.msk [vmem:[%s16377_s26 + $0xc8] sm:$0xff] %vm3596_vm4, %v11217_v26  ;;  %v11944_v62 = vpop.f32.mrf.mxu1  ;;  %v11114_v13 = vpop.f32.mrf.mxu0  ;;  %v10561_v29 = vld [vmem:[%s16377_s26 + $0xf8] sm:$0xff] }
 0x655   : > { %v12244_v31 = vmax.f32 %v12199_v25, 0.0  ;;  %v12060_v27 = vadd.f32 %v11944_v62, %v11304_v60  ;;  %v11218_v57 = vadd.f32 %v11114_v13, %v10556_v6 }
 0x656   : > { %v12148_v37 = vld [vmem:[%s16377_s26 + $0xa0] sm:$0xff]  ;;  %v11946_v5 = vpop.f32.mrf.mxu1  ;;  %v11116_v9 = vpop.f32.mrf.mxu0 }
 0x657   : > { %12289 = vst.msk [vmem:[%s16377_s26 + $0x98] sm:$0xff] %vm3596_vm4, %v12244_v31  ;;  %v12200_v34 = vadd.f32 %v19165_v15, %v12148_v37  ;;  %12105 = vst.msk [vmem:[%s16377_s26 + $0xb0] sm:$0xff] %vm3596_vm4, %v12060_v27  ;;  %v11306_v22 = vld [vmem:[%s16377_s26 + $0xc0] sm:$0xff] }
 0x658   : > { %11263 = vst.msk [vmem:[%s16377_s26 + $0xd0] sm:$0xff] %vm3596_vm4, %v11218_v57  ;;  %v11947_v24 = vpop.f32.mrf.mxu1  ;;  %v11117_v8 = vpop.f32.mrf.mxu0  ;;  %v10562_v27 = vld [vmem:[%s16377_s26 + $0x100] sm:$0xff] }
 0x659   : > { %v12245_v53 = vmax.f32 %v12200_v34, 0.0  ;;  %v12061_v36 = vadd.f32 %v11947_v24, %v11305_v18  ;;  %v11219_v56 = vadd.f32 %v11117_v8, %v10557_v33 }
 0x65a   : > { %v12149_v63 = vld [vmem:[%s16377_s26 + $0xa8] sm:$0xff]  ;;  %v11949_v51 = vpop.f32.mrf.mxu1  ;;  %v11119_v42 = vpop.f32.mrf.mxu0 }
 0x65b   : > { %12290 = vst.msk [vmem:[%s16377_s26 + $0xa0] sm:$0xff] %vm3596_vm4, %v12245_v53  ;;  %v12201_v20 = vadd.f32 %v19165_v15, %v12149_v63  ;;  %12106 = vst.msk [vmem:[%s16377_s26 + $0xb8] sm:$0xff] %vm3596_vm4, %v12061_v36  ;;  %v11307_v7 = vld [vmem:[%s16377_s26 + $0xc8] sm:$0xff] }
 0x65c   : > { %11264 = vst.msk [vmem:[%s16377_s26 + $0xd8] sm:$0xff] %vm3596_vm4, %v11219_v56  ;;  %v11952_v48 = vpop.f32.mrf.mxu1  ;;  %v11122_v38 = vpop.f32.mrf.mxu0  ;;  %v10563_v36 = vld [vmem:[%s16377_s26 + $0x108] sm:$0xff] }
 0x65d   : > { %v12246_v54 = vmax.f32 %v12201_v20, 0.0  ;;  %v12062_v1 = vadd.f32 %v11952_v48, %v11306_v22  ;;  %v11220_v39 = vadd.f32 %v11122_v38, %v10558_v21 }
 0x65e   : > { %v12150_v44 = vld [vmem:[%s16377_s26 + $0xb0] sm:$0xff]  ;;  %v11954_v10 = vpop.f32.mrf.mxu1  ;;  %v11124_v19 = vpop.f32.mrf.mxu0 }
 0x65f   : > { %12291 = vst.msk [vmem:[%s16377_s26 + $0xa8] sm:$0xff] %vm3596_vm4, %v12246_v54  ;;  %v12202_v12 = vadd.f32 %v19165_v15, %v12150_v44  ;;  %12107 = vst.msk [vmem:[%s16377_s26 + $0xc0] sm:$0xff] %vm3596_vm4, %v12062_v1  ;;  %v11308_v16 = vld [vmem:[%s16377_s26 + $0xd0] sm:$0xff] }
 0x660   : > { %11265 = vst.msk [vmem:[%s16377_s26 + $0xe0] sm:$0xff] %vm3596_vm4, %v11220_v39  ;;  %v11955_v4 = vpop.f32.mrf.mxu1  ;;  %v11125_v2 = vpop.f32.mrf.mxu0  ;;  %v10564_v1 = vld [vmem:[%s16377_s26 + $0x110] sm:$0xff] }
 0x661   : > { %v12247_v3 = vmax.f32 %v12202_v12, 0.0  ;;  %v12063_v58 = vadd.f32 %v11955_v4, %v11307_v7  ;;  %v11221_v50 = vadd.f32 %v11125_v2, %v10559_v11 }
 0x662   : > { %v12151_v30 = vld [vmem:[%s16377_s26 + $0xb8] sm:$0xff]  ;;  %v11957_v14 = vpop.f32.mrf.mxu1  ;;  %v11127_v52 = vpop.f32.mrf.mxu0 }
 0x663   : > { %12292 = vst.msk [vmem:[%s16377_s26 + $0xb0] sm:$0xff] %vm3596_vm4, %v12247_v3  ;;  %v12203_v17 = vadd.f32 %v19165_v15, %v12151_v30  ;;  %12108 = vst.msk [vmem:[%s16377_s26 + $0xc8] sm:$0xff] %vm3596_vm4, %v12063_v58  ;;  %v11309_v45 = vld [vmem:[%s16377_s26 + $0xd8] sm:$0xff] }
 0x664   : > { %11266 = vst.msk [vmem:[%s16377_s26 + $0xe8] sm:$0xff] %vm3596_vm4, %v11221_v50  ;;  %v11960_v49 = vpop.f32.mrf.mxu1  ;;  %v11130_v32 = vpop.f32.mrf.mxu0  ;;  %v10565_v58 = vld [vmem:[%s16377_s26 + $0x118] sm:$0xff] }
 0x665   : > { %v12248_v28 = vmax.f32 %v12203_v17, 0.0  ;;  %v12064_v46 = vadd.f32 %v11960_v49, %v11308_v16  ;;  %v11222_v0 = vadd.f32 %v11130_v32, %v10560_v55 }
 0x666   : > { %v12152_v35 = vld [vmem:[%s16377_s26 + $0xc0] sm:$0xff]  ;;  %v11962_v59 = vpop.f32.mrf.mxu1  ;;  %v11132_v23 = vpop.f32.mrf.mxu0 }
 0x667   : > { %12293 = vst.msk [vmem:[%s16377_s26 + $0xb8] sm:$0xff] %vm3596_vm4, %v12248_v28  ;;  %v12204_v41 = vadd.f32 %v19165_v15, %v12152_v35  ;;  %12109 = vst.msk [vmem:[%s16377_s26 + $0xd0] sm:$0xff] %vm3596_vm4, %v12064_v46  ;;  %v11310_v62 = vld [vmem:[%s16377_s26 + $0xe0] sm:$0xff] }
 0x668   : > { %11267 = vst.msk [vmem:[%s16377_s26 + $0xf0] sm:$0xff] %vm3596_vm4, %v11222_v0  ;;  %v11963_v40 = vpop.f32.mrf.mxu1  ;;  %v11133_v26 = vpop.f32.mrf.mxu0  ;;  %v10566_v46 = vld [vmem:[%s16377_s26 + $0x120] sm:$0xff] }
 0x669   : > { %v12249_v47 = vmax.f32 %v12204_v41, 0.0  ;;  %v12065_v43 = vadd.f32 %v11963_v40, %v11309_v45  ;;  %v11223_v60 = vadd.f32 %v11133_v26, %v10561_v29 }
 0x66a   : > { %v12153_v61 = vld [vmem:[%s16377_s26 + $0xc8] sm:$0xff]  ;;  %v11965_v25 = vpop.f32.mrf.mxu1  ;;  %v11135_v6 = vpop.f32.mrf.mxu0 }
 0x66b   : > { %12294 = vst.msk [vmem:[%s16377_s26 + $0xc0] sm:$0xff] %vm3596_vm4, %v12249_v47  ;;  %v12205_v13 = vadd.f32 %v19165_v15, %v12153_v61  ;;  %12110 = vst.msk [vmem:[%s16377_s26 + $0xd8] sm:$0xff] %vm3596_vm4, %v12065_v43  ;;  %v11311_v24 = vld [vmem:[%s16377_s26 + $0xe8] sm:$0xff] }
 0x66c   : > { %11268 = vst.msk [vmem:[%s16377_s26 + $0xf8] sm:$0xff] %vm3596_vm4, %v11223_v60  ;;  %v11968_v31 = vpop.f32.mrf.mxu1  ;;  %v11138_v57 = vpop.f32.mrf.mxu0  ;;  %v10567_v43 = vld [vmem:[%s16377_s26 + $0x128] sm:$0xff] }
 0x66d   : > { %v12250_v37 = vmax.f32 %v12205_v13, 0.0  ;;  %v12066_v5 = vadd.f32 %v11968_v31, %v11310_v62  ;;  %v11224_v18 = vadd.f32 %v11138_v57, %v10562_v27 }
 0x66e   : > { %v12154_v9 = vld [vmem:[%s16377_s26 + $0xd0] sm:$0xff]  ;;  %v11970_v34 = vpop.f32.mrf.mxu1  ;;  %v11140_v33 = vpop.f32.mrf.mxu0 }
 0x66f   : > { %12295 = vst.msk [vmem:[%s16377_s26 + $0xc8] sm:$0xff] %vm3596_vm4, %v12250_v37  ;;  %v12206_v8 = vadd.f32 %v19165_v15, %v12154_v9  ;;  %12111 = vst.msk [vmem:[%s16377_s26 + $0xe0] sm:$0xff] %vm3596_vm4, %v12066_v5  ;;  %v11312_v48 = vld [vmem:[%s16377_s26 + $0xf0] sm:$0xff] }
 0x670   : > { %11269 = vst.msk [vmem:[%s16377_s26 + $0x100] sm:$0xff] %vm3596_vm4, %v11224_v18  ;;  %v11971_v53 = vpop.f32.mrf.mxu1  ;;  %v11141_v56 = vpop.f32.mrf.mxu0  ;;  %v10568_v5 = vld [vmem:[%s16377_s26 + $0x130] sm:$0xff] }
 0x671   : > { %v12251_v63 = vmax.f32 %v12206_v8, 0.0  ;;  %v12067_v51 = vadd.f32 %v11971_v53, %v11311_v24  ;;  %v11225_v22 = vadd.f32 %v11141_v56, %v10563_v36 }
 0x672   : > { %v12155_v42 = vld [vmem:[%s16377_s26 + $0xd8] sm:$0xff]  ;;  %v11973_v20 = vpop.f32.mrf.mxu1  ;;  %v11143_v21 = vpop.f32.mrf.mxu0 }
 0x673   : > { %12296 = vst.msk [vmem:[%s16377_s26 + $0xd0] sm:$0xff] %vm3596_vm4, %v12251_v63  ;;  %v12207_v38 = vadd.f32 %v19165_v15, %v12155_v42  ;;  %12112 = vst.msk [vmem:[%s16377_s26 + $0xe8] sm:$0xff] %vm3596_vm4, %v12067_v51  ;;  %v11313_v4 = vld [vmem:[%s16377_s26 + $0xf8] sm:$0xff] }
 0x674   : > { %11270 = vst.msk [vmem:[%s16377_s26 + $0x108] sm:$0xff] %vm3596_vm4, %v11225_v22  ;;  %v11976_v54 = vpop.f32.mrf.mxu1  ;;  %v11146_v39 = vpop.f32.mrf.mxu0  ;;  %v10569_v51 = vld [vmem:[%s16377_s26 + $0x138] sm:$0xff] }
 0x675   : > { %v12252_v44 = vmax.f32 %v12207_v38, 0.0  ;;  %v12068_v10 = vadd.f32 %v11976_v54, %v11312_v48  ;;  %v11226_v7 = vadd.f32 %v11146_v39, %v10564_v1 }
 0x676   : > { %v12156_v19 = vld [vmem:[%s16377_s26 + $0xe0] sm:$0xff]  ;;  %v11978_v12 = vpop.f32.mrf.mxu1  ;;  %v11148_v11 = vpop.f32.mrf.mxu0 }
 0x677   : > { %12297 = vst.msk [vmem:[%s16377_s26 + $0xd8] sm:$0xff] %vm3596_vm4, %v12252_v44  ;;  %v12208_v2 = vadd.f32 %v19165_v15, %v12156_v19  ;;  %12113 = vst.msk [vmem:[%s16377_s26 + $0xf0] sm:$0xff] %vm3596_vm4, %v12068_v10  ;;  %v11314_v49 = vld [vmem:[%s16377_s26 + $0x100] sm:$0xff] }
 0x678   : > { %11271 = vst.msk [vmem:[%s16377_s26 + $0x110] sm:$0xff] %vm3596_vm4, %v11226_v7  ;;  %v11979_v3 = vpop.f32.mrf.mxu1  ;;  %v11149_v50 = vpop.f32.mrf.mxu0  ;;  %v10570_v10 = vld [vmem:[%s16377_s26 + $0x140] sm:$0xff] }
 0x679   : > { %v12253_v30 = vmax.f32 %v12208_v2, 0.0  ;;  %v12069_v14 = vadd.f32 %v11979_v3, %v11313_v4  ;;  %v11227_v16 = vadd.f32 %v11149_v50, %v10565_v58 }
 0x67a   : > { %v12157_v52 = vld [vmem:[%s16377_s26 + $0xe8] sm:$0xff]  ;;  %v11981_v17 = vpop.f32.mrf.mxu1  ;;  %v11151_v55 = vpop.f32.mrf.mxu0 }
 0x67b   : > { %12298 = vst.msk [vmem:[%s16377_s26 + $0xe0] sm:$0xff] %vm3596_vm4, %v12253_v30  ;;  %v12209_v32 = vadd.f32 %v19165_v15, %v12157_v52  ;;  %12114 = vst.msk [vmem:[%s16377_s26 + $0xf8] sm:$0xff] %vm3596_vm4, %v12069_v14  ;;  %v11315_v40 = vld [vmem:[%s16377_s26 + $0x108] sm:$0xff] }
 0x67c   : > { %11272 = vst.msk [vmem:[%s16377_s26 + $0x118] sm:$0xff] %vm3596_vm4, %v11227_v16  ;;  %v11984_v28 = vpop.f32.mrf.mxu1  ;;  %v11154_v0 = vpop.f32.mrf.mxu0  ;;  %v10571_v14 = vld [vmem:[%s16377_s26 + $0x148] sm:$0xff] }
 0x67d   : > { %v12254_v35 = vmax.f32 %v12209_v32, 0.0  ;;  %v12070_v59 = vadd.f32 %v11984_v28, %v11314_v49  ;;  %v11228_v45 = vadd.f32 %v11154_v0, %v10566_v46 }
 0x67e   : > { %v12158_v23 = vld [vmem:[%s16377_s26 + $0xf0] sm:$0xff]  ;;  %v11986_v41 = vpop.f32.mrf.mxu1  ;;  %v11156_v29 = vpop.f32.mrf.mxu0 }
 0x67f   : > { %12299 = vst.msk [vmem:[%s16377_s26 + $0xe8] sm:$0xff] %vm3596_vm4, %v12254_v35  ;;  %v12210_v26 = vadd.f32 %v19165_v15, %v12158_v23  ;;  %12115 = vst.msk [vmem:[%s16377_s26 + $0x100] sm:$0xff] %vm3596_vm4, %v12070_v59  ;;  %v11316_v31 = vld [vmem:[%s16377_s26 + $0x110] sm:$0xff] }
 0x680   : > { %11273 = vst.msk [vmem:[%s16377_s26 + $0x120] sm:$0xff] %vm3596_vm4, %v11228_v45  ;;  %v11987_v47 = vpop.f32.mrf.mxu1  ;;  %v11157_v60 = vpop.f32.mrf.mxu0  ;;  %v10572_v59 = vld [vmem:[%s16377_s26 + $0x150] sm:$0xff] }
 0x681   : > { %v12255_v61 = vmax.f32 %v12210_v26, 0.0  ;;  %v12071_v25 = vadd.f32 %v11987_v47, %v11315_v40  ;;  %v11229_v62 = vadd.f32 %v11157_v60, %v10567_v43 }
 0x682   : > { %v12159_v6 = vld [vmem:[%s16377_s26 + $0xf8] sm:$0xff]  ;;  %v11989_v13 = vpop.f32.mrf.mxu1  ;;  %v11159_v27 = vpop.f32.mrf.mxu0 }
 0x683   : > { %12300 = vst.msk [vmem:[%s16377_s26 + $0xf0] sm:$0xff] %vm3596_vm4, %v12255_v61  ;;  %v12211_v57 = vadd.f32 %v19165_v15, %v12159_v6  ;;  %12116 = vst.msk [vmem:[%s16377_s26 + $0x108] sm:$0xff] %vm3596_vm4, %v12071_v25  ;;  %v11317_v53 = vld [vmem:[%s16377_s26 + $0x118] sm:$0xff] }
 0x684   : > { %11274 = vst.msk [vmem:[%s16377_s26 + $0x128] sm:$0xff] %vm3596_vm4, %v11229_v62  ;;  %v11992_v37 = vpop.f32.mrf.mxu1  ;;  %v11162_v18 = vpop.f32.mrf.mxu0  ;;  %v10573_v25 = vld [vmem:[%s16377_s26 + $0x158] sm:$0xff] }
 0x685   : > { %v12256_v9 = vmax.f32 %v12211_v57, 0.0  ;;  %v12072_v34 = vadd.f32 %v11992_v37, %v11316_v31  ;;  %v11230_v24 = vadd.f32 %v11162_v18, %v10568_v5 }
 0x686   : > { %v12160_v33 = vld [vmem:[%s16377_s26 + $0x100] sm:$0xff]  ;;  %v11994_v8 = vpop.f32.mrf.mxu1  ;;  %v11164_v36 = vpop.f32.mrf.mxu0 }
 0x687   : > { %12301 = vst.msk [vmem:[%s16377_s26 + $0xf8] sm:$0xff] %vm3596_vm4, %v12256_v9  ;;  %v12212_v56 = vadd.f32 %v19165_v15, %v12160_v33  ;;  %12117 = vst.msk [vmem:[%s16377_s26 + $0x110] sm:$0xff] %vm3596_vm4, %v12072_v34  ;;  %v11318_v54 = vld [vmem:[%s16377_s26 + $0x120] sm:$0xff] }
 0x688   : > { %11275 = vst.msk [vmem:[%s16377_s26 + $0x130] sm:$0xff] %vm3596_vm4, %v11230_v24  ;;  %v11995_v63 = vpop.f32.mrf.mxu1  ;;  %v11165_v22 = vpop.f32.mrf.mxu0  ;;  %v10574_v34 = vld [vmem:[%s16377_s26 + $0x160] sm:$0xff] }
 0x689   : > { %v12257_v42 = vmax.f32 %v12212_v56, 0.0  ;;  %v12073_v20 = vadd.f32 %v11995_v63, %v11317_v53  ;;  %v11231_v48 = vadd.f32 %v11165_v22, %v10569_v51 }
 0x68a   : > { %v12161_v21 = vld [vmem:[%s16377_s26 + $0x108] sm:$0xff]  ;;  %v11997_v38 = vpop.f32.mrf.mxu1  ;;  %v11167_v1 = vpop.f32.mrf.mxu0 }
 0x68b   : > { %12302 = vst.msk [vmem:[%s16377_s26 + $0x100] sm:$0xff] %vm3596_vm4, %v12257_v42  ;;  %v12213_v39 = vadd.f32 %v19165_v15, %v12161_v21  ;;  %12118 = vst.msk [vmem:[%s16377_s26 + $0x118] sm:$0xff] %vm3596_vm4, %v12073_v20  ;;  %v11319_v3 = vld [vmem:[%s16377_s26 + $0x128] sm:$0xff] }
 0x68c   : > { %11276 = vst.msk [vmem:[%s16377_s26 + $0x138] sm:$0xff] %vm3596_vm4, %v11231_v48  ;;  %v12000_v44 = vpop.f32.mrf.mxu1  ;;  %v11170_v7 = vpop.f32.mrf.mxu0 }
 0x68d   : > { %v12258_v19 = vmax.f32 %v12213_v39, 0.0  ;;  %v12074_v12 = vadd.f32 %v12000_v44, %v11318_v54  ;;  %v11232_v4 = vadd.f32 %v11170_v7, %v10570_v10 }
 0x68e   : > { %v12162_v11 = vld [vmem:[%s16377_s26 + $0x110] sm:$0xff]  ;;  %v12002_v2 = vpop.f32.mrf.mxu1  ;;  %v11172_v58 = vpop.f32.mrf.mxu0 }
 0x68f   : > { %12303 = vst.msk [vmem:[%s16377_s26 + $0x108] sm:$0xff] %vm3596_vm4, %v12258_v19  ;;  %v12214_v50 = vadd.f32 %v19165_v15, %v12162_v11  ;;  %12119 = vst.msk [vmem:[%s16377_s26 + $0x120] sm:$0xff] %vm3596_vm4, %v12074_v12  ;;  %v11320_v28 = vld [vmem:[%s16377_s26 + $0x130] sm:$0xff] }
 0x690   : > { %11277 = vst.msk [vmem:[%s16377_s26 + $0x140] sm:$0xff] %vm3596_vm4, %v11232_v4  ;;  %v12003_v30 = vpop.f32.mrf.mxu1  ;;  %v11173_v16 = vpop.f32.mrf.mxu0 }
 0x691   : > { %v12259_v52 = vmax.f32 %v12214_v50, 0.0  ;;  %v12075_v17 = vadd.f32 %v12003_v30, %v11319_v3  ;;  %v11233_v49 = vadd.f32 %v11173_v16, %v10571_v14 }
 0x692   : > { %v12163_v55 = vld [vmem:[%s16377_s26 + $0x118] sm:$0xff]  ;;  %v12005_v32 = vpop.f32.mrf.mxu1  ;;  %v11175_v46 = vpop.f32.mrf.mxu0 }
 0x693   : > { %12304 = vst.msk [vmem:[%s16377_s26 + $0x110] sm:$0xff] %vm3596_vm4, %v12259_v52  ;;  %v12215_v0 = vadd.f32 %v19165_v15, %v12163_v55  ;;  %12120 = vst.msk [vmem:[%s16377_s26 + $0x128] sm:$0xff] %vm3596_vm4, %v12075_v17  ;;  %v11321_v47 = vld [vmem:[%s16377_s26 + $0x138] sm:$0xff]  ;;  %v19533_v15 = vld [vmem:[%s19604_s4] ss:$0 sm:$0xff] }
 0x694   : > { %11278 = vst.msk [vmem:[%s16377_s26 + $0x148] sm:$0xff] %vm3596_vm4, %v11233_v49  ;;  %v12008_v35 = vpop.f32.mrf.mxu1  ;;  %v11178_v45 = vpop.f32.mrf.mxu0 }
 0x695   : > { %v12260_v23 = vmax.f32 %v12215_v0, 0.0  ;;  %v12076_v41 = vadd.f32 %v12008_v35, %v11320_v28  ;;  %v11234_v40 = vadd.f32 %v11178_v45, %v10572_v59 }
 0x696   : > { %v12164_v29 = vld [vmem:[%s16377_s26 + $0x120] sm:$0xff]  ;;  %v12010_v26 = vpop.f32.mrf.mxu1  ;;  %v11180_v43 = vpop.f32.mrf.mxu0 }
 0x697   : > { %12305 = vst.msk [vmem:[%s16377_s26 + $0x118] sm:$0xff] %vm3596_vm4, %v12260_v23  ;;  %v12216_v60 = vadd.f32 %v19533_v15, %v12164_v29  ;;  %12121 = vst.msk [vmem:[%s16377_s26 + $0x130] sm:$0xff] %vm3596_vm4, %v12076_v41  ;;  %v11322_v37 = vld [vmem:[%s16377_s26 + $0x140] sm:$0xff] }
 0x698   : > { %11279 = vst.msk [vmem:[%s16377_s26 + $0x150] sm:$0xff] %vm3596_vm4, %v11234_v40  ;;  %v12011_v61 = vpop.f32.mrf.mxu1  ;;  %v11181_v62 = vpop.f32.mrf.mxu0 }
 0x699   : > { %v12261_v6 = vmax.f32 %v12216_v60, 0.0  ;;  %v12077_v13 = vadd.f32 %v12011_v61, %v11321_v47  ;;  %v11235_v31 = vadd.f32 %v11181_v62, %v10573_v25 }
 0x69a   : > { %v12165_v27 = vld [vmem:[%s16377_s26 + $0x128] sm:$0xff]  ;;  %v12013_v57 = vpop.f32.mrf.mxu1  ;;  %v11183_v5 = vpop.f32.mrf.mxu0 }
 0x69b   : > { %12306 = vst.msk [vmem:[%s16377_s26 + $0x120] sm:$0xff] %vm3596_vm4, %v12261_v6  ;;  %v12217_v18 = vadd.f32 %v19533_v15, %v12165_v27  ;;  %12122 = vst.msk [vmem:[%s16377_s26 + $0x138] sm:$0xff] %vm3596_vm4, %v12077_v13  ;;  %v11323_v63 = vld [vmem:[%s16377_s26 + $0x148] sm:$0xff] }
 0x69c   : > { %11280 = vst.msk [vmem:[%s16377_s26 + $0x158] sm:$0xff] %vm3596_vm4, %v11235_v31  ;;  %v12016_v9 = vpop.f32.mrf.mxu1  ;;  %v11186_v24 = vpop.f32.mrf.mxu0 }
 0x69d   : > { %v12262_v33 = vmax.f32 %v12217_v18, 0.0  ;;  %v12078_v8 = vadd.f32 %v12016_v9, %v11322_v37  ;;  %v11236_v53 = vadd.f32 %v11186_v24, %v10574_v34 }
 0x69e   : > { %v12166_v36 = vld [vmem:[%s16377_s26 + $0x130] sm:$0xff]  ;;  %v12018_v56 = vpop.f32.mrf.mxu1  ;;  %v11188_v51 = vpop.f32.mrf.mxu0 }
 0x69f   : > { %12307 = vst.msk [vmem:[%s16377_s26 + $0x128] sm:$0xff] %vm3596_vm4, %v12262_v33  ;;  %v12218_v22 = vadd.f32 %v19533_v15, %v12166_v36  ;;  %12123 = vst.msk [vmem:[%s16377_s26 + $0x140] sm:$0xff] %vm3596_vm4, %v12078_v8  ;;  %v11324_v1 = vld [vmem:[%s16377_s26 + $0x150] sm:$0xff] }
 0x6a0   : > { %11281 = vst.msk [vmem:[%s16377_s26 + $0x160] sm:$0xff] %vm3596_vm4, %v11236_v53  ;;  %v12019_v42 = vpop.f32.mrf.mxu1  ;;  %v11189_v20 = vpop.f32.mrf.mxu0 }
 0x6a1   : > { %v12263_v48 = vmax.f32 %v12218_v22, 0.0  ;;  %v12079_v21 = vadd.f32 %v12019_v42, %v11323_v63 }
 0x6a2   : > { %v12167_v38 = vld [vmem:[%s16377_s26 + $0x138] sm:$0xff]  ;;  %v12021_v54 = vpop.f32.mrf.mxu1  ;;  %v11190_v39 = vpop.f32.mrf.mxu0 }
 0x6a3   : > { %12308 = vst.msk [vmem:[%s16377_s26 + $0x130] sm:$0xff] %vm3596_vm4, %v12263_v48  ;;  %v12219_v44 = vadd.f32 %v19533_v15, %v12167_v38  ;;  %12124 = vst.msk [vmem:[%s16377_s26 + $0x148] sm:$0xff] %vm3596_vm4, %v12079_v21  ;;  %v11325_v11 = vld [vmem:[%s16377_s26 + $0x158] sm:$0xff] }
 0x6a4   : > { %v12024_v10 = vpop.f32.mrf.mxu1 }
 0x6a5   : > { %v12264_v7 = vmax.f32 %v12219_v44, 0.0  ;;  %v12080_v19 = vadd.f32 %v12024_v10, %v11324_v1 }
 0x6a6   : > { %v12168_v12 = vld [vmem:[%s16377_s26 + $0x140] sm:$0xff]  ;;  %v12026_v4 = vpop.f32.mrf.mxu1 }
 0x6a7   : > { %12309 = vst.msk [vmem:[%s16377_s26 + $0x138] sm:$0xff] %vm3596_vm4, %v12264_v7  ;;  %v12220_v2 = vadd.f32 %v19533_v15, %v12168_v12  ;;  %12125 = vst.msk [vmem:[%s16377_s26 + $0x150] sm:$0xff] %vm3596_vm4, %v12080_v19  ;;  %v11326_v16 = vld [vmem:[%s16377_s26 + $0x160] sm:$0xff] }
 0x6a8   : > { %v12027_v3 = vpop.f32.mrf.mxu1 }
 0x6a9   : > { %v12265_v58 = vmax.f32 %v12220_v2, 0.0  ;;  %v12081_v50 = vadd.f32 %v12027_v3, %v11325_v11 }
 0x6aa   : > { %v12169_v30 = vld [vmem:[%s16377_s26 + $0x148] sm:$0xff]  ;;  %v12029_v14 = vpop.f32.mrf.mxu1 }
 0x6ab   : > { %12310 = vst.msk [vmem:[%s16377_s26 + $0x140] sm:$0xff] %vm3596_vm4, %v12265_v58  ;;  %v12221_v52 = vadd.f32 %v19533_v15, %v12169_v30  ;;  %12126 = vst.msk [vmem:[%s16377_s26 + $0x158] sm:$0xff] %vm3596_vm4, %v12081_v50 }
 0x6ac   : > { %v12032_v17 = vpop.f32.mrf.mxu1 }
 0x6ad   : > { %v12266_v49 = vmax.f32 %v12221_v52, 0.0  ;;  %v12082_v55 = vadd.f32 %v12032_v17, %v11326_v16 }
 0x6ae   : > { %v12170_v32 = vld [vmem:[%s16377_s26 + $0x150] sm:$0xff]  ;;  %v12034_v28 = vpop.f32.mrf.mxu1 }
 0x6af   : > { %12311 = vst.msk [vmem:[%s16377_s26 + $0x148] sm:$0xff] %vm3596_vm4, %v12266_v49  ;;  %v12222_v46 = vadd.f32 %v19533_v15, %v12170_v32  ;;  %12127 = vst.msk [vmem:[%s16377_s26 + $0x160] sm:$0xff] %vm3596_vm4, %v12082_v55 }
 0x6b0   : > { %v12035_v0 = vpop.f32.mrf.mxu1 }
 0x6b1   : > { %v12267_v35 = vmax.f32 %v12222_v46, 0.0 }
 0x6b2   : > { %v12171_v59 = vld [vmem:[%s16377_s26 + $0x158] sm:$0xff]  ;;  %v12036_v45 = vpop.f32.mrf.mxu1 }
 0x6b3   : > { %12312 = vst.msk [vmem:[%s16377_s26 + $0x150] sm:$0xff] %vm3596_vm4, %v12267_v35  ;;  %v12223_v23 = vadd.f32 %v19533_v15, %v12171_v59 }
 0x6b5   : > { %v12268_v41 = vmax.f32 %v12223_v23, 0.0 }
 0x6b6   : > { %v12172_v40 = vld [vmem:[%s16377_s26 + $0x160] sm:$0xff] }
 0x6b7   : > { %12313 = vst.msk [vmem:[%s16377_s26 + $0x158] sm:$0xff] %vm3596_vm4, %v12268_v41  ;;  %v12224_v29 = vadd.f32 %v19533_v15, %v12172_v40 }
 0x6b9   : > { %v12269_v26 = vmax.f32 %v12224_v29, 0.0 }
 0x6bb   : > { %12314 = vst.msk [vmem:[%s16377_s26 + $0x160] sm:$0xff] %vm3596_vm4, %v12269_v26 }
 0x6bc PF: > { %s15_s18 = sadd.s32 1, %s14545_s18  }
 0x6bd   : > { %p12_p4 = scmp.ge.s32.totalorder %s15_s18, 4  }
 0x6bf   :  { %14 = sbr.rel (!%p12_p4) target bundleno = 1 (0x1), region = 82 }

</bundles_post_ra>
